<compile_context>
chip_gen: v6e
topology: v6e:2x2x1
jax: 0.10.0
libtpu: 0.0.40
codegen_flags: <defaults>
</compile_context>

<pallas_src>
import numpy as np
import jax
import jax.numpy as jnp
from jax.experimental import pallas as pl
from jax.experimental.pallas import tpu as pltpu

_K = 5         # conv kernel size (5x5 from the module spec)
_CONV_PAD = 1  # conv padding
_POOL_PAD = 1  # maxpool padding


# --------------------------- static shape bookkeeping ---------------------------

def _dims(in_spatial):
    s0 = in_spatial
    c1_in = s0 + 2 * _CONV_PAD                         # 34 (padded conv1 input)
    c1_out = c1_in - _K + 1                            # 30
    p1_out = (c1_out + 2 * _POOL_PAD - 2) // 2 + 1     # 16
    c2_in = p1_out + 2 * _CONV_PAD                     # 18 (padded conv2 input)
    c2_out = c2_in - _K + 1                            # 14
    p2_out = (c2_out + 2 * _POOL_PAD - 2) // 2 + 1     # 8
    pitch1, pitch2 = c1_in, c2_in                      # flat row pitch of each conv input
    return dict(
        c1_out=c1_out, p1_out=p1_out, c2_out=c2_out, p2_out=p2_out,
        pitch1=pitch1, pitch2=pitch2,
        l_in1=c1_in * c1_in,                           # 1156: flattened padded conv1 input
        l_c1=(c1_out - 1) * pitch1 + c1_out,           # 1016: flat conv1 output (pitch 34)
        l_p1=c2_in * c2_in,                            # 324 : pooled+re-padded conv2 input
        l_c2=(c2_out - 1) * pitch2 + c2_out,           # 248 : flat conv2 output (pitch 18)
        l_p2=p2_out * p2_out,                          # 64  : pooled map, (C,H,W) flatten order
    )


def _pool_select_mats(h_in, w_in, pitch_in, l_in, n_out, pitch_out, l_out, out_off):
    """4 one-hot gather matrices implementing MaxPool2d(2, stride=2, padding=1) on a
    flat-pitch conv output.  Window elements that fall in the implicit -inf padding are
    replaced by the nearest valid element (max(a, a) == a).  Output columns that belong
    to the next conv's zero padding (border when out_off=1) stay all-zero."""
    mats = np.zeros((4, l_in, l_out), np.float32)
    k = 0
    for dy in (-1, 0):
        for dx in (-1, 0):
            for i in range(n_out):
                r = min(max(2 * i + dy, 0), h_in - 1)
                for j in range(n_out):
                    c = min(max(2 * j + dx, 0), w_in - 1)
                    mats[k, r * pitch_in + c, (i + out_off) * pitch_out + (j + out_off)] = 1.0
            k += 1
    return mats


# ------------------------ one-time parameter preparation ------------------------

def prepare_params(params, in_spatial=32):
    """Hoisted out of the forward pass: weight transposes/reshapes, bf16 casts and the
    constant pooling gather matrices."""
    d = _dims(in_spatial)
    conv1, conv2 = params["conv1"], params["conv2"]
    fc1, fc2 = params["fc1"], params["fc2"]
    c1, cin = conv1.shape[0], conv1.shape[1]
    c2 = conv2.shape[0]
    nh = fc1.shape[0]
    assert fc1.shape[1] == c2 * d["l_p2"], "fc1 expects 32x32 input (8x8 after 2x conv+pool)"

    # conv weights: (Cout, Cin, kh, kw) -> (kh*kw, Cout, Cin): each tap is the matmul LHS.
    w1 = jnp.transpose(conv1, (2, 3, 0, 1)).reshape(_K * _K, c1, cin).astype(jnp.bfloat16)
    w2 = jnp.transpose(conv2, (2, 3, 0, 1)).reshape(_K * _K, c2, c1).astype(jnp.bfloat16)

    # fc1: PyTorch flatten order is (C, H, W); our pooled map is already channel-major
    # (C2, 8*8), so only a per-channel transpose is needed -> no activation transpose.
    fc1_p = jnp.transpose(fc1.reshape(nh, c2, d["l_p2"]), (1, 2, 0)).astype(jnp.bfloat16)
    fc2_p = jnp.asarray(fc2).T.astype(jnp.float32)   # fc2 kept f32 (tiny, less output rounding)

    s1 = jnp.asarray(
        _pool_select_mats(d["c1_out"], d["c1_out"], d["pitch1"], d["l_c1"],
                          d["p1_out"], d["pitch2"], d["l_p1"], 1), dtype=jnp.bfloat16)
    s2 = jnp.asarray(
        _pool_select_mats(d["c2_out"], d["c2_out"], d["pitch2"], d["l_c2"],
                          d["p2_out"], d["p2_out"], d["l_p2"], 0), dtype=jnp.bfloat16)
    return {"w1": w1, "w2": w2, "fc1": fc1_p, "fc2": fc2_p, "s1": s1, "s2": s2}


# ------------------------------- fused forward pass -------------------------------

def cnn2_forward(x_nchw, prep):
    """Pallas CNN2 forward: one fused kernel invocation per image."""
    b, cin, h, w = x_nchw.shape
    assert h == w, "square input expected"
    d = _dims(h)
    kk, c1, cin_w = prep["w1"].shape
    assert cin_w == cin
    c2 = prep["w2"].shape[1]
    nh = prep["fc1"].shape[2]
    ncls = prep["fc2"].shape[1]
    pitch1, pitch2 = d["pitch1"], d["pitch2"]
    l_in1, l_c1, l_c2 = d["l_in1"], d["l_c1"], d["l_c2"]

    # Only input preprocessing stays in XLA: zero-pad the (tiny) network input for conv1,
    # flatten each channel plane into the flat-pitch layout the kernel consumes, and cast
    # to bf16 once here (was per-tap in-kernel) -> halves the input DMA as well.
    xp = jnp.pad(x_nchw, ((0, 0), (0, 0), (_CONV_PAD, _CONV_PAD), (_CONV_PAD, _CONV_PAD)))
    xf = xp.reshape(b, cin, l_in1).astype(jnp.bfloat16)

    def kernel(x_ref, w1_ref, w2_ref, s1_ref, s2_ref, fc1_ref, fc2_ref, o_ref):
        bf16, f32 = jnp.bfloat16, jnp.float32

        def conv_relu(src, w_ref, pitch, length):
            # 5x5 conv as 25 accumulated (Cout, Cin) @ (Cin, length) MXU matmuls on the
            # flat-pitch, zero-padded bf16 input kept in VMEM (lane-dense f32 accumulator).
            acc = None
            for ki in range(_K):
                for kj in range(_K):
                    off = ki * pitch + kj
                    rhs = src[:, off:off + length]            # bf16, no per-tap cast
                    t = jnp.dot(w_ref[ki * _K + kj], rhs, preferred_element_type=f32)
                    acc = t if acc is None else acc + t
            return jnp.maximum(acc, 0.0).astype(bf16)

        def maxpool(act, s_ref):
            # MaxPool2d(2, stride 2, padding=1) fused as 4 one-hot gather matmuls; each
            # selects one 2x2-window element per output position (bf16 values selected
            # exactly into an f32 result), their elementwise max is the pooled map.
            out = jnp.dot(act, s_ref[0], preferred_element_type=f32)
            for k in range(1, 4):
                out = jnp.maximum(out, jnp.dot(act, s_ref[k], preferred_element_type=f32))
            return out.astype(bf16)   # exact: selected values are already bf16 values

        a1 = conv_relu(x_ref[0], w1_ref, pitch1, l_c1)     # (C1, 1016)  conv1 + ReLU
        p1 = maxpool(a1, s1_ref)                           # (C1, 324)   pool1, already re-padded
        a2 = conv_relu(p1, w2_ref, pitch2, l_c2)           # (C2, 248)   conv2 + ReLU
        p2 = maxpool(a2, s2_ref)                           # (C2, 64)    pool2, PyTorch flatten order

        # fc1 + ReLU (channel-wise contraction unrolled), then fc2 in f32.
        hid = None
        for c in range(c2):
            t = jnp.dot(p2[c:c + 1, :], fc1_ref[c], preferred_element_type=f32)
            hid = t if hid is None else hid + t
        hid = jnp.maximum(hid, 0.0)                        # (1, NH) f32
        o_ref[0] = jnp.dot(hid, fc2_ref[...],
                           preferred_element_type=f32).astype(o_ref.dtype)

    def full_spec(arr):
        nd = arr.ndim
        return pl.BlockSpec(arr.shape, lambda i, _nd=nd: (0,) * _nd)

    out = pl.pallas_call(
        kernel,
        out_shape=jax.ShapeDtypeStruct((b, 1, ncls), jnp.float32),
        grid=(b,),
        in_specs=[
            pl.BlockSpec((1, cin, l_in1), lambda i: (i, 0, 0)),   # one image per grid step
            full_spec(prep["w1"]),
            full_spec(prep["w2"]),
            full_spec(prep["s1"]),
            full_spec(prep["s2"]),
            full_spec(prep["fc1"]),
            full_spec(prep["fc2"]),
        ],
        out_specs=pl.BlockSpec((1, 1, ncls), lambda i: (i, 0, 0)),
        compiler_params=pltpu.CompilerParams(
            dimension_semantics=("parallel",),            # batch across TCs on v7x
            vmem_limit_bytes=32 * 1024 * 1024),           # explicit, portable VMEM budget
    )(xf, prep["w1"], prep["w2"], prep["s1"], prep["s2"], prep["fc1"], prep["fc2"])
    return out.reshape(b, ncls)


# --------------------------------- JAX reference ---------------------------------

def cnn2_reference(x, params):
    prec = jax.lax.Precision.HIGHEST

    def conv(inp, w):
        return jax.lax.conv_general_dilated(
            inp, w, window_strides=(1, 1), padding=((1, 1), (1, 1)),
            dimension_numbers=("NCHW", "OIHW", "NCHW"), precision=prec)

    def pool(inp):
        return jax.lax.reduce_window(
            inp, -jnp.inf, jax.lax.max,
            window_dimensions=(1, 1, 2, 2), window_strides=(1, 1, 2, 2),
            padding=((0, 0), (0, 0), (1, 1), (1, 1)))

    h = jax.nn.relu(conv(x, params["conv1"]))
    h = pool(h)
    h = jax.nn.relu(conv(h, params["conv2"]))
    h = pool(h)
    h = h.reshape(h.shape[0], -1)
    h = jax.nn.relu(jnp.dot(h, params["fc1"].T, precision=prec))
    return jnp.dot(h, params["fc2"].T, precision=prec)


# -------------------------------------- main --------------------------------------

if __name__ == "__main__":
    key = jax.random.PRNGKey(0)
    kx, k1, k2, k3, k4 = jax.random.split(key, 5)

    batch, in_channels, spatial = 2, 3, 32       # spatial=32 forced by fc1 (8*8 after 2x conv+pool)
    hidden_channels, num_hiddens, num_classes = 4, 32, 10

    x = jax.random.normal(kx, (batch, in_channels, spatial, spatial), jnp.float32)

    # Deterministic synthetic parameters (PyTorch shapes: OIHW convs, (out,in) linears).
    params = {
        "conv1": 0.05 * jax.random.normal(
            k1, (hidden_channels, in_channels, 5, 5), jnp.float32),
        "conv2": 0.05 * jax.random.normal(
            k2, (hidden_channels * 2, hidden_channels, 5, 5), jnp.float32),
        "fc1": 0.05 * jax.random.normal(
            k3, (num_hiddens, hidden_channels * 2 * 8 * 8), jnp.float32),
        "fc2": 0.05 * jax.random.normal(
            k4, (num_classes, num_hiddens), jnp.float32),
    }

    prep = prepare_params(params, in_spatial=spatial)     # one-time weight prep (hoisted)
    fwd = jax.jit(cnn2_forward)

    out = jax.block_until_ready(fwd(x, prep))
    ref = jax.block_until_ready(cnn2_reference(x, params))

    assert out.shape == (batch, num_classes), out.shape
    # bf16 MXU inputs (f32 accumulation) => slightly looser tolerance than pure f32.
    if not np.allclose(np.asarray(out), np.asarray(ref), rtol=2e-2, atol=5e-3):
        diff = float(np.max(np.abs(np.asarray(out) - np.asarray(ref))))
        raise AssertionError(
            f"Pallas CNN2 output mismatch vs JAX reference (max abs diff {diff:.3e})")
    print("KERNEL_OK")
</pallas_src>

<mosaic_0001>
module attributes {stable_mosaic.version = 11 : i64} {
  func.func @kernel(%arg0: i32, %arg1: memref<1x3x1156xbf16, #tpu.memory_space<vmem>>, %arg2: memref<25x4x3xbf16, #tpu.memory_space<vmem>>, %arg3: memref<25x8x4xbf16, #tpu.memory_space<vmem>>, %arg4: memref<4x1016x324xbf16, #tpu.memory_space<vmem>>, %arg5: memref<4x248x64xbf16, #tpu.memory_space<vmem>>, %arg6: memref<8x64x32xbf16, #tpu.memory_space<vmem>>, %arg7: memref<32x10xf32, #tpu.memory_space<vmem>>, %arg8: memref<1x1x10xf32, #tpu.memory_space<vmem>>) attributes {dimension_semantics = [#tpu.dimension_semantics<parallel>], iteration_bounds = array<i64: 2>, scalar_prefetch = 0 : i64, scratch_operands = 0 : i64, tpu.core_type = #tpu.core_type<tc>, window_params = [{transform_indices = @transform_0, window_bounds = array<i64: 1, 3, 1156>}, {pipeline_mode = #tpu.pipeline_mode<synchronous>, transform_indices = @transform_1, window_bounds = array<i64: 25, 4, 3>}, {pipeline_mode = #tpu.pipeline_mode<synchronous>, transform_indices = @transform_2, window_bounds = array<i64: 25, 8, 4>}, {pipeline_mode = #tpu.pipeline_mode<synchronous>, transform_indices = @transform_3, window_bounds = array<i64: 4, 1016, 324>}, {pipeline_mode = #tpu.pipeline_mode<synchronous>, transform_indices = @transform_4, window_bounds = array<i64: 4, 248, 64>}, {pipeline_mode = #tpu.pipeline_mode<synchronous>, transform_indices = @transform_5, window_bounds = array<i64: 8, 64, 32>}, {pipeline_mode = #tpu.pipeline_mode<synchronous>, transform_indices = @transform_6, window_bounds = array<i64: 32, 10>}, {transform_indices = @transform_7, window_bounds = array<i64: 1, 1, 10>}]} {
    %c0 = arith.constant 0 : index
    %c0_0 = arith.constant 0 : index
    %c0_1 = arith.constant 0 : index
    %0 = vector.load %arg1[%c0, %c0_0, %c0_1] : memref<1x3x1156xbf16, #tpu.memory_space<vmem>>, vector<1x3x1156xbf16>
    %1 = vector.shape_cast %0 : vector<1x3x1156xbf16> to vector<3x1156xbf16>
    %2 = vector.extract_strided_slice %1 {offsets = [0, 0], sizes = [3, 1016], strides = [1, 1]} : vector<3x1156xbf16> to vector<3x1016xbf16>
    %c0_2 = arith.constant 0 : index
    %c0_3 = arith.constant 0 : index
    %c0_4 = arith.constant 0 : index
    %3 = vector.load %arg2[%c0_2, %c0_3, %c0_4] : memref<25x4x3xbf16, #tpu.memory_space<vmem>>, vector<1x4x3xbf16>
    %4 = vector.shape_cast %3 : vector<1x4x3xbf16> to vector<4x3xbf16>
    %cst = arith.constant dense<0.000000e+00> : vector<4x1016xf32>
    %5 = tpu.matmul %4, %2, %cst {dimension_numbers = #tpu.dot_dimension_numbers<[1], [0], [0], [1], [0, 0, 1, 1], [], []>} : vector<4x3xbf16>, vector<3x1016xbf16>, vector<4x1016xf32> -> vector<4x1016xf32>
    %6 = vector.extract_strided_slice %1 {offsets = [0, 1], sizes = [3, 1016], strides = [1, 1]} : vector<3x1156xbf16> to vector<3x1016xbf16>
    %c1 = arith.constant 1 : index
    %c0_5 = arith.constant 0 : index
    %c0_6 = arith.constant 0 : index
    %7 = vector.load %arg2[%c1, %c0_5, %c0_6] : memref<25x4x3xbf16, #tpu.memory_space<vmem>>, vector<1x4x3xbf16>
    %8 = vector.shape_cast %7 : vector<1x4x3xbf16> to vector<4x3xbf16>
    %cst_7 = arith.constant dense<0.000000e+00> : vector<4x1016xf32>
    %9 = tpu.matmul %8, %6, %cst_7 {dimension_numbers = #tpu.dot_dimension_numbers<[1], [0], [0], [1], [0, 0, 1, 1], [], []>} : vector<4x3xbf16>, vector<3x1016xbf16>, vector<4x1016xf32> -> vector<4x1016xf32>
    %10 = arith.addf %5, %9 : vector<4x1016xf32>
    %11 = vector.extract_strided_slice %1 {offsets = [0, 2], sizes = [3, 1016], strides = [1, 1]} : vector<3x1156xbf16> to vector<3x1016xbf16>
    %c2 = arith.constant 2 : index
    %c0_8 = arith.constant 0 : index
    %c0_9 = arith.constant 0 : index
    %12 = vector.load %arg2[%c2, %c0_8, %c0_9] : memref<25x4x3xbf16, #tpu.memory_space<vmem>>, vector<1x4x3xbf16>
    %13 = vector.shape_cast %12 : vector<1x4x3xbf16> to vector<4x3xbf16>
    %cst_10 = arith.constant dense<0.000000e+00> : vector<4x1016xf32>
    %14 = tpu.matmul %13, %11, %cst_10 {dimension_numbers = #tpu.dot_dimension_numbers<[1], [0], [0], [1], [0, 0, 1, 1], [], []>} : vector<4x3xbf16>, vector<3x1016xbf16>, vector<4x1016xf32> -> vector<4x1016xf32>
    %15 = arith.addf %10, %14 : vector<4x1016xf32>
    %16 = vector.extract_strided_slice %1 {offsets = [0, 3], sizes = [3, 1016], strides = [1, 1]} : vector<3x1156xbf16> to vector<3x1016xbf16>
    %c3 = arith.constant 3 : index
    %c0_11 = arith.constant 0 : index
    %c0_12 = arith.constant 0 : index
    %17 = vector.load %arg2[%c3, %c0_11, %c0_12] : memref<25x4x3xbf16, #tpu.memory_space<vmem>>, vector<1x4x3xbf16>
    %18 = vector.shape_cast %17 : vector<1x4x3xbf16> to vector<4x3xbf16>
    %cst_13 = arith.constant dense<0.000000e+00> : vector<4x1016xf32>
    %19 = tpu.matmul %18, %16, %cst_13 {dimension_numbers = #tpu.dot_dimension_numbers<[1], [0], [0], [1], [0, 0, 1, 1], [], []>} : vector<4x3xbf16>, vector<3x1016xbf16>, vector<4x1016xf32> -> vector<4x1016xf32>
    %20 = arith.addf %15, %19 : vector<4x1016xf32>
    %21 = vector.extract_strided_slice %1 {offsets = [0, 4], sizes = [3, 1016], strides = [1, 1]} : vector<3x1156xbf16> to vector<3x1016xbf16>
    %c4 = arith.constant 4 : index
    %c0_14 = arith.constant 0 : index
    %c0_15 = arith.constant 0 : index
    %22 = vector.load %arg2[%c4, %c0_14, %c0_15] : memref<25x4x3xbf16, #tpu.memory_space<vmem>>, vector<1x4x3xbf16>
    %23 = vector.shape_cast %22 : vector<1x4x3xbf16> to vector<4x3xbf16>
    %cst_16 = arith.constant dense<0.000000e+00> : vector<4x1016xf32>
    %24 = tpu.matmul %23, %21, %cst_16 {dimension_numbers = #tpu.dot_dimension_numbers<[1], [0], [0], [1], [0, 0, 1, 1], [], []>} : vector<4x3xbf16>, vector<3x1016xbf16>, vector<4x1016xf32> -> vector<4x1016xf32>
    %25 = arith.addf %20, %24 : vector<4x1016xf32>
    %26 = vector.extract_strided_slice %1 {offsets = [0, 34], sizes = [3, 1016], strides = [1, 1]} : vector<3x1156xbf16> to vector<3x1016xbf16>
    %c5 = arith.constant 5 : index
    %c0_17 = arith.constant 0 : index
    %c0_18 = arith.constant 0 : index
    %27 = vector.load %arg2[%c5, %c0_17, %c0_18] : memref<25x4x3xbf16, #tpu.memory_space<vmem>>, vector<1x4x3xbf16>
    %28 = vector.shape_cast %27 : vector<1x4x3xbf16> to vector<4x3xbf16>
    %cst_19 = arith.constant dense<0.000000e+00> : vector<4x1016xf32>
    %29 = tpu.matmul %28, %26, %cst_19 {dimension_numbers = #tpu.dot_dimension_numbers<[1], [0], [0], [1], [0, 0, 1, 1], [], []>} : vector<4x3xbf16>, vector<3x1016xbf16>, vector<4x1016xf32> -> vector<4x1016xf32>
    %30 = arith.addf %25, %29 : vector<4x1016xf32>
    %31 = vector.extract_strided_slice %1 {offsets = [0, 35], sizes = [3, 1016], strides = [1, 1]} : vector<3x1156xbf16> to vector<3x1016xbf16>
    %c6 = arith.constant 6 : index
    %c0_20 = arith.constant 0 : index
    %c0_21 = arith.constant 0 : index
    %32 = vector.load %arg2[%c6, %c0_20, %c0_21] : memref<25x4x3xbf16, #tpu.memory_space<vmem>>, vector<1x4x3xbf16>
    %33 = vector.shape_cast %32 : vector<1x4x3xbf16> to vector<4x3xbf16>
    %cst_22 = arith.constant dense<0.000000e+00> : vector<4x1016xf32>
    %34 = tpu.matmul %33, %31, %cst_22 {dimension_numbers = #tpu.dot_dimension_numbers<[1], [0], [0], [1], [0, 0, 1, 1], [], []>} : vector<4x3xbf16>, vector<3x1016xbf16>, vector<4x1016xf32> -> vector<4x1016xf32>
    %35 = arith.addf %30, %34 : vector<4x1016xf32>
    %36 = vector.extract_strided_slice %1 {offsets = [0, 36], sizes = [3, 1016], strides = [1, 1]} : vector<3x1156xbf16> to vector<3x1016xbf16>
    %c7 = arith.constant 7 : index
    %c0_23 = arith.constant 0 : index
    %c0_24 = arith.constant 0 : index
    %37 = vector.load %arg2[%c7, %c0_23, %c0_24] : memref<25x4x3xbf16, #tpu.memory_space<vmem>>, vector<1x4x3xbf16>
    %38 = vector.shape_cast %37 : vector<1x4x3xbf16> to vector<4x3xbf16>
    %cst_25 = arith.constant dense<0.000000e+00> : vector<4x1016xf32>
    %39 = tpu.matmul %38, %36, %cst_25 {dimension_numbers = #tpu.dot_dimension_numbers<[1], [0], [0], [1], [0, 0, 1, 1], [], []>} : vector<4x3xbf16>, vector<3x1016xbf16>, vector<4x1016xf32> -> vector<4x1016xf32>
    %40 = arith.addf %35, %39 : vector<4x1016xf32>
    %41 = vector.extract_strided_slice %1 {offsets = [0, 37], sizes = [3, 1016], strides = [1, 1]} : vector<3x1156xbf16> to vector<3x1016xbf16>
    %c8 = arith.constant 8 : index
    %c0_26 = arith.constant 0 : index
    %c0_27 = arith.constant 0 : index
    %42 = vector.load %arg2[%c8, %c0_26, %c0_27] : memref<25x4x3xbf16, #tpu.memory_space<vmem>>, vector<1x4x3xbf16>
    %43 = vector.shape_cast %42 : vector<1x4x3xbf16> to vector<4x3xbf16>
    %cst_28 = arith.constant dense<0.000000e+00> : vector<4x1016xf32>
    %44 = tpu.matmul %43, %41, %cst_28 {dimension_numbers = #tpu.dot_dimension_numbers<[1], [0], [0], [1], [0, 0, 1, 1], [], []>} : vector<4x3xbf16>, vector<3x1016xbf16>, vector<4x1016xf32> -> vector<4x1016xf32>
    %45 = arith.addf %40, %44 : vector<4x1016xf32>
    %46 = vector.extract_strided_slice %1 {offsets = [0, 38], sizes = [3, 1016], strides = [1, 1]} : vector<3x1156xbf16> to vector<3x1016xbf16>
    %c9 = arith.constant 9 : index
    %c0_29 = arith.constant 0 : index
    %c0_30 = arith.constant 0 : index
    %47 = vector.load %arg2[%c9, %c0_29, %c0_30] : memref<25x4x3xbf16, #tpu.memory_space<vmem>>, vector<1x4x3xbf16>
    %48 = vector.shape_cast %47 : vector<1x4x3xbf16> to vector<4x3xbf16>
    %cst_31 = arith.constant dense<0.000000e+00> : vector<4x1016xf32>
    %49 = tpu.matmul %48, %46, %cst_31 {dimension_numbers = #tpu.dot_dimension_numbers<[1], [0], [0], [1], [0, 0, 1, 1], [], []>} : vector<4x3xbf16>, vector<3x1016xbf16>, vector<4x1016xf32> -> vector<4x1016xf32>
    %50 = arith.addf %45, %49 : vector<4x1016xf32>
    %51 = vector.extract_strided_slice %1 {offsets = [0, 68], sizes = [3, 1016], strides = [1, 1]} : vector<3x1156xbf16> to vector<3x1016xbf16>
    %c10 = arith.constant 10 : index
    %c0_32 = arith.constant 0 : index
    %c0_33 = arith.constant 0 : index
    %52 = vector.load %arg2[%c10, %c0_32, %c0_33] : memref<25x4x3xbf16, #tpu.memory_space<vmem>>, vector<1x4x3xbf16>
    %53 = vector.shape_cast %52 : vector<1x4x3xbf16> to vector<4x3xbf16>
    %cst_34 = arith.constant dense<0.000000e+00> : vector<4x1016xf32>
    %54 = tpu.matmul %53, %51, %cst_34 {dimension_numbers = #tpu.dot_dimension_numbers<[1], [0], [0], [1], [0, 0, 1, 1], [], []>} : vector<4x3xbf16>, vector<3x1016xbf16>, vector<4x1016xf32> -> vector<4x1016xf32>
    %55 = arith.addf %50, %54 : vector<4x1016xf32>
    %56 = vector.extract_strided_slice %1 {offsets = [0, 69], sizes = [3, 1016], strides = [1, 1]} : vector<3x1156xbf16> to vector<3x1016xbf16>
    %c11 = arith.constant 11 : index
    %c0_35 = arith.constant 0 : index
    %c0_36 = arith.constant 0 : index
    %57 = vector.load %arg2[%c11, %c0_35, %c0_36] : memref<25x4x3xbf16, #tpu.memory_space<vmem>>, vector<1x4x3xbf16>
    %58 = vector.shape_cast %57 : vector<1x4x3xbf16> to vector<4x3xbf16>
    %cst_37 = arith.constant dense<0.000000e+00> : vector<4x1016xf32>
    %59 = tpu.matmul %58, %56, %cst_37 {dimension_numbers = #tpu.dot_dimension_numbers<[1], [0], [0], [1], [0, 0, 1, 1], [], []>} : vector<4x3xbf16>, vector<3x1016xbf16>, vector<4x1016xf32> -> vector<4x1016xf32>
    %60 = arith.addf %55, %59 : vector<4x1016xf32>
    %61 = vector.extract_strided_slice %1 {offsets = [0, 70], sizes = [3, 1016], strides = [1, 1]} : vector<3x1156xbf16> to vector<3x1016xbf16>
    %c12 = arith.constant 12 : index
    %c0_38 = arith.constant 0 : index
    %c0_39 = arith.constant 0 : index
    %62 = vector.load %arg2[%c12, %c0_38, %c0_39] : memref<25x4x3xbf16, #tpu.memory_space<vmem>>, vector<1x4x3xbf16>
    %63 = vector.shape_cast %62 : vector<1x4x3xbf16> to vector<4x3xbf16>
    %cst_40 = arith.constant dense<0.000000e+00> : vector<4x1016xf32>
    %64 = tpu.matmul %63, %61, %cst_40 {dimension_numbers = #tpu.dot_dimension_numbers<[1], [0], [0], [1], [0, 0, 1, 1], [], []>} : vector<4x3xbf16>, vector<3x1016xbf16>, vector<4x1016xf32> -> vector<4x1016xf32>
    %65 = arith.addf %60, %64 : vector<4x1016xf32>
    %66 = vector.extract_strided_slice %1 {offsets = [0, 71], sizes = [3, 1016], strides = [1, 1]} : vector<3x1156xbf16> to vector<3x1016xbf16>
    %c13 = arith.constant 13 : index
    %c0_41 = arith.constant 0 : index
    %c0_42 = arith.constant 0 : index
    %67 = vector.load %arg2[%c13, %c0_41, %c0_42] : memref<25x4x3xbf16, #tpu.memory_space<vmem>>, vector<1x4x3xbf16>
    %68 = vector.shape_cast %67 : vector<1x4x3xbf16> to vector<4x3xbf16>
    %cst_43 = arith.constant dense<0.000000e+00> : vector<4x1016xf32>
    %69 = tpu.matmul %68, %66, %cst_43 {dimension_numbers = #tpu.dot_dimension_numbers<[1], [0], [0], [1], [0, 0, 1, 1], [], []>} : vector<4x3xbf16>, vector<3x1016xbf16>, vector<4x1016xf32> -> vector<4x1016xf32>
    %70 = arith.addf %65, %69 : vector<4x1016xf32>
    %71 = vector.extract_strided_slice %1 {offsets = [0, 72], sizes = [3, 1016], strides = [1, 1]} : vector<3x1156xbf16> to vector<3x1016xbf16>
    %c14 = arith.constant 14 : index
    %c0_44 = arith.constant 0 : index
    %c0_45 = arith.constant 0 : index
    %72 = vector.load %arg2[%c14, %c0_44, %c0_45] : memref<25x4x3xbf16, #tpu.memory_space<vmem>>, vector<1x4x3xbf16>
    %73 = vector.shape_cast %72 : vector<1x4x3xbf16> to vector<4x3xbf16>
    %cst_46 = arith.constant dense<0.000000e+00> : vector<4x1016xf32>
    %74 = tpu.matmul %73, %71, %cst_46 {dimension_numbers = #tpu.dot_dimension_numbers<[1], [0], [0], [1], [0, 0, 1, 1], [], []>} : vector<4x3xbf16>, vector<3x1016xbf16>, vector<4x1016xf32> -> vector<4x1016xf32>
    %75 = arith.addf %70, %74 : vector<4x1016xf32>
    %76 = vector.extract_strided_slice %1 {offsets = [0, 102], sizes = [3, 1016], strides = [1, 1]} : vector<3x1156xbf16> to vector<3x1016xbf16>
    %c15 = arith.constant 15 : index
    %c0_47 = arith.constant 0 : index
    %c0_48 = arith.constant 0 : index
    %77 = vector.load %arg2[%c15, %c0_47, %c0_48] : memref<25x4x3xbf16, #tpu.memory_space<vmem>>, vector<1x4x3xbf16>
    %78 = vector.shape_cast %77 : vector<1x4x3xbf16> to vector<4x3xbf16>
    %cst_49 = arith.constant dense<0.000000e+00> : vector<4x1016xf32>
    %79 = tpu.matmul %78, %76, %cst_49 {dimension_numbers = #tpu.dot_dimension_numbers<[1], [0], [0], [1], [0, 0, 1, 1], [], []>} : vector<4x3xbf16>, vector<3x1016xbf16>, vector<4x1016xf32> -> vector<4x1016xf32>
    %80 = arith.addf %75, %79 : vector<4x1016xf32>
    %81 = vector.extract_strided_slice %1 {offsets = [0, 103], sizes = [3, 1016], strides = [1, 1]} : vector<3x1156xbf16> to vector<3x1016xbf16>
    %c16 = arith.constant 16 : index
    %c0_50 = arith.constant 0 : index
    %c0_51 = arith.constant 0 : index
    %82 = vector.load %arg2[%c16, %c0_50, %c0_51] : memref<25x4x3xbf16, #tpu.memory_space<vmem>>, vector<1x4x3xbf16>
    %83 = vector.shape_cast %82 : vector<1x4x3xbf16> to vector<4x3xbf16>
    %cst_52 = arith.constant dense<0.000000e+00> : vector<4x1016xf32>
    %84 = tpu.matmul %83, %81, %cst_52 {dimension_numbers = #tpu.dot_dimension_numbers<[1], [0], [0], [1], [0, 0, 1, 1], [], []>} : vector<4x3xbf16>, vector<3x1016xbf16>, vector<4x1016xf32> -> vector<4x1016xf32>
    %85 = arith.addf %80, %84 : vector<4x1016xf32>
    %86 = vector.extract_strided_slice %1 {offsets = [0, 104], sizes = [3, 1016], strides = [1, 1]} : vector<3x1156xbf16> to vector<3x1016xbf16>
    %c17 = arith.constant 17 : index
    %c0_53 = arith.constant 0 : index
    %c0_54 = arith.constant 0 : index
    %87 = vector.load %arg2[%c17, %c0_53, %c0_54] : memref<25x4x3xbf16, #tpu.memory_space<vmem>>, vector<1x4x3xbf16>
    %88 = vector.shape_cast %87 : vector<1x4x3xbf16> to vector<4x3xbf16>
    %cst_55 = arith.constant dense<0.000000e+00> : vector<4x1016xf32>
    %89 = tpu.matmul %88, %86, %cst_55 {dimension_numbers = #tpu.dot_dimension_numbers<[1], [0], [0], [1], [0, 0, 1, 1], [], []>} : vector<4x3xbf16>, vector<3x1016xbf16>, vector<4x1016xf32> -> vector<4x1016xf32>
    %90 = arith.addf %85, %89 : vector<4x1016xf32>
    %91 = vector.extract_strided_slice %1 {offsets = [0, 105], sizes = [3, 1016], strides = [1, 1]} : vector<3x1156xbf16> to vector<3x1016xbf16>
    %c18 = arith.constant 18 : index
    %c0_56 = arith.constant 0 : index
    %c0_57 = arith.constant 0 : index
    %92 = vector.load %arg2[%c18, %c0_56, %c0_57] : memref<25x4x3xbf16, #tpu.memory_space<vmem>>, vector<1x4x3xbf16>
    %93 = vector.shape_cast %92 : vector<1x4x3xbf16> to vector<4x3xbf16>
    %cst_58 = arith.constant dense<0.000000e+00> : vector<4x1016xf32>
    %94 = tpu.matmul %93, %91, %cst_58 {dimension_numbers = #tpu.dot_dimension_numbers<[1], [0], [0], [1], [0, 0, 1, 1], [], []>} : vector<4x3xbf16>, vector<3x1016xbf16>, vector<4x1016xf32> -> vector<4x1016xf32>
    %95 = arith.addf %90, %94 : vector<4x1016xf32>
    %96 = vector.extract_strided_slice %1 {offsets = [0, 106], sizes = [3, 1016], strides = [1, 1]} : vector<3x1156xbf16> to vector<3x1016xbf16>
    %c19 = arith.constant 19 : index
    %c0_59 = arith.constant 0 : index
    %c0_60 = arith.constant 0 : index
    %97 = vector.load %arg2[%c19, %c0_59, %c0_60] : memref<25x4x3xbf16, #tpu.memory_space<vmem>>, vector<1x4x3xbf16>
    %98 = vector.shape_cast %97 : vector<1x4x3xbf16> to vector<4x3xbf16>
    %cst_61 = arith.constant dense<0.000000e+00> : vector<4x1016xf32>
    %99 = tpu.matmul %98, %96, %cst_61 {dimension_numbers = #tpu.dot_dimension_numbers<[1], [0], [0], [1], [0, 0, 1, 1], [], []>} : vector<4x3xbf16>, vector<3x1016xbf16>, vector<4x1016xf32> -> vector<4x1016xf32>
    %100 = arith.addf %95, %99 : vector<4x1016xf32>
    %101 = vector.extract_strided_slice %1 {offsets = [0, 136], sizes = [3, 1016], strides = [1, 1]} : vector<3x1156xbf16> to vector<3x1016xbf16>
    %c20 = arith.constant 20 : index
    %c0_62 = arith.constant 0 : index
    %c0_63 = arith.constant 0 : index
    %102 = vector.load %arg2[%c20, %c0_62, %c0_63] : memref<25x4x3xbf16, #tpu.memory_space<vmem>>, vector<1x4x3xbf16>
    %103 = vector.shape_cast %102 : vector<1x4x3xbf16> to vector<4x3xbf16>
    %cst_64 = arith.constant dense<0.000000e+00> : vector<4x1016xf32>
    %104 = tpu.matmul %103, %101, %cst_64 {dimension_numbers = #tpu.dot_dimension_numbers<[1], [0], [0], [1], [0, 0, 1, 1], [], []>} : vector<4x3xbf16>, vector<3x1016xbf16>, vector<4x1016xf32> -> vector<4x1016xf32>
    %105 = arith.addf %100, %104 : vector<4x1016xf32>
    %106 = vector.extract_strided_slice %1 {offsets = [0, 137], sizes = [3, 1016], strides = [1, 1]} : vector<3x1156xbf16> to vector<3x1016xbf16>
    %c21 = arith.constant 21 : index
    %c0_65 = arith.constant 0 : index
    %c0_66 = arith.constant 0 : index
    %107 = vector.load %arg2[%c21, %c0_65, %c0_66] : memref<25x4x3xbf16, #tpu.memory_space<vmem>>, vector<1x4x3xbf16>
    %108 = vector.shape_cast %107 : vector<1x4x3xbf16> to vector<4x3xbf16>
    %cst_67 = arith.constant dense<0.000000e+00> : vector<4x1016xf32>
    %109 = tpu.matmul %108, %106, %cst_67 {dimension_numbers = #tpu.dot_dimension_numbers<[1], [0], [0], [1], [0, 0, 1, 1], [], []>} : vector<4x3xbf16>, vector<3x1016xbf16>, vector<4x1016xf32> -> vector<4x1016xf32>
    %110 = arith.addf %105, %109 : vector<4x1016xf32>
    %111 = vector.extract_strided_slice %1 {offsets = [0, 138], sizes = [3, 1016], strides = [1, 1]} : vector<3x1156xbf16> to vector<3x1016xbf16>
    %c22 = arith.constant 22 : index
    %c0_68 = arith.constant 0 : index
    %c0_69 = arith.constant 0 : index
    %112 = vector.load %arg2[%c22, %c0_68, %c0_69] : memref<25x4x3xbf16, #tpu.memory_space<vmem>>, vector<1x4x3xbf16>
    %113 = vector.shape_cast %112 : vector<1x4x3xbf16> to vector<4x3xbf16>
    %cst_70 = arith.constant dense<0.000000e+00> : vector<4x1016xf32>
    %114 = tpu.matmul %113, %111, %cst_70 {dimension_numbers = #tpu.dot_dimension_numbers<[1], [0], [0], [1], [0, 0, 1, 1], [], []>} : vector<4x3xbf16>, vector<3x1016xbf16>, vector<4x1016xf32> -> vector<4x1016xf32>
    %115 = arith.addf %110, %114 : vector<4x1016xf32>
    %116 = vector.extract_strided_slice %1 {offsets = [0, 139], sizes = [3, 1016], strides = [1, 1]} : vector<3x1156xbf16> to vector<3x1016xbf16>
    %c23 = arith.constant 23 : index
    %c0_71 = arith.constant 0 : index
    %c0_72 = arith.constant 0 : index
    %117 = vector.load %arg2[%c23, %c0_71, %c0_72] : memref<25x4x3xbf16, #tpu.memory_space<vmem>>, vector<1x4x3xbf16>
    %118 = vector.shape_cast %117 : vector<1x4x3xbf16> to vector<4x3xbf16>
    %cst_73 = arith.constant dense<0.000000e+00> : vector<4x1016xf32>
    %119 = tpu.matmul %118, %116, %cst_73 {dimension_numbers = #tpu.dot_dimension_numbers<[1], [0], [0], [1], [0, 0, 1, 1], [], []>} : vector<4x3xbf16>, vector<3x1016xbf16>, vector<4x1016xf32> -> vector<4x1016xf32>
    %120 = arith.addf %115, %119 : vector<4x1016xf32>
    %121 = vector.extract_strided_slice %1 {offsets = [0, 140], sizes = [3, 1016], strides = [1, 1]} : vector<3x1156xbf16> to vector<3x1016xbf16>
    %c24 = arith.constant 24 : index
    %c0_74 = arith.constant 0 : index
    %c0_75 = arith.constant 0 : index
    %122 = vector.load %arg2[%c24, %c0_74, %c0_75] : memref<25x4x3xbf16, #tpu.memory_space<vmem>>, vector<1x4x3xbf16>
    %123 = vector.shape_cast %122 : vector<1x4x3xbf16> to vector<4x3xbf16>
    %cst_76 = arith.constant dense<0.000000e+00> : vector<4x1016xf32>
    %124 = tpu.matmul %123, %121, %cst_76 {dimension_numbers = #tpu.dot_dimension_numbers<[1], [0], [0], [1], [0, 0, 1, 1], [], []>} : vector<4x3xbf16>, vector<3x1016xbf16>, vector<4x1016xf32> -> vector<4x1016xf32>
    %125 = arith.addf %120, %124 : vector<4x1016xf32>
    %cst_77 = arith.constant 0.000000e+00 : f32
    %126 = vector.broadcast %cst_77 : f32 to vector<4x1016xf32>
    %127 = arith.maximumf %125, %126 : vector<4x1016xf32>
    %128 = arith.truncf %127 : vector<4x1016xf32> to vector<4x1016xbf16>
    %c0_78 = arith.constant 0 : index
    %c0_79 = arith.constant 0 : index
    %c0_80 = arith.constant 0 : index
    %129 = vector.load %arg4[%c0_78, %c0_79, %c0_80] : memref<4x1016x324xbf16, #tpu.memory_space<vmem>>, vector<1x1016x324xbf16>
    %130 = vector.shape_cast %129 : vector<1x1016x324xbf16> to vector<1016x324xbf16>
    %cst_81 = arith.constant dense<0.000000e+00> : vector<4x324xf32>
    %131 = tpu.matmul %128, %130, %cst_81 {dimension_numbers = #tpu.dot_dimension_numbers<[1], [0], [0], [1], [0, 0, 1, 1], [], []>} : vector<4x1016xbf16>, vector<1016x324xbf16>, vector<4x324xf32> -> vector<4x324xf32>
    %c1_82 = arith.constant 1 : index
    %c0_83 = arith.constant 0 : index
    %c0_84 = arith.constant 0 : index
    %132 = vector.load %arg4[%c1_82, %c0_83, %c0_84] : memref<4x1016x324xbf16, #tpu.memory_space<vmem>>, vector<1x1016x324xbf16>
    %133 = vector.shape_cast %132 : vector<1x1016x324xbf16> to vector<1016x324xbf16>
    %cst_85 = arith.constant dense<0.000000e+00> : vector<4x324xf32>
    %134 = tpu.matmul %128, %133, %cst_85 {dimension_numbers = #tpu.dot_dimension_numbers<[1], [0], [0], [1], [0, 0, 1, 1], [], []>} : vector<4x1016xbf16>, vector<1016x324xbf16>, vector<4x324xf32> -> vector<4x324xf32>
    %135 = arith.maximumf %131, %134 : vector<4x324xf32>
    %c2_86 = arith.constant 2 : index
    %c0_87 = arith.constant 0 : index
    %c0_88 = arith.constant 0 : index
    %136 = vector.load %arg4[%c2_86, %c0_87, %c0_88] : memref<4x1016x324xbf16, #tpu.memory_space<vmem>>, vector<1x1016x324xbf16>
    %137 = vector.shape_cast %136 : vector<1x1016x324xbf16> to vector<1016x324xbf16>
    %cst_89 = arith.constant dense<0.000000e+00> : vector<4x324xf32>
    %138 = tpu.matmul %128, %137, %cst_89 {dimension_numbers = #tpu.dot_dimension_numbers<[1], [0], [0], [1], [0, 0, 1, 1], [], []>} : vector<4x1016xbf16>, vector<1016x324xbf16>, vector<4x324xf32> -> vector<4x324xf32>
    %139 = arith.maximumf %135, %138 : vector<4x324xf32>
    %c3_90 = arith.constant 3 : index
    %c0_91 = arith.constant 0 : index
    %c0_92 = arith.constant 0 : index
    %140 = vector.load %arg4[%c3_90, %c0_91, %c0_92] : memref<4x1016x324xbf16, #tpu.memory_space<vmem>>, vector<1x1016x324xbf16>
    %141 = vector.shape_cast %140 : vector<1x1016x324xbf16> to vector<1016x324xbf16>
    %cst_93 = arith.constant dense<0.000000e+00> : vector<4x324xf32>
    %142 = tpu.matmul %128, %141, %cst_93 {dimension_numbers = #tpu.dot_dimension_numbers<[1], [0], [0], [1], [0, 0, 1, 1], [], []>} : vector<4x1016xbf16>, vector<1016x324xbf16>, vector<4x324xf32> -> vector<4x324xf32>
    %143 = arith.maximumf %139, %142 : vector<4x324xf32>
    %144 = arith.truncf %143 : vector<4x324xf32> to vector<4x324xbf16>
    %145 = vector.extract_strided_slice %144 {offsets = [0, 0], sizes = [4, 248], strides = [1, 1]} : vector<4x324xbf16> to vector<4x248xbf16>
    %c0_94 = arith.constant 0 : index
    %c0_95 = arith.constant 0 : index
    %c0_96 = arith.constant 0 : index
    %146 = vector.load %arg3[%c0_94, %c0_95, %c0_96] : memref<25x8x4xbf16, #tpu.memory_space<vmem>>, vector<1x8x4xbf16>
    %147 = vector.shape_cast %146 : vector<1x8x4xbf16> to vector<8x4xbf16>
    %cst_97 = arith.constant dense<0.000000e+00> : vector<8x248xf32>
    %148 = tpu.matmul %147, %145, %cst_97 {dimension_numbers = #tpu.dot_dimension_numbers<[1], [0], [0], [1], [0, 0, 1, 1], [], []>} : vector<8x4xbf16>, vector<4x248xbf16>, vector<8x248xf32> -> vector<8x248xf32>
    %149 = vector.extract_strided_slice %144 {offsets = [0, 1], sizes = [4, 248], strides = [1, 1]} : vector<4x324xbf16> to vector<4x248xbf16>
    %c1_98 = arith.constant 1 : index
    %c0_99 = arith.constant 0 : index
    %c0_100 = arith.constant 0 : index
    %150 = vector.load %arg3[%c1_98, %c0_99, %c0_100] : memref<25x8x4xbf16, #tpu.memory_space<vmem>>, vector<1x8x4xbf16>
    %151 = vector.shape_cast %150 : vector<1x8x4xbf16> to vector<8x4xbf16>
    %cst_101 = arith.constant dense<0.000000e+00> : vector<8x248xf32>
    %152 = tpu.matmul %151, %149, %cst_101 {dimension_numbers = #tpu.dot_dimension_numbers<[1], [0], [0], [1], [0, 0, 1, 1], [], []>} : vector<8x4xbf16>, vector<4x248xbf16>, vector<8x248xf32> -> vector<8x248xf32>
    %153 = arith.addf %148, %152 : vector<8x248xf32>
    %154 = vector.extract_strided_slice %144 {offsets = [0, 2], sizes = [4, 248], strides = [1, 1]} : vector<4x324xbf16> to vector<4x248xbf16>
    %c2_102 = arith.constant 2 : index
    %c0_103 = arith.constant 0 : index
    %c0_104 = arith.constant 0 : index
    %155 = vector.load %arg3[%c2_102, %c0_103, %c0_104] : memref<25x8x4xbf16, #tpu.memory_space<vmem>>, vector<1x8x4xbf16>
    %156 = vector.shape_cast %155 : vector<1x8x4xbf16> to vector<8x4xbf16>
    %cst_105 = arith.constant dense<0.000000e+00> : vector<8x248xf32>
    %157 = tpu.matmul %156, %154, %cst_105 {dimension_numbers = #tpu.dot_dimension_numbers<[1], [0], [0], [1], [0, 0, 1, 1], [], []>} : vector<8x4xbf16>, vector<4x248xbf16>, vector<8x248xf32> -> vector<8x248xf32>
    %158 = arith.addf %153, %157 : vector<8x248xf32>
    %159 = vector.extract_strided_slice %144 {offsets = [0, 3], sizes = [4, 248], strides = [1, 1]} : vector<4x324xbf16> to vector<4x248xbf16>
    %c3_106 = arith.constant 3 : index
    %c0_107 = arith.constant 0 : index
    %c0_108 = arith.constant 0 : index
    %160 = vector.load %arg3[%c3_106, %c0_107, %c0_108] : memref<25x8x4xbf16, #tpu.memory_space<vmem>>, vector<1x8x4xbf16>
    %161 = vector.shape_cast %160 : vector<1x8x4xbf16> to vector<8x4xbf16>
    %cst_109 = arith.constant dense<0.000000e+00> : vector<8x248xf32>
    %162 = tpu.matmul %161, %159, %cst_109 {dimension_numbers = #tpu.dot_dimension_numbers<[1], [0], [0], [1], [0, 0, 1, 1], [], []>} : vector<8x4xbf16>, vector<4x248xbf16>, vector<8x248xf32> -> vector<8x248xf32>
    %163 = arith.addf %158, %162 : vector<8x248xf32>
    %164 = vector.extract_strided_slice %144 {offsets = [0, 4], sizes = [4, 248], strides = [1, 1]} : vector<4x324xbf16> to vector<4x248xbf16>
    %c4_110 = arith.constant 4 : index
    %c0_111 = arith.constant 0 : index
    %c0_112 = arith.constant 0 : index
    %165 = vector.load %arg3[%c4_110, %c0_111, %c0_112] : memref<25x8x4xbf16, #tpu.memory_space<vmem>>, vector<1x8x4xbf16>
    %166 = vector.shape_cast %165 : vector<1x8x4xbf16> to vector<8x4xbf16>
    %cst_113 = arith.constant dense<0.000000e+00> : vector<8x248xf32>
    %167 = tpu.matmul %166, %164, %cst_113 {dimension_numbers = #tpu.dot_dimension_numbers<[1], [0], [0], [1], [0, 0, 1, 1], [], []>} : vector<8x4xbf16>, vector<4x248xbf16>, vector<8x248xf32> -> vector<8x248xf32>
    %168 = arith.addf %163, %167 : vector<8x248xf32>
    %169 = vector.extract_strided_slice %144 {offsets = [0, 18], sizes = [4, 248], strides = [1, 1]} : vector<4x324xbf16> to vector<4x248xbf16>
    %c5_114 = arith.constant 5 : index
    %c0_115 = arith.constant 0 : index
    %c0_116 = arith.constant 0 : index
    %170 = vector.load %arg3[%c5_114, %c0_115, %c0_116] : memref<25x8x4xbf16, #tpu.memory_space<vmem>>, vector<1x8x4xbf16>
    %171 = vector.shape_cast %170 : vector<1x8x4xbf16> to vector<8x4xbf16>
    %cst_117 = arith.constant dense<0.000000e+00> : vector<8x248xf32>
    %172 = tpu.matmul %171, %169, %cst_117 {dimension_numbers = #tpu.dot_dimension_numbers<[1], [0], [0], [1], [0, 0, 1, 1], [], []>} : vector<8x4xbf16>, vector<4x248xbf16>, vector<8x248xf32> -> vector<8x248xf32>
    %173 = arith.addf %168, %172 : vector<8x248xf32>
    %174 = vector.extract_strided_slice %144 {offsets = [0, 19], sizes = [4, 248], strides = [1, 1]} : vector<4x324xbf16> to vector<4x248xbf16>
    %c6_118 = arith.constant 6 : index
    %c0_119 = arith.constant 0 : index
    %c0_120 = arith.constant 0 : index
    %175 = vector.load %arg3[%c6_118, %c0_119, %c0_120] : memref<25x8x4xbf16, #tpu.memory_space<vmem>>, vector<1x8x4xbf16>
    %176 = vector.shape_cast %175 : vector<1x8x4xbf16> to vector<8x4xbf16>
    %cst_121 = arith.constant dense<0.000000e+00> : vector<8x248xf32>
    %177 = tpu.matmul %176, %174, %cst_121 {dimension_numbers = #tpu.dot_dimension_numbers<[1], [0], [0], [1], [0, 0, 1, 1], [], []>} : vector<8x4xbf16>, vector<4x248xbf16>, vector<8x248xf32> -> vector<8x248xf32>
    %178 = arith.addf %173, %177 : vector<8x248xf32>
    %179 = vector.extract_strided_slice %144 {offsets = [0, 20], sizes = [4, 248], strides = [1, 1]} : vector<4x324xbf16> to vector<4x248xbf16>
    %c7_122 = arith.constant 7 : index
    %c0_123 = arith.constant 0 : index
    %c0_124 = arith.constant 0 : index
    %180 = vector.load %arg3[%c7_122, %c0_123, %c0_124] : memref<25x8x4xbf16, #tpu.memory_space<vmem>>, vector<1x8x4xbf16>
    %181 = vector.shape_cast %180 : vector<1x8x4xbf16> to vector<8x4xbf16>
    %cst_125 = arith.constant dense<0.000000e+00> : vector<8x248xf32>
    %182 = tpu.matmul %181, %179, %cst_125 {dimension_numbers = #tpu.dot_dimension_numbers<[1], [0], [0], [1], [0, 0, 1, 1], [], []>} : vector<8x4xbf16>, vector<4x248xbf16>, vector<8x248xf32> -> vector<8x248xf32>
    %183 = arith.addf %178, %182 : vector<8x248xf32>
    %184 = vector.extract_strided_slice %144 {offsets = [0, 21], sizes = [4, 248], strides = [1, 1]} : vector<4x324xbf16> to vector<4x248xbf16>
    %c8_126 = arith.constant 8 : index
    %c0_127 = arith.constant 0 : index
    %c0_128 = arith.constant 0 : index
    %185 = vector.load %arg3[%c8_126, %c0_127, %c0_128] : memref<25x8x4xbf16, #tpu.memory_space<vmem>>, vector<1x8x4xbf16>
    %186 = vector.shape_cast %185 : vector<1x8x4xbf16> to vector<8x4xbf16>
    %cst_129 = arith.constant dense<0.000000e+00> : vector<8x248xf32>
    %187 = tpu.matmul %186, %184, %cst_129 {dimension_numbers = #tpu.dot_dimension_numbers<[1], [0], [0], [1], [0, 0, 1, 1], [], []>} : vector<8x4xbf16>, vector<4x248xbf16>, vector<8x248xf32> -> vector<8x248xf32>
    %188 = arith.addf %183, %187 : vector<8x248xf32>
    %189 = vector.extract_strided_slice %144 {offsets = [0, 22], sizes = [4, 248], strides = [1, 1]} : vector<4x324xbf16> to vector<4x248xbf16>
    %c9_130 = arith.constant 9 : index
    %c0_131 = arith.constant 0 : index
    %c0_132 = arith.constant 0 : index
    %190 = vector.load %arg3[%c9_130, %c0_131, %c0_132] : memref<25x8x4xbf16, #tpu.memory_space<vmem>>, vector<1x8x4xbf16>
    %191 = vector.shape_cast %190 : vector<1x8x4xbf16> to vector<8x4xbf16>
    %cst_133 = arith.constant dense<0.000000e+00> : vector<8x248xf32>
    %192 = tpu.matmul %191, %189, %cst_133 {dimension_numbers = #tpu.dot_dimension_numbers<[1], [0], [0], [1], [0, 0, 1, 1], [], []>} : vector<8x4xbf16>, vector<4x248xbf16>, vector<8x248xf32> -> vector<8x248xf32>
    %193 = arith.addf %188, %192 : vector<8x248xf32>
    %194 = vector.extract_strided_slice %144 {offsets = [0, 36], sizes = [4, 248], strides = [1, 1]} : vector<4x324xbf16> to vector<4x248xbf16>
    %c10_134 = arith.constant 10 : index
    %c0_135 = arith.constant 0 : index
    %c0_136 = arith.constant 0 : index
    %195 = vector.load %arg3[%c10_134, %c0_135, %c0_136] : memref<25x8x4xbf16, #tpu.memory_space<vmem>>, vector<1x8x4xbf16>
    %196 = vector.shape_cast %195 : vector<1x8x4xbf16> to vector<8x4xbf16>
    %cst_137 = arith.constant dense<0.000000e+00> : vector<8x248xf32>
    %197 = tpu.matmul %196, %194, %cst_137 {dimension_numbers = #tpu.dot_dimension_numbers<[1], [0], [0], [1], [0, 0, 1, 1], [], []>} : vector<8x4xbf16>, vector<4x248xbf16>, vector<8x248xf32> -> vector<8x248xf32>
    %198 = arith.addf %193, %197 : vector<8x248xf32>
    %199 = vector.extract_strided_slice %144 {offsets = [0, 37], sizes = [4, 248], strides = [1, 1]} : vector<4x324xbf16> to vector<4x248xbf16>
    %c11_138 = arith.constant 11 : index
    %c0_139 = arith.constant 0 : index
    %c0_140 = arith.constant 0 : index
    %200 = vector.load %arg3[%c11_138, %c0_139, %c0_140] : memref<25x8x4xbf16, #tpu.memory_space<vmem>>, vector<1x8x4xbf16>
    %201 = vector.shape_cast %200 : vector<1x8x4xbf16> to vector<8x4xbf16>
    %cst_141 = arith.constant dense<0.000000e+00> : vector<8x248xf32>
    %202 = tpu.matmul %201, %199, %cst_141 {dimension_numbers = #tpu.dot_dimension_numbers<[1], [0], [0], [1], [0, 0, 1, 1], [], []>} : vector<8x4xbf16>, vector<4x248xbf16>, vector<8x248xf32> -> vector<8x248xf32>
    %203 = arith.addf %198, %202 : vector<8x248xf32>
    %204 = vector.extract_strided_slice %144 {offsets = [0, 38], sizes = [4, 248], strides = [1, 1]} : vector<4x324xbf16> to vector<4x248xbf16>
    %c12_142 = arith.constant 12 : index
    %c0_143 = arith.constant 0 : index
    %c0_144 = arith.constant 0 : index
    %205 = vector.load %arg3[%c12_142, %c0_143, %c0_144] : memref<25x8x4xbf16, #tpu.memory_space<vmem>>, vector<1x8x4xbf16>
    %206 = vector.shape_cast %205 : vector<1x8x4xbf16> to vector<8x4xbf16>
    %cst_145 = arith.constant dense<0.000000e+00> : vector<8x248xf32>
    %207 = tpu.matmul %206, %204, %cst_145 {dimension_numbers = #tpu.dot_dimension_numbers<[1], [0], [0], [1], [0, 0, 1, 1], [], []>} : vector<8x4xbf16>, vector<4x248xbf16>, vector<8x248xf32> -> vector<8x248xf32>
    %208 = arith.addf %203, %207 : vector<8x248xf32>
    %209 = vector.extract_strided_slice %144 {offsets = [0, 39], sizes = [4, 248], strides = [1, 1]} : vector<4x324xbf16> to vector<4x248xbf16>
    %c13_146 = arith.constant 13 : index
    %c0_147 = arith.constant 0 : index
    %c0_148 = arith.constant 0 : index
    %210 = vector.load %arg3[%c13_146, %c0_147, %c0_148] : memref<25x8x4xbf16, #tpu.memory_space<vmem>>, vector<1x8x4xbf16>
    %211 = vector.shape_cast %210 : vector<1x8x4xbf16> to vector<8x4xbf16>
    %cst_149 = arith.constant dense<0.000000e+00> : vector<8x248xf32>
    %212 = tpu.matmul %211, %209, %cst_149 {dimension_numbers = #tpu.dot_dimension_numbers<[1], [0], [0], [1], [0, 0, 1, 1], [], []>} : vector<8x4xbf16>, vector<4x248xbf16>, vector<8x248xf32> -> vector<8x248xf32>
    %213 = arith.addf %208, %212 : vector<8x248xf32>
    %214 = vector.extract_strided_slice %144 {offsets = [0, 40], sizes = [4, 248], strides = [1, 1]} : vector<4x324xbf16> to vector<4x248xbf16>
    %c14_150 = arith.constant 14 : index
    %c0_151 = arith.constant 0 : index
    %c0_152 = arith.constant 0 : index
    %215 = vector.load %arg3[%c14_150, %c0_151, %c0_152] : memref<25x8x4xbf16, #tpu.memory_space<vmem>>, vector<1x8x4xbf16>
    %216 = vector.shape_cast %215 : vector<1x8x4xbf16> to vector<8x4xbf16>
    %cst_153 = arith.constant dense<0.000000e+00> : vector<8x248xf32>
    %217 = tpu.matmul %216, %214, %cst_153 {dimension_numbers = #tpu.dot_dimension_numbers<[1], [0], [0], [1], [0, 0, 1, 1], [], []>} : vector<8x4xbf16>, vector<4x248xbf16>, vector<8x248xf32> -> vector<8x248xf32>
    %218 = arith.addf %213, %217 : vector<8x248xf32>
    %219 = vector.extract_strided_slice %144 {offsets = [0, 54], sizes = [4, 248], strides = [1, 1]} : vector<4x324xbf16> to vector<4x248xbf16>
    %c15_154 = arith.constant 15 : index
    %c0_155 = arith.constant 0 : index
    %c0_156 = arith.constant 0 : index
    %220 = vector.load %arg3[%c15_154, %c0_155, %c0_156] : memref<25x8x4xbf16, #tpu.memory_space<vmem>>, vector<1x8x4xbf16>
    %221 = vector.shape_cast %220 : vector<1x8x4xbf16> to vector<8x4xbf16>
    %cst_157 = arith.constant dense<0.000000e+00> : vector<8x248xf32>
    %222 = tpu.matmul %221, %219, %cst_157 {dimension_numbers = #tpu.dot_dimension_numbers<[1], [0], [0], [1], [0, 0, 1, 1], [], []>} : vector<8x4xbf16>, vector<4x248xbf16>, vector<8x248xf32> -> vector<8x248xf32>
    %223 = arith.addf %218, %222 : vector<8x248xf32>
    %224 = vector.extract_strided_slice %144 {offsets = [0, 55], sizes = [4, 248], strides = [1, 1]} : vector<4x324xbf16> to vector<4x248xbf16>
    %c16_158 = arith.constant 16 : index
    %c0_159 = arith.constant 0 : index
    %c0_160 = arith.constant 0 : index
    %225 = vector.load %arg3[%c16_158, %c0_159, %c0_160] : memref<25x8x4xbf16, #tpu.memory_space<vmem>>, vector<1x8x4xbf16>
    %226 = vector.shape_cast %225 : vector<1x8x4xbf16> to vector<8x4xbf16>
    %cst_161 = arith.constant dense<0.000000e+00> : vector<8x248xf32>
    %227 = tpu.matmul %226, %224, %cst_161 {dimension_numbers = #tpu.dot_dimension_numbers<[1], [0], [0], [1], [0, 0, 1, 1], [], []>} : vector<8x4xbf16>, vector<4x248xbf16>, vector<8x248xf32> -> vector<8x248xf32>
    %228 = arith.addf %223, %227 : vector<8x248xf32>
    %229 = vector.extract_strided_slice %144 {offsets = [0, 56], sizes = [4, 248], strides = [1, 1]} : vector<4x324xbf16> to vector<4x248xbf16>
    %c17_162 = arith.constant 17 : index
    %c0_163 = arith.constant 0 : index
    %c0_164 = arith.constant 0 : index
    %230 = vector.load %arg3[%c17_162, %c0_163, %c0_164] : memref<25x8x4xbf16, #tpu.memory_space<vmem>>, vector<1x8x4xbf16>
    %231 = vector.shape_cast %230 : vector<1x8x4xbf16> to vector<8x4xbf16>
    %cst_165 = arith.constant dense<0.000000e+00> : vector<8x248xf32>
    %232 = tpu.matmul %231, %229, %cst_165 {dimension_numbers = #tpu.dot_dimension_numbers<[1], [0], [0], [1], [0, 0, 1, 1], [], []>} : vector<8x4xbf16>, vector<4x248xbf16>, vector<8x248xf32> -> vector<8x248xf32>
    %233 = arith.addf %228, %232 : vector<8x248xf32>
    %234 = vector.extract_strided_slice %144 {offsets = [0, 57], sizes = [4, 248], strides = [1, 1]} : vector<4x324xbf16> to vector<4x248xbf16>
    %c18_166 = arith.constant 18 : index
    %c0_167 = arith.constant 0 : index
    %c0_168 = arith.constant 0 : index
    %235 = vector.load %arg3[%c18_166, %c0_167, %c0_168] : memref<25x8x4xbf16, #tpu.memory_space<vmem>>, vector<1x8x4xbf16>
    %236 = vector.shape_cast %235 : vector<1x8x4xbf16> to vector<8x4xbf16>
    %cst_169 = arith.constant dense<0.000000e+00> : vector<8x248xf32>
    %237 = tpu.matmul %236, %234, %cst_169 {dimension_numbers = #tpu.dot_dimension_numbers<[1], [0], [0], [1], [0, 0, 1, 1], [], []>} : vector<8x4xbf16>, vector<4x248xbf16>, vector<8x248xf32> -> vector<8x248xf32>
    %238 = arith.addf %233, %237 : vector<8x248xf32>
    %239 = vector.extract_strided_slice %144 {offsets = [0, 58], sizes = [4, 248], strides = [1, 1]} : vector<4x324xbf16> to vector<4x248xbf16>
    %c19_170 = arith.constant 19 : index
    %c0_171 = arith.constant 0 : index
    %c0_172 = arith.constant 0 : index
    %240 = vector.load %arg3[%c19_170, %c0_171, %c0_172] : memref<25x8x4xbf16, #tpu.memory_space<vmem>>, vector<1x8x4xbf16>
    %241 = vector.shape_cast %240 : vector<1x8x4xbf16> to vector<8x4xbf16>
    %cst_173 = arith.constant dense<0.000000e+00> : vector<8x248xf32>
    %242 = tpu.matmul %241, %239, %cst_173 {dimension_numbers = #tpu.dot_dimension_numbers<[1], [0], [0], [1], [0, 0, 1, 1], [], []>} : vector<8x4xbf16>, vector<4x248xbf16>, vector<8x248xf32> -> vector<8x248xf32>
    %243 = arith.addf %238, %242 : vector<8x248xf32>
    %244 = vector.extract_strided_slice %144 {offsets = [0, 72], sizes = [4, 248], strides = [1, 1]} : vector<4x324xbf16> to vector<4x248xbf16>
    %c20_174 = arith.constant 20 : index
    %c0_175 = arith.constant 0 : index
    %c0_176 = arith.constant 0 : index
    %245 = vector.load %arg3[%c20_174, %c0_175, %c0_176] : memref<25x8x4xbf16, #tpu.memory_space<vmem>>, vector<1x8x4xbf16>
    %246 = vector.shape_cast %245 : vector<1x8x4xbf16> to vector<8x4xbf16>
    %cst_177 = arith.constant dense<0.000000e+00> : vector<8x248xf32>
    %247 = tpu.matmul %246, %244, %cst_177 {dimension_numbers = #tpu.dot_dimension_numbers<[1], [0], [0], [1], [0, 0, 1, 1], [], []>} : vector<8x4xbf16>, vector<4x248xbf16>, vector<8x248xf32> -> vector<8x248xf32>
    %248 = arith.addf %243, %247 : vector<8x248xf32>
    %249 = vector.extract_strided_slice %144 {offsets = [0, 73], sizes = [4, 248], strides = [1, 1]} : vector<4x324xbf16> to vector<4x248xbf16>
    %c21_178 = arith.constant 21 : index
    %c0_179 = arith.constant 0 : index
    %c0_180 = arith.constant 0 : index
    %250 = vector.load %arg3[%c21_178, %c0_179, %c0_180] : memref<25x8x4xbf16, #tpu.memory_space<vmem>>, vector<1x8x4xbf16>
    %251 = vector.shape_cast %250 : vector<1x8x4xbf16> to vector<8x4xbf16>
    %cst_181 = arith.constant dense<0.000000e+00> : vector<8x248xf32>
    %252 = tpu.matmul %251, %249, %cst_181 {dimension_numbers = #tpu.dot_dimension_numbers<[1], [0], [0], [1], [0, 0, 1, 1], [], []>} : vector<8x4xbf16>, vector<4x248xbf16>, vector<8x248xf32> -> vector<8x248xf32>
    %253 = arith.addf %248, %252 : vector<8x248xf32>
    %254 = vector.extract_strided_slice %144 {offsets = [0, 74], sizes = [4, 248], strides = [1, 1]} : vector<4x324xbf16> to vector<4x248xbf16>
    %c22_182 = arith.constant 22 : index
    %c0_183 = arith.constant 0 : index
    %c0_184 = arith.constant 0 : index
    %255 = vector.load %arg3[%c22_182, %c0_183, %c0_184] : memref<25x8x4xbf16, #tpu.memory_space<vmem>>, vector<1x8x4xbf16>
    %256 = vector.shape_cast %255 : vector<1x8x4xbf16> to vector<8x4xbf16>
    %cst_185 = arith.constant dense<0.000000e+00> : vector<8x248xf32>
    %257 = tpu.matmul %256, %254, %cst_185 {dimension_numbers = #tpu.dot_dimension_numbers<[1], [0], [0], [1], [0, 0, 1, 1], [], []>} : vector<8x4xbf16>, vector<4x248xbf16>, vector<8x248xf32> -> vector<8x248xf32>
    %258 = arith.addf %253, %257 : vector<8x248xf32>
    %259 = vector.extract_strided_slice %144 {offsets = [0, 75], sizes = [4, 248], strides = [1, 1]} : vector<4x324xbf16> to vector<4x248xbf16>
    %c23_186 = arith.constant 23 : index
    %c0_187 = arith.constant 0 : index
    %c0_188 = arith.constant 0 : index
    %260 = vector.load %arg3[%c23_186, %c0_187, %c0_188] : memref<25x8x4xbf16, #tpu.memory_space<vmem>>, vector<1x8x4xbf16>
    %261 = vector.shape_cast %260 : vector<1x8x4xbf16> to vector<8x4xbf16>
    %cst_189 = arith.constant dense<0.000000e+00> : vector<8x248xf32>
    %262 = tpu.matmul %261, %259, %cst_189 {dimension_numbers = #tpu.dot_dimension_numbers<[1], [0], [0], [1], [0, 0, 1, 1], [], []>} : vector<8x4xbf16>, vector<4x248xbf16>, vector<8x248xf32> -> vector<8x248xf32>
    %263 = arith.addf %258, %262 : vector<8x248xf32>
    %264 = vector.extract_strided_slice %144 {offsets = [0, 76], sizes = [4, 248], strides = [1, 1]} : vector<4x324xbf16> to vector<4x248xbf16>
    %c24_190 = arith.constant 24 : index
    %c0_191 = arith.constant 0 : index
    %c0_192 = arith.constant 0 : index
    %265 = vector.load %arg3[%c24_190, %c0_191, %c0_192] : memref<25x8x4xbf16, #tpu.memory_space<vmem>>, vector<1x8x4xbf16>
    %266 = vector.shape_cast %265 : vector<1x8x4xbf16> to vector<8x4xbf16>
    %cst_193 = arith.constant dense<0.000000e+00> : vector<8x248xf32>
    %267 = tpu.matmul %266, %264, %cst_193 {dimension_numbers = #tpu.dot_dimension_numbers<[1], [0], [0], [1], [0, 0, 1, 1], [], []>} : vector<8x4xbf16>, vector<4x248xbf16>, vector<8x248xf32> -> vector<8x248xf32>
    %268 = arith.addf %263, %267 : vector<8x248xf32>
    %cst_194 = arith.constant 0.000000e+00 : f32
    %269 = vector.broadcast %cst_194 : f32 to vector<8x248xf32>
    %270 = arith.maximumf %268, %269 : vector<8x248xf32>
    %271 = arith.truncf %270 : vector<8x248xf32> to vector<8x248xbf16>
    %c0_195 = arith.constant 0 : index
    %c0_196 = arith.constant 0 : index
    %c0_197 = arith.constant 0 : index
    %272 = vector.load %arg5[%c0_195, %c0_196, %c0_197] : memref<4x248x64xbf16, #tpu.memory_space<vmem>>, vector<1x248x64xbf16>
    %273 = vector.shape_cast %272 : vector<1x248x64xbf16> to vector<248x64xbf16>
    %cst_198 = arith.constant dense<0.000000e+00> : vector<8x64xf32>
    %274 = tpu.matmul %271, %273, %cst_198 {dimension_numbers = #tpu.dot_dimension_numbers<[1], [0], [0], [1], [0, 0, 1, 1], [], []>} : vector<8x248xbf16>, vector<248x64xbf16>, vector<8x64xf32> -> vector<8x64xf32>
    %c1_199 = arith.constant 1 : index
    %c0_200 = arith.constant 0 : index
    %c0_201 = arith.constant 0 : index
    %275 = vector.load %arg5[%c1_199, %c0_200, %c0_201] : memref<4x248x64xbf16, #tpu.memory_space<vmem>>, vector<1x248x64xbf16>
    %276 = vector.shape_cast %275 : vector<1x248x64xbf16> to vector<248x64xbf16>
    %cst_202 = arith.constant dense<0.000000e+00> : vector<8x64xf32>
    %277 = tpu.matmul %271, %276, %cst_202 {dimension_numbers = #tpu.dot_dimension_numbers<[1], [0], [0], [1], [0, 0, 1, 1], [], []>} : vector<8x248xbf16>, vector<248x64xbf16>, vector<8x64xf32> -> vector<8x64xf32>
    %278 = arith.maximumf %274, %277 : vector<8x64xf32>
    %c2_203 = arith.constant 2 : index
    %c0_204 = arith.constant 0 : index
    %c0_205 = arith.constant 0 : index
    %279 = vector.load %arg5[%c2_203, %c0_204, %c0_205] : memref<4x248x64xbf16, #tpu.memory_space<vmem>>, vector<1x248x64xbf16>
    %280 = vector.shape_cast %279 : vector<1x248x64xbf16> to vector<248x64xbf16>
    %cst_206 = arith.constant dense<0.000000e+00> : vector<8x64xf32>
    %281 = tpu.matmul %271, %280, %cst_206 {dimension_numbers = #tpu.dot_dimension_numbers<[1], [0], [0], [1], [0, 0, 1, 1], [], []>} : vector<8x248xbf16>, vector<248x64xbf16>, vector<8x64xf32> -> vector<8x64xf32>
    %282 = arith.maximumf %278, %281 : vector<8x64xf32>
    %c3_207 = arith.constant 3 : index
    %c0_208 = arith.constant 0 : index
    %c0_209 = arith.constant 0 : index
    %283 = vector.load %arg5[%c3_207, %c0_208, %c0_209] : memref<4x248x64xbf16, #tpu.memory_space<vmem>>, vector<1x248x64xbf16>
    %284 = vector.shape_cast %283 : vector<1x248x64xbf16> to vector<248x64xbf16>
    %cst_210 = arith.constant dense<0.000000e+00> : vector<8x64xf32>
    %285 = tpu.matmul %271, %284, %cst_210 {dimension_numbers = #tpu.dot_dimension_numbers<[1], [0], [0], [1], [0, 0, 1, 1], [], []>} : vector<8x248xbf16>, vector<248x64xbf16>, vector<8x64xf32> -> vector<8x64xf32>
    %286 = arith.maximumf %282, %285 : vector<8x64xf32>
    %287 = arith.truncf %286 : vector<8x64xf32> to vector<8x64xbf16>
    %288 = vector.extract_strided_slice %287 {offsets = [0, 0], sizes = [1, 64], strides = [1, 1]} : vector<8x64xbf16> to vector<1x64xbf16>
    %c0_211 = arith.constant 0 : index
    %c0_212 = arith.constant 0 : index
    %c0_213 = arith.constant 0 : index
    %289 = vector.load %arg6[%c0_211, %c0_212, %c0_213] : memref<8x64x32xbf16, #tpu.memory_space<vmem>>, vector<1x64x32xbf16>
    %290 = vector.shape_cast %289 : vector<1x64x32xbf16> to vector<64x32xbf16>
    %cst_214 = arith.constant dense<0.000000e+00> : vector<1x32xf32>
    %291 = tpu.matmul %288, %290, %cst_214 {dimension_numbers = #tpu.dot_dimension_numbers<[1], [0], [0], [1], [0, 0, 1, 1], [], []>} : vector<1x64xbf16>, vector<64x32xbf16>, vector<1x32xf32> -> vector<1x32xf32>
    %292 = vector.extract_strided_slice %287 {offsets = [1, 0], sizes = [1, 64], strides = [1, 1]} : vector<8x64xbf16> to vector<1x64xbf16>
    %c1_215 = arith.constant 1 : index
    %c0_216 = arith.constant 0 : index
    %c0_217 = arith.constant 0 : index
    %293 = vector.load %arg6[%c1_215, %c0_216, %c0_217] : memref<8x64x32xbf16, #tpu.memory_space<vmem>>, vector<1x64x32xbf16>
    %294 = vector.shape_cast %293 : vector<1x64x32xbf16> to vector<64x32xbf16>
    %cst_218 = arith.constant dense<0.000000e+00> : vector<1x32xf32>
    %295 = tpu.matmul %292, %294, %cst_218 {dimension_numbers = #tpu.dot_dimension_numbers<[1], [0], [0], [1], [0, 0, 1, 1], [], []>} : vector<1x64xbf16>, vector<64x32xbf16>, vector<1x32xf32> -> vector<1x32xf32>
    %296 = arith.addf %291, %295 : vector<1x32xf32>
    %297 = vector.extract_strided_slice %287 {offsets = [2, 0], sizes = [1, 64], strides = [1, 1]} : vector<8x64xbf16> to vector<1x64xbf16>
    %c2_219 = arith.constant 2 : index
    %c0_220 = arith.constant 0 : index
    %c0_221 = arith.constant 0 : index
    %298 = vector.load %arg6[%c2_219, %c0_220, %c0_221] : memref<8x64x32xbf16, #tpu.memory_space<vmem>>, vector<1x64x32xbf16>
    %299 = vector.shape_cast %298 : vector<1x64x32xbf16> to vector<64x32xbf16>
    %cst_222 = arith.constant dense<0.000000e+00> : vector<1x32xf32>
    %300 = tpu.matmul %297, %299, %cst_222 {dimension_numbers = #tpu.dot_dimension_numbers<[1], [0], [0], [1], [0, 0, 1, 1], [], []>} : vector<1x64xbf16>, vector<64x32xbf16>, vector<1x32xf32> -> vector<1x32xf32>
    %301 = arith.addf %296, %300 : vector<1x32xf32>
    %302 = vector.extract_strided_slice %287 {offsets = [3, 0], sizes = [1, 64], strides = [1, 1]} : vector<8x64xbf16> to vector<1x64xbf16>
    %c3_223 = arith.constant 3 : index
    %c0_224 = arith.constant 0 : index
    %c0_225 = arith.constant 0 : index
    %303 = vector.load %arg6[%c3_223, %c0_224, %c0_225] : memref<8x64x32xbf16, #tpu.memory_space<vmem>>, vector<1x64x32xbf16>
    %304 = vector.shape_cast %303 : vector<1x64x32xbf16> to vector<64x32xbf16>
    %cst_226 = arith.constant dense<0.000000e+00> : vector<1x32xf32>
    %305 = tpu.matmul %302, %304, %cst_226 {dimension_numbers = #tpu.dot_dimension_numbers<[1], [0], [0], [1], [0, 0, 1, 1], [], []>} : vector<1x64xbf16>, vector<64x32xbf16>, vector<1x32xf32> -> vector<1x32xf32>
    %306 = arith.addf %301, %305 : vector<1x32xf32>
    %307 = vector.extract_strided_slice %287 {offsets = [4, 0], sizes = [1, 64], strides = [1, 1]} : vector<8x64xbf16> to vector<1x64xbf16>
    %c4_227 = arith.constant 4 : index
    %c0_228 = arith.constant 0 : index
    %c0_229 = arith.constant 0 : index
    %308 = vector.load %arg6[%c4_227, %c0_228, %c0_229] : memref<8x64x32xbf16, #tpu.memory_space<vmem>>, vector<1x64x32xbf16>
    %309 = vector.shape_cast %308 : vector<1x64x32xbf16> to vector<64x32xbf16>
    %cst_230 = arith.constant dense<0.000000e+00> : vector<1x32xf32>
    %310 = tpu.matmul %307, %309, %cst_230 {dimension_numbers = #tpu.dot_dimension_numbers<[1], [0], [0], [1], [0, 0, 1, 1], [], []>} : vector<1x64xbf16>, vector<64x32xbf16>, vector<1x32xf32> -> vector<1x32xf32>
    %311 = arith.addf %306, %310 : vector<1x32xf32>
    %312 = vector.extract_strided_slice %287 {offsets = [5, 0], sizes = [1, 64], strides = [1, 1]} : vector<8x64xbf16> to vector<1x64xbf16>
    %c5_231 = arith.constant 5 : index
    %c0_232 = arith.constant 0 : index
    %c0_233 = arith.constant 0 : index
    %313 = vector.load %arg6[%c5_231, %c0_232, %c0_233] : memref<8x64x32xbf16, #tpu.memory_space<vmem>>, vector<1x64x32xbf16>
    %314 = vector.shape_cast %313 : vector<1x64x32xbf16> to vector<64x32xbf16>
    %cst_234 = arith.constant dense<0.000000e+00> : vector<1x32xf32>
    %315 = tpu.matmul %312, %314, %cst_234 {dimension_numbers = #tpu.dot_dimension_numbers<[1], [0], [0], [1], [0, 0, 1, 1], [], []>} : vector<1x64xbf16>, vector<64x32xbf16>, vector<1x32xf32> -> vector<1x32xf32>
    %316 = arith.addf %311, %315 : vector<1x32xf32>
    %317 = vector.extract_strided_slice %287 {offsets = [6, 0], sizes = [1, 64], strides = [1, 1]} : vector<8x64xbf16> to vector<1x64xbf16>
    %c6_235 = arith.constant 6 : index
    %c0_236 = arith.constant 0 : index
    %c0_237 = arith.constant 0 : index
    %318 = vector.load %arg6[%c6_235, %c0_236, %c0_237] : memref<8x64x32xbf16, #tpu.memory_space<vmem>>, vector<1x64x32xbf16>
    %319 = vector.shape_cast %318 : vector<1x64x32xbf16> to vector<64x32xbf16>
    %cst_238 = arith.constant dense<0.000000e+00> : vector<1x32xf32>
    %320 = tpu.matmul %317, %319, %cst_238 {dimension_numbers = #tpu.dot_dimension_numbers<[1], [0], [0], [1], [0, 0, 1, 1], [], []>} : vector<1x64xbf16>, vector<64x32xbf16>, vector<1x32xf32> -> vector<1x32xf32>
    %321 = arith.addf %316, %320 : vector<1x32xf32>
    %322 = vector.extract_strided_slice %287 {offsets = [7, 0], sizes = [1, 64], strides = [1, 1]} : vector<8x64xbf16> to vector<1x64xbf16>
    %c7_239 = arith.constant 7 : index
    %c0_240 = arith.constant 0 : index
    %c0_241 = arith.constant 0 : index
    %323 = vector.load %arg6[%c7_239, %c0_240, %c0_241] : memref<8x64x32xbf16, #tpu.memory_space<vmem>>, vector<1x64x32xbf16>
    %324 = vector.shape_cast %323 : vector<1x64x32xbf16> to vector<64x32xbf16>
    %cst_242 = arith.constant dense<0.000000e+00> : vector<1x32xf32>
    %325 = tpu.matmul %322, %324, %cst_242 {dimension_numbers = #tpu.dot_dimension_numbers<[1], [0], [0], [1], [0, 0, 1, 1], [], []>} : vector<1x64xbf16>, vector<64x32xbf16>, vector<1x32xf32> -> vector<1x32xf32>
    %326 = arith.addf %321, %325 : vector<1x32xf32>
    %cst_243 = arith.constant 0.000000e+00 : f32
    %327 = vector.broadcast %cst_243 : f32 to vector<1x32xf32>
    %328 = arith.maximumf %326, %327 : vector<1x32xf32>
    %c0_244 = arith.constant 0 : index
    %c0_245 = arith.constant 0 : index
    %329 = vector.load %arg7[%c0_244, %c0_245] : memref<32x10xf32, #tpu.memory_space<vmem>>, vector<32x10xf32>
    %cst_246 = arith.constant dense<0.000000e+00> : vector<1x10xf32>
    %330 = tpu.matmul %328, %329, %cst_246 {dimension_numbers = #tpu.dot_dimension_numbers<[1], [0], [0], [1], [0, 0, 1, 1], [], []>} : vector<1x32xf32>, vector<32x10xf32>, vector<1x10xf32> -> vector<1x10xf32>
    %c0_247 = arith.constant 0 : index
    %c0_248 = arith.constant 0 : index
    %c0_249 = arith.constant 0 : index
    %331 = vector.load %arg8[%c0_247, %c0_248, %c0_249] : memref<1x1x10xf32, #tpu.memory_space<vmem>>, vector<1x1x10xf32>
    %332 = vector.shape_cast %331 : vector<1x1x10xf32> to vector<1x10xf32>
    %333 = vector.shape_cast %330 : vector<1x10xf32> to vector<1x1x10xf32>
    tpu.vector_store %arg8[%c0_247, %c0_248, %c0_249], %333 {strides = array<i32>} : memref<1x1x10xf32, #tpu.memory_space<vmem>>, vector<1x1x10xf32>,
    return
  }
  func.func @transform_0(%arg0: i32) -> (i32, i32, i32) {
    %c0_i32 = arith.constant 0 : i32
    %c0_i32_0 = arith.constant 0 : i32
    %c0_i32_1 = arith.constant 0 : i32
    return %arg0, %c0_i32, %c0_i32_0 : i32, i32, i32
  }
  func.func @transform_1(%arg0: i32) -> (i32, i32, i32) {
    %c0_i32 = arith.constant 0 : i32
    %c0_i32_0 = arith.constant 0 : i32
    %c0_i32_1 = arith.constant 0 : i32
    %c0_i32_2 = arith.constant 0 : i32
    return %c0_i32, %c0_i32_0, %c0_i32_1 : i32, i32, i32
  }
  func.func @transform_2(%arg0: i32) -> (i32, i32, i32) {
    %c0_i32 = arith.constant 0 : i32
    %c0_i32_0 = arith.constant 0 : i32
    %c0_i32_1 = arith.constant 0 : i32
    %c0_i32_2 = arith.constant 0 : i32
    return %c0_i32, %c0_i32_0, %c0_i32_1 : i32, i32, i32
  }
  func.func @transform_3(%arg0: i32) -> (i32, i32, i32) {
    %c0_i32 = arith.constant 0 : i32
    %c0_i32_0 = arith.constant 0 : i32
    %c0_i32_1 = arith.constant 0 : i32
    %c0_i32_2 = arith.constant 0 : i32
    return %c0_i32, %c0_i32_0, %c0_i32_1 : i32, i32, i32
  }
  func.func @transform_4(%arg0: i32) -> (i32, i32, i32) {
    %c0_i32 = arith.constant 0 : i32
    %c0_i32_0 = arith.constant 0 : i32
    %c0_i32_1 = arith.constant 0 : i32
    %c0_i32_2 = arith.constant 0 : i32
    return %c0_i32, %c0_i32_0, %c0_i32_1 : i32, i32, i32
  }
  func.func @transform_5(%arg0: i32) -> (i32, i32, i32) {
    %c0_i32 = arith.constant 0 : i32
    %c0_i32_0 = arith.constant 0 : i32
    %c0_i32_1 = arith.constant 0 : i32
    %c0_i32_2 = arith.constant 0 : i32
    return %c0_i32, %c0_i32_0, %c0_i32_1 : i32, i32, i32
  }
  func.func @transform_6(%arg0: i32) -> (i32, i32) {
    %c0_i32 = arith.constant 0 : i32
    %c0_i32_0 = arith.constant 0 : i32
    %c0_i32_1 = arith.constant 0 : i32
    return %c0_i32, %c0_i32_0 : i32, i32
  }
  func.func @transform_7(%arg0: i32) -> (i32, i32, i32) {
    %c0_i32 = arith.constant 0 : i32
    %c0_i32_0 = arith.constant 0 : i32
    %c0_i32_1 = arith.constant 0 : i32
    return %arg0, %c0_i32, %c0_i32_0 : i32, i32, i32
  }
}

</mosaic_0001>

<bundles_post_ra>
// kernel: cnn2_forward.1
= control target key start
LH: loop header
LB: loop body
LE: loop exit
PB: predicated region body
PF: predicated region fallthrough
CT: control target
= control target key end

     0   :  { %12 = vsyncpa [#allocation3], 0  ;;  %s24168_s0 = inlined_call_operand.vmem [shape: bf16[2,3,1156], index: 0, kind: input, shape index: {}]   ;;  %s24169_s1 = inlined_call_operand.vmem [shape: bf16[25,4,3], index: 1, kind: input, shape index: {}]   ;;  %s24170_s2 = inlined_call_operand.vmem [shape: bf16[25,8,4], index: 2, kind: input, shape index: {}]   ;;  %s24171_s3 = inlined_call_operand.vmem [shape: bf16[4,1016,324], index: 3, kind: input, shape index: {}]   ;;  %s24172_s4 = inlined_call_operand.vmem [shape: bf16[4,248,64], index: 4, kind: input, shape index: {}]   ;;  %s24173_s5 = inlined_call_operand.vmem [shape: bf16[8,64,32], index: 5, kind: input, shape index: {}]   ;;  %s24174_s6 = inlined_call_operand.vmem [shape: f32[32,10], index: 6, kind: input, shape index: {}]   ;;  %s24175_s7 = inlined_call_operand.hbm [shape: f32[2,1,10], index: 7, kind: output, shape index: {}]  }
   0x1   :  { %14 = vsyncpa [#allocation3 + $0x1], 0  ;;  %s19379_s24 = smov 0   ;;  %s19381_s25 = smov 0  }
   0x2   :  { %s19383_s26 = smov 0   ;;  %s19385_s27 = smov 0  }
   0x3 LB: > { %s19400_s28 = sadd.s32 4294967295, %s19291_s27   ;;  %s15418_s29 = sadd.s32 4294967294, %s19291_s27   ;;  %s19291_s27 = sphi %s19385_s27, %s24193_s27   ;;  %s19287_s26 = sphi %s19383_s26, %s24192_s26   ;;  %s19283_s25 = sphi %s19381_s25, %s24191_s25   ;;  %s19279_s24 = sphi %s19379_s24, %s24190_s24  }
   0x4   : > { %s19404_s30 = sadd.s32 1, %s19291_s27   ;;  %s179_s8 = sadd.s32 1, %s19287_s26 }
   0x5   : > { %s176_s9 = ssub.s32 %s19291_s27, %s19404_s30  ;;  %p189_p0 = scmp.ne.s32.totalorder %s19287_s26, %s19283_s25 }
   0x6   : > { %p177_p1 = scmp.eq.s32.totalorder %s176_s9, 0  ;;  %p190_p2 = scmp.eq.s32.totalorder %s19400_s28, 1 }
   0x7   : > { %p195_p3 = scmp.ne.s32.totalorder %s19283_s25, %s19279_s24  ;;  %p196_p4 = scmp.eq.s32.totalorder %s15418_s29, 1 }
   0x8   : > { %s19415_s10 = scalar_select %p177_p1, %s19287_s26, %s179_s8  }
   0x9   : > { %p19417_p5 = por %p190_p2, %p189_p0  ;;  %p19421_p6 = por %p196_p4, %p195_p3 }
   0xa   : > { %p15421_p7 = scmp.ge.s32.totalorder %s19291_s27, 1  ;;  %p240_p8 = scmp.lt.s32.totalorder %s19291_s27, 3 }
   0xc   : > { %p241_p9 = pnand %p15421_p7, %p240_p8 }
   0xd   : > { %p271_p10 = scmp.lt.s32.totalorder (!%p241_p9), %s19400_s28, 1  ;;  %s19294_s18 = smov (!%p241_p9), 127  }
   0xe   : > { %244 = sbr.rel (%p241_p9) target bundleno = 2761 (0xac9), region = 48  ;;  %s19296_s19 = smov (!%p241_p9), 126  }
   0xf   : > { %s19297_s20 = smov (!%p241_p9), 125   ;;  %s24180_s21 = smov (!%p241_p9), 124  }
  0x10   : > { %s19299_s22 = smov (!%p241_p9), 94   ;;  %s19300_s23 = smov (!%p241_p9), 93  }
  0x11   : > { %s19301_s29 = smov (!%p241_p9), 92   ;;  %s24178_s8 = smov (!%p241_p9), 91  }
  0x12   : > { %s19307_s9 = smov (!%p241_p9), 58   ;;  %s19308_s16 = smov (!%p241_p9), 57  }
  0x13   : > { %v289_v0 = vlaneseq  ;;  %v19293_v1 = vmov 1983009808   ;;  %s272_s13 = scalar_select %p271_p10, %s19400_s28, 1  ;;  %v19295_v15 = vmov 0   ;;  %vm347_vm0 = vcmask 1040384  }
  0x14   : > { %v287_v2 = vunpack.c.l.s4 %v19293_v1  ;;  %407 = vmatprep.mubr.bf16.mxu0 %v19295_v15  ;;  %448 = vmatprep.mubr.bf16.mxu1 %v19295_v15  ;;  %vm335_vm1 = vcmask 1039360   ;;  %vm348_vm2 = vcmask 1041408   ;;  %v19303_v24 = vmov 65535   ;;  %v15423_v37 = vld [vmem:[%s24169_s1 + $0x2] sm:$0x3]  ;;  %s19313_s15 = smov 23  }
  0x15   : > { %v290_v3 = vshrl.u32 %v289_v0, 7  ;;  %s18025_s14 = smul.u32 20, %s272_s13  ;;  %v349_v25 = vsel %vm347_vm0, 4294967295, %v19303_v24  ;;  %vm343_vm3 = vcmask 23552   ;;  %vm748_vm4 = vcmask 1031168   ;;  %s19306_s13 = smov 59  }
  0x16   : > { %v288_v4 = vunpack.c.0.s8 %v287_v2  ;;  %v19572_v26 = vsel %vm348_vm2, %v349_v25, 0  ;;  %v280_v59 = vld [vmem:[%s24169_s1] sm:$0x3]  ;;  %vm973_vm5 = vcmask 1022976   ;;  %vm1198_vm6 = vcmask 1014784  }
  0x17   : > { %s19432_s17 = scalar_lea.vmem %s24168_s0, %s18025_s14  ;;  %s24182_s14 = smov 90   ;;  %vm1433_vm7 = vcmask 769024   ;;  %vm1661_vm8 = vcmask 760832   ;;  %vm1889_vm9 = vcmask 752640   ;;  %vm2117_vm10 = vcmask 744448  }
  0x18   : > { %v291_v5 = vsub.s32 %v288_v4, %v290_v3  ;;  %v278_v6 = vld [vmem:[%s19432_s17 + $0x8] sm:$0xff]  ;;  %v277_v7 = vld [vmem:[%s19432_s17] sm:$0xff]  ;;  %v19533_v19 = vld.sshfl [vmem:[%s19432_s17 + $0x10] sm:$0x33 pattern:$0x76325410] }
  0x19   : > { %v285_v10 = vcombine.high %v277_v7, %v277_v7  ;;  %v302_v11 = vcombine.high %v278_v6, %v278_v6  ;;  %vm2345_vm11 = vcmask 736256   ;;  %vm2573_vm12 = vcmask 490496  }
  0x1a   : > { %v19436_v8 = vrot.slane %v278_v6, %v291_v5  ;;  %v19438_v9 = vrot.slane %v277_v7, %v291_v5  ;;  %vm2801_vm13 = vcmask 482304   ;;  %vm3029_vm14 = vcmask 474112  }
  0x1b   : > { %v19444_v12 = vrot.slane %v285_v10, %v291_v5  ;;  %v19464_v17 = vrot.slane %v302_v11, %v291_v5  ;;  %vm3257_vm15 = vcmask 465920   ;;  %vm3485_vm0 = vcmask 457728  }
  0x1c   : > { %327 = vrot.lane.b32.xlu0 %v19436_v8, %s19294_s18  ;;  %319 = vrot.lane.b32.xlu1 %v19438_v9, %s19294_s18  ;;  %v19448_v13 = vcombine.high %v19436_v8, %v19436_v8  ;;  %v19452_v14 = vcombine.high %v19438_v9, %v19438_v9  ;;  %v543_v53 = vand.u32 %v19572_v26, %v19438_v9 }
  0x1d   : > { %v19462_v16 = vcombine.high %v19444_v12, %v19444_v12  ;;  %v19472_v18 = vcombine.high %v19464_v17, %v19464_v17  ;;  %v549_v54 = vand.u32 %v19572_v26, %v19444_v12  ;;  %v555_v63 = vand.u32 %v19572_v26, %v19436_v8 }
  0x1e   : > { %v546_v49 = vand.u32 %v19572_v26, %v19452_v14  ;;  %v558_v57 = vand.u32 %v19572_v26, %v19448_v13  ;;  %v561_v1 = vand.u32 %v19572_v26, %v19464_v17 }
  0x1f   : > { %v552_v50 = vand.u32 %v19572_v26, %v19462_v16  ;;  %v564_v58 = vand.u32 %v19572_v26, %v19472_v18 }
  0x20   : > { %329 = vrot.lane.b32.xlu1 %v19448_v13, %s19294_s18  ;;  %321 = vrot.lane.b32.xlu0 %v19452_v14, %s19294_s18 }
  0x24   : > { %323 = vrot.lane.b32.xlu0 %v19444_v12, %s19294_s18  ;;  %325 = vrot.lane.b32.xlu1 %v19462_v16, %s19294_s18 }
  0x28   : > { %331 = vrot.lane.b32.xlu0 %v19464_v17, %s19294_s18  ;;  %333 = vrot.lane.b32.xlu1 %v19472_v18, %s19294_s18 }
  0x2c   : > { %734 = vrot.lane.b32.xlu0 %v19452_v14, %s19296_s19  ;;  %736 = vrot.lane.b32.xlu1 %v19444_v12, %s19296_s19 }
  0x30   : > { %732 = vrot.lane.b32.xlu0 %v19438_v9, %s19296_s19  ;;  %738 = vrot.lane.b32.xlu1 %v19462_v16, %s19296_s19 }
  0x34   : > { %740 = vrot.lane.b32.xlu0 %v19436_v8, %s19296_s19  ;;  %742 = vrot.lane.b32.xlu1 %v19448_v13, %s19296_s19 }
  0x38   : > { %744 = vrot.lane.b32.xlu0 %v19464_v17, %s19296_s19  ;;  %746 = vrot.lane.b32.xlu1 %v19472_v18, %s19296_s19 }
  0x3c   : > { %959 = vrot.lane.b32.xlu0 %v19452_v14, %s19297_s20  ;;  %961 = vrot.lane.b32.xlu1 %v19444_v12, %s19297_s20 }
  0x40   : > { %957 = vrot.lane.b32.xlu0 %v19438_v9, %s19297_s20  ;;  %963 = vrot.lane.b32.xlu1 %v19462_v16, %s19297_s20 }
  0x44   : > { %965 = vrot.lane.b32.xlu0 %v19436_v8, %s19297_s20  ;;  %967 = vrot.lane.b32.xlu1 %v19448_v13, %s19297_s20 }
  0x48   : > { %969 = vrot.lane.b32.xlu0 %v19464_v17, %s19297_s20  ;;  %971 = vrot.lane.b32.xlu1 %v19472_v18, %s19297_s20 }
  0x4c   : > { %1184 = vrot.lane.b32.xlu0 %v19452_v14, %s24180_s21  ;;  %1186 = vrot.lane.b32.xlu1 %v19444_v12, %s24180_s21 }
  0x50   : > { %1182 = vrot.lane.b32.xlu0 %v19438_v9, %s24180_s21  ;;  %1188 = vrot.lane.b32.xlu1 %v19462_v16, %s24180_s21 }
  0x54   : > { %1190 = vrot.lane.b32.xlu0 %v19436_v8, %s24180_s21  ;;  %1192 = vrot.lane.b32.xlu1 %v19448_v13, %s24180_s21 }
  0x58   : > { %1194 = vrot.lane.b32.xlu0 %v19464_v17, %s24180_s21  ;;  %1196 = vrot.lane.b32.xlu1 %v19472_v18, %s24180_s21  ;;  %s19320_s21 = smov 109  }
  0x5c   : > { %1417 = vrot.lane.b32.xlu0 %v19452_v14, %s19299_s22  ;;  %1419 = vrot.lane.b32.xlu1 %v19444_v12, %s19299_s22 }
  0x60   : > { %1415 = vrot.lane.b32.xlu0 %v19438_v9, %s19299_s22  ;;  %1421 = vrot.lane.b32.xlu1 %v19462_v16, %s19299_s22 }
  0x64   : > { %1423 = vrot.lane.b32.xlu0 %v19436_v8, %s19299_s22  ;;  %1425 = vrot.lane.b32.xlu1 %v19448_v13, %s19299_s22 }
  0x68   : > { %1427 = vrot.lane.b32.xlu0 %v19464_v17, %s19299_s22  ;;  %1429 = vrot.lane.b32.xlu1 %v19472_v18, %s19299_s22 }
  0x6c   : > { %1431 = vrot.lane.b32.xlu0 %v19533_v19, %s19299_s22  ;;  %1645 = vrot.lane.b32.xlu1 %v19452_v14, %s19300_s23  ;;  %s19305_s22 = smov 60  }
  0x70   : > { %1647 = vrot.lane.b32.xlu0 %v19444_v12, %s19300_s23  ;;  %1643 = vrot.lane.b32.xlu1 %v19438_v9, %s19300_s23 }
  0x74   : > { %1649 = vrot.lane.b32.xlu0 %v19462_v16, %s19300_s23  ;;  %1651 = vrot.lane.b32.xlu1 %v19436_v8, %s19300_s23 }
  0x78   : > { %1653 = vrot.lane.b32.xlu0 %v19448_v13, %s19300_s23  ;;  %1655 = vrot.lane.b32.xlu1 %v19464_v17, %s19300_s23 }
  0x7c   : > { %1657 = vrot.lane.b32.xlu0 %v19472_v18, %s19300_s23  ;;  %1659 = vrot.lane.b32.xlu1 %v19533_v19, %s19300_s23  ;;  %s19314_s23 = smov 22  }
  0x80   : > { %1873 = vrot.lane.b32.xlu0 %v19452_v14, %s19301_s29  ;;  %1875 = vrot.lane.b32.xlu1 %v19444_v12, %s19301_s29 }
  0x84   : > { %1871 = vrot.lane.b32.xlu0 %v19438_v9, %s19301_s29  ;;  %1877 = vrot.lane.b32.xlu1 %v19462_v16, %s19301_s29 }
  0x88   : > { %1879 = vrot.lane.b32.xlu0 %v19436_v8, %s19301_s29  ;;  %1881 = vrot.lane.b32.xlu1 %v19448_v13, %s19301_s29 }
  0x8c   : > { %1883 = vrot.lane.b32.xlu0 %v19464_v17, %s19301_s29  ;;  %1885 = vrot.lane.b32.xlu1 %v19472_v18, %s19301_s29 }
  0x8e   : > { %v328_v20 = vpop.permute.xlu0 %327  ;;  %v320_v21 = vpop.permute.xlu1 %319 }
  0x90   : > { %1887 = vrot.lane.b32.xlu0 %v19533_v19, %s19301_s29  ;;  %2101 = vrot.lane.b32.xlu1 %v19452_v14, %s24178_s8 }
  0x92   : > { %v330_v22 = vpop.permute.xlu1 %329  ;;  %v322_v23 = vpop.permute.xlu0 %321 }
  0x93   : > { %v336_v29 = vsel %vm335_vm1, %v320_v21, %v322_v23  ;;  %v340_v38 = vsel %vm335_vm1, %v328_v20, %v330_v22 }
  0x94   : > { %2103 = vrot.lane.b32.xlu0 %v19444_v12, %s24178_s8  ;;  %2099 = vrot.lane.b32.xlu1 %v19438_v9, %s24178_s8  ;;  %v352_v36 = vand.u32 %v19572_v26, %v336_v29  ;;  %v364_v46 = vand.u32 %v19572_v26, %v340_v38 }
  0x96   : > { %v324_v27 = vpop.permute.xlu0 %323  ;;  %v326_v28 = vpop.permute.xlu1 %325 }
  0x97   : > { %v337_v30 = vsel %vm335_vm1, %v322_v23, %v324_v27  ;;  %v339_v31 = vsel %vm335_vm1, %v326_v28, %v328_v20  ;;  %v338_v32 = vsel %vm335_vm1, %v324_v27, %v326_v28  ;;  %v15432_v28 = vld [vmem:[%s24169_s1 + $0x4] sm:$0x3] }
  0x98   : > { %2105 = vrot.lane.b32.xlu0 %v19462_v16, %s24178_s8  ;;  %2107 = vrot.lane.b32.xlu1 %v19436_v8, %s24178_s8  ;;  %v355_v33 = vand.u32 %v19572_v26, %v337_v30  ;;  %v361_v34 = vand.u32 %v19572_v26, %v339_v31  ;;  %v358_v35 = vand.u32 %v19572_v26, %v338_v32 }
  0x9a   : > { %389 = vmatprep.subr.bf16.mxu0 %v355_v33  ;;  %v332_v39 = vpop.permute.xlu0 %331  ;;  %430 = vmatprep.subr.bf16.mxu1 %v361_v34  ;;  %v334_v40 = vpop.permute.xlu1 %333 }
  0x9b   : > { %v341_v41 = vsel %vm335_vm1, %v330_v22, %v332_v39  ;;  %v342_v42 = vsel %vm335_vm1, %v332_v39, %v334_v40  ;;  %v373_v43 = vand.u32 %v19572_v26, %v334_v40  ;;  %390 = vmatpush1.bf16.msra.mxu0 %v352_v36  ;;  %431 = vmatpush1.bf16.msra.mxu1 %v358_v35 }
  0x9c   : > { %v370_v44 = vand.u32 %v19572_v26, %v342_v42  ;;  %2109 = vrot.lane.b32.xlu0 %v19448_v13, %s24178_s8  ;;  %2111 = vrot.lane.b32.xlu1 %v19464_v17, %s24178_s8  ;;  %v367_v45 = vand.u32 %v19572_v26, %v341_v41 }
  0x9d   : > { %512 = vmatprep.subr.bf16.mxu1 %v373_v43 }
  0x9e   : > { %15424 = vmatmul.mubr.msk.bf16.vlgmr.msra.gmra.mxu0 %vm343_vm3, %v15423_v37  ;;  %471 = vmatprep.subr.bf16.mxu0 %v367_v45  ;;  %v735_v47 = vpop.permute.xlu0 %734  ;;  %v737_v48 = vpop.permute.xlu1 %736 }
  0x9f   : > { %15425 = vmatmul.mubr.msk.bf16.vlgmr.msra.gmra.mxu1 %vm343_vm3, %v15423_v37  ;;  %472 = vmatpush1.bf16.msra.mxu0 %v364_v46  ;;  %v750_v62 = vsel %vm748_vm4, %v735_v47, %v737_v48 }
  0xa0   : > { %513 = vmatpush1.bf16.msra.mxu1 %v370_v44  ;;  %2113 = vrot.lane.b32.xlu0 %v19472_v18, %s24178_s8  ;;  %v763_v4 = vand.u32 %v750_v62, %v19572_v26 }
  0xa1   : > { %2115 = vrot.lane.b32.xlu1 %v19533_v19, %s24178_s8  ;;  %489 = vmatprep.mubr.bf16.mxu0 %v19295_v15  ;;  %s19322_s8 = smov 88  }
  0xa2   : > { %v733_v51 = vpop.permute.xlu0 %732  ;;  %v739_v52 = vpop.permute.xlu1 %738  ;;  %530 = vmatprep.mubr.bf16.mxu1 %v19295_v15  ;;  %580 = vmatprep.subr.bf16.mxu0 %v546_v49 }
  0xa3   : > { %621 = vmatprep.subr.bf16.mxu1 %v552_v50  ;;  %v749_v6 = vsel %vm748_vm4, %v733_v51, %v735_v47  ;;  %v751_v11 = vsel %vm748_vm4, %v737_v48, %v739_v52 }
  0xa4   : > { %2329 = vrot.lane.b32.xlu0 %v19452_v14, %s24182_s14  ;;  %v760_v21 = vand.u32 %v749_v6, %v19572_v26  ;;  %v766_v22 = vand.u32 %v751_v11, %v19572_v26 }
  0xa5   : > { %2331 = vrot.lane.b32.xlu1 %v19444_v12, %s24182_s14 }
  0xa6   : > { %15426 = vmatmul.mubr.msk.bf16.vlgmr.msra.gmra.mxu0 %vm343_vm3, %v15423_v37  ;;  %v741_v55 = vpop.permute.xlu0 %740  ;;  %v743_v56 = vpop.permute.xlu1 %742 }
  0xa7   : > { %15427 = vmatmul.mubr.msk.bf16.vlgmr.msra.gmra.mxu1 %vm343_vm3, %v15423_v37  ;;  %581 = vmatpush1.bf16.msra.mxu0 %v543_v53  ;;  %v752_v0 = vsel %vm748_vm4, %v739_v52, %v741_v55  ;;  %v753_v29 = vsel %vm748_vm4, %v741_v55, %v743_v56 }
  0xa8   : > { %2327 = vrot.lane.b32.xlu0 %v19438_v9, %s24182_s14  ;;  %622 = vmatpush1.bf16.msra.mxu1 %v549_v54  ;;  %v769_v5 = vand.u32 %v752_v0, %v19572_v26  ;;  %v772_v35 = vand.u32 %v753_v29, %v19572_v26 }
  0xa9   : > { %2333 = vrot.lane.b32.xlu1 %v19462_v16, %s24182_s14  ;;  %598 = vmatprep.mubr.bf16.mxu0 %v19295_v15 }
  0xaa   : > { %v745_v60 = vpop.permute.xlu0 %744  ;;  %v747_v61 = vpop.permute.xlu1 %746  ;;  %639 = vmatprep.mubr.bf16.mxu1 %v19295_v15  ;;  %662 = vmatprep.subr.bf16.mxu0 %v558_v57 }
  0xab   : > { %703 = vmatprep.subr.bf16.mxu1 %v564_v58  ;;  %v754_v20 = vsel %vm748_vm4, %v743_v56, %v745_v60  ;;  %v781_v27 = vand.u32 %v747_v61, %v19572_v26  ;;  %v755_v32 = vsel %vm748_vm4, %v745_v60, %v747_v61 }
  0xac   : > { %2335 = vrot.lane.b32.xlu0 %v19436_v8, %s24182_s14  ;;  %v775_v25 = vand.u32 %v754_v20, %v19572_v26  ;;  %v778_v36 = vand.u32 %v755_v32, %v19572_v26 }
  0xad   : > { %2337 = vrot.lane.b32.xlu1 %v19448_v13, %s24182_s14 }
  0xae   : > { %15428 = vmatmul.mubr.msk.bf16.vlgmr.msra.gmra.mxu0 %vm343_vm3, %v280_v59  ;;  %v960_v2 = vpop.permute.xlu0 %959  ;;  %v19646_v3 = vpop.permute.xlu1 %961 }
  0xaf   : > { %663 = vmatpush1.bf16.msra.mxu0 %v555_v63  ;;  %15429 = vmatmul.mubr.msk.bf16.vlgmr.msra.gmra.mxu1 %vm343_vm3, %v280_v59  ;;  %v975_v33 = vsel %vm973_vm5, %v960_v2, %v19646_v3 }
  0xb0   : > { %704 = vmatpush1.bf16.msra.mxu1 %v561_v1  ;;  %797 = vmatprep.subr.bf16.mxu0 %v763_v4  ;;  %v988_v39 = vand.u32 %v975_v33, %v19572_v26 }
  0xb1   : > { %838 = vmatprep.subr.bf16.mxu1 %v769_v5  ;;  %2339 = vrot.lane.b32.xlu0 %v19464_v17, %s24182_s14 }
  0xb2   : > { %2341 = vrot.lane.b32.xlu1 %v19472_v18, %s24182_s14  ;;  %v958_v7 = vpop.permute.xlu0 %957  ;;  %v964_v10 = vpop.permute.xlu1 %963  ;;  %680 = vmatprep.mubr.bf16.mxu0 %v19295_v15 }
  0xb3   : > { %721 = vmatprep.mubr.bf16.mxu1 %v19295_v15  ;;  %v974_v41 = vsel %vm973_vm5, %v958_v7, %v960_v2  ;;  %v976_v44 = vsel %vm973_vm5, %v19646_v3, %v964_v10 }
  0xb4   : > { %v985_v46 = vand.u32 %v974_v41, %v19572_v26  ;;  %v991_v47 = vand.u32 %v976_v44, %v19572_v26 }
  0xb5   : > { %2343 = vrot.lane.b32.xlu0 %v19533_v19, %s24182_s14  ;;  %s19321_s14 = smov 107  }
  0xb6   : > { %2557 = vrot.lane.b32.xlu1 %v19452_v14, %s19305_s22  ;;  %15430 = vmatmul.mubr.msk.bf16.vlgmr.msra.gmra.mxu0 %vm343_vm3, %v280_v59  ;;  %v966_v23 = vpop.permute.xlu0 %965  ;;  %v968_v24 = vpop.permute.xlu1 %967 }
  0xb7   : > { %798 = vmatpush1.bf16.msra.mxu0 %v760_v21  ;;  %15431 = vmatmul.mubr.msk.bf16.vlgmr.msra.gmra.mxu1 %vm343_vm3, %v280_v59  ;;  %v977_v34 = vsel %vm973_vm5, %v964_v10, %v966_v23  ;;  %v978_v52 = vsel %vm973_vm5, %v966_v23, %v968_v24  ;;  %v19772_v21 = vld.sshfl [vmem:[%s19432_s17 + $0x10] sm:$0x33 pattern:$0x76325410] }
  0xb8   : > { %839 = vmatpush1.bf16.msra.mxu1 %v766_v22  ;;  %879 = vmatprep.subr.bf16.mxu0 %v775_v25  ;;  %v994_v40 = vand.u32 %v977_v34, %v19572_v26  ;;  %v997_v58 = vand.u32 %v978_v52, %v19572_v26  ;;  %v15442_v22 = vld [vmem:[%s24169_s1 + $0x8] sm:$0x3] }
  0xb9   : > { %920 = vmatprep.subr.bf16.mxu1 %v781_v27  ;;  %2559 = vrot.lane.b32.xlu0 %v19444_v12, %s19305_s22 }
  0xba   : > { %2555 = vrot.lane.b32.xlu1 %v19438_v9, %s19305_s22  ;;  %v970_v30 = vpop.permute.xlu0 %969  ;;  %v972_v31 = vpop.permute.xlu1 %971  ;;  %815 = vmatprep.mubr.bf16.mxu0 %v19295_v15 }
  0xbb   : > { %856 = vmatprep.mubr.bf16.mxu1 %v19295_v15  ;;  %v979_v45 = vsel %vm973_vm5, %v968_v24, %v970_v30  ;;  %v1006_v51 = vand.u32 %v972_v31, %v19572_v26  ;;  %v980_v55 = vsel %vm973_vm5, %v970_v30, %v972_v31 }
  0xbc   : > { %v1000_v50 = vand.u32 %v979_v45, %v19572_v26  ;;  %v1003_v59 = vand.u32 %v980_v55, %v19572_v26 }
  0xbd   : > { %2561 = vrot.lane.b32.xlu0 %v19462_v16, %s19305_s22 }
  0xbe   : > { %2563 = vrot.lane.b32.xlu1 %v19436_v8, %s19305_s22  ;;  %v1185_v37 = vpop.permute.xlu0 %1184  ;;  %15433 = vmatmul.mubr.msk.bf16.vlgmr.msra.gmra.mxu0 %vm343_vm3, %v15432_v28  ;;  %v19691_v38 = vpop.permute.xlu1 %1186 }
  0xbf   : > { %880 = vmatpush1.bf16.msra.mxu0 %v772_v35  ;;  %15434 = vmatmul.mubr.msk.bf16.vlgmr.msra.gmra.mxu1 %vm343_vm3, %v15432_v28  ;;  %v1200_v56 = vsel %vm1198_vm6, %v1185_v37, %v19691_v38 }
  0xc0   : > { %921 = vmatpush1.bf16.msra.mxu1 %v778_v36  ;;  %1022 = vmatprep.subr.bf16.mxu0 %v988_v39  ;;  %v1213_v62 = vand.u32 %v1200_v56, %v19572_v26 }
  0xc1   : > { %1063 = vmatprep.subr.bf16.mxu1 %v994_v40  ;;  %2565 = vrot.lane.b32.xlu0 %v19448_v13, %s19305_s22 }
  0xc2   : > { %2567 = vrot.lane.b32.xlu1 %v19464_v17, %s19305_s22  ;;  %v1183_v42 = vpop.permute.xlu0 %1182  ;;  %v1189_v43 = vpop.permute.xlu1 %1188  ;;  %897 = vmatprep.mubr.bf16.mxu0 %v19295_v15 }
  0xc3   : > { %938 = vmatprep.mubr.bf16.mxu1 %v19295_v15  ;;  %v1199_v0 = vsel %vm1198_vm6, %v1183_v42, %v1185_v37  ;;  %v1201_v3 = vsel %vm1198_vm6, %v19691_v38, %v1189_v43 }
  0xc4   : > { %v1210_v5 = vand.u32 %v1199_v0, %v19572_v26  ;;  %v1216_v6 = vand.u32 %v1201_v3, %v19572_v26 }
  0xc5   : > { %2569 = vrot.lane.b32.xlu0 %v19472_v18, %s19305_s22 }
  0xc6   : > { %2571 = vrot.lane.b32.xlu1 %v19533_v19, %s19305_s22  ;;  %v19712_v48 = vpop.permute.xlu0 %1190  ;;  %15435 = vmatmul.mubr.msk.bf16.vlgmr.msra.gmra.mxu0 %vm343_vm3, %v15432_v28  ;;  %v1193_v49 = vpop.permute.xlu1 %1192  ;;  %v15437_v19 = vld [vmem:[%s24169_s1 + $0x6] sm:$0x3]  ;;  %s19312_s22 = smov 24  }
  0xc7   : > { %1023 = vmatpush1.bf16.msra.mxu0 %v985_v46  ;;  %15436 = vmatmul.mubr.msk.bf16.vlgmr.msra.gmra.mxu1 %vm343_vm3, %v15432_v28  ;;  %v1202_v57 = vsel %vm1198_vm6, %v1189_v43, %v19712_v48  ;;  %v1203_v23 = vsel %vm1198_vm6, %v19712_v48, %v1193_v49  ;;  %v15447_v48 = vld [vmem:[%s24169_s1 + $0xa] sm:$0x3] }
  0xc8   : > { %1064 = vmatpush1.bf16.msra.mxu1 %v991_v47  ;;  %1104 = vmatprep.subr.bf16.mxu0 %v1000_v50  ;;  %v1219_v63 = vand.u32 %v1202_v57, %v19572_v26  ;;  %v1222_v30 = vand.u32 %v1203_v23, %v19572_v26 }
  0xc9   : > { %1145 = vmatprep.subr.bf16.mxu1 %v1006_v51  ;;  %2785 = vrot.lane.b32.xlu0 %v19452_v14, %s19306_s13 }
  0xca   : > { %2787 = vrot.lane.b32.xlu1 %v19444_v12, %s19306_s13  ;;  %v1195_v53 = vpop.permute.xlu0 %1194  ;;  %v1197_v54 = vpop.permute.xlu1 %1196  ;;  %1040 = vmatprep.mubr.bf16.mxu0 %v19295_v15 }
  0xcb   : > { %1081 = vmatprep.mubr.bf16.mxu1 %v19295_v15  ;;  %v1204_v4 = vsel %vm1198_vm6, %v1193_v49, %v1195_v53  ;;  %v1231_v20 = vand.u32 %v1197_v54, %v19572_v26  ;;  %v1205_v27 = vsel %vm1198_vm6, %v1195_v53, %v1197_v54 }
  0xcc   : > { %v1225_v11 = vand.u32 %v1204_v4, %v19572_v26  ;;  %v1228_v31 = vand.u32 %v1205_v27, %v19572_v26 }
  0xcd   : > { %2783 = vrot.lane.b32.xlu0 %v19438_v9, %s19306_s13 }
  0xce   : > { %2789 = vrot.lane.b32.xlu1 %v19462_v16, %s19306_s13  ;;  %v19739_v60 = vpop.permute.xlu0 %1417  ;;  %15438 = vmatmul.mubr.msk.bf16.vlgmr.msra.gmra.mxu0 %vm343_vm3, %v15437_v19  ;;  %v19742_v61 = vpop.permute.xlu1 %1419 }
  0xcf   : > { %1105 = vmatpush1.bf16.msra.mxu0 %v997_v58  ;;  %15439 = vmatmul.mubr.msk.bf16.vlgmr.msra.gmra.mxu1 %vm343_vm3, %v15437_v19  ;;  %v1435_v28 = vsel %vm1433_vm7, %v19739_v60, %v19742_v61 }
  0xd0   : > { %1146 = vmatpush1.bf16.msra.mxu1 %v1003_v59  ;;  %1247 = vmatprep.subr.bf16.mxu0 %v1213_v62  ;;  %v1449_v34 = vand.u32 %v1435_v28, %v19572_v26 }
  0xd1   : > { %1288 = vmatprep.subr.bf16.mxu1 %v1219_v63  ;;  %2791 = vrot.lane.b32.xlu0 %v19436_v8, %s19306_s13 }
  0xd2   : > { %2793 = vrot.lane.b32.xlu1 %v19448_v13, %s19306_s13  ;;  %v1416_v1 = vpop.permute.xlu0 %1415  ;;  %v1422_v2 = vpop.permute.xlu1 %1421  ;;  %1122 = vmatprep.mubr.bf16.mxu0 %v19295_v15 }
  0xd3   : > { %1163 = vmatprep.mubr.bf16.mxu1 %v19295_v15  ;;  %v1434_v36 = vsel %vm1433_vm7, %v1416_v1, %v19739_v60  ;;  %v1436_v39 = vsel %vm1433_vm7, %v19742_v61, %v1422_v2 }
  0xd4   : > { %v1446_v42 = vand.u32 %v1434_v36, %v19572_v26  ;;  %v1452_v43 = vand.u32 %v1436_v39, %v19572_v26 }
  0xd5   : > { %2795 = vrot.lane.b32.xlu0 %v19464_v17, %s19306_s13 }
  0xd6   : > { %2797 = vrot.lane.b32.xlu1 %v19472_v18, %s19306_s13  ;;  %v19763_v7 = vpop.permute.xlu0 %1423  ;;  %15440 = vmatmul.mubr.msk.bf16.vlgmr.msra.gmra.mxu0 %vm343_vm3, %v15437_v19  ;;  %v19766_v10 = vpop.permute.xlu1 %1425 }
  0xd7   : > { %1248 = vmatpush1.bf16.msra.mxu0 %v1210_v5  ;;  %15441 = vmatmul.mubr.msk.bf16.vlgmr.msra.gmra.mxu1 %vm343_vm3, %v15437_v19  ;;  %v1437_v29 = vsel %vm1433_vm7, %v1422_v2, %v19763_v7  ;;  %v1438_v49 = vsel %vm1433_vm7, %v19763_v7, %v19766_v10 }
  0xd8   : > { %1289 = vmatpush1.bf16.msra.mxu1 %v1216_v6  ;;  %1329 = vmatprep.subr.bf16.mxu0 %v1225_v11  ;;  %v1455_v35 = vand.u32 %v1437_v29, %v19572_v26  ;;  %v1458_v54 = vand.u32 %v1438_v49, %v19572_v26 }
  0xd9   : > { %1370 = vmatprep.subr.bf16.mxu1 %v1231_v20  ;;  %2799 = vrot.lane.b32.xlu0 %v19772_v21, %s19306_s13  ;;  %s19311_s13 = smov 25  }
  0xda   : > { %3013 = vrot.lane.b32.xlu1 %v19452_v14, %s19307_s9  ;;  %v1428_v24 = vpop.permute.xlu0 %1427  ;;  %v1430_v25 = vpop.permute.xlu1 %1429  ;;  %1265 = vmatprep.mubr.bf16.mxu0 %v19295_v15 }
  0xdb   : > { %1306 = vmatprep.mubr.bf16.mxu1 %v19295_v15  ;;  %v1439_v40 = vsel %vm1433_vm7, %v19766_v10, %v1428_v24  ;;  %v1440_v19 = vsel %vm1433_vm7, %v1428_v24, %v1430_v25  ;;  %v15453_v10 = vld [vmem:[%s24169_s1 + $0xc] sm:$0x3] }
  0xdc   : > { %v1461_v46 = vand.u32 %v1439_v40, %v19572_v26  ;;  %v1464_v55 = vand.u32 %v1440_v19, %v19572_v26 }
  0xdd   : > { %3015 = vrot.lane.b32.xlu0 %v19444_v12, %s19307_s9 }
  0xde   : > { %3011 = vrot.lane.b32.xlu1 %v19438_v9, %s19307_s9  ;;  %v1432_v32 = vpop.permute.xlu0 %1431  ;;  %15443 = vmatmul.mubr.msk.bf16.vlgmr.msra.gmra.mxu0 %vm343_vm3, %v15442_v22  ;;  %v1646_v33 = vpop.permute.xlu1 %1645 }
  0xdf   : > { %1330 = vmatpush1.bf16.msra.mxu0 %v1222_v30  ;;  %15444 = vmatmul.mubr.msk.bf16.vlgmr.msra.gmra.mxu1 %vm343_vm3, %v15442_v22  ;;  %v1441_v41 = vsel %vm1433_vm7, %v1430_v25, %v1432_v32  ;;  %vm3713_vm7 = vcmask 211968  }
  0xe0   : > { %1371 = vmatpush1.bf16.msra.mxu1 %v1228_v31  ;;  %1483 = vmatprep.subr.bf16.mxu0 %v1449_v34  ;;  %v1467_v47 = vand.u32 %v1441_v41, %v19572_v26 }
  0xe1   : > { %1524 = vmatprep.subr.bf16.mxu1 %v1455_v35  ;;  %3017 = vrot.lane.b32.xlu0 %v19462_v16, %s19307_s9 }
  0xe2   : > { %3019 = vrot.lane.b32.xlu1 %v19436_v8, %s19307_s9  ;;  %v1648_v37 = vpop.permute.xlu0 %1647  ;;  %v1644_v38 = vpop.permute.xlu1 %1643  ;;  %1347 = vmatprep.mubr.bf16.mxu0 %v19295_v15 }
  0xe3   : > { %1388 = vmatprep.mubr.bf16.mxu1 %v19295_v15  ;;  %v1663_v52 = vsel %vm1661_vm8, %v1646_v33, %v1648_v37  ;;  %v1662_v60 = vsel %vm1661_vm8, %v1644_v38, %v1646_v33 }
  0xe4   : > { %v1677_v58 = vand.u32 %v1663_v52, %v19572_v26  ;;  %v1674_v2 = vand.u32 %v1662_v60, %v19572_v26 }
  0xe5   : > { %3021 = vrot.lane.b32.xlu0 %v19448_v13, %s19307_s9 }
  0xe6   : > { %3023 = vrot.lane.b32.xlu1 %v19464_v17, %s19307_s9  ;;  %v1650_v44 = vpop.permute.xlu0 %1649  ;;  %15445 = vmatmul.mubr.msk.bf16.vlgmr.msra.gmra.mxu0 %vm343_vm3, %v15442_v22  ;;  %v19821_v45 = vpop.permute.xlu1 %1651 }
  0xe7   : > { %1484 = vmatpush1.bf16.msra.mxu0 %v1446_v42  ;;  %15446 = vmatmul.mubr.msk.bf16.vlgmr.msra.gmra.mxu1 %vm343_vm3, %v15442_v22  ;;  %v1665_v53 = vsel %vm1661_vm8, %v1650_v44, %v19821_v45  ;;  %v1664_v63 = vsel %vm1661_vm8, %v1648_v37, %v1650_v44 }
  0xe8   : > { %1525 = vmatpush1.bf16.msra.mxu1 %v1452_v43  ;;  %1565 = vmatprep.subr.bf16.mxu0 %v1461_v46  ;;  %v1683_v59 = vand.u32 %v1665_v53, %v19572_v26  ;;  %v1680_v3 = vand.u32 %v1664_v63, %v19572_v26 }
  0xe9   : > { %1606 = vmatprep.subr.bf16.mxu1 %v1467_v47  ;;  %3025 = vrot.lane.b32.xlu0 %v19472_v18, %s19307_s9 }
  0xea   : > { %3027 = vrot.lane.b32.xlu1 %v19772_v21, %s19307_s9  ;;  %v1654_v50 = vpop.permute.xlu0 %1653  ;;  %v1656_v51 = vpop.permute.xlu1 %1655  ;;  %1501 = vmatprep.mubr.bf16.mxu0 %v19295_v15  ;;  %s24176_s9 = smov 56  }
  0xeb   : > { %1542 = vmatprep.mubr.bf16.mxu1 %v19295_v15  ;;  %v1667_v0 = vsel %vm1661_vm8, %v1654_v50, %v1656_v51  ;;  %v1666_v11 = vsel %vm1661_vm8, %v19821_v45, %v1654_v50  ;;  %v15458_v45 = vld [vmem:[%s24169_s1 + $0xe] sm:$0x3] }
  0xec   : > { %v1689_v6 = vand.u32 %v1667_v0, %v19572_v26  ;;  %v1686_v27 = vand.u32 %v1666_v11, %v19572_v26 }
  0xed   : > { %3241 = vrot.lane.b32.xlu0 %v19452_v14, %s19308_s16 }
  0xee   : > { %3243 = vrot.lane.b32.xlu1 %v19444_v12, %s19308_s16  ;;  %v1658_v56 = vpop.permute.xlu0 %1657  ;;  %15449 = vmatmul.mubr.msk.bf16.vlgmr.msra.gmra.mxu0 %vm343_vm3, %v15447_v48  ;;  %v1660_v57 = vpop.permute.xlu1 %1659 }
  0xef   : > { %1566 = vmatpush1.bf16.msra.mxu0 %v1458_v54  ;;  %15450 = vmatmul.mubr.msk.bf16.vlgmr.msra.gmra.mxu1 %vm343_vm3, %v15447_v48  ;;  %v1669_v1 = vsel %vm1661_vm8, %v1658_v56, %v1660_v57  ;;  %v1668_v23 = vsel %vm1661_vm8, %v1656_v51, %v1658_v56  ;;  %vm3941_vm8 = vcmask 203776  }
  0xf0   : > { %1607 = vmatpush1.bf16.msra.mxu1 %v1464_v55  ;;  %1711 = vmatprep.subr.bf16.mxu0 %v1677_v58  ;;  %v1695_v7 = vand.u32 %v1669_v1, %v19572_v26  ;;  %v1692_v29 = vand.u32 %v1668_v23, %v19572_v26 }
  0xf1   : > { %1752 = vmatprep.subr.bf16.mxu1 %v1683_v59  ;;  %3239 = vrot.lane.b32.xlu0 %v19438_v9, %s19308_s16 }
  0xf2   : > { %3245 = vrot.lane.b32.xlu1 %v19462_v16, %s19308_s16  ;;  %v1874_v61 = vpop.permute.xlu0 %1873  ;;  %v1876_v62 = vpop.permute.xlu1 %1875  ;;  %1583 = vmatprep.mubr.bf16.mxu0 %v19295_v15 }
  0xf3   : > { %1624 = vmatprep.mubr.bf16.mxu1 %v19295_v15  ;;  %v1891_v24 = vsel %vm1889_vm9, %v1874_v61, %v1876_v62 }
  0xf4   : > { %v1905_v32 = vand.u32 %v1891_v24, %v19572_v26 }
  0xf5   : > { %3247 = vrot.lane.b32.xlu0 %v19436_v8, %s19308_s16 }
  0xf6   : > { %3249 = vrot.lane.b32.xlu1 %v19448_v13, %s19308_s16  ;;  %v1872_v4 = vpop.permute.xlu0 %1871  ;;  %15451 = vmatmul.mubr.msk.bf16.vlgmr.msra.gmra.mxu0 %vm343_vm3, %v15447_v48  ;;  %v1878_v5 = vpop.permute.xlu1 %1877 }
  0xf7   : > { %1712 = vmatpush1.bf16.msra.mxu0 %v1674_v2  ;;  %15452 = vmatmul.mubr.msk.bf16.vlgmr.msra.gmra.mxu1 %vm343_vm3, %v15447_v48  ;;  %v1890_v33 = vsel %vm1889_vm9, %v1872_v4, %v1874_v61  ;;  %v1892_v36 = vsel %vm1889_vm9, %v1876_v62, %v1878_v5 }
  0xf8   : > { %1753 = vmatpush1.bf16.msra.mxu1 %v1680_v3  ;;  %1793 = vmatprep.subr.bf16.mxu0 %v1689_v6  ;;  %v1902_v39 = vand.u32 %v1890_v33, %v19572_v26  ;;  %v1908_v41 = vand.u32 %v1892_v36, %v19572_v26 }
  0xf9   : > { %1834 = vmatprep.subr.bf16.mxu1 %v1695_v7  ;;  %3251 = vrot.lane.b32.xlu0 %v19464_v17, %s19308_s16 }
  0xfa   : > { %3253 = vrot.lane.b32.xlu1 %v19472_v18, %s19308_s16  ;;  %v1880_v20 = vpop.permute.xlu0 %1879  ;;  %v1882_v22 = vpop.permute.xlu1 %1881  ;;  %1729 = vmatprep.mubr.bf16.mxu0 %v19295_v15 }
  0xfb   : > { %v1893_v25 = vsel %vm1889_vm9, %v1878_v5, %v1880_v20  ;;  %1770 = vmatprep.mubr.bf16.mxu1 %v19295_v15  ;;  %v1894_v46 = vsel %vm1889_vm9, %v1880_v20, %v1882_v22  ;;  %v15463_v5 = vld [vmem:[%s24169_s1 + $0x10] sm:$0x3] }
  0xfc   : > { %v1911_v28 = vand.u32 %v1893_v25, %v19572_v26  ;;  %v1914_v19 = vand.u32 %v1894_v46, %v19572_v26 }
  0xfd   : > { %3255 = vrot.lane.b32.xlu0 %v19772_v21, %s19308_s16  ;;  %s19310_s16 = smov 26  }
  0xfe   : > { %3469 = vrot.lane.b32.xlu1 %v19452_v14, %s24176_s9  ;;  %v1884_v30 = vpop.permute.xlu0 %1883  ;;  %15454 = vmatmul.mubr.msk.bf16.vlgmr.msra.gmra.mxu0 %vm343_vm3, %v15453_v10  ;;  %v1886_v31 = vpop.permute.xlu1 %1885 }
  0xff   : > { %1794 = vmatpush1.bf16.msra.mxu0 %v1686_v27  ;;  %15455 = vmatmul.mubr.msk.bf16.vlgmr.msra.gmra.mxu1 %vm343_vm3, %v15453_v10  ;;  %v1895_v37 = vsel %vm1889_vm9, %v1882_v22, %v1884_v30  ;;  %v1896_v49 = vsel %vm1889_vm9, %v1884_v30, %v1886_v31 }
 0x100   : > { %1835 = vmatpush1.bf16.msra.mxu1 %v1692_v29  ;;  %1939 = vmatprep.subr.bf16.mxu0 %v1905_v32  ;;  %v1917_v44 = vand.u32 %v1895_v37, %v19572_v26  ;;  %v1920_v53 = vand.u32 %v1896_v49, %v19572_v26 }
 0x101   : > { %1980 = vmatprep.subr.bf16.mxu1 %v1911_v28  ;;  %3471 = vrot.lane.b32.xlu0 %v19444_v12, %s24176_s9 }
 0x102   : > { %3467 = vrot.lane.b32.xlu1 %v19438_v9, %s24176_s9  ;;  %v1888_v34 = vpop.permute.xlu0 %1887  ;;  %v2102_v35 = vpop.permute.xlu1 %2101  ;;  %1811 = vmatprep.mubr.bf16.mxu0 %v19295_v15 }
 0x103   : > { %v1897_v38 = vsel %vm1889_vm9, %v1886_v31, %v1888_v34  ;;  %1852 = vmatprep.mubr.bf16.mxu1 %v19295_v15 }
 0x104   : > { %v1923_v40 = vand.u32 %v1897_v38, %v19572_v26 }
 0x105   : > { %3473 = vrot.lane.b32.xlu0 %v19462_v16, %s24176_s9 }
 0x106   : > { %3475 = vrot.lane.b32.xlu1 %v19436_v8, %s24176_s9  ;;  %v2104_v42 = vpop.permute.xlu0 %2103  ;;  %15456 = vmatmul.mubr.msk.bf16.vlgmr.msra.gmra.mxu0 %vm343_vm3, %v15453_v10  ;;  %v2100_v43 = vpop.permute.xlu1 %2099 }
 0x107   : > { %1940 = vmatpush1.bf16.msra.mxu0 %v1902_v39  ;;  %15457 = vmatmul.mubr.msk.bf16.vlgmr.msra.gmra.mxu1 %vm343_vm3, %v15453_v10  ;;  %v2119_v50 = vsel %vm2117_vm10, %v2102_v35, %v2104_v42  ;;  %v2118_v57 = vsel %vm2117_vm10, %v2100_v43, %v2102_v35 }
 0x108   : > { %1981 = vmatpush1.bf16.msra.mxu1 %v1908_v41  ;;  %2021 = vmatprep.subr.bf16.mxu0 %v1917_v44  ;;  %v2133_v56 = vand.u32 %v2119_v50, %v19572_v26  ;;  %v2130_v63 = vand.u32 %v2118_v57, %v19572_v26  ;;  %v15468_v41 = vld [vmem:[%s24169_s1 + $0x12] sm:$0x3] }
 0x109   : > { %2062 = vmatprep.subr.bf16.mxu1 %v1923_v40  ;;  %3477 = vrot.lane.b32.xlu0 %v19448_v13, %s24176_s9 }
 0x10a   : > { %3479 = vrot.lane.b32.xlu1 %v19464_v17, %s24176_s9  ;;  %v2106_v47 = vpop.permute.xlu0 %2105  ;;  %v2108_v48 = vpop.permute.xlu1 %2107  ;;  %1957 = vmatprep.mubr.bf16.mxu0 %v19295_v15 }
 0x10b   : > { %v2121_v51 = vsel %vm2117_vm10, %v2106_v47, %v2108_v48  ;;  %1998 = vmatprep.mubr.bf16.mxu1 %v19295_v15  ;;  %v2120_v59 = vsel %vm2117_vm10, %v2104_v42, %v2106_v47 }
 0x10c   : > { %v2139_v52 = vand.u32 %v2121_v51, %v19572_v26  ;;  %v2136_v1 = vand.u32 %v2120_v59, %v19572_v26 }
 0x10d   : > { %3481 = vrot.lane.b32.xlu0 %v19472_v18, %s24176_s9 }
 0x10e   : > { %3483 = vrot.lane.b32.xlu1 %v19772_v21, %s24176_s9  ;;  %v2110_v54 = vpop.permute.xlu0 %2109  ;;  %15459 = vmatmul.mubr.msk.bf16.vlgmr.msra.gmra.mxu0 %vm343_vm3, %v15458_v45  ;;  %v2112_v55 = vpop.permute.xlu1 %2111  ;;  %s19323_s9 = smov 110  }
 0x10f   : > { %2022 = vmatpush1.bf16.msra.mxu0 %v1914_v19  ;;  %15460 = vmatmul.mubr.msk.bf16.vlgmr.msra.gmra.mxu1 %vm343_vm3, %v15458_v45  ;;  %v2123_v60 = vsel %vm2117_vm10, %v2110_v54, %v2112_v55  ;;  %v2122_v6 = vsel %vm2117_vm10, %v2108_v48, %v2110_v54 }
 0x110   : > { %2063 = vmatpush1.bf16.msra.mxu1 %v1920_v53  ;;  %2167 = vmatprep.subr.bf16.mxu0 %v2133_v56  ;;  %v2145_v3 = vand.u32 %v2123_v60, %v19572_v26  ;;  %v2142_v22 = vand.u32 %v2122_v6, %v19572_v26  ;;  %v20029_v53 = vld.sshfl [vmem:[%s19432_s17 + $0x10] sm:$0x33 pattern:$0x76325410] }
 0x111   : > { %2208 = vmatprep.subr.bf16.mxu1 %v2139_v52  ;;  %3697 = vrot.lane.b32.xlu0 %v19452_v14, %s19310_s16 }
 0x112   : > { %3699 = vrot.lane.b32.xlu1 %v19444_v12, %s19310_s16  ;;  %v2114_v58 = vpop.permute.xlu0 %2113  ;;  %2039 = vmatprep.mubr.bf16.mxu0 %v19295_v15 }
 0x113   : > { %v2116_v61 = vpop.permute.xlu1 %2115  ;;  %2080 = vmatprep.mubr.bf16.mxu1 %v19295_v15  ;;  %v2124_v10 = vsel %vm2117_vm10, %v2112_v55, %v2114_v58 }
 0x114   : > { %v2125_v62 = vsel %vm2117_vm10, %v2114_v58, %v2116_v61  ;;  %v2148_v23 = vand.u32 %v2124_v10, %v19572_v26 }
 0x115   : > { %v2151_v0 = vand.u32 %v2125_v62, %v19572_v26  ;;  %3695 = vrot.lane.b32.xlu0 %v19438_v9, %s19310_s16 }
 0x116   : > { %3701 = vrot.lane.b32.xlu1 %v19462_v16, %s19310_s16  ;;  %v2330_v2 = vpop.permute.xlu0 %2329  ;;  %15461 = vmatmul.mubr.msk.bf16.vlgmr.msra.gmra.mxu0 %vm343_vm3, %v15458_v45 }
 0x117   : > { %2168 = vmatpush1.bf16.msra.mxu0 %v2130_v63  ;;  %v2332_v4 = vpop.permute.xlu1 %2331  ;;  %15462 = vmatmul.mubr.msk.bf16.vlgmr.msra.gmra.mxu1 %vm343_vm3, %v15458_v45 }
 0x118   : > { %2209 = vmatpush1.bf16.msra.mxu1 %v2136_v1  ;;  %2249 = vmatprep.subr.bf16.mxu0 %v2145_v3  ;;  %v2347_v11 = vsel %vm2345_vm11, %v2330_v2, %v2332_v4  ;;  %v15473_v1 = vld [vmem:[%s24169_s1 + $0x14] sm:$0x3] }
 0x119   : > { %2290 = vmatprep.subr.bf16.mxu1 %v2151_v0  ;;  %3703 = vrot.lane.b32.xlu0 %v19436_v8, %s19310_s16  ;;  %v2361_v25 = vand.u32 %v2347_v11, %v19572_v26 }
 0x11a   : > { %3705 = vrot.lane.b32.xlu1 %v19448_v13, %s19310_s16  ;;  %v2328_v7 = vpop.permute.xlu0 %2327  ;;  %2185 = vmatprep.mubr.bf16.mxu0 %v19295_v15 }
 0x11b   : > { %v2334_v20 = vpop.permute.xlu1 %2333  ;;  %2226 = vmatprep.mubr.bf16.mxu1 %v19295_v15  ;;  %v2346_v30 = vsel %vm2345_vm11, %v2328_v7, %v2330_v2 }
 0x11c   : > { %v2348_v31 = vsel %vm2345_vm11, %v2332_v4, %v2334_v20  ;;  %v2358_v35 = vand.u32 %v2346_v30, %v19572_v26 }
 0x11d   : > { %3707 = vrot.lane.b32.xlu0 %v19464_v17, %s19310_s16  ;;  %v2364_v36 = vand.u32 %v2348_v31, %v19572_v26 }
 0x11e   : > { %3709 = vrot.lane.b32.xlu1 %v19472_v18, %s19310_s16  ;;  %v2336_v24 = vpop.permute.xlu0 %2335  ;;  %15464 = vmatmul.mubr.msk.bf16.vlgmr.msra.gmra.mxu0 %vm343_vm3, %v15463_v5 }
 0x11f   : > { %v2349_v27 = vsel %vm2345_vm11, %v2334_v20, %v2336_v24  ;;  %2250 = vmatpush1.bf16.msra.mxu0 %v2142_v22  ;;  %v2338_v28 = vpop.permute.xlu1 %2337  ;;  %15465 = vmatmul.mubr.msk.bf16.vlgmr.msra.gmra.mxu1 %vm343_vm3, %v15463_v5 }
 0x120   : > { %2291 = vmatpush1.bf16.msra.mxu1 %v2148_v23  ;;  %2395 = vmatprep.subr.bf16.mxu0 %v2361_v25  ;;  %v2367_v29 = vand.u32 %v2349_v27, %v19572_v26  ;;  %v2350_v42 = vsel %vm2345_vm11, %v2336_v24, %v2338_v28 }
 0x121   : > { %3711 = vrot.lane.b32.xlu0 %v19772_v21, %s19310_s16  ;;  %2267 = vmatprep.mubr.bf16.mxu0 %v19295_v15  ;;  %v2370_v47 = vand.u32 %v2350_v42, %v19572_v26  ;;  %s19316_s16 = smov 119  }
 0x122   : > { %3925 = vrot.lane.b32.xlu1 %v19452_v14, %s19311_s13  ;;  %2436 = vmatprep.subr.bf16.mxu1 %v2367_v29 }
 0x123   : > { %v2340_v32 = vpop.permute.xlu0 %2339  ;;  %2308 = vmatprep.mubr.bf16.mxu1 %v19295_v15 }
 0x124   : > { %v2351_v33 = vsel %vm2345_vm11, %v2338_v28, %v2340_v32  ;;  %v2342_v34 = vpop.permute.xlu1 %2341 }
 0x125   : > { %3927 = vrot.lane.b32.xlu0 %v19444_v12, %s19311_s13  ;;  %v2373_v21 = vand.u32 %v2351_v33, %v19572_v26  ;;  %v2352_v43 = vsel %vm2345_vm11, %v2340_v32, %v2342_v34 }
 0x126   : > { %3923 = vrot.lane.b32.xlu1 %v19438_v9, %s19311_s13  ;;  %15466 = vmatmul.mubr.msk.bf16.vlgmr.msra.gmra.mxu0 %vm343_vm3, %v15463_v5  ;;  %v2376_v49 = vand.u32 %v2352_v43, %v19572_v26 }
 0x127   : > { %v2344_v37 = vpop.permute.xlu0 %2343  ;;  %2396 = vmatpush1.bf16.msra.mxu0 %v2358_v35  ;;  %15467 = vmatmul.mubr.msk.bf16.vlgmr.msra.gmra.mxu1 %vm343_vm3, %v15463_v5 }
 0x128   : > { %v2353_v38 = vsel %vm2345_vm11, %v2342_v34, %v2344_v37  ;;  %v2558_v39 = vpop.permute.xlu1 %2557  ;;  %2437 = vmatpush1.bf16.msra.mxu1 %v2364_v36  ;;  %2477 = vmatprep.subr.bf16.mxu0 %v2373_v21  ;;  %v15478_v36 = vld [vmem:[%s24169_s1 + $0x16] sm:$0x3] }
 0x129   : > { %v2379_v40 = vand.u32 %v2353_v38, %v19572_v26  ;;  %3929 = vrot.lane.b32.xlu0 %v19462_v16, %s19311_s13  ;;  %2413 = vmatprep.mubr.bf16.mxu0 %v19295_v15 }
 0x12a   : > { %3931 = vrot.lane.b32.xlu1 %v19436_v8, %s19311_s13  ;;  %2454 = vmatprep.mubr.bf16.mxu1 %v19295_v15 }
 0x12b   : > { %v2560_v44 = vpop.permute.xlu0 %2559  ;;  %2518 = vmatprep.subr.bf16.mxu1 %v2379_v40 }
 0x12c   : > { %v2575_v45 = vsel %vm2573_vm12, %v2558_v39, %v2560_v44  ;;  %v2556_v46 = vpop.permute.xlu1 %2555 }
 0x12d   : > { %3933 = vrot.lane.b32.xlu0 %v19448_v13, %s19311_s13  ;;  %v2589_v48 = vand.u32 %v2575_v45, %v19572_v26  ;;  %v2574_v52 = vsel %vm2573_vm12, %v2556_v46, %v2558_v39 }
 0x12e   : > { %3935 = vrot.lane.b32.xlu1 %v19464_v17, %s19311_s13  ;;  %15469 = vmatmul.mubr.msk.bf16.vlgmr.msra.gmra.mxu0 %vm343_vm3, %v15468_v41  ;;  %v2586_v58 = vand.u32 %v2574_v52, %v19572_v26 }
 0x12f   : > { %v2562_v50 = vpop.permute.xlu0 %2561  ;;  %2478 = vmatpush1.bf16.msra.mxu0 %v2370_v47  ;;  %15470 = vmatmul.mubr.msk.bf16.vlgmr.msra.gmra.mxu1 %vm343_vm3, %v15468_v41 }
 0x130   : > { %v2564_v51 = vpop.permute.xlu1 %2563  ;;  %2519 = vmatpush1.bf16.msra.mxu1 %v2376_v49  ;;  %2623 = vmatprep.subr.bf16.mxu0 %v2589_v48  ;;  %v2576_v55 = vsel %vm2573_vm12, %v2560_v44, %v2562_v50 }
 0x131   : > { %v2577_v19 = vsel %vm2573_vm12, %v2562_v50, %v2564_v51  ;;  %3937 = vrot.lane.b32.xlu0 %v19472_v18, %s19311_s13  ;;  %2495 = vmatprep.mubr.bf16.mxu0 %v19295_v15  ;;  %v2592_v60 = vand.u32 %v2576_v55, %v19572_v26 }
 0x132   : > { %3939 = vrot.lane.b32.xlu1 %v20029_v53, %s19311_s13  ;;  %v2595_v54 = vand.u32 %v2577_v19, %v19572_v26  ;;  %2536 = vmatprep.mubr.bf16.mxu1 %v19295_v15  ;;  %s19315_s13 = smov 120  }
 0x133   : > { %v2566_v56 = vpop.permute.xlu0 %2565 }
 0x134   : > { %v2568_v57 = vpop.permute.xlu1 %2567  ;;  %2664 = vmatprep.subr.bf16.mxu1 %v2595_v54  ;;  %v2578_v2 = vsel %vm2573_vm12, %v2564_v51, %v2566_v56 }
 0x135   : > { %v2579_v59 = vsel %vm2573_vm12, %v2566_v56, %v2568_v57  ;;  %4153 = vrot.lane.b32.xlu0 %v19452_v14, %s19312_s22  ;;  %v2598_v7 = vand.u32 %v2578_v2, %v19572_v26 }
 0x136   : > { %4155 = vrot.lane.b32.xlu1 %v19444_v12, %s19312_s22  ;;  %15471 = vmatmul.mubr.msk.bf16.vlgmr.msra.gmra.mxu0 %vm343_vm3, %v15468_v41  ;;  %v2601_v61 = vand.u32 %v2579_v59, %v19572_v26 }
 0x137   : > { %v2570_v62 = vpop.permute.xlu0 %2569  ;;  %2624 = vmatpush1.bf16.msra.mxu0 %v2586_v58  ;;  %15472 = vmatmul.mubr.msk.bf16.vlgmr.msra.gmra.mxu1 %vm343_vm3, %v15468_v41 }
 0x138   : > { %v2572_v63 = vpop.permute.xlu1 %2571  ;;  %2665 = vmatpush1.bf16.msra.mxu1 %v2592_v60  ;;  %2705 = vmatprep.subr.bf16.mxu0 %v2601_v61  ;;  %v2580_v4 = vsel %vm2573_vm12, %v2568_v57, %v2570_v62  ;;  %v15483_v60 = vld [vmem:[%s24169_s1 + $0x18] sm:$0x3] }
 0x139   : > { %v2581_v0 = vsel %vm2573_vm12, %v2570_v62, %v2572_v63  ;;  %4151 = vrot.lane.b32.xlu0 %v19438_v9, %s19312_s22  ;;  %2641 = vmatprep.mubr.bf16.mxu0 %v19295_v15  ;;  %v2604_v11 = vand.u32 %v2580_v4, %v19572_v26  ;;  %vm4169_vm12 = vcmask 195584  }
 0x13a   : > { %v2607_v3 = vand.u32 %v2581_v0, %v19572_v26  ;;  %4157 = vrot.lane.b32.xlu1 %v19462_v16, %s19312_s22  ;;  %2682 = vmatprep.mubr.bf16.mxu1 %v19295_v15 }
 0x13b   : > { %v2786_v5 = vpop.permute.xlu0 %2785 }
 0x13c   : > { %v2788_v6 = vpop.permute.xlu1 %2787  ;;  %2746 = vmatprep.subr.bf16.mxu1 %v2607_v3 }
 0x13d   : > { %v2803_v10 = vsel %vm2801_vm13, %v2786_v5, %v2788_v6  ;;  %4159 = vrot.lane.b32.xlu0 %v19436_v8, %s19312_s22 }
 0x13e   : > { %4161 = vrot.lane.b32.xlu1 %v19448_v13, %s19312_s22  ;;  %15474 = vmatmul.mubr.msk.bf16.vlgmr.msra.gmra.mxu0 %vm343_vm3, %v15473_v1  ;;  %v2817_v20 = vand.u32 %v2803_v10, %v19572_v26 }
 0x13f   : > { %v2784_v22 = vpop.permute.xlu0 %2783  ;;  %2706 = vmatpush1.bf16.msra.mxu0 %v2598_v7  ;;  %15475 = vmatmul.mubr.msk.bf16.vlgmr.msra.gmra.mxu1 %vm343_vm3, %v15473_v1 }
 0x140   : > { %v2790_v23 = vpop.permute.xlu1 %2789  ;;  %2747 = vmatpush1.bf16.msra.mxu1 %v2604_v11  ;;  %2851 = vmatprep.subr.bf16.mxu0 %v2817_v20  ;;  %v2802_v24 = vsel %vm2801_vm13, %v2784_v22, %v2786_v5 }
 0x141   : > { %4163 = vrot.lane.b32.xlu0 %v19464_v17, %s19312_s22  ;;  %2723 = vmatprep.mubr.bf16.mxu0 %v19295_v15  ;;  %v2804_v27 = vsel %vm2801_vm13, %v2788_v6, %v2790_v23  ;;  %v2814_v30 = vand.u32 %v2802_v24, %v19572_v26 }
 0x142   : > { %4165 = vrot.lane.b32.xlu1 %v19472_v18, %s19312_s22  ;;  %2764 = vmatprep.mubr.bf16.mxu1 %v19295_v15  ;;  %v2820_v32 = vand.u32 %v2804_v27, %v19572_v26 }
 0x143   : > { %v2792_v25 = vpop.permute.xlu0 %2791 }
 0x144   : > { %v2805_v28 = vsel %vm2801_vm13, %v2790_v23, %v2792_v25  ;;  %v2794_v29 = vpop.permute.xlu1 %2793 }
 0x145   : > { %4167 = vrot.lane.b32.xlu0 %v20029_v53, %s19312_s22  ;;  %v2823_v31 = vand.u32 %v2805_v28, %v19572_v26  ;;  %v2806_v37 = vsel %vm2801_vm13, %v2792_v25, %v2794_v29  ;;  %s24186_s22 = smov 90  }
 0x146   : > { %4381 = vrot.lane.b32.xlu1 %v19452_v14, %s19313_s15  ;;  %15476 = vmatmul.mubr.msk.bf16.vlgmr.msra.gmra.mxu0 %vm343_vm3, %v15473_v1  ;;  %v2826_v42 = vand.u32 %v2806_v37, %v19572_v26 }
 0x147   : > { %v2796_v33 = vpop.permute.xlu0 %2795  ;;  %2852 = vmatpush1.bf16.msra.mxu0 %v2814_v30  ;;  %15477 = vmatmul.mubr.msk.bf16.vlgmr.msra.gmra.mxu1 %vm343_vm3, %v15473_v1 }
 0x148   : > { %v2807_v34 = vsel %vm2801_vm13, %v2794_v29, %v2796_v33  ;;  %v2798_v35 = vpop.permute.xlu1 %2797  ;;  %2892 = vmatprep.subr.bf16.mxu1 %v2823_v31  ;;  %2869 = vmatprep.mubr.bf16.mxu0 %v19295_v15 }
 0x149   : > { %2893 = vmatpush1.bf16.msra.mxu1 %v2820_v32  ;;  %4383 = vrot.lane.b32.xlu0 %v19444_v12, %s19313_s15  ;;  %v2829_v21 = vand.u32 %v2807_v34, %v19572_v26  ;;  %v2808_v39 = vsel %vm2801_vm13, %v2796_v33, %v2798_v35 }
 0x14a   : > { %4379 = vrot.lane.b32.xlu1 %v19438_v9, %s19313_s15  ;;  %2910 = vmatprep.mubr.bf16.mxu1 %v19295_v15  ;;  %v2832_v44 = vand.u32 %v2808_v39, %v19572_v26 }
 0x14b   : > { %v2800_v38 = vpop.permute.xlu0 %2799  ;;  %2933 = vmatprep.subr.bf16.mxu0 %v2829_v21 }
 0x14c   : > { %v2809_v40 = vsel %vm2801_vm13, %v2798_v35, %v2800_v38  ;;  %v3014_v41 = vpop.permute.xlu1 %3013  ;;  %vm4397_vm13 = vcmask 187392  }
 0x14d   : > { %v2835_v43 = vand.u32 %v2809_v40, %v19572_v26  ;;  %4385 = vrot.lane.b32.xlu0 %v19462_v16, %s19313_s15 }
 0x14e   : > { %4387 = vrot.lane.b32.xlu1 %v19436_v8, %s19313_s15  ;;  %15479 = vmatmul.mubr.msk.bf16.vlgmr.msra.gmra.mxu0 %vm343_vm3, %v15478_v36 }
 0x14f   : > { %v3016_v45 = vpop.permute.xlu0 %3015  ;;  %2934 = vmatpush1.bf16.msra.mxu0 %v2826_v42  ;;  %15480 = vmatmul.mubr.msk.bf16.vlgmr.msra.gmra.mxu1 %vm343_vm3, %v15478_v36 }
 0x150   : > { %v3031_v46 = vsel %vm3029_vm14, %v3014_v41, %v3016_v45  ;;  %v3012_v47 = vpop.permute.xlu1 %3011  ;;  %2974 = vmatprep.subr.bf16.mxu1 %v2835_v43  ;;  %2951 = vmatprep.mubr.bf16.mxu0 %v19295_v15 }
 0x151   : > { %2975 = vmatpush1.bf16.msra.mxu1 %v2832_v44  ;;  %4389 = vrot.lane.b32.xlu0 %v19448_v13, %s19313_s15  ;;  %v3045_v48 = vand.u32 %v3031_v46, %v19572_v26  ;;  %v3030_v49 = vsel %vm3029_vm14, %v3012_v47, %v3014_v41  ;;  %v15488_v41 = vld [vmem:[%s24169_s1 + $0x1a] sm:$0x3] }
 0x152   : > { %4391 = vrot.lane.b32.xlu1 %v19464_v17, %s19313_s15  ;;  %2992 = vmatprep.mubr.bf16.mxu1 %v19295_v15  ;;  %v3042_v52 = vand.u32 %v3030_v49, %v19572_v26 }
 0x153   : > { %v3018_v50 = vpop.permute.xlu0 %3017  ;;  %3079 = vmatprep.subr.bf16.mxu0 %v3045_v48 }
 0x154   : > { %v3032_v51 = vsel %vm3029_vm14, %v3016_v45, %v3018_v50  ;;  %v3020_v19 = vpop.permute.xlu1 %3019 }
 0x155   : > { %v3048_v54 = vand.u32 %v3032_v51, %v19572_v26  ;;  %v3033_v55 = vsel %vm3029_vm14, %v3018_v50, %v3020_v19  ;;  %4393 = vrot.lane.b32.xlu0 %v19472_v18, %s19313_s15 }
 0x156   : > { %4395 = vrot.lane.b32.xlu1 %v20029_v53, %s19313_s15  ;;  %15481 = vmatmul.mubr.msk.bf16.vlgmr.msra.gmra.mxu0 %vm343_vm3, %v15478_v36  ;;  %v3051_v56 = vand.u32 %v3033_v55, %v19572_v26  ;;  %s19335_s15 = smov 52  }
 0x157   : > { %v3022_v57 = vpop.permute.xlu0 %3021  ;;  %3080 = vmatpush1.bf16.msra.mxu0 %v3042_v52  ;;  %15482 = vmatmul.mubr.msk.bf16.vlgmr.msra.gmra.mxu1 %vm343_vm3, %v15478_v36 }
 0x158   : > { %v3024_v58 = vpop.permute.xlu1 %3023  ;;  %3120 = vmatprep.subr.bf16.mxu1 %v3051_v56  ;;  %3097 = vmatprep.mubr.bf16.mxu0 %v19295_v15  ;;  %v3034_v61 = vsel %vm3029_vm14, %v3020_v19, %v3022_v57 }
 0x159   : > { %v3035_v59 = vsel %vm3029_vm14, %v3022_v57, %v3024_v58  ;;  %3121 = vmatpush1.bf16.msra.mxu1 %v3048_v54  ;;  %4609 = vrot.lane.b32.xlu0 %v19452_v14, %s19314_s23  ;;  %v3054_v2 = vand.u32 %v3034_v61, %v19572_v26 }
 0x15a   : > { %4611 = vrot.lane.b32.xlu1 %v19444_v12, %s19314_s23  ;;  %v3057_v62 = vand.u32 %v3035_v59, %v19572_v26  ;;  %3138 = vmatprep.mubr.bf16.mxu1 %v19295_v15 }
 0x15b   : > { %v3026_v63 = vpop.permute.xlu0 %3025 }
 0x15c   : > { %v3036_v0 = vsel %vm3029_vm14, %v3024_v58, %v3026_v63  ;;  %3161 = vmatprep.subr.bf16.mxu0 %v3057_v62  ;;  %v3028_v1 = vpop.permute.xlu1 %3027 }
 0x15d   : > { %v3060_v3 = vand.u32 %v3036_v0, %v19572_v26  ;;  %v3037_v4 = vsel %vm3029_vm14, %v3026_v63, %v3028_v1  ;;  %4607 = vrot.lane.b32.xlu0 %v19438_v9, %s19314_s23  ;;  %vm4625_vm14 = vcmask 179200  }
 0x15e   : > { %v3063_v5 = vand.u32 %v3037_v4, %v19572_v26  ;;  %4613 = vrot.lane.b32.xlu1 %v19462_v16, %s19314_s23  ;;  %v20151_v6 = vpop.f32.mrf.mxu0  ;;  %15484 = vmatmul.mubr.msk.bf16.vlgmr.msra.gmra.mxu0 %vm343_vm3, %v15483_v60 }
 0x15f   : > { %v3242_v7 = vpop.permute.xlu0 %3241  ;;  %v20154_v10 = vpop.f32.mrf.mxu1  ;;  %3162 = vmatpush1.bf16.msra.mxu0 %v3054_v2  ;;  %15485 = vmatmul.mubr.msk.bf16.vlgmr.msra.gmra.mxu1 %vm343_vm3, %v15483_v60 }
 0x160   : > { %v3244_v11 = vpop.permute.xlu1 %3243  ;;  %3202 = vmatprep.subr.bf16.mxu1 %v3063_v5  ;;  %v20157_v20 = vpop.f32.mrf.mxu0  ;;  %3179 = vmatprep.mubr.bf16.mxu0 %v19295_v15 }
 0x161   : > { %v3259_v9 = vsel %vm3257_vm15, %v3242_v7, %v3244_v11  ;;  %3203 = vmatpush1.bf16.msra.mxu1 %v3060_v3  ;;  %4615 = vrot.lane.b32.xlu0 %v19436_v8, %s19314_s23  ;;  %v20163_v22 = vpop.f32.mrf.mxu1 }
 0x162   : > { %4617 = vrot.lane.b32.xlu1 %v19448_v13, %s19314_s23  ;;  %v413_v23 = vpop.f32.mrf.mxu0  ;;  %v3273_v24 = vand.u32 %v3259_v9, %v19572_v26  ;;  %3220 = vmatprep.mubr.bf16.mxu1 %v19295_v15 }
 0x163   : > { %v3240_v25 = vpop.permute.xlu0 %3239  ;;  %v454_v27 = vpop.f32.mrf.mxu1 }
 0x164   : > { %v3258_v28 = vsel %vm3257_vm15, %v3240_v25, %v3242_v7  ;;  %3307 = vmatprep.subr.bf16.mxu0 %v3273_v24  ;;  %v3246_v29 = vpop.permute.xlu1 %3245  ;;  %v414_v30 = vpop.f32.mrf.mxu0 }
 0x165   : > { %v3270_v31 = vand.u32 %v3258_v28, %v19572_v26  ;;  %4619 = vrot.lane.b32.xlu0 %v19464_v17, %s19314_s23  ;;  %v455_v32 = vpop.f32.mrf.mxu1  ;;  %v3260_v34 = vsel %vm3257_vm15, %v3244_v11, %v3246_v29 }
 0x166   : > { %4621 = vrot.lane.b32.xlu1 %v19472_v18, %s19314_s23  ;;  %v20175_v33 = vpop.f32.mrf.mxu0  ;;  %15486 = vmatmul.mubr.msk.bf16.vlgmr.msra.gmra.mxu0 %vm343_vm3, %v15483_v60  ;;  %v3276_v42 = vand.u32 %v3260_v34, %v19572_v26 }
 0x167   : > { %v3248_v35 = vpop.permute.xlu0 %3247  ;;  %v20179_v21 = vpop.f32.mrf.mxu1  ;;  %3308 = vmatpush1.bf16.msra.mxu0 %v3270_v31  ;;  %15487 = vmatmul.mubr.msk.bf16.vlgmr.msra.gmra.mxu1 %vm343_vm3, %v15483_v60 }
 0x168   : > { %v3261_v36 = vsel %vm3257_vm15, %v3246_v29, %v3248_v35  ;;  %v3250_v37 = vpop.permute.xlu1 %3249  ;;  %v20183_v38 = vpop.f32.mrf.mxu0  ;;  %3325 = vmatprep.mubr.bf16.mxu0 %v19295_v15  ;;  %3366 = vmatprep.mubr.bf16.mxu1 %v19295_v15 }
 0x169   : > { %4623 = vrot.lane.b32.xlu0 %v20029_v53, %s19314_s23  ;;  %v20189_v39 = vpop.f32.mrf.mxu1  ;;  %v3279_v40 = vand.u32 %v3261_v36, %v19572_v26  ;;  %v3262_v44 = vsel %vm3257_vm15, %v3248_v35, %v3250_v37  ;;  %s19326_s23 = smov 89  }
 0x16a   : > { %4837 = vrot.lane.b32.xlu1 %v19444_v12, %s19315_s13  ;;  %v495_v43 = vpop.f32.mrf.mxu0  ;;  %v3282_v19 = vand.u32 %v3262_v44, %v19572_v26 }
 0x16b   : > { %v3252_v45 = vpop.permute.xlu0 %3251  ;;  %v536_v46 = vpop.f32.mrf.mxu1  ;;  %3348 = vmatprep.subr.bf16.mxu1 %v3279_v40 }
 0x16c   : > { %v3263_v47 = vsel %vm3257_vm15, %v3250_v37, %v3252_v45  ;;  %v3254_v48 = vpop.permute.xlu1 %3253  ;;  %3349 = vmatpush1.bf16.msra.mxu1 %v3276_v42  ;;  %v496_v49 = vpop.f32.mrf.mxu0 }
 0x16d   : > { %4839 = vrot.lane.b32.xlu0 %v19462_v16, %s19315_s13  ;;  %v537_v50 = vpop.f32.mrf.mxu1  ;;  %v3285_v51 = vand.u32 %v3263_v47, %v19572_v26  ;;  %v3264_v54 = vsel %vm3257_vm15, %v3252_v45, %v3254_v48 }
 0x16e   : > { %4835 = vrot.lane.b32.xlu1 %v19452_v14, %s19315_s13  ;;  %v600_v52 = vpop.f32.mrf.mxu0  ;;  %15489 = vmatmul.mubr.msk.bf16.vlgmr.msra.gmra.mxu0 %vm343_vm3, %v15488_v41  ;;  %v3288_v1 = vand.u32 %v3264_v54, %v19572_v26 }
 0x16f   : > { %v20209_v55 = vadd.f32 %v600_v52, %v20151_v6  ;;  %v3256_v56 = vpop.permute.xlu0 %3255  ;;  %3389 = vmatprep.subr.bf16.mxu0 %v3285_v51  ;;  %v641_v57 = vpop.f32.mrf.mxu1  ;;  %15490 = vmatmul.mubr.msk.bf16.vlgmr.msra.gmra.mxu1 %vm343_vm3, %v15488_v41 }
 0x170   : > { %v3265_v58 = vsel %vm3257_vm15, %v3254_v48, %v3256_v56  ;;  %v3470_v59 = vpop.permute.xlu1 %3469  ;;  %v20214_v60 = vadd.f32 %v641_v57, %v20154_v10  ;;  %3390 = vmatpush1.bf16.msra.mxu0 %v3282_v19  ;;  %v602_v61 = vpop.f32.mrf.mxu0  ;;  %3407 = vmatprep.mubr.bf16.mxu0 %v19295_v15  ;;  %vm4851_vm15 = vcmask 982016  }
 0x171   : > { %v3291_v62 = vand.u32 %v3265_v58, %v19572_v26  ;;  %v20219_v63 = vadd.f32 %v602_v61, %v20157_v20  ;;  %4841 = vrot.lane.b32.xlu0 %v19436_v8, %s19315_s13  ;;  %v643_v0 = vpop.f32.mrf.mxu1  ;;  %3448 = vmatprep.mubr.bf16.mxu1 %v19295_v15 }
 0x172   : > { %4843 = vrot.lane.b32.xlu1 %v19448_v13, %s19315_s13  ;;  %v20228_v2 = vadd.f32 %v643_v0, %v20163_v22  ;;  %v604_v3 = vpop.f32.mrf.mxu0 }
 0x173   : > { %v3472_v4 = vpop.permute.xlu0 %3471  ;;  %v645_v5 = vpop.f32.mrf.mxu1  ;;  %3430 = vmatprep.subr.bf16.mxu1 %v3291_v62 }
 0x174   : > { %v3487_v6 = vsel %vm3485_vm0, %v3470_v59, %v3472_v4  ;;  %v3468_v7 = vpop.permute.xlu1 %3467  ;;  %3431 = vmatpush1.bf16.msra.mxu1 %v3288_v1  ;;  %v605_v10 = vpop.f32.mrf.mxu0 }
 0x175   : > { %v3486_v11 = vsel %vm3485_vm0, %v3468_v7, %v3470_v59  ;;  %4845 = vrot.lane.b32.xlu0 %v19464_v17, %s19315_s13  ;;  %v646_v20 = vpop.f32.mrf.mxu1  ;;  %v3501_v9 = vand.u32 %v3487_v6, %v19572_v26  ;;  %v20310_v6 = vld.sshfl [vmem:[%s19432_s17 + $0x10] sm:$0x33 pattern:$0x76325410]  ;;  %s19325_s17 = smov 106  }
 0x176   : > { %v3498_v22 = vand.u32 %v3486_v11, %v19572_v26  ;;  %4847 = vrot.lane.b32.xlu1 %v19472_v18, %s19315_s13  ;;  %v682_v23 = vpop.f32.mrf.mxu0  ;;  %15491 = vmatmul.mubr.msk.bf16.vlgmr.msra.gmra.mxu0 %vm343_vm3, %v15488_v41  ;;  %v20314_v7 = vcombine.high %v20310_v6, %v20310_v6 }
 0x177   : > { %v20240_v24 = vadd.f32 %v682_v23, %v20175_v33  ;;  %v3474_v25 = vpop.permute.xlu0 %3473  ;;  %3535 = vmatprep.subr.bf16.mxu0 %v3501_v9  ;;  %v723_v27 = vpop.f32.mrf.mxu1  ;;  %15492 = vmatmul.mubr.msk.bf16.vlgmr.msra.gmra.mxu1 %vm343_vm3, %v15488_v41 }
 0x178   : > { %v3488_v28 = vsel %vm3485_vm0, %v3472_v4, %v3474_v25  ;;  %v3476_v29 = vpop.permute.xlu1 %3475  ;;  %v20245_v30 = vadd.f32 %v723_v27, %v20179_v21  ;;  %3536 = vmatpush1.bf16.msra.mxu0 %v3498_v22  ;;  %v684_v31 = vpop.f32.mrf.mxu0  ;;  %3553 = vmatprep.mubr.bf16.mxu0 %v19295_v15  ;;  %v20259_v21 = vld [vmem:[%s24169_s1 + $0x1c] sm:$0x3] }
 0x179   : > { %v3504_v32 = vand.u32 %v3488_v28, %v19572_v26  ;;  %v3489_v33 = vsel %vm3485_vm0, %v3474_v25, %v3476_v29  ;;  %v20251_v34 = vadd.f32 %v684_v31, %v20183_v38  ;;  %4849 = vrot.lane.b32.xlu0 %v20029_v53, %s19315_s13  ;;  %v725_v35 = vpop.f32.mrf.mxu1  ;;  %3594 = vmatprep.mubr.bf16.mxu1 %v19295_v15  ;;  %v20341_v31 = vld [vmem:[%s24169_s1 + $0x1e] sm:$0x3]  ;;  %s19317_s13 = smov 118  }
 0x17a   : > { %5063 = vrot.lane.b32.xlu1 %v19444_v12, %s19316_s16  ;;  %v20264_v36 = vadd.f32 %v725_v35, %v20189_v39  ;;  %v686_v37 = vpop.f32.mrf.mxu0  ;;  %v3507_v38 = vand.u32 %v3489_v33, %v19572_v26 }
 0x17b   : > { %v3478_v40 = vpop.permute.xlu0 %3477  ;;  %v727_v53 = vpop.f32.mrf.mxu1 }
 0x17c   : > { %v3490_v41 = vsel %vm3485_vm0, %v3476_v29, %v3478_v40  ;;  %v3480_v42 = vpop.permute.xlu1 %3479  ;;  %3576 = vmatprep.subr.bf16.mxu1 %v3507_v38  ;;  %v687_v43 = vpop.f32.mrf.mxu0 }
 0x17d   : > { %v3510_v44 = vand.u32 %v3490_v41, %v19572_v26  ;;  %v3491_v45 = vsel %vm3485_vm0, %v3478_v40, %v3480_v42  ;;  %3577 = vmatpush1.bf16.msra.mxu1 %v3504_v32  ;;  %5065 = vrot.lane.b32.xlu0 %v19462_v16, %s19316_s16  ;;  %v728_v39 = vpop.f32.mrf.mxu1 }
 0x17e   : > { %5061 = vrot.lane.b32.xlu1 %v19452_v14, %s19316_s16  ;;  %v817_v46 = vpop.f32.mrf.mxu0  ;;  %15494 = vmatmul.mubr.msk.bf16.vlgmr.msra.gmra.mxu0 %vm343_vm3, %v20259_v21  ;;  %v3513_v47 = vand.u32 %v3491_v45, %v19572_v26 }
 0x17f   : > { %v3482_v48 = vpop.permute.xlu0 %3481  ;;  %v20278_v49 = vadd.f32 %v817_v46, %v20209_v55  ;;  %v858_v50 = vpop.f32.mrf.mxu1  ;;  %3635 = vmatprep.mubr.bf16.mxu0 %v19295_v15 }
 0x180   : > { %v3492_v51 = vsel %vm3485_vm0, %v3480_v42, %v3482_v48  ;;  %3617 = vmatprep.subr.bf16.mxu0 %v3513_v47  ;;  %v3484_v19 = vpop.permute.xlu1 %3483  ;;  %v20283_v52 = vadd.f32 %v858_v50, %v20214_v60  ;;  %15495 = vmatmul.mubr.msk.bf16.vlgmr.msra.gmra.mxu1 %vm343_vm3, %v20259_v21  ;;  %v819_v54 = vpop.f32.mrf.mxu0 }
 0x181   : > { %v3516_v56 = vand.u32 %v3492_v51, %v19572_v26  ;;  %v3493_v55 = vsel %vm3485_vm0, %v3482_v48, %v3484_v19  ;;  %3618 = vmatpush1.bf16.msra.mxu0 %v3510_v44  ;;  %5067 = vrot.lane.b32.xlu0 %v19436_v8, %s19316_s16  ;;  %v20292_v57 = vadd.f32 %v819_v54, %v20219_v63  ;;  %v860_v58 = vpop.f32.mrf.mxu1 }
 0x182   : > { %v3519_v59 = vand.u32 %v3493_v55, %v19572_v26  ;;  %5069 = vrot.lane.b32.xlu1 %v19448_v13, %s19316_s16  ;;  %v20298_v60 = vadd.f32 %v860_v58, %v20228_v2  ;;  %v821_v61 = vpop.f32.mrf.mxu0  ;;  %3676 = vmatprep.mubr.bf16.mxu1 %v19295_v15 }
 0x183   : > { %v3698_v62 = vpop.permute.xlu0 %3697  ;;  %v862_v0 = vpop.f32.mrf.mxu1 }
 0x184   : > { %v3700_v1 = vpop.permute.xlu1 %3699  ;;  %3658 = vmatprep.subr.bf16.mxu1 %v3519_v59  ;;  %v822_v3 = vpop.f32.mrf.mxu0 }
 0x185   : > { %v3715_v63 = vsel %vm3713_vm7, %v3698_v62, %v3700_v1  ;;  %3659 = vmatpush1.bf16.msra.mxu1 %v3516_v56  ;;  %5071 = vrot.lane.b32.xlu0 %v19464_v17, %s19316_s16  ;;  %v863_v4 = vpop.f32.mrf.mxu1 }
 0x186   : > { %5073 = vrot.lane.b32.xlu1 %v19472_v18, %s19316_s16  ;;  %v899_v2 = vpop.f32.mrf.mxu0  ;;  %15496 = vmatmul.mubr.msk.bf16.vlgmr.msra.gmra.mxu0 %vm343_vm3, %v20259_v21  ;;  %v3729_v5 = vand.u32 %v3715_v63, %v19572_v26 }
 0x187   : > { %v3696_v10 = vpop.permute.xlu0 %3695  ;;  %v20317_v11 = vadd.f32 %v899_v2, %v20240_v24  ;;  %v940_v20 = vpop.f32.mrf.mxu1  ;;  %3781 = vmatprep.mubr.bf16.mxu0 %v19295_v15 }
 0x188   : > { %v3714_v9 = vsel %vm3713_vm7, %v3696_v10, %v3698_v62  ;;  %3763 = vmatprep.subr.bf16.mxu0 %v3729_v5  ;;  %v3702_v22 = vpop.permute.xlu1 %3701  ;;  %v20322_v23 = vadd.f32 %v940_v20, %v20245_v30  ;;  %15497 = vmatmul.mubr.msk.bf16.vlgmr.msra.gmra.mxu1 %vm343_vm3, %v20259_v21  ;;  %v901_v25 = vpop.f32.mrf.mxu0 }
 0x189   : > { %v3726_v27 = vand.u32 %v3714_v9, %v19572_v26  ;;  %5075 = vrot.lane.b32.xlu0 %v20310_v6, %s19316_s16  ;;  %v20330_v24 = vadd.f32 %v901_v25, %v20251_v34  ;;  %v942_v28 = vpop.f32.mrf.mxu1  ;;  %3822 = vmatprep.mubr.bf16.mxu1 %v19295_v15  ;;  %v3716_v32 = vsel %vm3713_vm7, %v3700_v1, %v3702_v22 }
 0x18a   : > { %5077 = vrot.lane.b32.xlu1 %v20314_v7, %s19316_s16  ;;  %v20336_v29 = vadd.f32 %v942_v28, %v20264_v36  ;;  %v903_v30 = vpop.f32.mrf.mxu0  ;;  %v3732_v40 = vand.u32 %v3716_v32, %v19572_v26  ;;  %s19318_s16 = smov 117  }
 0x18b   : > { %v3704_v33 = vpop.permute.xlu0 %3703  ;;  %3764 = vmatpush1.bf16.msra.mxu0 %v3726_v27  ;;  %v944_v34 = vpop.f32.mrf.mxu1 }
 0x18c   : > { %v3717_v35 = vsel %vm3713_vm7, %v3702_v22, %v3704_v33  ;;  %v3706_v21 = vpop.permute.xlu1 %3705  ;;  %v904_v37 = vpop.f32.mrf.mxu0 }
 0x18d   : > { %5291 = vrot.lane.b32.xlu0 %v19444_v12, %s19317_s13  ;;  %v945_v36 = vpop.f32.mrf.mxu1  ;;  %v3735_v38 = vand.u32 %v3717_v35, %v19572_v26  ;;  %v3718_v41 = vsel %vm3713_vm7, %v3704_v33, %v3706_v21 }
 0x18e   : > { %5293 = vrot.lane.b32.xlu1 %v19462_v16, %s19317_s13  ;;  %v1042_v53 = vpop.f32.mrf.mxu0  ;;  %15499 = vmatmul.mubr.msk.bf16.vlgmr.msra.gmra.mxu0 %vm343_vm3, %v20341_v31  ;;  %v3738_v51 = vand.u32 %v3718_v41, %v19572_v26 }
 0x18f   : > { %v3708_v42 = vpop.permute.xlu0 %3707  ;;  %v20355_v43 = vadd.f32 %v1042_v53, %v20278_v49  ;;  %v1083_v44 = vpop.f32.mrf.mxu1  ;;  %3804 = vmatprep.subr.bf16.mxu1 %v3735_v38  ;;  %3863 = vmatprep.mubr.bf16.mxu0 %v19295_v15 }
 0x190   : > { %v3719_v45 = vsel %vm3713_vm7, %v3706_v21, %v3708_v42  ;;  %v3710_v39 = vpop.permute.xlu1 %3709  ;;  %v20360_v46 = vadd.f32 %v1083_v44, %v20283_v52  ;;  %3805 = vmatpush1.bf16.msra.mxu1 %v3732_v40  ;;  %v1044_v47 = vpop.f32.mrf.mxu0 }
 0x191   : > { %5289 = vrot.lane.b32.xlu0 %v19452_v14, %s19317_s13  ;;  %v20365_v48 = vadd.f32 %v1044_v47, %v20292_v57  ;;  %v1085_v49 = vpop.f32.mrf.mxu1  ;;  %v3741_v50 = vand.u32 %v3719_v45, %v19572_v26  ;;  %v3720_v54 = vsel %vm3713_vm7, %v3708_v42, %v3710_v39 }
 0x192   : > { %5295 = vrot.lane.b32.xlu1 %v19436_v8, %s19317_s13  ;;  %v20372_v19 = vadd.f32 %v1085_v49, %v20298_v60  ;;  %v1046_v52 = vpop.f32.mrf.mxu0  ;;  %v3744_v62 = vand.u32 %v3720_v54, %v19572_v26 }
 0x193   : > { %v3712_v56 = vpop.permute.xlu0 %3711  ;;  %3845 = vmatprep.subr.bf16.mxu0 %v3741_v50  ;;  %v1087_v55 = vpop.f32.mrf.mxu1  ;;  %15500 = vmatmul.mubr.msk.bf16.vlgmr.msra.gmra.mxu1 %vm343_vm3, %v20341_v31 }
 0x194   : > { %v3721_v57 = vsel %vm3713_vm7, %v3710_v39, %v3712_v56  ;;  %v3926_v58 = vpop.permute.xlu1 %3925  ;;  %3846 = vmatpush1.bf16.msra.mxu0 %v3738_v51  ;;  %v1047_v59 = vpop.f32.mrf.mxu0  ;;  %3904 = vmatprep.mubr.bf16.mxu1 %v19295_v15  ;;  %vm5079_vm7 = vcmask 973824  }
 0x195   : > { %v3747_v60 = vand.u32 %v3721_v57, %v19572_v26  ;;  %5297 = vrot.lane.b32.xlu0 %v19448_v13, %s19317_s13  ;;  %v1088_v61 = vpop.f32.mrf.mxu1 }
 0x196   : > { %5299 = vrot.lane.b32.xlu1 %v19464_v17, %s19317_s13  ;;  %v1124_v0 = vpop.f32.mrf.mxu0 }
 0x197   : > { %v3928_v1 = vpop.permute.xlu0 %3927  ;;  %v20386_v3 = vadd.f32 %v1124_v0, %v20317_v11  ;;  %15501 = vmatmul.mubr.msk.bf16.vlgmr.msra.gmra.mxu0 %vm343_vm3, %v20341_v31  ;;  %v1165_v63 = vpop.f32.mrf.mxu1  ;;  %3886 = vmatprep.subr.bf16.mxu1 %v3747_v60 }
 0x198   : > { %v3943_v4 = vsel %vm3941_vm8, %v3926_v58, %v3928_v1  ;;  %v3924_v2 = vpop.permute.xlu1 %3923  ;;  %v20392_v5 = vadd.f32 %v1165_v63, %v20322_v23  ;;  %3887 = vmatpush1.bf16.msra.mxu1 %v3744_v62  ;;  %v1126_v10 = vpop.f32.mrf.mxu0  ;;  %4009 = vmatprep.mubr.bf16.mxu0 %v19295_v15 }
 0x199   : > { %v3942_v20 = vsel %vm3941_vm8, %v3924_v2, %v3926_v58  ;;  %5301 = vrot.lane.b32.xlu0 %v19472_v18, %s19317_s13  ;;  %v20399_v11 = vadd.f32 %v1126_v10, %v20330_v24  ;;  %v1167_v9 = vpop.f32.mrf.mxu1  ;;  %v3957_v22 = vand.u32 %v3943_v4, %v19572_v26  ;;  %v20413_v24 = vld [vmem:[%s24169_s1 + $0x20] sm:$0x3] }
 0x19a   : > { %v3954_v25 = vand.u32 %v3942_v20, %v19572_v26  ;;  %5303 = vrot.lane.b32.xlu1 %v20310_v6, %s19317_s13  ;;  %v20406_v23 = vadd.f32 %v1167_v9, %v20336_v29  ;;  %v1128_v27 = vpop.f32.mrf.mxu0 }
 0x19b   : > { %v3930_v28 = vpop.permute.xlu0 %3929  ;;  %3991 = vmatprep.subr.bf16.mxu0 %v3957_v22  ;;  %v1169_v30 = vpop.f32.mrf.mxu1  ;;  %15502 = vmatmul.mubr.msk.bf16.vlgmr.msra.gmra.mxu1 %vm343_vm3, %v20341_v31 }
 0x19c   : > { %v3944_v32 = vsel %vm3941_vm8, %v3928_v1, %v3930_v28  ;;  %v3932_v33 = vpop.permute.xlu1 %3931  ;;  %3992 = vmatpush1.bf16.msra.mxu0 %v3954_v25  ;;  %v1129_v34 = vpop.f32.mrf.mxu0  ;;  %4050 = vmatprep.mubr.bf16.mxu1 %v19295_v15 }
 0x19d   : > { %v3960_v29 = vand.u32 %v3944_v32, %v19572_v26  ;;  %v3945_v35 = vsel %vm3941_vm8, %v3930_v28, %v3932_v33  ;;  %5305 = vrot.lane.b32.xlu0 %v20314_v7, %s19317_s13  ;;  %v1170_v31 = vpop.f32.mrf.mxu1  ;;  %v20491_v32 = vld [vmem:[%s24169_s1 + $0x22] sm:$0x3]  ;;  %s19319_s13 = smov 116  }
 0x19e   : > { %5519 = vrot.lane.b32.xlu1 %v19444_v12, %s19318_s16  ;;  %v1267_v21 = vpop.f32.mrf.mxu0  ;;  %v3963_v37 = vand.u32 %v3945_v35, %v19572_v26 }
 0x19f   : > { %v3934_v36 = vpop.permute.xlu0 %3933  ;;  %v20425_v38 = vadd.f32 %v1267_v21, %v20355_v43  ;;  %15504 = vmatmul.mubr.msk.bf16.vlgmr.msra.gmra.mxu0 %vm343_vm3, %v20413_v24  ;;  %v1308_v40 = vpop.f32.mrf.mxu1 }
 0x1a0   : > { %v3946_v53 = vsel %vm3941_vm8, %v3932_v33, %v3934_v36  ;;  %v3936_v41 = vpop.permute.xlu1 %3935  ;;  %v20431_v42 = vadd.f32 %v1308_v40, %v20360_v46  ;;  %4032 = vmatprep.subr.bf16.mxu1 %v3963_v37  ;;  %v1269_v44 = vpop.f32.mrf.mxu0  ;;  %4091 = vmatprep.mubr.bf16.mxu0 %v19295_v15 }
 0x1a1   : > { %v3966_v45 = vand.u32 %v3946_v53, %v19572_v26  ;;  %v3947_v39 = vsel %vm3941_vm8, %v3934_v36, %v3936_v41  ;;  %4033 = vmatpush1.bf16.msra.mxu1 %v3960_v29  ;;  %5521 = vrot.lane.b32.xlu0 %v19462_v16, %s19318_s16  ;;  %v20439_v43 = vadd.f32 %v1269_v44, %v20365_v48  ;;  %v1310_v47 = vpop.f32.mrf.mxu1 }
 0x1a2   : > { %5517 = vrot.lane.b32.xlu1 %v19452_v14, %s19318_s16  ;;  %v20444_v46 = vadd.f32 %v1310_v47, %v20372_v19  ;;  %v1271_v49 = vpop.f32.mrf.mxu0  ;;  %v3969_v50 = vand.u32 %v3947_v39, %v19572_v26 }
 0x1a3   : > { %v3938_v51 = vpop.permute.xlu0 %3937  ;;  %v1312_v52 = vpop.f32.mrf.mxu1 }
 0x1a4   : > { %v3948_v54 = vsel %vm3941_vm8, %v3936_v41, %v3938_v51  ;;  %4073 = vmatprep.subr.bf16.mxu0 %v3969_v50  ;;  %v3940_v56 = vpop.permute.xlu1 %3939  ;;  %15505 = vmatmul.mubr.msk.bf16.vlgmr.msra.gmra.mxu1 %vm343_vm3, %v20413_v24  ;;  %v1272_v48 = vpop.f32.mrf.mxu0 }
 0x1a5   : > { %v3972_v55 = vand.u32 %v3948_v54, %v19572_v26  ;;  %v3949_v57 = vsel %vm3941_vm8, %v3938_v51, %v3940_v56  ;;  %4074 = vmatpush1.bf16.msra.mxu0 %v3966_v45  ;;  %5523 = vrot.lane.b32.xlu0 %v19436_v8, %s19318_s16  ;;  %v1313_v19 = vpop.f32.mrf.mxu1  ;;  %vm5307_vm8 = vcmask 965632  }
 0x1a6   : > { %v3975_v58 = vand.u32 %v3949_v57, %v19572_v26  ;;  %5525 = vrot.lane.b32.xlu1 %v19448_v13, %s19318_s16  ;;  %v1349_v59 = vpop.f32.mrf.mxu0  ;;  %4132 = vmatprep.mubr.bf16.mxu1 %v19295_v15 }
 0x1a7   : > { %v4154_v60 = vpop.permute.xlu0 %4153  ;;  %v20459_v61 = vadd.f32 %v1349_v59, %v20386_v3  ;;  %v1390_v62 = vpop.f32.mrf.mxu1 }
 0x1a8   : > { %15506 = vmatmul.mubr.msk.bf16.vlgmr.msra.gmra.mxu0 %vm343_vm3, %v20413_v24  ;;  %v4156_v0 = vpop.permute.xlu1 %4155  ;;  %v20464_v1 = vadd.f32 %v1390_v62, %v20392_v5  ;;  %4114 = vmatprep.subr.bf16.mxu1 %v3975_v58  ;;  %v1351_v63 = vpop.f32.mrf.mxu0 }
 0x1a9   : > { %v4171_v4 = vsel %vm4169_vm12, %v4154_v60, %v4156_v0  ;;  %4115 = vmatpush1.bf16.msra.mxu1 %v3972_v55  ;;  %5527 = vrot.lane.b32.xlu0 %v19464_v17, %s19318_s16  ;;  %v20470_v2 = vadd.f32 %v1351_v63, %v20399_v11  ;;  %v1392_v3 = vpop.f32.mrf.mxu1 }
 0x1aa   : > { %5529 = vrot.lane.b32.xlu1 %v19472_v18, %s19318_s16  ;;  %v20475_v10 = vadd.f32 %v1392_v3, %v20406_v23  ;;  %v1353_v5 = vpop.f32.mrf.mxu0  ;;  %v4185_v20 = vand.u32 %v4171_v4, %v19572_v26  ;;  %4237 = vmatprep.mubr.bf16.mxu0 %v19295_v15 }
 0x1ab   : > { %v4152_v9 = vpop.permute.xlu0 %4151  ;;  %v1394_v22 = vpop.f32.mrf.mxu1 }
 0x1ac   : > { %v4170_v25 = vsel %vm4169_vm12, %v4152_v9, %v4154_v60  ;;  %4219 = vmatprep.subr.bf16.mxu0 %v4185_v20  ;;  %v4158_v27 = vpop.permute.xlu1 %4157  ;;  %15507 = vmatmul.mubr.msk.bf16.vlgmr.msra.gmra.mxu1 %vm343_vm3, %v20413_v24  ;;  %v1354_v11 = vpop.f32.mrf.mxu0 }
 0x1ad   : > { %v4182_v28 = vand.u32 %v4170_v25, %v19572_v26  ;;  %5531 = vrot.lane.b32.xlu0 %v20310_v6, %s19318_s16  ;;  %v1395_v23 = vpop.f32.mrf.mxu1  ;;  %4278 = vmatprep.mubr.bf16.mxu1 %v19295_v15  ;;  %v4172_v24 = vsel %vm4169_vm12, %v4156_v0, %v4158_v27 }
 0x1ae   : > { %5533 = vrot.lane.b32.xlu1 %v20314_v7, %s19318_s16  ;;  %v1503_v30 = vpop.f32.mrf.mxu0  ;;  %v4188_v53 = vand.u32 %v4172_v24, %v19572_v26  ;;  %s19324_s16 = smov 108  }
 0x1af   : > { %v4160_v33 = vpop.permute.xlu0 %4159  ;;  %v20495_v34 = vadd.f32 %v1503_v30, %v20425_v38  ;;  %4220 = vmatpush1.bf16.msra.mxu0 %v4182_v28  ;;  %v1544_v29 = vpop.f32.mrf.mxu1 }
 0x1b0   : > { %v4173_v35 = vsel %vm4169_vm12, %v4158_v27, %v4160_v33  ;;  %v4162_v31 = vpop.permute.xlu1 %4161  ;;  %v20499_v21 = vadd.f32 %v1544_v29, %v20431_v42  ;;  %v1505_v37 = vpop.f32.mrf.mxu0 }
 0x1b1   : > { %5747 = vrot.lane.b32.xlu0 %v19444_v12, %s19319_s13  ;;  %v20504_v36 = vadd.f32 %v1505_v37, %v20439_v43  ;;  %v1546_v40 = vpop.f32.mrf.mxu1  ;;  %v4191_v38 = vand.u32 %v4173_v35, %v19572_v26  ;;  %v4174_v12 = vsel %vm4169_vm12, %v4160_v33, %v4162_v31 }
 0x1b2   : > { %5749 = vrot.lane.b32.xlu1 %v19462_v16, %s19319_s13  ;;  %v20511_v41 = vadd.f32 %v1546_v40, %v20444_v46  ;;  %15509 = vmatmul.mubr.msk.bf16.vlgmr.msra.gmra.mxu0 %vm343_vm3, %v20491_v32  ;;  %v1507_v42 = vpop.f32.mrf.mxu0  ;;  %v4194_v49 = vand.u32 %v4174_v12, %v19572_v26 }
 0x1b3   : > { %v4164_v44 = vpop.permute.xlu0 %4163  ;;  %v1548_v45 = vpop.f32.mrf.mxu1  ;;  %4260 = vmatprep.subr.bf16.mxu1 %v4191_v38  ;;  %4319 = vmatprep.mubr.bf16.mxu0 %v19295_v15 }
 0x1b4   : > { %v4175_v39 = vsel %vm4169_vm12, %v4162_v31, %v4164_v44  ;;  %v4166_v43 = vpop.permute.xlu1 %4165  ;;  %4261 = vmatpush1.bf16.msra.mxu1 %v4188_v53  ;;  %v1508_v47 = vpop.f32.mrf.mxu0 }
 0x1b5   : > { %5745 = vrot.lane.b32.xlu0 %v19452_v14, %s19319_s13  ;;  %v1549_v16 = vpop.f32.mrf.mxu1  ;;  %v4197_v46 = vand.u32 %v4175_v39, %v19572_v26  ;;  %v4176_v51 = vsel %vm4169_vm12, %v4164_v44, %v4166_v43 }
 0x1b6   : > { %5751 = vrot.lane.b32.xlu1 %v19436_v8, %s19319_s13  ;;  %v1585_v50 = vpop.f32.mrf.mxu0  ;;  %v4200_v59 = vand.u32 %v4176_v51, %v19572_v26 }
 0x1b7   : > { %v4168_v52 = vpop.permute.xlu0 %4167  ;;  %v20526_v54 = vadd.f32 %v1585_v50, %v20459_v61  ;;  %4301 = vmatprep.subr.bf16.mxu0 %v4197_v46  ;;  %v1626_v56 = vpop.f32.mrf.mxu1  ;;  %15510 = vmatmul.mubr.msk.bf16.vlgmr.msra.gmra.mxu1 %vm343_vm3, %v20491_v32 }
 0x1b8   : > { %v4177_v14 = vsel %vm4169_vm12, %v4166_v43, %v4168_v52  ;;  %v4382_v48 = vpop.permute.xlu1 %4381  ;;  %v20532_v55 = vadd.f32 %v1626_v56, %v20464_v1  ;;  %4302 = vmatpush1.bf16.msra.mxu0 %v4194_v49  ;;  %v1587_v8 = vpop.f32.mrf.mxu0  ;;  %4360 = vmatprep.mubr.bf16.mxu1 %v19295_v15  ;;  %vm5535_vm12 = vcmask 957440  }
 0x1b9   : > { %v4203_v57 = vand.u32 %v4177_v14, %v19572_v26  ;;  %5753 = vrot.lane.b32.xlu0 %v19448_v13, %s19319_s13  ;;  %v20539_v19 = vadd.f32 %v1587_v8, %v20470_v2  ;;  %v1628_v58 = vpop.f32.mrf.mxu1 }
 0x1ba   : > { %5755 = vrot.lane.b32.xlu1 %v19464_v17, %s19319_s13  ;;  %v20545_v60 = vadd.f32 %v1628_v58, %v20475_v10  ;;  %v1589_v61 = vpop.f32.mrf.mxu0 }
 0x1bb   : > { %v4384_v62 = vpop.permute.xlu0 %4383  ;;  %15511 = vmatmul.mubr.msk.bf16.vlgmr.msra.gmra.mxu0 %vm343_vm3, %v20491_v32  ;;  %v1630_v0 = vpop.f32.mrf.mxu1  ;;  %4342 = vmatprep.subr.bf16.mxu1 %v4203_v57 }
 0x1bc   : > { %v4399_v13 = vsel %vm4397_vm13, %v4382_v48, %v4384_v62  ;;  %v4380_v1 = vpop.permute.xlu1 %4379  ;;  %4343 = vmatpush1.bf16.msra.mxu1 %v4200_v59  ;;  %v1590_v63 = vpop.f32.mrf.mxu0  ;;  %4465 = vmatprep.mubr.bf16.mxu0 %v19295_v15 }
 0x1bd   : > { %v4398_v4 = vsel %vm4397_vm13, %v4380_v1, %v4382_v48  ;;  %5757 = vrot.lane.b32.xlu0 %v19472_v18, %s19319_s13  ;;  %v1631_v17 = vpop.f32.mrf.mxu1  ;;  %v4413_v2 = vand.u32 %v4399_v13, %v19572_v26 }
 0x1be   : > { %v4410_v3 = vand.u32 %v4398_v4, %v19572_v26  ;;  %v1731_v10 = vpop.f32.mrf.mxu0  ;;  %5759 = vrot.lane.b32.xlu1 %v20310_v6, %s19319_s13  ;;  %v15513_v6 = vld [vmem:[%s24169_s1 + $0x24] sm:$0x3] }
 0x1bf   : > { %v4386_v5 = vpop.permute.xlu0 %4385  ;;  %v20559_v20 = vadd.f32 %v1731_v10, %v20495_v34  ;;  %4447 = vmatprep.subr.bf16.mxu0 %v4413_v2  ;;  %v1772_v9 = vpop.f32.mrf.mxu1  ;;  %15512 = vmatmul.mubr.msk.bf16.vlgmr.msra.gmra.mxu1 %vm343_vm3, %v20491_v32 }
 0x1c0   : > { %v4400_v18 = vsel %vm4397_vm13, %v4384_v62, %v4386_v5  ;;  %v4388_v22 = vpop.permute.xlu1 %4387  ;;  %v20565_v25 = vadd.f32 %v1772_v9, %v20499_v21  ;;  %4448 = vmatpush1.bf16.msra.mxu0 %v4410_v3  ;;  %v1733_v27 = vpop.f32.mrf.mxu0  ;;  %4506 = vmatprep.mubr.bf16.mxu1 %v19295_v15 }
 0x1c1   : > { %v4416_v11 = vand.u32 %v4400_v18, %v19572_v26  ;;  %v4401_v28 = vsel %vm4397_vm13, %v4386_v5, %v4388_v22  ;;  %5761 = vrot.lane.b32.xlu0 %v20314_v7, %s19319_s13  ;;  %v1862_v23 = vadd.f32 %v1733_v27, %v20504_v36  ;;  %v1774_v30 = vpop.f32.mrf.mxu1  ;;  %v15518_v5 = vld [vmem:[%s24169_s1 + $0x26] sm:$0x3]  ;;  %s24187_s13 = smov 124  }
 0x1c2   : > { %v1864_v32 = vadd.f32 %v1774_v30, %v20511_v41  ;;  %v1735_v24 = vpop.f32.mrf.mxu0  ;;  %v4419_v33 = vand.u32 %v4401_v28, %v19572_v26 }
 0x1c3   : > { %v4390_v34 = vpop.permute.xlu0 %4389  ;;  %15514 = vmatmul.mubr.msk.bf16.vlgmr.msra.gmra.mxu0 %vm343_vm3, %v15513_v6  ;;  %v1776_v29 = vpop.f32.mrf.mxu1 }
 0x1c4   : > { %v4402_v35 = vsel %vm4397_vm13, %v4388_v22, %v4390_v34  ;;  %v4392_v31 = vpop.permute.xlu1 %4391  ;;  %4488 = vmatprep.subr.bf16.mxu1 %v4419_v33  ;;  %v1736_v21 = vpop.f32.mrf.mxu0  ;;  %4547 = vmatprep.mubr.bf16.mxu0 %v19295_v15 }
 0x1c5   : > { %v4422_v7 = vand.u32 %v4402_v35, %v19572_v26  ;;  %v4403_v37 = vsel %vm4397_vm13, %v4390_v34, %v4392_v31  ;;  %4489 = vmatpush1.bf16.msra.mxu1 %v4416_v11  ;;  %v1777_v36 = vpop.f32.mrf.mxu1 }
 0x1c6   : > { %v1813_v40 = vpop.f32.mrf.mxu0  ;;  %v4425_v38 = vand.u32 %v4403_v37, %v19572_v26 }
 0x1c7   : > { %v4394_v53 = vpop.permute.xlu0 %4393  ;;  %v1865_v41 = vadd.f32 %v1813_v40, %v20526_v54  ;;  %v1854_v42 = vpop.f32.mrf.mxu1 }
 0x1c8   : > { %v4404_v12 = vsel %vm4397_vm13, %v4392_v31, %v4394_v53  ;;  %4529 = vmatprep.subr.bf16.mxu0 %v4425_v38  ;;  %v4396_v44 = vpop.permute.xlu1 %4395  ;;  %v1867_v45 = vadd.f32 %v1854_v42, %v20532_v55  ;;  %15515 = vmatmul.mubr.msk.bf16.vlgmr.msra.gmra.mxu1 %vm343_vm3, %v15513_v6  ;;  %v1815_v39 = vpop.f32.mrf.mxu0 }
 0x1c9   : > { %v4428_v43 = vand.u32 %v4404_v12, %v19572_v26  ;;  %v4405_v47 = vsel %vm4397_vm13, %v4394_v53, %v4396_v44  ;;  %4530 = vmatpush1.bf16.msra.mxu0 %v4422_v7  ;;  %v1866_v16 = vadd.f32 %v1815_v39, %v20539_v19  ;;  %v1856_v46 = vpop.f32.mrf.mxu1  ;;  %4588 = vmatprep.mubr.bf16.mxu1 %v19295_v15  ;;  %vm5763_vm13 = vcmask 949248  }
 0x1ca   : > { %v4431_v49 = vand.u32 %v4405_v47, %v19572_v26  ;;  %v1868_v50 = vadd.f32 %v1856_v46, %v20545_v60  ;;  %v1817_v51 = vpop.f32.mrf.mxu0 }
 0x1cb   : > { %v4610_v52 = vpop.permute.xlu0 %4609  ;;  %v1858_v54 = vpop.f32.mrf.mxu1 }
 0x1cc   : > { %15516 = vmatmul.mubr.msk.bf16.vlgmr.msra.gmra.mxu0 %vm343_vm3, %v15513_v6  ;;  %v4612_v56 = vpop.permute.xlu1 %4611  ;;  %4570 = vmatprep.subr.bf16.mxu1 %v4431_v49  ;;  %v1818_v14 = vpop.f32.mrf.mxu0 }
 0x1cd   : > { %v4627_v48 = vsel %vm4625_vm14, %v4610_v52, %v4612_v56  ;;  %4571 = vmatpush1.bf16.msra.mxu1 %v4428_v43  ;;  %v1859_v55 = vpop.f32.mrf.mxu1  ;;  %4693 = vmatprep.mubr.bf16.mxu0 %v19295_v15 }
 0x1ce   : > { %v1959_v8 = vpop.f32.mrf.mxu0  ;;  %v4641_v57 = vand.u32 %v4627_v48, %v19572_v26 }
 0x1cf   : > { %v4608_v19 = vpop.permute.xlu0 %4607  ;;  %v2089_v58 = vadd.f32 %v1959_v8, %v20559_v20  ;;  %v2000_v59 = vpop.f32.mrf.mxu1 }
 0x1d0   : > { %v4626_v60 = vsel %vm4625_vm14, %v4608_v19, %v4610_v52  ;;  %4675 = vmatprep.subr.bf16.mxu0 %v4641_v57  ;;  %v4614_v61 = vpop.permute.xlu1 %4613  ;;  %v2091_v62 = vadd.f32 %v2000_v59, %v20565_v25  ;;  %15517 = vmatmul.mubr.msk.bf16.vlgmr.msra.gmra.mxu1 %vm343_vm3, %v15513_v6  ;;  %v1961_v0 = vpop.f32.mrf.mxu0 }
 0x1d1   : > { %v4638_v13 = vand.u32 %v4626_v60, %v19572_v26  ;;  %v20603_v1 = vadd.f32 %v1961_v0, %v1862_v23  ;;  %v2002_v63 = vpop.f32.mrf.mxu1  ;;  %4734 = vmatprep.mubr.bf16.mxu1 %v19295_v15  ;;  %v4628_v2 = vsel %vm4625_vm14, %v4612_v56, %v4614_v61 }
 0x1d2   : > { %v20606_v4 = vadd.f32 %v2002_v63, %v1864_v32  ;;  %v1963_v17 = vpop.f32.mrf.mxu0  ;;  %v4644_v27 = vand.u32 %v4628_v2, %v19572_v26 }
 0x1d3   : > { %v4616_v3 = vpop.permute.xlu0 %4615  ;;  %4676 = vmatpush1.bf16.msra.mxu0 %v4638_v13  ;;  %v2004_v10 = vpop.f32.mrf.mxu1 }
 0x1d4   : > { %v4629_v20 = vsel %vm4625_vm14, %v4614_v61, %v4616_v3  ;;  %v4618_v9 = vpop.permute.xlu1 %4617  ;;  %v1964_v18 = vpop.f32.mrf.mxu0  ;;  %v15523_v61 = vld [vmem:[%s24169_s1 + $0x28] sm:$0x3] }
 0x1d5   : > { %v2005_v22 = vpop.f32.mrf.mxu1  ;;  %v4647_v25 = vand.u32 %v4629_v20, %v19572_v26  ;;  %v4630_v11 = vsel %vm4625_vm14, %v4616_v3, %v4618_v9 }
 0x1d6   : > { %15519 = vmatmul.mubr.msk.bf16.vlgmr.msra.gmra.mxu0 %vm343_vm3, %v15518_v5  ;;  %v2041_v6 = vpop.f32.mrf.mxu0  ;;  %v4650_v21 = vand.u32 %v4630_v11, %v19572_v26 }
 0x1d7   : > { %v4620_v28 = vpop.permute.xlu0 %4619  ;;  %v20617_v23 = vadd.f32 %v2041_v6, %v1865_v41  ;;  %v2082_v30 = vpop.f32.mrf.mxu1  ;;  %4716 = vmatprep.subr.bf16.mxu1 %v4647_v25  ;;  %4775 = vmatprep.mubr.bf16.mxu0 %v19295_v15 }
 0x1d8   : > { %v4631_v32 = vsel %vm4625_vm14, %v4618_v9, %v4620_v28  ;;  %v4622_v24 = vpop.permute.xlu1 %4621  ;;  %v20621_v33 = vadd.f32 %v2082_v30, %v1867_v45  ;;  %4717 = vmatpush1.bf16.msra.mxu1 %v4644_v27  ;;  %v2043_v34 = vpop.f32.mrf.mxu0 }
 0x1d9   : > { %v20623_v29 = vadd.f32 %v2043_v34, %v1866_v16  ;;  %v2084_v35 = vpop.f32.mrf.mxu1  ;;  %v4653_v31 = vand.u32 %v4631_v32, %v19572_v26  ;;  %v4632_v36 = vsel %vm4625_vm14, %v4620_v28, %v4622_v24 }
 0x1da   : > { %v20627_v7 = vadd.f32 %v2084_v35, %v1868_v50  ;;  %v2045_v37 = vpop.f32.mrf.mxu0  ;;  %v4656_v45 = vand.u32 %v4632_v36, %v19572_v26 }
 0x1db   : > { %v4624_v40 = vpop.permute.xlu0 %4623  ;;  %4757 = vmatprep.subr.bf16.mxu0 %v4653_v31  ;;  %v2086_v38 = vpop.f32.mrf.mxu1  ;;  %15520 = vmatmul.mubr.msk.bf16.vlgmr.msra.gmra.mxu1 %vm343_vm3, %v15518_v5 }
 0x1dc   : > { %v4633_v53 = vsel %vm4625_vm14, %v4622_v24, %v4624_v40  ;;  %v4838_v41 = vpop.permute.xlu1 %4837  ;;  %4758 = vmatpush1.bf16.msra.mxu0 %v4650_v21  ;;  %v2046_v42 = vpop.f32.mrf.mxu0  ;;  %4816 = vmatprep.mubr.bf16.mxu1 %v19295_v15  ;;  %vm12429_vm14 = vcmask 31744  }
 0x1dd   : > { %v4659_v12 = vand.u32 %v4633_v53, %v19572_v26  ;;  %v2087_v44 = vpop.f32.mrf.mxu1 }
 0x1de   : > { %v2187_v39 = vpop.f32.mrf.mxu0 }
 0x1df   : > { %v4840_v43 = vpop.permute.xlu0 %4839  ;;  %v20635_v47 = vadd.f32 %v2187_v39, %v2089_v58  ;;  %15521 = vmatmul.mubr.msk.bf16.vlgmr.msra.gmra.mxu0 %vm343_vm3, %v15518_v5  ;;  %v2228_v16 = vpop.f32.mrf.mxu1  ;;  %4798 = vmatprep.subr.bf16.mxu1 %v4659_v12 }
 0x1e0   : > { %v4853_v46 = vsel %vm4851_vm15, %v4838_v41, %v4840_v43  ;;  %v4836_v49 = vpop.permute.xlu1 %4835  ;;  %v20639_v50 = vadd.f32 %v2228_v16, %v2091_v62  ;;  %4799 = vmatpush1.bf16.msra.mxu1 %v4656_v45  ;;  %v2189_v51 = vpop.f32.mrf.mxu0  ;;  %4918 = vmatprep.mubr.bf16.mxu0 %v19295_v15 }
 0x1e1   : > { %v4852_v52 = vsel %vm4851_vm15, %v4836_v49, %v4838_v41  ;;  %v20644_v54 = vadd.f32 %v2189_v51, %v20603_v1  ;;  %v2230_v56 = vpop.f32.mrf.mxu1  ;;  %v4866_v14 = vand.u32 %v4853_v46, %v19572_v26 }
 0x1e2   : > { %v4863_v48 = vand.u32 %v4852_v52, %v19572_v26  ;;  %v20649_v55 = vadd.f32 %v2230_v56, %v20606_v4  ;;  %v2191_v8 = vpop.f32.mrf.mxu0 }
 0x1e3   : > { %v4842_v57 = vpop.permute.xlu0 %4841  ;;  %4900 = vmatprep.subr.bf16.mxu0 %v4866_v14  ;;  %v2232_v19 = vpop.f32.mrf.mxu1  ;;  %15522 = vmatmul.mubr.msk.bf16.vlgmr.msra.gmra.mxu1 %vm343_vm3, %v15518_v5 }
 0x1e4   : > { %v4854_v58 = vsel %vm4851_vm15, %v4840_v43, %v4842_v57  ;;  %v4844_v59 = vpop.permute.xlu1 %4843  ;;  %4901 = vmatpush1.bf16.msra.mxu0 %v4863_v48  ;;  %v2192_v60 = vpop.f32.mrf.mxu0  ;;  %4959 = vmatprep.mubr.bf16.mxu1 %v19295_v15 }
 0x1e5   : > { %v4869_v62 = vand.u32 %v4854_v58, %v19572_v26  ;;  %v4855_v0 = vsel %vm4851_vm15, %v4842_v57, %v4844_v59  ;;  %v2233_v13 = vpop.f32.mrf.mxu1 }
 0x1e6   : > { %v2269_v1 = vpop.f32.mrf.mxu0  ;;  %v4872_v63 = vand.u32 %v4855_v0, %v19572_v26 }
 0x1e7   : > { %v4846_v4 = vpop.permute.xlu0 %4845  ;;  %v20661_v17 = vadd.f32 %v2269_v1, %v20617_v23  ;;  %15524 = vmatmul.mubr.msk.bf16.vlgmr.msra.gmra.mxu0 %vm343_vm3, %v15523_v61  ;;  %v2310_v2 = vpop.f32.mrf.mxu1 }
 0x1e8   : > { %v4856_v3 = vsel %vm4851_vm15, %v4844_v59, %v4846_v4  ;;  %v4848_v10 = vpop.permute.xlu1 %4847  ;;  %v20666_v5 = vadd.f32 %v2310_v2, %v20621_v33  ;;  %4941 = vmatprep.subr.bf16.mxu1 %v4872_v63  ;;  %v2271_v20 = vpop.f32.mrf.mxu0  ;;  %5000 = vmatprep.mubr.bf16.mxu0 %v19295_v15 }
 0x1e9   : > { %v4875_v9 = vand.u32 %v4856_v3, %v19572_v26  ;;  %v4857_v18 = vsel %vm4851_vm15, %v4846_v4, %v4848_v10  ;;  %4942 = vmatpush1.bf16.msra.mxu1 %v4869_v62  ;;  %v20672_v22 = vadd.f32 %v2271_v20, %v20623_v29  ;;  %v2312_v25 = vpop.f32.mrf.mxu1 }
 0x1ea   : > { %v20675_v27 = vadd.f32 %v2312_v25, %v20627_v7  ;;  %v2273_v6 = vpop.f32.mrf.mxu0  ;;  %v4878_v11 = vand.u32 %v4857_v18, %v19572_v26 }
 0x1eb   : > { %v4850_v28 = vpop.permute.xlu0 %4849  ;;  %v2314_v23 = vpop.f32.mrf.mxu1 }
 0x1ec   : > { %v4858_v30 = vsel %vm4851_vm15, %v4848_v10, %v4850_v28  ;;  %v4884_v32 = vand.u32 %v4850_v28, %v19572_v26  ;;  %4982 = vmatprep.subr.bf16.mxu0 %v4878_v11  ;;  %v5064_v24 = vpop.permute.xlu1 %5063  ;;  %15525 = vmatmul.mubr.msk.bf16.vlgmr.msra.gmra.mxu1 %vm343_vm3, %v15523_v61  ;;  %v2274_v33 = vpop.f32.mrf.mxu0 }
 0x1ed   : > { %v4881_v34 = vand.u32 %v4858_v30, %v19572_v26  ;;  %4983 = vmatpush1.bf16.msra.mxu0 %v4875_v9  ;;  %v2315_v29 = vpop.f32.mrf.mxu1  ;;  %5041 = vmatprep.mubr.bf16.mxu1 %v19295_v15 }
 0x1ee   : > { %5023 = vmatprep.subr.bf16.mxu1 %v4884_v32  ;;  %v2415_v35 = vpop.f32.mrf.mxu0 }
 0x1ef   : > { %v5066_v31 = vpop.permute.xlu0 %5065  ;;  %v20684_v21 = vadd.f32 %v2415_v35, %v20635_v47  ;;  %v2456_v7 = vpop.f32.mrf.mxu1  ;;  %5024 = vmatpush1.bf16.msra.mxu1 %v4881_v34 }
 0x1f0   : > { %v5081_v37 = vsel %vm5079_vm7, %v5064_v24, %v5066_v31  ;;  %15526 = vmatmul.mubr.msk.bf16.vlgmr.msra.gmra.mxu0 %vm343_vm3, %v15523_v61  ;;  %v5062_v36 = vpop.permute.xlu1 %5061  ;;  %v20689_v40 = vadd.f32 %v2456_v7, %v20639_v50  ;;  %v2417_v38 = vpop.f32.mrf.mxu0 }
 0x1f1   : > { %v5080_v53 = vsel %vm5079_vm7, %v5062_v36, %v5064_v24  ;;  %v20693_v41 = vadd.f32 %v2417_v38, %v20644_v54  ;;  %v2458_v42 = vpop.f32.mrf.mxu1  ;;  %v5095_v12 = vand.u32 %v5081_v37, %v19572_v26  ;;  %5147 = vmatprep.mubr.bf16.mxu0 %v19295_v15  ;;  %v15528_v54 = vld [vmem:[%s24169_s1 + $0x2a] sm:$0x3] }
 0x1f2   : > { %v5092_v44 = vand.u32 %v5080_v53, %v19572_v26  ;;  %v20699_v45 = vadd.f32 %v2458_v42, %v20649_v55  ;;  %v2419_v39 = vpop.f32.mrf.mxu0 }
 0x1f3   : > { %v5068_v43 = vpop.permute.xlu0 %5067  ;;  %5129 = vmatprep.subr.bf16.mxu0 %v5095_v12  ;;  %v2460_v47 = vpop.f32.mrf.mxu1 }
 0x1f4   : > { %v5082_v16 = vsel %vm5079_vm7, %v5066_v31, %v5068_v43  ;;  %v5070_v46 = vpop.permute.xlu1 %5069  ;;  %15527 = vmatmul.mubr.msk.bf16.vlgmr.msra.gmra.mxu1 %vm343_vm3, %v15523_v61  ;;  %5130 = vmatpush1.bf16.msra.mxu0 %v5092_v44  ;;  %v2420_v49 = vpop.f32.mrf.mxu0  ;;  %v15533_v44 = vld [vmem:[%s24169_s1 + $0x2c] sm:$0x3] }
 0x1f5   : > { %v5098_v50 = vand.u32 %v5082_v16, %v19572_v26  ;;  %v5083_v51 = vsel %vm5079_vm7, %v5068_v43, %v5070_v46  ;;  %v2461_v52 = vpop.f32.mrf.mxu1  ;;  %5188 = vmatprep.mubr.bf16.mxu1 %v19295_v15 }
 0x1f6   : > { %v2497_v56 = vpop.f32.mrf.mxu0  ;;  %v5101_v14 = vand.u32 %v5083_v51, %v19572_v26 }
 0x1f7   : > { %v5072_v48 = vpop.permute.xlu0 %5071  ;;  %v2549_v55 = vadd.f32 %v2497_v56, %v20661_v17  ;;  %v2538_v8 = vpop.f32.mrf.mxu1 }
 0x1f8   : > { %v5084_v57 = vsel %vm5079_vm7, %v5070_v46, %v5072_v48  ;;  %15529 = vmatmul.mubr.msk.bf16.vlgmr.msra.gmra.mxu0 %vm343_vm3, %v15528_v54  ;;  %v5074_v19 = vpop.permute.xlu1 %5073  ;;  %v2551_v58 = vadd.f32 %v2538_v8, %v20666_v5  ;;  %5170 = vmatprep.subr.bf16.mxu1 %v5101_v14  ;;  %v2499_v59 = vpop.f32.mrf.mxu0 }
 0x1f9   : > { %v5104_v60 = vand.u32 %v5084_v57, %v19572_v26  ;;  %v5085_v61 = vsel %vm5079_vm7, %v5072_v48, %v5074_v19  ;;  %5171 = vmatpush1.bf16.msra.mxu1 %v5098_v50  ;;  %v2550_v62 = vadd.f32 %v2499_v59, %v20672_v22  ;;  %v2540_v0 = vpop.f32.mrf.mxu1  ;;  %5229 = vmatprep.mubr.bf16.mxu0 %v19295_v15 }
 0x1fa   : > { %v5107_v13 = vand.u32 %v5085_v61, %v19572_v26  ;;  %v2552_v1 = vadd.f32 %v2540_v0, %v20675_v27  ;;  %v2501_v63 = vpop.f32.mrf.mxu0 }
 0x1fb   : > { %v5076_v4 = vpop.permute.xlu0 %5075  ;;  %v2542_v17 = vpop.f32.mrf.mxu1 }
 0x1fc   : > { %v5086_v2 = vsel %vm5079_vm7, %v5074_v19, %v5076_v4  ;;  %5211 = vmatprep.subr.bf16.mxu0 %v5107_v13  ;;  %v5078_v3 = vpop.permute.xlu1 %5077  ;;  %15530 = vmatmul.mubr.msk.bf16.vlgmr.msra.gmra.mxu1 %vm343_vm3, %v15528_v54  ;;  %v2502_v10 = vpop.f32.mrf.mxu0 }
 0x1fd   : > { %v5110_v5 = vand.u32 %v5086_v2, %v19572_v26  ;;  %v5087_v20 = vsel %vm5079_vm7, %v5076_v4, %v5078_v3  ;;  %5212 = vmatpush1.bf16.msra.mxu0 %v5104_v60  ;;  %v2543_v9 = vpop.f32.mrf.mxu1  ;;  %5270 = vmatprep.mubr.bf16.mxu1 %v19295_v15  ;;  %vm12968_vm7 = vcmask 867328  }
 0x1fe   : > { %v5113_v18 = vand.u32 %v5087_v20, %v19572_v26  ;;  %v2643_v22 = vpop.f32.mrf.mxu0 }
 0x1ff   : > { %v5292_v25 = vpop.permute.xlu0 %5291  ;;  %v2773_v27 = vadd.f32 %v2643_v22, %v20684_v21  ;;  %v2684_v6 = vpop.f32.mrf.mxu1 }
 0x200   : > { %15531 = vmatmul.mubr.msk.bf16.vlgmr.msra.gmra.mxu0 %vm343_vm3, %v15528_v54  ;;  %v5294_v11 = vpop.permute.xlu1 %5293  ;;  %v2775_v28 = vadd.f32 %v2684_v6, %v20689_v40  ;;  %5252 = vmatprep.subr.bf16.mxu1 %v5113_v18  ;;  %v2645_v23 = vpop.f32.mrf.mxu0 }
 0x201   : > { %v5309_v30 = vsel %vm5307_vm8, %v5292_v25, %v5294_v11  ;;  %5253 = vmatpush1.bf16.msra.mxu1 %v5110_v5  ;;  %v2774_v32 = vadd.f32 %v2645_v23, %v20693_v41  ;;  %v2686_v24 = vpop.f32.mrf.mxu1  ;;  %5375 = vmatprep.mubr.bf16.mxu0 %v19295_v15 }
 0x202   : > { %v5323_v33 = vand.u32 %v5309_v30, %v19572_v26  ;;  %v2776_v34 = vadd.f32 %v2686_v24, %v20699_v45  ;;  %v2647_v29 = vpop.f32.mrf.mxu0 }
 0x203   : > { %v5290_v35 = vpop.permute.xlu0 %5289  ;;  %v2688_v31 = vpop.f32.mrf.mxu1 }
 0x204   : > { %v5308_v21 = vsel %vm5307_vm8, %v5290_v35, %v5292_v25  ;;  %5357 = vmatprep.subr.bf16.mxu0 %v5323_v33  ;;  %v5296_v7 = vpop.permute.xlu1 %5295  ;;  %15532 = vmatmul.mubr.msk.bf16.vlgmr.msra.gmra.mxu1 %vm343_vm3, %v15528_v54  ;;  %v2648_v37 = vpop.f32.mrf.mxu0 }
 0x205   : > { %v5320_v36 = vand.u32 %v5308_v21, %v19572_v26  ;;  %v2689_v40 = vpop.f32.mrf.mxu1  ;;  %5416 = vmatprep.mubr.bf16.mxu1 %v19295_v15  ;;  %v5310_v53 = vsel %vm5307_vm8, %v5294_v11, %v5296_v7  ;;  %v15538_v21 = vld [vmem:[%s24169_s1 + $0x2e] sm:$0x3] }
 0x206   : > { %v2725_v38 = vpop.f32.mrf.mxu0  ;;  %v5326_v50 = vand.u32 %v5310_v53, %v19572_v26 }
 0x207   : > { %v5298_v41 = vpop.permute.xlu0 %5297  ;;  %v2777_v42 = vadd.f32 %v2725_v38, %v2549_v55  ;;  %5358 = vmatpush1.bf16.msra.mxu0 %v5320_v36  ;;  %v2766_v12 = vpop.f32.mrf.mxu1 }
 0x208   : > { %v5311_v45 = vsel %vm5307_vm8, %v5296_v7, %v5298_v41  ;;  %v5300_v39 = vpop.permute.xlu1 %5299  ;;  %v2779_v43 = vadd.f32 %v2766_v12, %v2551_v58  ;;  %v2727_v47 = vpop.f32.mrf.mxu0 }
 0x209   : > { %v5329_v16 = vand.u32 %v5311_v45, %v19572_v26  ;;  %v20744_v46 = vadd.f32 %v2727_v47, %v2550_v62  ;;  %v2768_v49 = vpop.f32.mrf.mxu1  ;;  %v5312_v54 = vsel %vm5307_vm8, %v5298_v41, %v5300_v39 }
 0x20a   : > { %v20747_v51 = vadd.f32 %v2768_v49, %v2552_v1  ;;  %15534 = vmatmul.mubr.msk.bf16.vlgmr.msra.gmra.mxu0 %vm343_vm3, %v15533_v44  ;;  %v2729_v52 = vpop.f32.mrf.mxu0  ;;  %v5332_v58 = vand.u32 %v5312_v54, %v19572_v26 }
 0x20b   : > { %v5302_v56 = vpop.permute.xlu0 %5301  ;;  %v2770_v14 = vpop.f32.mrf.mxu1  ;;  %5398 = vmatprep.subr.bf16.mxu1 %v5329_v16  ;;  %5457 = vmatprep.mubr.bf16.mxu0 %v19295_v15 }
 0x20c   : > { %v5313_v48 = vsel %vm5307_vm8, %v5300_v39, %v5302_v56  ;;  %v5304_v55 = vpop.permute.xlu1 %5303  ;;  %5399 = vmatpush1.bf16.msra.mxu1 %v5326_v50  ;;  %v2730_v8 = vpop.f32.mrf.mxu0 }
 0x20d   : > { %v5335_v57 = vand.u32 %v5313_v48, %v19572_v26  ;;  %v2771_v19 = vpop.f32.mrf.mxu1  ;;  %v5314_v60 = vsel %vm5307_vm8, %v5302_v56, %v5304_v55 }
 0x20e   : > { %v2871_v59 = vpop.f32.mrf.mxu0  ;;  %v5338_v10 = vand.u32 %v5314_v60, %v19572_v26 }
 0x20f   : > { %v5306_v61 = vpop.permute.xlu0 %5305  ;;  %v20756_v62 = vadd.f32 %v2871_v59, %v2773_v27  ;;  %5439 = vmatprep.subr.bf16.mxu0 %v5335_v57  ;;  %v2912_v0 = vpop.f32.mrf.mxu1  ;;  %15535 = vmatmul.mubr.msk.bf16.vlgmr.msra.gmra.mxu1 %vm343_vm3, %v15533_v44 }
 0x210   : > { %v5315_v13 = vsel %vm5307_vm8, %v5304_v55, %v5306_v61  ;;  %v5520_v1 = vpop.permute.xlu1 %5519  ;;  %v20760_v63 = vadd.f32 %v2912_v0, %v2775_v28  ;;  %5440 = vmatpush1.bf16.msra.mxu0 %v5332_v58  ;;  %v2873_v4 = vpop.f32.mrf.mxu0  ;;  %5498 = vmatprep.mubr.bf16.mxu1 %v19295_v15  ;;  %vm13406_vm8 = vcmask 596992  }
 0x211   : > { %v5341_v17 = vand.u32 %v5315_v13, %v19572_v26  ;;  %v20764_v2 = vadd.f32 %v2873_v4, %v2774_v32  ;;  %v2914_v3 = vpop.f32.mrf.mxu1 }
 0x212   : > { %v20767_v5 = vadd.f32 %v2914_v3, %v2776_v34  ;;  %v2875_v20 = vpop.f32.mrf.mxu0 }
 0x213   : > { %v5522_v9 = vpop.permute.xlu0 %5521  ;;  %15536 = vmatmul.mubr.msk.bf16.vlgmr.msra.gmra.mxu0 %vm343_vm3, %v15533_v44  ;;  %v2916_v18 = vpop.f32.mrf.mxu1  ;;  %5480 = vmatprep.subr.bf16.mxu1 %v5341_v17 }
 0x214   : > { %v5537_v22 = vsel %vm5535_vm12, %v5520_v1, %v5522_v9  ;;  %v5518_v25 = vpop.permute.xlu1 %5517  ;;  %5481 = vmatpush1.bf16.msra.mxu1 %v5338_v10  ;;  %v2876_v27 = vpop.f32.mrf.mxu0  ;;  %5603 = vmatprep.mubr.bf16.mxu0 %v19295_v15 }
 0x215   : > { %v5551_v6 = vand.u32 %v5537_v22, %v19572_v26  ;;  %v5536_v11 = vsel %vm5535_vm12, %v5518_v25, %v5520_v1  ;;  %v2917_v28 = vpop.f32.mrf.mxu1 }
 0x216   : > { %v5548_v23 = vand.u32 %v5536_v11, %v19572_v26  ;;  %v2953_v30 = vpop.f32.mrf.mxu0 }
 0x217   : > { %v5524_v32 = vpop.permute.xlu0 %5523  ;;  %v20775_v24 = vadd.f32 %v2953_v30, %v2777_v42  ;;  %5585 = vmatprep.subr.bf16.mxu0 %v5551_v6  ;;  %v2994_v33 = vpop.f32.mrf.mxu1  ;;  %15537 = vmatmul.mubr.msk.bf16.vlgmr.msra.gmra.mxu1 %vm343_vm3, %v15533_v44 }
 0x218   : > { %v5538_v34 = vsel %vm5535_vm12, %v5522_v9, %v5524_v32  ;;  %v5526_v29 = vpop.permute.xlu1 %5525  ;;  %v20779_v35 = vadd.f32 %v2994_v33, %v2779_v43  ;;  %5586 = vmatpush1.bf16.msra.mxu0 %v5548_v23  ;;  %v2955_v31 = vpop.f32.mrf.mxu0  ;;  %5644 = vmatprep.mubr.bf16.mxu1 %v19295_v15 }
 0x219   : > { %v5554_v7 = vand.u32 %v5538_v34, %v19572_v26  ;;  %v5539_v37 = vsel %vm5535_vm12, %v5524_v32, %v5526_v29  ;;  %v3006_v36 = vadd.f32 %v2955_v31, %v20744_v46  ;;  %v2996_v40 = vpop.f32.mrf.mxu1  ;;  %v15543_v32 = vld [vmem:[%s24169_s1 + $0x30] sm:$0x3] }
 0x21a   : > { %v5557_v38 = vand.u32 %v5539_v37, %v19572_v26  ;;  %v3008_v53 = vadd.f32 %v2996_v40, %v20747_v51  ;;  %v2957_v41 = vpop.f32.mrf.mxu0 }
 0x21b   : > { %v5528_v42 = vpop.permute.xlu0 %5527  ;;  %15539 = vmatmul.mubr.msk.bf16.vlgmr.msra.gmra.mxu0 %vm343_vm3, %v15538_v21  ;;  %v2998_v12 = vpop.f32.mrf.mxu1 }
 0x21c   : > { %v5540_v44 = vsel %vm5535_vm12, %v5526_v29, %v5528_v42  ;;  %v5530_v45 = vpop.permute.xlu1 %5529  ;;  %5626 = vmatprep.subr.bf16.mxu1 %v5557_v38  ;;  %v2958_v39 = vpop.f32.mrf.mxu0  ;;  %5685 = vmatprep.mubr.bf16.mxu0 %v19295_v15 }
 0x21d   : > { %v5560_v43 = vand.u32 %v5540_v44, %v19572_v26  ;;  %v5541_v47 = vsel %vm5535_vm12, %v5528_v42, %v5530_v45  ;;  %5627 = vmatpush1.bf16.msra.mxu1 %v5554_v7  ;;  %v2999_v16 = vpop.f32.mrf.mxu1 }
 0x21e   : > { %v5563_v46 = vand.u32 %v5541_v47, %v19572_v26  ;;  %v3099_v49 = vpop.f32.mrf.mxu0 }
 0x21f   : > { %v5532_v50 = vpop.permute.xlu0 %5531  ;;  %v3229_v51 = vadd.f32 %v3099_v49, %v20756_v62  ;;  %v3140_v52 = vpop.f32.mrf.mxu1 }
 0x220   : > { %v5542_v54 = vsel %vm5535_vm12, %v5530_v45, %v5532_v50  ;;  %5667 = vmatprep.subr.bf16.mxu0 %v5563_v46  ;;  %v5534_v56 = vpop.permute.xlu1 %5533  ;;  %v3231_v14 = vadd.f32 %v3140_v52, %v20760_v63  ;;  %15540 = vmatmul.mubr.msk.bf16.vlgmr.msra.gmra.mxu1 %vm343_vm3, %v15538_v21  ;;  %v3101_v48 = vpop.f32.mrf.mxu0 }
 0x221   : > { %v5566_v55 = vand.u32 %v5542_v54, %v19572_v26  ;;  %v5543_v8 = vsel %vm5535_vm12, %v5532_v50, %v5534_v56  ;;  %5668 = vmatpush1.bf16.msra.mxu0 %v5560_v43  ;;  %v3230_v57 = vadd.f32 %v3101_v48, %v20764_v2  ;;  %v3142_v19 = vpop.f32.mrf.mxu1  ;;  %5726 = vmatprep.mubr.bf16.mxu1 %v19295_v15  ;;  %v18114_v48 = vld [vmem:[%s24171_s3 + $0xac] ss:$12 sps:$4 sm:$0xff]   ;;  %vm13469_vm12 = vcmask 588800  }
 0x222   : > { %v5569_v58 = vand.u32 %v5543_v8, %v19572_v26  ;;  %v3232_v59 = vadd.f32 %v3142_v19, %v20767_v5  ;;  %v3103_v60 = vpop.f32.mrf.mxu0 }
 0x223   : > { %v5748_v61 = vpop.permute.xlu0 %5747  ;;  %v3144_v62 = vpop.f32.mrf.mxu1 }
 0x224   : > { %15541 = vmatmul.mubr.msk.bf16.vlgmr.msra.gmra.mxu0 %vm343_vm3, %v15538_v21  ;;  %v5750_v0 = vpop.permute.xlu1 %5749  ;;  %5708 = vmatprep.subr.bf16.mxu1 %v5569_v58  ;;  %v3104_v13 = vpop.f32.mrf.mxu0  ;;  %v18117_v62 = vld [vmem:[%s24171_s3 + $0x94] ss:$12 sps:$4 sm:$0xff]  }
 0x225   : > { %v5765_v1 = vsel %vm5763_vm13, %v5748_v61, %v5750_v0  ;;  %5709 = vmatpush1.bf16.msra.mxu1 %v5566_v55  ;;  %v3145_v63 = vpop.f32.mrf.mxu1  ;;  %5831 = vmatprep.mubr.bf16.mxu0 %v19295_v15  ;;  %v18115_v13 = vld [vmem:[%s24171_s3 + $0x90] ss:$12 sps:$4 sm:$0xff]  }
 0x226   : > { %v5779_v4 = vand.u32 %v5765_v1, %v19572_v26  ;;  %v3181_v17 = vpop.f32.mrf.mxu0  ;;  %v18120_v1 = vld [vmem:[%s24171_s3 + $0x22c] ss:$12 sps:$4 sm:$0xff]  }
 0x227   : > { %v5746_v2 = vpop.permute.xlu0 %5745  ;;  %v3233_v3 = vadd.f32 %v3181_v17, %v20775_v24  ;;  %v3222_v10 = vpop.f32.mrf.mxu1 }
 0x228   : > { %v5764_v5 = vsel %vm5763_vm13, %v5746_v2, %v5748_v61  ;;  %5813 = vmatprep.subr.bf16.mxu0 %v5779_v4  ;;  %v5752_v20 = vpop.permute.xlu1 %5751  ;;  %v3235_v9 = vadd.f32 %v3222_v10, %v20779_v35  ;;  %15542 = vmatmul.mubr.msk.bf16.vlgmr.msra.gmra.mxu1 %vm343_vm3, %v15538_v21  ;;  %v3183_v18 = vpop.f32.mrf.mxu0  ;;  %v18118_v4 = vld [vmem:[%s24171_s3 + $0x228] ss:$12 sps:$4 sm:$0xff]  }
 0x229   : > { %v5776_v22 = vand.u32 %v5764_v5, %v19572_v26  ;;  %v3234_v25 = vadd.f32 %v3183_v18, %v3006_v36  ;;  %v3224_v27 = vpop.f32.mrf.mxu1  ;;  %5872 = vmatprep.mubr.bf16.mxu1 %v19295_v15  ;;  %v5766_v28 = vsel %vm5763_vm13, %v5750_v0, %v5752_v20  ;;  %v18121_v5 = vld [vmem:[%s24171_s3 + $0x78] ss:$12 sps:$4 sm:$0xff]  }
 0x22a   : > { %v3236_v6 = vadd.f32 %v3224_v27, %v3008_v53  ;;  %v3185_v11 = vpop.f32.mrf.mxu0  ;;  %v5782_v31 = vand.u32 %v5766_v28, %v19572_v26  ;;  %v18129_v28 = vld [vmem:[%s24171_s3 + $0x64] ss:$12 sps:$4 sm:$0xff]  }
 0x22b   : > { %v5754_v23 = vpop.permute.xlu0 %5753  ;;  %5814 = vmatpush1.bf16.msra.mxu0 %v5776_v22  ;;  %v3226_v30 = vpop.f32.mrf.mxu1  ;;  %v18124_v22 = vld [vmem:[%s24171_s3 + $0x210] ss:$12 sps:$4 sm:$0xff]  }
 0x22c   : > { %v5767_v24 = vsel %vm5763_vm13, %v5752_v20, %v5754_v23  ;;  %v5756_v33 = vpop.permute.xlu1 %5755  ;;  %v3186_v34 = vpop.f32.mrf.mxu0  ;;  %v18126_v20 = vld [vmem:[%s24171_s3 + $0x214] ss:$12 sps:$4 sm:$0xff]  }
 0x22d   : > { %v5785_v29 = vand.u32 %v5767_v24, %v19572_v26  ;;  %v3227_v35 = vpop.f32.mrf.mxu1  ;;  %v5768_v7 = vsel %vm5763_vm13, %v5754_v23, %v5756_v33  ;;  %v18127_v30 = vld [vmem:[%s24171_s3 + $0x60] ss:$12 sps:$4 sm:$0xff]   ;;  %v18130_v34 = vld [vmem:[%s24171_s3 + $0x1f8] ss:$12 sps:$4 sm:$0xff]  }
 0x22e   : > { %15544 = vmatmul.mubr.msk.bf16.vlgmr.msra.gmra.mxu0 %vm343_vm3, %v15543_v32  ;;  %v3327_v21 = vpop.f32.mrf.mxu0  ;;  %v5788_v43 = vand.u32 %v5768_v7, %v19572_v26  ;;  %v18133_v7 = vld [vmem:[%s24171_s3 + $0x48] ss:$12 sps:$4 sm:$0xff]  }
 0x22f   : > { %v5758_v37 = vpop.permute.xlu0 %5757  ;;  %v3457_v36 = vadd.f32 %v3327_v21, %v3229_v51  ;;  %v3368_v40 = vpop.f32.mrf.mxu1  ;;  %5854 = vmatprep.subr.bf16.mxu1 %v5785_v29  ;;  %5913 = vmatprep.mubr.bf16.mxu0 %v19295_v15 }
 0x230   : > { %v5769_v38 = vsel %vm5763_vm13, %v5756_v33, %v5758_v37  ;;  %v3459_v53 = vadd.f32 %v3368_v40, %v3231_v14  ;;  %5855 = vmatpush1.bf16.msra.mxu1 %v5782_v31  ;;  %v3329_v41 = vpop.f32.mrf.mxu0  ;;  %v5760_v42 = vpop.permute.xlu1 %5759  ;;  %v18135_v31 = vld [vmem:[%s24171_s3 + $0x4c] ss:$12 sps:$4 sm:$0xff]  }
 0x231   : > { %v5791_v12 = vand.u32 %v5769_v38, %v19572_v26  ;;  %v3458_v44 = vadd.f32 %v3329_v41, %v3230_v57  ;;  %v3370_v45 = vpop.f32.mrf.mxu1  ;;  %v5770_v39 = vsel %vm5763_vm13, %v5758_v37, %v5760_v42  ;;  %v18112_v57 = vld [vmem:[%s24171_s3 + $0xa8] ss:$12 sps:$4 sm:$0xff]   ;;  %v18136_v37 = vld [vmem:[%s24171_s3 + $0x1e0] ss:$12 sps:$4 sm:$0xff]  }
 0x232   : > { %v3460_v47 = vadd.f32 %v3370_v45, %v3232_v59  ;;  %v3331_v16 = vpop.f32.mrf.mxu0  ;;  %v5794_v51 = vand.u32 %v5770_v39, %v19572_v26  ;;  %v18139_v39 = vld [vmem:[%s24171_s3 + $0x30] ss:$12 sps:$4 sm:$0xff]  }
 0x233   : > { %v5762_v46 = vpop.permute.xlu0 %5761  ;;  %5895 = vmatprep.subr.bf16.mxu0 %v5791_v12  ;;  %v3372_v49 = vpop.f32.mrf.mxu1  ;;  %15545 = vmatmul.mubr.msk.bf16.vlgmr.msra.gmra.mxu1 %vm343_vm3, %v15543_v32 }
 0x234   : > { %v5771_v50 = vsel %vm5763_vm13, %v5760_v42, %v5762_v46  ;;  %5896 = vmatpush1.bf16.msra.mxu0 %v5788_v43  ;;  %v3332_v52 = vpop.f32.mrf.mxu0  ;;  %5954 = vmatprep.mubr.bf16.mxu1 %v19295_v15  ;;  %v18144_v43 = vld [vmem:[%s24171_s3 + $0x1cc] ss:$12 sps:$4 sm:$0xff]   ;;  %v18142_v46 = vld [vmem:[%s24171_s3 + $0x1c8] ss:$12 sps:$4 sm:$0xff]   ;;  %vm13532_vm13 = vcmask 580608  }
 0x235   : > { %v5797_v54 = vand.u32 %v5771_v50, %v19572_v26  ;;  %v3373_v56 = vpop.f32.mrf.mxu1  ;;  %7271 = vmatprep.subr.bf16.mxu0 %v18114_v48  ;;  %v18148_v48 = vld [vmem:[%s24171_s3 + $0x1b0] ss:$12 sps:$4 sm:$0xff]  }
 0x236   : > { %v3409_v14 = vpop.f32.mrf.mxu0  ;;  %v18150_v56 = vld [vmem:[%s24171_s3 + $0x1b4] ss:$12 sps:$4 sm:$0xff]  }
 0x237   : > { %v3461_v55 = vadd.f32 %v3409_v14, %v3233_v3  ;;  %v3450_v8 = vpop.f32.mrf.mxu1  ;;  %15546 = vmatmul.mubr.msk.bf16.vlgmr.msra.gmra.mxu0 %vm343_vm3, %v15543_v32  ;;  %5936 = vmatprep.subr.bf16.mxu1 %v5797_v54  ;;  %v18123_v3 = vld [vmem:[%s24171_s3 + $0x7c] ss:$12 sps:$4 sm:$0xff]   ;;  %v18145_v54 = vld [vmem:[%s24171_s3 + $0x18] ss:$12 sps:$4 sm:$0xff]  }
 0x238   : > { %v3463_v19 = vadd.f32 %v3450_v8, %v3235_v9  ;;  %5937 = vmatpush1.bf16.msra.mxu1 %v5794_v51  ;;  %v3411_v58 = vpop.f32.mrf.mxu0  ;;  %7272 = vmatpush1.bf16.msra.mxu0 %v18112_v57  ;;  %v18147_v51 = vld [vmem:[%s24171_s3 + $0x1c] ss:$12 sps:$4 sm:$0xff]   ;;  %v18153_v57 = vld [vmem:[%s24171_s3 + $0x4] ss:$12 sps:$4 sm:$0xff]  }
 0x239   : > { %v3462_v26 = vadd.f32 %v3411_v58, %v3234_v25  ;;  %v3452_v59 = vpop.f32.mrf.mxu1  ;;  %7273 = vmatprep.subr.bf16.mxu0 %v18117_v62  ;;  %7312 = vmatprep.subr.bf16.mxu1 %v18120_v1  ;;  %v18151_v58 = vld [vmem:[%s24171_s3] ss:$12 sps:$4 sm:$0xff]  }
 0x23a   : > { %v3464_v60 = vadd.f32 %v3452_v59, %v3236_v6  ;;  %v3413_v61 = vpop.f32.mrf.mxu0 }
 0x23b   : > { %v3454_v0 = vpop.f32.mrf.mxu1  ;;  %15547 = vmatmul.mubr.msk.bf16.vlgmr.msra.gmra.mxu1 %vm343_vm3, %v15543_v32  ;;  %v18132_v32 = vld [vmem:[%s24171_s3 + $0x1fc] ss:$12 sps:$4 sm:$0xff]   ;;  %v18154_v61 = vld [vmem:[%s24171_s3 + $0x198] ss:$12 sps:$4 sm:$0xff]   ;;  %vm7261_vm3 = vcmask 1043456  }
 0x23c   : > { %v3414_v63 = vpop.f32.mrf.mxu0  ;;  %7274 = vmatpush1.bf16.msra.mxu0 %v18115_v13  ;;  %7313 = vmatpush1.bf16.msra.mxu1 %v18118_v4  ;;  %v18159_v13 = vld [vmem:[%s24171_s3 + $0x16c] ss:$12 sps:$4 sm:$0xff]   ;;  %v18157_v4 = vld [vmem:[%s24171_s3 + $0x168] ss:$12 sps:$4 sm:$0xff]  }
 0x23d   : > { %v3455_v17 = vpop.f32.mrf.mxu1  ;;  %7275 = vmatprep.subr.bf16.mxu0 %v18123_v3  ;;  %7314 = vmatprep.subr.bf16.mxu1 %v18126_v20  ;;  %v18160_v3 = vld [vmem:[%s24171_s3 + $0x180] ss:$12 sps:$4 sm:$0xff]  }
 0x23e   : > { %v3555_v2 = vpop.f32.mrf.mxu0  ;;  %v18162_v17 = vld [vmem:[%s24171_s3 + $0x184] ss:$12 sps:$4 sm:$0xff]  }
 0x23f   : > { %v3685_v10 = vadd.f32 %v3555_v2, %v3457_v36  ;;  %v18138_v36 = vld [vmem:[%s24171_s3 + $0x1e4] ss:$12 sps:$4 sm:$0xff]  }
 0x240   : > { %v3596_v9 = vpop.f32.mrf.mxu1  ;;  %v3557_v18 = vpop.f32.mrf.mxu0  ;;  %7276 = vmatpush1.bf16.msra.mxu0 %v18121_v5  ;;  %7315 = vmatpush1.bf16.msra.mxu1 %v18124_v22 }
 0x241   : > { %v20867_v25 = vadd.f32 %v3596_v9, %v3459_v53  ;;  %v3686_v27 = vadd.f32 %v3557_v18, %v3458_v44  ;;  %7277 = vmatprep.subr.bf16.mxu0 %v18129_v28  ;;  %7316 = vmatprep.subr.bf16.mxu1 %v18132_v32  ;;  %v18141_v44 = vld [vmem:[%s24171_s3 + $0x34] ss:$12 sps:$4 sm:$0xff]   ;;  %v18171_v32 = vld [vmem:[%s24171_s3 + $0x13c] ss:$12 sps:$4 sm:$0xff]  }
 0x242   : > { %v3598_v6 = vpop.f32.mrf.mxu1  ;;  %v3559_v11 = vpop.f32.mrf.mxu0  ;;  %v18165_v9 = vld [vmem:[%s24171_s3 + $0x154] ss:$12 sps:$4 sm:$0xff]  }
 0x243   : > { %v20872_v23 = vadd.f32 %v3598_v6, %v3460_v47  ;;  %v18166_v11 = vld [vmem:[%s24171_s3 + $0x2e8] ss:$12 sps:$4 sm:$0xff]  }
 0x244   : > { %v3600_v24 = vpop.f32.mrf.mxu1  ;;  %v3560_v33 = vpop.f32.mrf.mxu0  ;;  %7278 = vmatpush1.bf16.msra.mxu0 %v18127_v30  ;;  %7317 = vmatpush1.bf16.msra.mxu1 %v18130_v34  ;;  %v18169_v34 = vld [vmem:[%s24171_s3 + $0x138] ss:$12 sps:$4 sm:$0xff]  }
 0x245   : > { %7279 = vmatprep.subr.bf16.mxu0 %v18135_v31  ;;  %7318 = vmatprep.subr.bf16.mxu1 %v18138_v36  ;;  %v18172_v31 = vld [vmem:[%s24171_s3 + $0x2d0] ss:$12 sps:$4 sm:$0xff]  }
 0x246   : > { %v3601_v29 = vpop.f32.mrf.mxu1  ;;  %v3637_v35 = vpop.f32.mrf.mxu0  ;;  %v18177_v36 = vld [vmem:[%s24171_s3 + $0x124] ss:$12 sps:$4 sm:$0xff]  }
 0x247   : > { %v3689_v21 = vadd.f32 %v3637_v35, %v3461_v55  ;;  %v18174_v29 = vld [vmem:[%s24171_s3 + $0x2d4] ss:$12 sps:$4 sm:$0xff]  }
 0x248   : > { %v3678_v40 = vpop.f32.mrf.mxu1  ;;  %v3639_v38 = vpop.f32.mrf.mxu0  ;;  %7280 = vmatpush1.bf16.msra.mxu0 %v18133_v7  ;;  %7319 = vmatpush1.bf16.msra.mxu1 %v18136_v37 }
 0x249   : > { %v20895_v53 = vadd.f32 %v3678_v40, %v3463_v19  ;;  %v3690_v41 = vadd.f32 %v3639_v38, %v3462_v26  ;;  %7281 = vmatprep.subr.bf16.mxu0 %v18141_v44  ;;  %7320 = vmatprep.subr.bf16.mxu1 %v18144_v43  ;;  %v18156_v26 = vld [vmem:[%s24171_s3 + $0x19c] ss:$12 sps:$4 sm:$0xff]   ;;  %v18175_v38 = vld [vmem:[%s24171_s3 + $0x120] ss:$12 sps:$4 sm:$0xff]  }
 0x24a   : > { %v3680_v42 = vpop.f32.mrf.mxu1  ;;  %v3641_v12 = vpop.f32.mrf.mxu0 }
 0x24b   : > { %v20900_v45 = vadd.f32 %v3680_v42, %v3464_v60  ;;  %v18178_v42 = vld [vmem:[%s24171_s3 + $0x2b8] ss:$12 sps:$4 sm:$0xff]  }
 0x24c   : > { %v3642_v47 = vpop.f32.mrf.mxu0  ;;  %v3682_v16 = vpop.f32.mrf.mxu1  ;;  %7282 = vmatpush1.bf16.msra.mxu0 %v18139_v39  ;;  %7321 = vmatpush1.bf16.msra.mxu1 %v18142_v46  ;;  %v18183_v39 = vld [vmem:[%s24171_s3 + $0x10c] ss:$12 sps:$4 sm:$0xff]  }
 0x24d   : > { %7283 = vmatprep.subr.bf16.mxu0 %v18147_v51  ;;  %7322 = vmatprep.subr.bf16.mxu1 %v18150_v56  ;;  %v18181_v47 = vld [vmem:[%s24171_s3 + $0x108] ss:$12 sps:$4 sm:$0xff]   ;;  %v18186_v16 = vld [vmem:[%s24171_s3 + $0x2a4] ss:$12 sps:$4 sm:$0xff]  }
 0x24e   : > { %v3783_v49 = vpop.f32.mrf.mxu0  ;;  %v3683_v50 = vpop.f32.mrf.mxu1  ;;  %v18189_v56 = vld [vmem:[%s24171_s3 + $0xf4] ss:$12 sps:$4 sm:$0xff]  }
 0x24f   : > { %v3913_v52 = vadd.f32 %v3783_v49, %v3685_v10  ;;  %v18184_v50 = vld [vmem:[%s24171_s3 + $0x2a0] ss:$12 sps:$4 sm:$0xff]  }
 0x250   : > { %v3785_v14 = vpop.f32.mrf.mxu0  ;;  %7284 = vmatpush1.bf16.msra.mxu0 %v18145_v54  ;;  %7323 = vmatpush1.bf16.msra.mxu1 %v18148_v48  ;;  %v18187_v48 = vld [vmem:[%s24171_s3 + $0xf0] ss:$12 sps:$4 sm:$0xff]  }
 0x251   : > { %v3914_v55 = vadd.f32 %v3785_v14, %v3686_v27  ;;  %7285 = vmatprep.subr.bf16.mxu0 %v18153_v57  ;;  %7324 = vmatprep.subr.bf16.mxu1 %v18156_v26  ;;  %v18168_v27 = vld [vmem:[%s24171_s3 + $0x2ec] ss:$12 sps:$4 sm:$0xff]  }
 0x252   : > { %v3787_v8 = vpop.f32.mrf.mxu0 }
 0x253   : > { %v3824_v19 = vpop.f32.mrf.mxu1 }
 0x254   : > { %v3915_v59 = vadd.f32 %v3824_v19, %v20867_v25  ;;  %v3788_v60 = vpop.f32.mrf.mxu0  ;;  %7286 = vmatpush1.bf16.msra.mxu0 %v18151_v58  ;;  %7325 = vmatpush1.bf16.msra.mxu1 %v18154_v61  ;;  %v18163_v25 = vld [vmem:[%s24171_s3 + $0x150] ss:$12 sps:$4 sm:$0xff]   ;;  %v18190_v19 = vld [vmem:[%s24171_s3 + $0x288] ss:$12 sps:$4 sm:$0xff]  }
 0x255   : > { %v3826_v62 = vpop.f32.mrf.mxu1  ;;  %7287 = vmatprep.subr.bf16.mxu0 %v18159_v13  ;;  %7326 = vmatprep.subr.bf16.mxu1 %v18162_v17  ;;  %v18195_v60 = vld [vmem:[%s24171_s3 + $0xdc] ss:$12 sps:$4 sm:$0xff]   ;;  %v18201_v17 = vld [vmem:[%s24171_s3 + $0xc4] ss:$12 sps:$4 sm:$0xff]  }
 0x256   : > { %v3916_v0 = vadd.f32 %v3826_v62, %v20872_v23  ;;  %v18193_v62 = vld [vmem:[%s24171_s3 + $0xd8] ss:$12 sps:$4 sm:$0xff]  }
 0x257   : > { %v3828_v1 = vpop.f32.mrf.mxu1  ;;  %v3865_v63 = vpop.f32.mrf.mxu0 }
 0x258   : > { %v3917_v2 = vadd.f32 %v3865_v63, %v3689_v21  ;;  %7288 = vmatpush2.bf16.msra.mxu0 %v18157_v4  ;;  %7327 = vmatpush1.bf16.msra.mxu1 %v18160_v3  ;;  %v18196_v1 = vld [vmem:[%s24171_s3 + $0x270] ss:$12 sps:$4 sm:$0xff]   ;;  %v18199_v3 = vld [vmem:[%s24171_s3 + $0xc0] ss:$12 sps:$4 sm:$0xff]  }
 0x259   : > { %v3829_v10 = vpop.f32.mrf.mxu1  ;;  %v3867_v5 = vpop.f32.mrf.mxu0  ;;  %7289 = vmatprep.subr.bf16.mxu0 %v18165_v9  ;;  %7328 = vmatprep.subr.bf16.mxu1 %v18168_v27  ;;  %v18210_v27 = vld [vmem:[%s24171_s3 + $0x244] ss:$12 sps:$4 sm:$0xff]  }
 0x25a   : > { %v3918_v20 = vadd.f32 %v3867_v5, %v3690_v41  ;;  %v18204_v10 = vld [vmem:[%s24171_s3 + $0x25c] ss:$12 sps:$4 sm:$0xff]  }
 0x25b   : > { %v3869_v18 = vpop.f32.mrf.mxu0  ;;  %v3906_v22 = vpop.f32.mrf.mxu1 }
 0x25c   : > { %v3919_v6 = vadd.f32 %v3906_v22, %v20895_v53  ;;  %7290 = vmatpush2.bf16.msra.mxu0 %v18163_v25  ;;  %7329 = vmatpush2.bf16.msra.mxu1 %v18166_v11  ;;  %v18180_v53 = vld [vmem:[%s24171_s3 + $0x2bc] ss:$12 sps:$4 sm:$0xff]   ;;  %v18207_v22 = vld [vmem:[%s24171_s3 + $0x3ac] ss:$12 sps:$4 sm:$0xff]  }
 0x25d   : > { %v3870_v28 = vpop.f32.mrf.mxu0  ;;  %v3908_v23 = vpop.f32.mrf.mxu1  ;;  %7291 = vmatprep.subr.bf16.mxu0 %v18171_v32  ;;  %7330 = vmatprep.subr.bf16.mxu1 %v18174_v29 }
 0x25e   : > { %v3920_v30 = vadd.f32 %v3908_v23, %v20900_v45  ;;  %v18208_v28 = vld [vmem:[%s24171_s3 + $0x240] ss:$12 sps:$4 sm:$0xff]  }
 0x25f   : > { %v3910_v24 = vpop.f32.mrf.mxu1  ;;  %v4011_v33 = vpop.f32.mrf.mxu0 }
 0x260   : > { %v20972_v35 = vadd.f32 %v4011_v33, %v3913_v52  ;;  %7292 = vmatpush2.bf16.msra.mxu0 %v18169_v34  ;;  %7331 = vmatpush2.bf16.msra.mxu1 %v18172_v31  ;;  %v18216_v33 = vld [vmem:[%s24171_s3 + $0x52c] ss:$12 sps:$4 sm:$0xff]  }
 0x261   : > { %v3911_v21 = vpop.f32.mrf.mxu1  ;;  %v4013_v7 = vpop.f32.mrf.mxu0  ;;  %7293 = vmatprep.subr.bf16.mxu0 %v18177_v36  ;;  %7332 = vmatprep.subr.bf16.mxu1 %v18180_v53 }
 0x262   : > { %v4142_v37 = vadd.f32 %v4013_v7, %v3914_v55  ;;  %v18192_v55 = vld [vmem:[%s24171_s3 + $0x28c] ss:$12 sps:$4 sm:$0xff]  }
 0x263   : > { %v4015_v40 = vpop.f32.mrf.mxu0 }
 0x264   : > { %v4052_v41 = vpop.f32.mrf.mxu1  ;;  %7294 = vmatpush2.bf16.msra.mxu0 %v18175_v38  ;;  %7333 = vmatpush2.bf16.msra.mxu1 %v18178_v42 }
 0x265   : > { %v4143_v12 = vadd.f32 %v4052_v41, %v3915_v59  ;;  %v4016_v44 = vpop.f32.mrf.mxu0  ;;  %7295 = vmatprep.subr.bf16.mxu0 %v18183_v39  ;;  %7334 = vmatprep.subr.bf16.mxu1 %v18186_v16 }
 0x266   : > { %v4054_v45 = vpop.f32.mrf.mxu1 }
 0x267   : > { %v4144_v43 = vadd.f32 %v4054_v45, %v3916_v0  ;;  %v18198_v0 = vld [vmem:[%s24171_s3 + $0x274] ss:$12 sps:$4 sm:$0xff]  }
 0x268   : > { %v4056_v46 = vpop.f32.mrf.mxu1  ;;  %v4093_v49 = vpop.f32.mrf.mxu0  ;;  %7296 = vmatpush2.bf16.msra.mxu0 %v18181_v47  ;;  %7335 = vmatpush2.bf16.msra.mxu1 %v18184_v50 }
 0x269   : > { %v4145_v51 = vadd.f32 %v4093_v49, %v3917_v2  ;;  %7297 = vmatprep.subr.bf16.mxu0 %v18189_v56  ;;  %7336 = vmatprep.subr.bf16.mxu1 %v18192_v55 }
 0x26a   : > { %v4057_v52 = vpop.f32.mrf.mxu1  ;;  %v4095_v54 = vpop.f32.mrf.mxu0 }
 0x26b   : > { %v4146_v14 = vadd.f32 %v4095_v54, %v3918_v20  ;;  %v18202_v20 = vld [vmem:[%s24171_s3 + $0x258] ss:$12 sps:$4 sm:$0xff]  }
 0x26c   : > { %v4134_v8 = vpop.f32.mrf.mxu1  ;;  %v4097_v57 = vpop.f32.mrf.mxu0  ;;  %7298 = vmatpush2.bf16.msra.mxu0 %v18187_v48  ;;  %7337 = vmatpush2.bf16.msra.mxu1 %v18190_v19 }
 0x26d   : > { %v4147_v58 = vadd.f32 %v4134_v8, %v3919_v6  ;;  %7299 = vmatprep.subr.bf16.mxu0 %v18195_v60  ;;  %7338 = vmatprep.subr.bf16.mxu1 %v18198_v0 }
 0x26e   : > { %v4136_v26 = vpop.f32.mrf.mxu1  ;;  %v4098_v59 = vpop.f32.mrf.mxu0 }
 0x26f   : > { %v4148_v61 = vadd.f32 %v4136_v26, %v3920_v30 }
 0x270   : > { %v4138_v13 = vpop.f32.mrf.mxu1  ;;  %7300 = vmatpush2.bf16.msra.mxu0 %v18193_v62  ;;  %7339 = vmatpush2.bf16.msra.mxu1 %v18196_v1 }
 0x271   : > { %7301 = vmatprep.subr.bf16.mxu0 %v18201_v17  ;;  %7340 = vmatprep.subr.bf16.mxu1 %v18204_v10 }
 0x272   : > { %v4239_v63 = vpop.f32.mrf.mxu0  ;;  %v4139_v4 = vpop.f32.mrf.mxu1 }
 0x273   : > { %v4369_v2 = vadd.f32 %v4239_v63, %v20972_v35 }
 0x274   : > { %v4241_v5 = vpop.f32.mrf.mxu0  ;;  %7302 = vmatpush2.bf16.msra.mxu0 %v18199_v3  ;;  %7341 = vmatpush2.bf16.msra.mxu1 %v18202_v20 }
 0x275   : > { %v4370_v9 = vadd.f32 %v4241_v5, %v4142_v37  ;;  %7353 = vmatprep.subr.bf16.mxu0 %v18207_v22  ;;  %7342 = vmatprep.subr.bf16.mxu1 %v18210_v27 }
 0x276   : > { %v4243_v18 = vpop.f32.mrf.mxu0 }
 0x277   : > { %v4280_v25 = vpop.f32.mrf.mxu1 }
 0x278   : > { %v4371_v6 = vadd.f32 %v4280_v25, %v4143_v12  ;;  %v4244_v11 = vpop.f32.mrf.mxu0  ;;  %7343 = vmatpush2.bf16.msra.mxu1 %v18208_v28 }
 0x279   : > { %v4282_v23 = vpop.f32.mrf.mxu1  ;;  %7394 = vmatprep.subr.bf16.mxu1 %v18216_v33 }
 0x27a   : > { %v4372_v30 = vadd.f32 %v4282_v23, %v4144_v43 }
 0x27b   : > { %v4284_v32 = vpop.f32.mrf.mxu1  ;;  %v4321_v24 = vpop.f32.mrf.mxu0 }
 0x27c   : > { %v4373_v34 = vadd.f32 %v4321_v24, %v4145_v51 }
 0x27d   : > { %v4285_v29 = vpop.f32.mrf.mxu1  ;;  %v4323_v35 = vpop.f32.mrf.mxu0 }
 0x27e   : > { %v4374_v31 = vadd.f32 %v4323_v35, %v4146_v14 }
 0x27f   : > { %v4325_v21 = vpop.f32.mrf.mxu0  ;;  %v4362_v7 = vpop.f32.mrf.mxu1 }
 0x280   : > { %v4375_v37 = vadd.f32 %v4362_v7, %v4147_v58 }
 0x281   : > { %v4326_v36 = vpop.f32.mrf.mxu0  ;;  %v4364_v40 = vpop.f32.mrf.mxu1 }
 0x282   : > { %v4376_v38 = vadd.f32 %v4364_v40, %v4148_v61 }
 0x283   : > { %v4366_v53 = vpop.f32.mrf.mxu1  ;;  %v4467_v41 = vpop.f32.mrf.mxu0 }
 0x284   : > { %v4597_v42 = vadd.f32 %v4467_v41, %v4369_v2 }
 0x285   : > { %v4367_v12 = vpop.f32.mrf.mxu1  ;;  %v4469_v44 = vpop.f32.mrf.mxu0 }
 0x286   : > { %v4598_v45 = vadd.f32 %v4469_v44, %v4370_v9 }
 0x287   : > { %v4471_v39 = vpop.f32.mrf.mxu0 }
 0x288   : > { %v4508_v43 = vpop.f32.mrf.mxu1 }
 0x289   : > { %v4599_v47 = vadd.f32 %v4508_v43, %v4371_v6  ;;  %v4472_v16 = vpop.f32.mrf.mxu0 }
 0x28a   : > { %v4510_v46 = vpop.f32.mrf.mxu1 }
 0x28b   : > { %v4600_v49 = vadd.f32 %v4510_v46, %v4372_v30 }
 0x28c   : > { %v4512_v50 = vpop.f32.mrf.mxu1  ;;  %v4549_v51 = vpop.f32.mrf.mxu0 }
 0x28d   : > { %v4601_v52 = vadd.f32 %v4549_v51, %v4373_v34 }
 0x28e   : > { %v4513_v54 = vpop.f32.mrf.mxu1  ;;  %v4551_v56 = vpop.f32.mrf.mxu0 }
 0x28f   : > { %v4602_v14 = vadd.f32 %v4551_v56, %v4374_v31 }
 0x290   : > { %v4590_v48 = vpop.f32.mrf.mxu1  ;;  %v4553_v55 = vpop.f32.mrf.mxu0 }
 0x291   : > { %v4603_v8 = vadd.f32 %v4590_v48, %v4375_v37 }
 0x292   : > { %v4592_v57 = vpop.f32.mrf.mxu1  ;;  %v4554_v19 = vpop.f32.mrf.mxu0 }
 0x293   : > { %v4604_v58 = vadd.f32 %v4592_v57, %v4376_v38 }
 0x294   : > { %v4594_v26 = vpop.f32.mrf.mxu1 }
 0x296   : > { %v4695_v59 = vpop.f32.mrf.mxu0  ;;  %v4595_v60 = vpop.f32.mrf.mxu1 }
 0x297   : > { %v4825_v61 = vadd.f32 %v4695_v59, %v4597_v42 }
 0x298   : > { %v4697_v62 = vpop.f32.mrf.mxu0 }
 0x299   : > { %v21050_v0 = vadd.f32 %v4697_v62, %v4598_v45 }
 0x29a   : > { %v4699_v13 = vpop.f32.mrf.mxu0 }
 0x29b   : > { %v4736_v1 = vpop.f32.mrf.mxu1 }
 0x29c   : > { %v4827_v63 = vadd.f32 %v4736_v1, %v4599_v47  ;;  %v4700_v4 = vpop.f32.mrf.mxu0 }
 0x29d   : > { %v4738_v17 = vpop.f32.mrf.mxu1 }
 0x29e   : > { %v21052_v2 = vadd.f32 %v4738_v17, %v4600_v49 }
 0x29f   : > { %v4740_v3 = vpop.f32.mrf.mxu1  ;;  %v4777_v10 = vpop.f32.mrf.mxu0 }
 0x2a0   : > { %v4829_v5 = vadd.f32 %v4777_v10, %v4601_v52 }
 0x2a1   : > { %v4741_v20 = vpop.f32.mrf.mxu1  ;;  %v4779_v9 = vpop.f32.mrf.mxu0 }
 0x2a2   : > { %v21054_v18 = vadd.f32 %v4779_v9, %v4602_v14 }
 0x2a3   : > { %v4781_v22 = vpop.f32.mrf.mxu0  ;;  %v4818_v25 = vpop.f32.mrf.mxu1 }
 0x2a4   : > { %v4831_v27 = vadd.f32 %v4818_v25, %v4603_v8 }
 0x2a5   : > { %v4782_v6 = vpop.f32.mrf.mxu0  ;;  %v4820_v11 = vpop.f32.mrf.mxu1 }
 0x2a6   : > { %v21056_v28 = vadd.f32 %v4820_v11, %v4604_v58 }
 0x2a7   : > { %v4822_v23 = vpop.f32.mrf.mxu1  ;;  %v4920_v30 = vpop.f32.mrf.mxu0 }
 0x2a8   : > { %v21058_v32 = vadd.f32 %v4920_v30, %v4825_v61 }
 0x2a9   : > { %v4823_v24 = vpop.f32.mrf.mxu1  ;;  %v21060_v33 = vpop.f32.mrf.mxu0 }
 0x2ab   : > { %v4924_v34 = vpop.f32.mrf.mxu0 }
 0x2ac   : > { %v4961_v29 = vpop.f32.mrf.mxu1 }
 0x2ad   : > { %v21062_v35 = vadd.f32 %v4961_v29, %v4827_v63  ;;  %v4925_v31 = vpop.f32.mrf.mxu0 }
 0x2ae   : > { %v21064_v21 = vpop.f32.mrf.mxu1 }
 0x2b0   : > { %v4965_v7 = vpop.f32.mrf.mxu1  ;;  %v5002_v37 = vpop.f32.mrf.mxu0 }
 0x2b1   : > { %v5054_v36 = vadd.f32 %v5002_v37, %v4829_v5 }
 0x2b2   : > { %v4966_v40 = vpop.f32.mrf.mxu1  ;;  %v21066_v38 = vpop.f32.mrf.mxu0 }
 0x2b4   : > { %v5006_v53 = vpop.f32.mrf.mxu0  ;;  %v5043_v41 = vpop.f32.mrf.mxu1 }
 0x2b5   : > { %v5056_v42 = vadd.f32 %v5043_v41, %v4831_v27 }
 0x2b6   : > { %v5007_v12 = vpop.f32.mrf.mxu0  ;;  %v21068_v44 = vpop.f32.mrf.mxu1 }
 0x2b8   : > { %v5047_v45 = vpop.f32.mrf.mxu1  ;;  %v5149_v39 = vpop.f32.mrf.mxu0 }
 0x2b9   : > { %v5279_v12 = vadd.f32 %v5149_v39, %v21058_v32 }
 0x2ba   : > { %v5048_v43 = vpop.f32.mrf.mxu1  ;;  %v5151_v47 = vpop.f32.mrf.mxu0 }
 0x2bc   : > { %v5153_v16 = vpop.f32.mrf.mxu0  ;;  %v5190_v46 = vpop.f32.mrf.mxu1 }
 0x2be   : > { %v5154_v49 = vpop.f32.mrf.mxu0  ;;  %v5192_v50 = vpop.f32.mrf.mxu1 }
 0x2c0   : > { %v5194_v51 = vpop.f32.mrf.mxu1  ;;  %v5231_v52 = vpop.f32.mrf.mxu0 }
 0x2c1   : > { %v5283_v54 = vadd.f32 %v5231_v52, %v5054_v36 }
 0x2c2   : > { %v5195_v56 = vpop.f32.mrf.mxu1  ;;  %v21070_v14 = vpop.f32.mrf.mxu0 }
 0x2c4   : > { %v5272_v48 = vpop.f32.mrf.mxu1  ;;  %v5235_v55 = vpop.f32.mrf.mxu0 }
 0x2c5   : > { %v5285_v8 = vadd.f32 %v5272_v48, %v5056_v42  ;;  %v5051_v42 = vadd.f32 %v21060_v33, %v21050_v0  ;;  %v5053_v48 = vadd.f32 %v21064_v21, %v21052_v2  ;;  %v5281_v55 = vadd.f32 %v5190_v46, %v21062_v35 }
 0x2c6   : > { %v21072_v57 = vpop.f32.mrf.mxu1  ;;  %v5236_v19 = vpop.f32.mrf.mxu0 }
 0x2c7   : > { %v5280_v49 = vadd.f32 %v5151_v47, %v5051_v42  ;;  %v5282_v33 = vadd.f32 %v5192_v50, %v5053_v48  ;;  %v5055_v47 = vadd.f32 %v21066_v38, %v21054_v18  ;;  %v5057_v18 = vadd.f32 %v21068_v44, %v21056_v28 }
 0x2c8   : > { %v5276_v58 = vpop.f32.mrf.mxu1 }
 0x2c9   : > { %v5284_v2 = vadd.f32 %v21070_v14, %v5055_v47  ;;  %v18213_v14 = vld [vmem:[%s24171_s3 + $0x394] ss:$12 sps:$4 sm:$0xff]   ;;  %v18243_v47 = vld [vmem:[%s24171_s3 + $0x31c] ss:$12 sps:$4 sm:$0xff]  }
 0x2ca   : > { %v5377_v26 = vpop.f32.mrf.mxu0  ;;  %v5277_v59 = vpop.f32.mrf.mxu1 }
 0x2cb   : > { %v5507_v51 = vadd.f32 %v5377_v26, %v5279_v12 }
 0x2cc   : > { %v5379_v60 = vpop.f32.mrf.mxu0 }
 0x2ce   : > { %v5381_v61 = vpop.f32.mrf.mxu0 }
 0x2cf   : > { %v5418_v62 = vpop.f32.mrf.mxu1 }
 0x2d0   : > { %v5382_v13 = vpop.f32.mrf.mxu0  ;;  %v5509_v32 = vadd.f32 %v5418_v62, %v5281_v55  ;;  %v18205_v62 = vld [vmem:[%s24171_s3 + $0x3a8] ss:$12 sps:$4 sm:$0xff]   ;;  %v18226_v55 = vld [vmem:[%s24171_s3 + $0x4f8] ss:$12 sps:$4 sm:$0xff]  }
 0x2d1   : > { %v5420_v1 = vpop.f32.mrf.mxu1 }
 0x2d2   : > { %v5510_v26 = vadd.f32 %v5420_v1, %v5282_v33  ;;  %v18237_v33 = vld [vmem:[%s24171_s3 + $0x334] ss:$12 sps:$4 sm:$0xff]  }
 0x2d3   : > { %v5422_v63 = vpop.f32.mrf.mxu1  ;;  %v5459_v4 = vpop.f32.mrf.mxu0 }
 0x2d4   : > { %v5511_v17 = vadd.f32 %v5459_v4, %v5283_v54  ;;  %v5508_v54 = vadd.f32 %v5379_v60, %v5280_v49  ;;  %v18228_v49 = vld [vmem:[%s24171_s3 + $0x4fc] ss:$12 sps:$4 sm:$0xff]  }
 0x2d5   : > { %v5423_v3 = vpop.f32.mrf.mxu1  ;;  %v5461_v10 = vpop.f32.mrf.mxu0 }
 0x2d6   : > { %v5512_v38 = vadd.f32 %v5461_v10, %v5284_v2  ;;  %v18211_v10 = vld [vmem:[%s24171_s3 + $0x390] ss:$12 sps:$4 sm:$0xff]   ;;  %v18250_v2 = vld [vmem:[%s24171_s3 + $0x498] ss:$12 sps:$4 sm:$0xff]  }
 0x2d7   : > { %v5463_v5 = vpop.f32.mrf.mxu0  ;;  %v5500_v20 = vpop.f32.mrf.mxu1 }
 0x2d8   : > { %v5513_v9 = vadd.f32 %v5500_v20, %v5285_v8 }
 0x2d9   : > { %v5464_v22 = vpop.f32.mrf.mxu0  ;;  %v21074_v25 = vpop.f32.mrf.mxu1 }
 0x2da   : > { %v5286_v22 = vadd.f32 %v21072_v57, %v5057_v18  ;;  %v18214_v57 = vld [vmem:[%s24171_s3 + $0x528] ss:$12 sps:$4 sm:$0xff]  }
 0x2db   : > { %v5504_v27 = vpop.f32.mrf.mxu1  ;;  %v5605_v6 = vpop.f32.mrf.mxu0  ;;  %v18261_v18 = vld [vmem:[%s24171_s3 + $0x454] ss:$12 sps:$4 sm:$0xff]  }
 0x2dc   : > { %v5735_v56 = vadd.f32 %v5605_v6, %v5507_v51 }
 0x2dd   : > { %v5505_v11 = vpop.f32.mrf.mxu1  ;;  %v5607_v23 = vpop.f32.mrf.mxu0 }
 0x2de   : > { %v5736_v58 = vadd.f32 %v5607_v23, %v5508_v54  ;;  %v5514_v11 = vadd.f32 %v21074_v25, %v5286_v22  ;;  %v18222_v25 = vld [vmem:[%s24171_s3 + $0x514] ss:$12 sps:$4 sm:$0xff]  }
 0x2df   : > { %v5609_v30 = vpop.f32.mrf.mxu0  ;;  %v18223_v54 = vld [vmem:[%s24171_s3 + $0x360] ss:$12 sps:$4 sm:$0xff]  }
 0x2e0   : > { %v5646_v24 = vpop.f32.mrf.mxu1  ;;  %v18269_v22 = vld [vmem:[%s24171_s3 + $0x5d4] ss:$12 sps:$4 sm:$0xff]  }
 0x2e1   : > { %v5610_v34 = vpop.f32.mrf.mxu0  ;;  %v5737_v61 = vadd.f32 %v5646_v24, %v5509_v32  ;;  %v18219_v24 = vld [vmem:[%s24171_s3 + $0x37c] ss:$12 sps:$4 sm:$0xff]   ;;  %v18240_v32 = vld [vmem:[%s24171_s3 + $0x4cc] ss:$12 sps:$4 sm:$0xff]  }
 0x2e2   : > { %v5648_v29 = vpop.f32.mrf.mxu1 }
 0x2e3   : > { %v5738_v35 = vadd.f32 %v5648_v29, %v5510_v26  ;;  %v18246_v26 = vld [vmem:[%s24171_s3 + $0x4b4] ss:$12 sps:$4 sm:$0xff]  }
 0x2e4   : > { %v5650_v31 = vpop.f32.mrf.mxu1  ;;  %v5687_v7 = vpop.f32.mrf.mxu0 }
 0x2e5   : > { %v21076_v37 = vadd.f32 %v5687_v7, %v5511_v17 }
 0x2e6   : > { %v5651_v36 = vpop.f32.mrf.mxu1  ;;  %v5689_v40 = vpop.f32.mrf.mxu0 }
 0x2e7   : > { %v5740_v27 = vadd.f32 %v5689_v40, %v5512_v38 }
 0x2e8   : > { %v5691_v53 = vpop.f32.mrf.mxu0  ;;  %v5728_v41 = vpop.f32.mrf.mxu1 }
 0x2e9   : > { %v21081_v45 = vadd.f32 %v5728_v41, %v5513_v9  ;;  %v18217_v53 = vld [vmem:[%s24171_s3 + $0x378] ss:$12 sps:$4 sm:$0xff]  }
 0x2ea   : > { %v5692_v43 = vpop.f32.mrf.mxu0  ;;  %v5730_v16 = vpop.f32.mrf.mxu1 }
 0x2eb   : > { %v5742_v7 = vadd.f32 %v5730_v16, %v5514_v11  ;;  %v18220_v43 = vld [vmem:[%s24171_s3 + $0x510] ss:$12 sps:$4 sm:$0xff]   ;;  %v18273_v11 = vld [vmem:[%s24171_s3 + $0x5b8] ss:$12 sps:$4 sm:$0xff]  }
 0x2ec   : > { %v5732_v52 = vpop.f32.mrf.mxu1  ;;  %v18225_v16 = vld [vmem:[%s24171_s3 + $0x364] ss:$12 sps:$4 sm:$0xff]  }
 0x2ee   : > { %v5733_v8 = vpop.f32.mrf.mxu1  ;;  %v5833_v19 = vpop.f32.mrf.mxu0 }
 0x2ef   : > { %v5963_v0 = vadd.f32 %v5833_v19, %v5735_v56  ;;  %v18231_v8 = vld [vmem:[%s24171_s3 + $0x34c] ss:$12 sps:$4 sm:$0xff]   ;;  %v18234_v19 = vld [vmem:[%s24171_s3 + $0x4e4] ss:$12 sps:$4 sm:$0xff]  }
 0x2f0   : > { %v5835_v39 = vpop.f32.mrf.mxu0 }
 0x2f1   : > { %v5964_v59 = vadd.f32 %v5835_v39, %v5736_v58  ;;  %v5971_v60 = vmax.f32 %v5963_v0, 0.0  ;;  %v18229_v58 = vld [vmem:[%s24171_s3 + $0x348] ss:$12 sps:$4 sm:$0xff]   ;;  %v18232_v0 = vld [vmem:[%s24171_s3 + $0x4e0] ss:$12 sps:$4 sm:$0xff]  }
 0x2f2   : > { %v5837_v13 = vpop.f32.mrf.mxu0  ;;  %v18235_v39 = vld [vmem:[%s24171_s3 + $0x330] ss:$12 sps:$4 sm:$0xff]  }
 0x2f3   : > { %v5972_v63 = vmax.f32 %v5964_v59, 0.0  ;;  %v5874_v4 = vpop.f32.mrf.mxu1  ;;  %v21096_v1 = vpack.c.bf16 %v5971_v60, %v5971_v60  ;;  %v18238_v59 = vld [vmem:[%s24171_s3 + $0x4c8] ss:$12 sps:$4 sm:$0xff]   ;;  %v18244_v60 = vld [vmem:[%s24171_s3 + $0x4b0] ss:$12 sps:$4 sm:$0xff]  }
 0x2f4   : > { %v5965_v21 = vadd.f32 %v5874_v4, %v5737_v61  ;;  %v5838_v46 = vpop.f32.mrf.mxu0  ;;  %v18241_v61 = vld [vmem:[%s24171_s3 + $0x318] ss:$12 sps:$4 sm:$0xff]   ;;  %v18247_v4 = vld [vmem:[%s24171_s3 + $0x300] ss:$12 sps:$4 sm:$0xff]  }
 0x2f5   : > { %v21089_v17 = vpack.c.bf16 %v5972_v63, %v5972_v63  ;;  %v5876_v50 = vpop.f32.mrf.mxu1  ;;  %v18249_v13 = vld [vmem:[%s24171_s3 + $0x304] ss:$12 sps:$4 sm:$0xff]   ;;  %v18252_v63 = vld [vmem:[%s24171_s3 + $0x49c] ss:$12 sps:$4 sm:$0xff]  }
 0x2f6   : > { %v5966_v3 = vadd.f32 %v5876_v50, %v5738_v35  ;;  %v5973_v5 = vmax.f32 %v5965_v21, 0.0  ;;  %v18255_v35 = vld [vmem:[%s24171_s3 + $0x46c] ss:$12 sps:$4 sm:$0xff]   ;;  %v18258_v21 = vld [vmem:[%s24171_s3 + $0x484] ss:$12 sps:$4 sm:$0xff]  }
 0x2f7   : > { %v5878_v20 = vpop.f32.mrf.mxu1  ;;  %v21101_v9 = vpop.f32.mrf.mxu0  ;;  %7303 = vmatprep.mubr.bf16.mxu0 %v21089_v17  ;;  %v6239_v46 = vld [vmem:[%s24171_s3 + $0x5e8] sm:$0xff] }
 0x2f8   : > { %v5974_v6 = vmax.f32 %v5966_v3, 0.0  ;;  %7304 = vmatmul.mubr.bf16.vlgmr.msra.gmra.mxu0 %v21096_v1  ;;  %v21118_v34 = vpack.c.bf16 %v5973_v5, %v5973_v5  ;;  %v18253_v50 = vld [vmem:[%s24171_s3 + $0x468] ss:$12 sps:$4 sm:$0xff]   ;;  %v15738_v38 = vcombine.high %v6239_v46, %v6239_v46  ;;  %v15737_v3 = vcombine.low %v6239_v46, %v6239_v46 }
 0x2f9   : > { %7354 = vmatpush1.bf16.msra.mxu0 %v18205_v62  ;;  %v5879_v28 = vpop.f32.mrf.mxu1  ;;  %v5917_v44 = vpop.f32.mrf.mxu0  ;;  %v18256_v62 = vld [vmem:[%s24171_s3 + $0x480] ss:$12 sps:$4 sm:$0xff]   ;;  %v18266_v5 = vld [vmem:[%s24171_s3 + $0x43c] ss:$12 sps:$4 sm:$0xff]  }
 0x2fa   : > { %v21110_v23 = vpack.c.bf16 %v5974_v6, %v5974_v6  ;;  %v5968_v30 = vadd.f32 %v5917_v44, %v5740_v27  ;;  %7355 = vmatprep.subr.bf16.mxu0 %v18213_v14  ;;  %v18259_v14 = vld [vmem:[%s24171_s3 + $0x450] ss:$12 sps:$4 sm:$0xff]   ;;  %v7263_v20 = vsel %vm7261_vm3, %v15737_v3, 0  ;;  %v18264_v27 = vld [vmem:[%s24171_s3 + $0x438] ss:$12 sps:$4 sm:$0xff]  }
 0x2fb   : > { %v21120_v29 = vpop.f32.mrf.mxu1  ;;  %v5919_v31 = vpop.f32.mrf.mxu0  ;;  %v18267_v6 = vld [vmem:[%s24171_s3 + $0x5d0] ss:$12 sps:$4 sm:$0xff]   ;;  %v18320_v46 = vld [vmem:[%s24171_s3 + $0x1e8] ss:$12 sps:$4 sm:$0xff]   ;;  %v18325_v3 = vld [vmem:[%s24171_s3 + $0xe0] ss:$12 sps:$4 sm:$0xff]  }
 0x2fc   : > { %v5976_v36 = vmax.f32 %v5968_v30, 0.0  ;;  %7344 = vmatprep.mubr.bf16.mxu1 %v21110_v23  ;;  %v18272_v28 = vld [vmem:[%s24171_s3 + $0x424] ss:$12 sps:$4 sm:$0xff]   ;;  %v18275_v44 = vld [vmem:[%s24171_s3 + $0x5bc] ss:$12 sps:$4 sm:$0xff]  }
 0x2fd   : > { %7356 = vmatpush1.bf16.msra.mxu0 %v18211_v10  ;;  %v5958_v40 = vpop.f32.mrf.mxu1  ;;  %7345 = vmatmul.mubr.bf16.vlgmr.msra.gmra.mxu1 %v21118_v34  ;;  %v5920_v41 = vpop.f32.mrf.mxu0  ;;  %v18270_v10 = vld [vmem:[%s24171_s3 + $0x420] ss:$12 sps:$4 sm:$0xff]  }
 0x2fe   : > { %v21130_v42 = vpack.c.bf16 %v5976_v36, %v5976_v36  ;;  %v5970_v12 = vadd.f32 %v5958_v40, %v5742_v7  ;;  %7395 = vmatpush1.bf16.msra.mxu1 %v18214_v57  ;;  %7357 = vmatprep.subr.bf16.mxu0 %v18219_v24  ;;  %v18278_v30 = vld [vmem:[%s24171_s3 + $0x40c] ss:$12 sps:$4 sm:$0xff]   ;;  %v18281_v57 = vld [vmem:[%s24171_s3 + $0x5a4] ss:$12 sps:$4 sm:$0xff]   ;;  %v18276_v24 = vld [vmem:[%s24171_s3 + $0x408] ss:$12 sps:$4 sm:$0xff]  }
 0x2ff   : > { %7396 = vmatprep.subr.bf16.mxu1 %v18222_v25  ;;  %v5960_v51 = vpop.f32.mrf.mxu1  ;;  %v18279_v25 = vld [vmem:[%s24171_s3 + $0x5a0] ss:$12 sps:$4 sm:$0xff]   ;;  %v18282_v36 = vld [vmem:[%s24171_s3 + $0x3f0] ss:$12 sps:$4 sm:$0xff]   ;;  %v18285_v40 = vld [vmem:[%s24171_s3 + $0x588] ss:$12 sps:$4 sm:$0xff]  }
 0x300   : > { %v5978_v52 = vmax.f32 %v5970_v12, 0.0  ;;  %7385 = vmatprep.mubr.bf16.mxu0 %v21130_v42  ;;  %v18284_v31 = vld [vmem:[%s24171_s3 + $0x3f4] ss:$12 sps:$4 sm:$0xff]   ;;  %v18287_v7 = vld [vmem:[%s24171_s3 + $0x58c] ss:$12 sps:$4 sm:$0xff]  }
 0x301   : > { %7358 = vmatpush1.bf16.msra.mxu0 %v18217_v53  ;;  %v5961_v56 = vpop.f32.mrf.mxu1  ;;  %v18290_v53 = vld [vmem:[%s24171_s3 + $0x3dc] ss:$12 sps:$4 sm:$0xff]   ;;  %v18293_v41 = vld [vmem:[%s24171_s3 + $0x574] ss:$12 sps:$4 sm:$0xff]   ;;  %v18288_v12 = vld [vmem:[%s24171_s3 + $0x3d8] ss:$12 sps:$4 sm:$0xff]  }
 0x302   : > { %v21145_v48 = vpack.c.bf16 %v5978_v52, %v5978_v52  ;;  %7397 = vmatpush1.bf16.msra.mxu1 %v18220_v43  ;;  %7359 = vmatprep.subr.bf16.mxu0 %v18225_v16  ;;  %v5967_v43 = vadd.f32 %v21101_v9, %v21076_v37  ;;  %v18291_v16 = vld [vmem:[%s24171_s3 + $0x570] ss:$12 sps:$4 sm:$0xff]   ;;  %v18294_v37 = vld [vmem:[%s24171_s3 + $0x3c0] ss:$12 sps:$4 sm:$0xff]   ;;  %v18297_v52 = vld [vmem:[%s24171_s3 + $0x558] ss:$12 sps:$4 sm:$0xff]   ;;  %v5969_v56 = vadd.f32 %v21120_v29, %v21081_v45 }
 0x303   : > { %7398 = vmatprep.subr.bf16.mxu1 %v18228_v49  ;;  %v18296_v49 = vld [vmem:[%s24171_s3 + $0x3c4] ss:$12 sps:$4 sm:$0xff]   ;;  %v18299_v51 = vld [vmem:[%s24171_s3 + $0x55c] ss:$12 sps:$4 sm:$0xff]  }
 0x304   : > { %15741 = vmatprep.mubr.msk.bf16.mxu1 %vm4851_vm15, %v21145_v48  ;;  %v5975_v9 = vmax.f32 %v5967_v43, 0.0  ;;  %v18305_v45 = vld [vmem:[%s24171_s3 + $0x158] ss:$12 sps:$4 sm:$0xff]   ;;  %v5977_v29 = vmax.f32 %v5969_v56, 0.0  ;;  %v18346_v43 = vld [vmem:[%s24171_s3 + $0x368] ss:$12 sps:$4 sm:$0xff]  }
 0x305   : > { %7360 = vmatpush1.bf16.msra.mxu0 %v18223_v54  ;;  %v18300_v54 = vld [vmem:[%s24171_s3 + $0x170] ss:$12 sps:$4 sm:$0xff]   ;;  %v18354_v56 = vld [vmem:[%s24171_s3 + $0x338] ss:$12 sps:$4 sm:$0xff]  }
 0x306   : > { %7399 = vmatpush1.bf16.msra.mxu1 %v18226_v55  ;;  %7361 = vmatprep.subr.bf16.mxu0 %v18231_v8  ;;  %v18303_v55 = vld [vmem:[%s24171_s3 + $0x544] ss:$12 sps:$4 sm:$0xff]  }
 0x307   : > { %7400 = vmatprep.subr.bf16.mxu1 %v18234_v19  ;;  %v18304_v8 = vld [vmem:[%s24171_s3 + $0xb0] ss:$12 sps:$4 sm:$0xff]   ;;  %v21308_v19 = vpack.c.bf16 %v5975_v9, %v5975_v9  ;;  %v18352_v9 = vld [vmem:[%s24171_s3 + $0x4e8] ss:$12 sps:$4 sm:$0xff]  }
 0x309   : > { %7362 = vmatpush1.bf16.msra.mxu0 %v18229_v58  ;;  %v18301_v58 = vld [vmem:[%s24171_s3 + $0x540] ss:$12 sps:$4 sm:$0xff]  }
 0x30a   : > { %7401 = vmatpush1.bf16.msra.mxu1 %v18232_v0  ;;  %7363 = vmatprep.subr.bf16.mxu0 %v18237_v33  ;;  %v18307_v0 = vld [vmem:[%s24171_s3 + $0x2f0] ss:$12 sps:$4 sm:$0xff]   ;;  %v18306_v33 = vld [vmem:[%s24171_s3 + $0x98] ss:$12 sps:$4 sm:$0xff]  }
 0x30b   : > { %7402 = vmatprep.subr.bf16.mxu1 %v18240_v32  ;;  %v18308_v32 = vld [vmem:[%s24171_s3 + $0x230] ss:$12 sps:$4 sm:$0xff]  }
 0x30d   : > { %7364 = vmatpush1.bf16.msra.mxu0 %v18235_v39  ;;  %v21327_v39 = vpack.c.bf16 %v5977_v29, %v5977_v29  ;;  %v18360_v29 = vld [vmem:[%s24171_s3 + $0x4b8] ss:$12 sps:$4 sm:$0xff]  }
 0x30e   : > { %7403 = vmatpush1.bf16.msra.mxu1 %v18238_v59  ;;  %7365 = vmatprep.subr.bf16.mxu0 %v18243_v47  ;;  %v18309_v59 = vld [vmem:[%s24171_s3 + $0x140] ss:$12 sps:$4 sm:$0xff]   ;;  %v18311_v47 = vld [vmem:[%s24171_s3 + $0x2d8] ss:$12 sps:$4 sm:$0xff]  }
 0x30f   : > { %7404 = vmatprep.subr.bf16.mxu1 %v18246_v26  ;;  %v18310_v26 = vld [vmem:[%s24171_s3 + $0x80] ss:$12 sps:$4 sm:$0xff]  }
 0x311   : > { %7366 = vmatpush1.bf16.msra.mxu0 %v18241_v61  ;;  %v18312_v61 = vld [vmem:[%s24171_s3 + $0x218] ss:$12 sps:$4 sm:$0xff]  }
 0x312   : > { %7405 = vmatpush1.bf16.msra.mxu1 %v18244_v60  ;;  %7367 = vmatprep.subr.bf16.mxu0 %v18249_v13  ;;  %v18313_v60 = vld [vmem:[%s24171_s3 + $0x128] ss:$12 sps:$4 sm:$0xff]   ;;  %v18315_v13 = vld [vmem:[%s24171_s3 + $0x2c0] ss:$12 sps:$4 sm:$0xff]  }
 0x313   : > { %7406 = vmatprep.subr.bf16.mxu1 %v18252_v63  ;;  %v18314_v63 = vld [vmem:[%s24171_s3 + $0x68] ss:$12 sps:$4 sm:$0xff]  }
 0x315   : > { %7368 = vmatpush1.bf16.msra.mxu0 %v18247_v4  ;;  %v18316_v4 = vld [vmem:[%s24171_s3 + $0x200] ss:$12 sps:$4 sm:$0xff]  }
 0x316   : > { %7407 = vmatpush1.bf16.msra.mxu1 %v18250_v2  ;;  %7369 = vmatprep.subr.bf16.mxu0 %v18255_v35  ;;  %v18317_v2 = vld [vmem:[%s24171_s3 + $0x110] ss:$12 sps:$4 sm:$0xff]   ;;  %v18319_v35 = vld [vmem:[%s24171_s3 + $0x2a8] ss:$12 sps:$4 sm:$0xff]  }
 0x317   : > { %7408 = vmatprep.subr.bf16.mxu1 %v18258_v21  ;;  %v18318_v21 = vld [vmem:[%s24171_s3 + $0x50] ss:$12 sps:$4 sm:$0xff]  }
 0x319   : > { %7370 = vmatpush2.bf16.msra.mxu0 %v18253_v50  ;;  %v18321_v50 = vld [vmem:[%s24171_s3 + $0xf8] ss:$12 sps:$4 sm:$0xff]  }
 0x31a   : > { %7409 = vmatpush1.bf16.msra.mxu1 %v18256_v62  ;;  %7371 = vmatprep.subr.bf16.mxu0 %v18261_v18  ;;  %v18323_v62 = vld [vmem:[%s24171_s3 + $0x290] ss:$12 sps:$4 sm:$0xff]   ;;  %v18322_v18 = vld [vmem:[%s24171_s3 + $0x38] ss:$12 sps:$4 sm:$0xff]  }
 0x31b   : > { %15740 = vmatprep.subr.msk.bf16.mxu1 %vm7261_vm3, %v15738_v38  ;;  %v18324_v38 = vld [vmem:[%s24171_s3 + $0x1d0] ss:$12 sps:$4 sm:$0xff]  }
 0x31d   : > { %7372 = vmatpush2.bf16.msra.mxu0 %v18259_v14  ;;  %v18327_v14 = vld [vmem:[%s24171_s3 + $0x278] ss:$12 sps:$4 sm:$0xff]  }
 0x31e   : > { %7411 = vmatpush2.bf16.msra.mxu1 %v7263_v20  ;;  %7373 = vmatprep.subr.bf16.mxu0 %v18266_v5  ;;  %v18326_v5 = vld [vmem:[%s24171_s3 + $0x20] ss:$12 sps:$4 sm:$0xff]   ;;  %v18328_v20 = vld [vmem:[%s24171_s3 + $0x1b8] ss:$12 sps:$4 sm:$0xff]  }
 0x31f   : > { %7412 = vmatprep.subr.bf16.mxu1 %v18269_v22  ;;  %v18329_v22 = vld [vmem:[%s24171_s3 + $0xc8] ss:$12 sps:$4 sm:$0xff]  }
 0x321   : > { %7374 = vmatpush2.bf16.msra.mxu0 %v18264_v27  ;;  %v18331_v27 = vld [vmem:[%s24171_s3 + $0x260] ss:$12 sps:$4 sm:$0xff]  }
 0x322   : > { %7413 = vmatpush2.bf16.msra.mxu1 %v18267_v6  ;;  %7375 = vmatprep.subr.bf16.mxu0 %v18272_v28  ;;  %v18330_v6 = vld [vmem:[%s24171_s3 + $0x8] ss:$12 sps:$4 sm:$0xff]   ;;  %v18332_v28 = vld [vmem:[%s24171_s3 + $0x1a0] ss:$12 sps:$4 sm:$0xff]  }
 0x323   : > { %7414 = vmatprep.subr.bf16.mxu1 %v18275_v44  ;;  %v18333_v44 = vld [vmem:[%s24171_s3 + $0x470] ss:$12 sps:$4 sm:$0xff]  }
 0x325   : > { %7376 = vmatpush2.bf16.msra.mxu0 %v18270_v10  ;;  %v18334_v10 = vld [vmem:[%s24171_s3 + $0x248] ss:$12 sps:$4 sm:$0xff]  }
 0x326   : > { %7415 = vmatpush2.bf16.msra.mxu1 %v18273_v11  ;;  %7377 = vmatprep.subr.bf16.mxu0 %v18278_v30  ;;  %v18335_v11 = vld [vmem:[%s24171_s3 + $0x3b0] ss:$12 sps:$4 sm:$0xff]   ;;  %v18336_v30 = vld [vmem:[%s24171_s3 + $0x188] ss:$12 sps:$4 sm:$0xff]  }
 0x327   : > { %7416 = vmatprep.subr.bf16.mxu1 %v18281_v57  ;;  %v18337_v57 = vld [vmem:[%s24171_s3 + $0x458] ss:$12 sps:$4 sm:$0xff]  }
 0x329   : > { %7378 = vmatpush2.bf16.msra.mxu0 %v18276_v24  ;;  %v18339_v24 = vld [vmem:[%s24171_s3 + $0x5f0] ss:$0 sps:$4 sm:$0xff]  }
 0x32a   : > { %7417 = vmatpush2.bf16.msra.mxu1 %v18279_v25  ;;  %7379 = vmatprep.subr.bf16.mxu0 %v18284_v31  ;;  %v18338_v25 = vld [vmem:[%s24171_s3 + $0x398] ss:$12 sps:$4 sm:$0xff]   ;;  %v18340_v31 = vld [vmem:[%s24171_s3 + $0x530] ss:$12 sps:$4 sm:$0xff]  }
 0x32b   : > { %7418 = vmatprep.subr.bf16.mxu1 %v18287_v7  ;;  %v18341_v7 = vld [vmem:[%s24171_s3 + $0x440] ss:$12 sps:$4 sm:$0xff]  }
 0x32d   : > { %7380 = vmatpush2.bf16.msra.mxu0 %v18282_v36  ;;  %v18343_v36 = vld [vmem:[%s24171_s3 + $0x5d8] ss:$12 sps:$4 sm:$0xff]  }
 0x32e   : > { %7419 = vmatpush2.bf16.msra.mxu1 %v18285_v40  ;;  %7381 = vmatprep.subr.bf16.mxu0 %v18290_v53  ;;  %v18342_v40 = vld [vmem:[%s24171_s3 + $0x380] ss:$12 sps:$4 sm:$0xff]   ;;  %v18344_v53 = vld [vmem:[%s24171_s3 + $0x518] ss:$12 sps:$4 sm:$0xff]  }
 0x32f   : > { %7420 = vmatprep.subr.bf16.mxu1 %v18293_v41  ;;  %v18345_v41 = vld [vmem:[%s24171_s3 + $0x428] ss:$12 sps:$4 sm:$0xff]  }
 0x331   : > { %7382 = vmatpush2.bf16.msra.mxu0 %v18288_v12  ;;  %v18347_v12 = vld [vmem:[%s24171_s3 + $0x5c0] ss:$12 sps:$4 sm:$0xff]  }
 0x332   : > { %7421 = vmatpush2.bf16.msra.mxu1 %v18291_v16  ;;  %7383 = vmatprep.subr.bf16.mxu0 %v18296_v49  ;;  %v18348_v16 = vld [vmem:[%s24171_s3 + $0x500] ss:$12 sps:$4 sm:$0xff]   ;;  %v18349_v49 = vld [vmem:[%s24171_s3 + $0x410] ss:$12 sps:$4 sm:$0xff]  }
 0x333   : > { %7422 = vmatprep.subr.bf16.mxu1 %v18299_v51  ;;  %v18351_v51 = vld [vmem:[%s24171_s3 + $0x5a8] ss:$12 sps:$4 sm:$0xff]  }
 0x335   : > { %7384 = vmatpush2.bf16.msra.mxu0 %v18294_v37  ;;  %v18350_v37 = vld [vmem:[%s24171_s3 + $0x350] ss:$12 sps:$4 sm:$0xff]  }
 0x336   : > { %7423 = vmatpush2.bf16.msra.mxu1 %v18297_v52  ;;  %17425 = vmatprep.subr.bf16.mxu0 %v18300_v54  ;;  %v18353_v52 = vld [vmem:[%s24171_s3 + $0x3f8] ss:$12 sps:$4 sm:$0xff]   ;;  %v18355_v54 = vld [vmem:[%s24171_s3 + $0x590] ss:$12 sps:$4 sm:$0xff]  }
 0x337   : > { %7424 = vmatprep.subr.bf16.mxu1 %v18303_v55  ;;  %v18356_v55 = vld [vmem:[%s24171_s3 + $0x4d0] ss:$12 sps:$4 sm:$0xff]  }
 0x338   : > { %7386 = vmatmul.mubr.bf16.vlgmr.msra.gmra.mxu0 %v21308_v19 }
 0x339   : > { %17426 = vmatpush3.bf16.msra.mxu0 %v18304_v8  ;;  %7467 = vmatprep.mubr.bf16.mxu0 %v21089_v17  ;;  %v18357_v8 = vld [vmem:[%s24171_s3 + $0x3e0] ss:$12 sps:$4 sm:$0xff]  }
 0x33a   : > { %7425 = vmatpush2.bf16.msra.mxu1 %v18301_v58  ;;  %17427 = vmatprep.subr.bf16.mxu0 %v18305_v45  ;;  %v18359_v58 = vld [vmem:[%s24171_s3 + $0x578] ss:$12 sps:$4 sm:$0xff]   ;;  %v18358_v45 = vld [vmem:[%s24171_s3 + $0x320] ss:$12 sps:$4 sm:$0xff]  }
 0x33b   : > { %17447 = vmatprep.subr.bf16.mxu1 %v18307_v0  ;;  %v18361_v0 = vld [vmem:[%s24171_s3 + $0x3c8] ss:$12 sps:$4 sm:$0xff]  }
 0x33d   : > { %7427 = vmatmul.mubr.bf16.vlgmr.msra.gmra.mxu1 %v21327_v39  ;;  %17428 = vmatpush3.bf16.msra.mxu0 %v18306_v33  ;;  %v18363_v33 = vld [vmem:[%s24171_s3 + $0x560] ss:$12 sps:$4 sm:$0xff]  }
 0x33e   : > { %17448 = vmatpush3.bf16.msra.mxu1 %v18308_v32  ;;  %7507 = vmatprep.mubr.bf16.mxu1 %v21110_v23  ;;  %v18362_v32 = vld [vmem:[%s24171_s3 + $0x308] ss:$12 sps:$4 sm:$0xff]  }
 0x33f   : > { %17429 = vmatprep.subr.bf16.mxu0 %v18309_v59  ;;  %17449 = vmatprep.subr.bf16.mxu1 %v18311_v47  ;;  %v18364_v59 = vld [vmem:[%s24171_s3 + $0x4a0] ss:$12 sps:$4 sm:$0xff]  }
 0x340   : > { %v18367_v47 = vld [vmem:[%s24171_s3 + $0x6a0] ss:$12 sps:$4 sm:$0xff]  }
 0x341   : > { %17430 = vmatpush3.bf16.msra.mxu0 %v18310_v26  ;;  %v18368_v26 = vld [vmem:[%s24171_s3 + $0x548] ss:$12 sps:$4 sm:$0xff]  }
 0x342   : > { %17450 = vmatpush3.bf16.msra.mxu1 %v18312_v61  ;;  %17431 = vmatprep.subr.bf16.mxu0 %v18313_v60  ;;  %v18365_v61 = vld [vmem:[%s24171_s3 + $0x69c] ss:$12 sps:$4 sm:$0xff]  }
 0x343   : > { %17451 = vmatprep.subr.bf16.mxu1 %v18315_v13  ;;  %v18369_v60 = vld [vmem:[%s24171_s3 + $0x488] ss:$12 sps:$4 sm:$0xff]  }
 0x344   : > { %v18372_v13 = vld [vmem:[%s24171_s3 + $0x688] ss:$12 sps:$4 sm:$0xff]  }
 0x345   : > { %17432 = vmatpush3.bf16.msra.mxu0 %v18314_v63  ;;  %v18375_v63 = vld [vmem:[%s24171_s3 + $0x820] ss:$12 sps:$4 sm:$0xff]  }
 0x346   : > { %17452 = vmatpush3.bf16.msra.mxu1 %v18316_v4  ;;  %17433 = vmatprep.subr.bf16.mxu0 %v18317_v2  ;;  %v18370_v4 = vld [vmem:[%s24171_s3 + $0x684] ss:$12 sps:$4 sm:$0xff]   ;;  %v18373_v2 = vld [vmem:[%s24171_s3 + $0x81c] ss:$12 sps:$4 sm:$0xff]  }
 0x347   : > { %17453 = vmatprep.subr.bf16.mxu1 %v18319_v35  ;;  %v18378_v35 = vld [vmem:[%s24171_s3 + $0x670] ss:$12 sps:$4 sm:$0xff]  }
 0x349   : > { %17434 = vmatpush3.bf16.msra.mxu0 %v18318_v21  ;;  %v18381_v21 = vld [vmem:[%s24171_s3 + $0x808] ss:$12 sps:$4 sm:$0xff]  }
 0x34a   : > { %17454 = vmatpush3.bf16.msra.mxu1 %v18320_v46  ;;  %17435 = vmatprep.subr.bf16.mxu0 %v18321_v50  ;;  %v18376_v46 = vld [vmem:[%s24171_s3 + $0x66c] ss:$12 sps:$4 sm:$0xff]   ;;  %v18379_v50 = vld [vmem:[%s24171_s3 + $0x804] ss:$12 sps:$4 sm:$0xff]  }
 0x34b   : > { %17455 = vmatprep.subr.bf16.mxu1 %v18323_v62  ;;  %v18384_v62 = vld [vmem:[%s24171_s3 + $0x658] ss:$12 sps:$4 sm:$0xff]  }
 0x34d   : > { %17436 = vmatpush3.bf16.msra.mxu0 %v18322_v18  ;;  %v18387_v18 = vld [vmem:[%s24171_s3 + $0x7f0] ss:$12 sps:$4 sm:$0xff]  }
 0x34e   : > { %17456 = vmatpush3.bf16.msra.mxu1 %v18324_v38  ;;  %17437 = vmatprep.subr.bf16.mxu0 %v18325_v3  ;;  %v18382_v38 = vld [vmem:[%s24171_s3 + $0x654] ss:$12 sps:$4 sm:$0xff]   ;;  %v18385_v3 = vld [vmem:[%s24171_s3 + $0x7ec] ss:$12 sps:$4 sm:$0xff]  }
 0x34f   : > { %17457 = vmatprep.subr.bf16.mxu1 %v18327_v14  ;;  %v18390_v14 = vld [vmem:[%s24171_s3 + $0x640] ss:$12 sps:$4 sm:$0xff]  }
 0x351   : > { %17438 = vmatpush3.bf16.msra.mxu0 %v18326_v5  ;;  %v18393_v5 = vld [vmem:[%s24171_s3 + $0x7d8] ss:$12 sps:$4 sm:$0xff]  }
 0x352   : > { %17458 = vmatpush3.bf16.msra.mxu1 %v18328_v20  ;;  %17439 = vmatprep.subr.bf16.mxu0 %v18329_v22  ;;  %v18388_v20 = vld [vmem:[%s24171_s3 + $0x63c] ss:$12 sps:$4 sm:$0xff]   ;;  %v18391_v22 = vld [vmem:[%s24171_s3 + $0x7d4] ss:$12 sps:$4 sm:$0xff]  }
 0x353   : > { %17459 = vmatprep.subr.bf16.mxu1 %v18331_v27  ;;  %v18396_v27 = vld [vmem:[%s24171_s3 + $0x628] ss:$12 sps:$4 sm:$0xff]  }
 0x355   : > { %17440 = vmatpush3.bf16.msra.mxu0 %v18330_v6  ;;  %v18399_v6 = vld [vmem:[%s24171_s3 + $0x7c0] ss:$12 sps:$4 sm:$0xff]  }
 0x356   : > { %17460 = vmatpush3.bf16.msra.mxu1 %v18332_v28  ;;  %17469 = vmatprep.subr.bf16.mxu0 %v18333_v44  ;;  %v18394_v28 = vld [vmem:[%s24171_s3 + $0x624] ss:$12 sps:$4 sm:$0xff]   ;;  %v18397_v44 = vld [vmem:[%s24171_s3 + $0x7bc] ss:$12 sps:$4 sm:$0xff]  }
 0x357   : > { %17461 = vmatprep.subr.bf16.mxu1 %v18334_v10  ;;  %v18402_v10 = vld [vmem:[%s24171_s3 + $0x610] ss:$12 sps:$4 sm:$0xff]  }
 0x358   : > { %7468 = vmatmul.mubr.bf16.vlgmr.msra.gmra.mxu0 %v21096_v1 }
 0x359   : > { %17470 = vmatpush3.bf16.msra.mxu0 %v18335_v11  ;;  %7547 = vmatprep.mubr.bf16.mxu0 %v21130_v42  ;;  %v18405_v11 = vld [vmem:[%s24171_s3 + $0x7a8] ss:$12 sps:$4 sm:$0xff]  }
 0x35a   : > { %17462 = vmatpush3.bf16.msra.mxu1 %v18336_v30  ;;  %17471 = vmatprep.subr.bf16.mxu0 %v18337_v57  ;;  %v18400_v30 = vld [vmem:[%s24171_s3 + $0x60c] ss:$12 sps:$4 sm:$0xff]   ;;  %v18403_v57 = vld [vmem:[%s24171_s3 + $0x7a4] ss:$12 sps:$4 sm:$0xff]  }
 0x35b   : > { %18017 = vmatprep.subr.msk.bf16.mxu1 %vm7261_vm3, %v18339_v24  ;;  %v18408_v24 = vld [vmem:[%s24171_s3 + $0x5f8] ss:$12 sps:$4 sm:$0xff]  }
 0x35d   : > { %7508 = vmatmul.mubr.bf16.vlgmr.msra.gmra.mxu1 %v21118_v34  ;;  %17472 = vmatpush3.bf16.msra.mxu0 %v18338_v25  ;;  %v18411_v25 = vld [vmem:[%s24171_s3 + $0x790] ss:$12 sps:$4 sm:$0xff]  }
 0x35e   : > { %17492 = vmatpush3.bf16.msra.mxu1 %v18340_v31  ;;  %15742 = vmatprep.mubr.msk.bf16.mxu1 %vm4851_vm15, %v21145_v48  ;;  %v18406_v31 = vld [vmem:[%s24171_s3 + $0x5f4] ss:$12 sps:$4 sm:$0xff]  }
 0x35f   : > { %17473 = vmatprep.subr.bf16.mxu0 %v18341_v7  ;;  %17493 = vmatprep.subr.bf16.mxu1 %v18343_v36  ;;  %v18409_v7 = vld [vmem:[%s24171_s3 + $0x78c] ss:$12 sps:$4 sm:$0xff]  }
 0x360   : > { %v18414_v36 = vld [vmem:[%s24171_s3 + $0x760] ss:$12 sps:$4 sm:$0xff]  }
 0x361   : > { %17474 = vmatpush3.bf16.msra.mxu0 %v18342_v40  ;;  %v18417_v40 = vld [vmem:[%s24171_s3 + $0x778] ss:$12 sps:$4 sm:$0xff]  }
 0x362   : > { %17494 = vmatpush3.bf16.msra.mxu1 %v18344_v53  ;;  %17475 = vmatprep.subr.bf16.mxu0 %v18345_v41  ;;  %v18412_v53 = vld [vmem:[%s24171_s3 + $0x75c] ss:$12 sps:$4 sm:$0xff]   ;;  %v18415_v41 = vld [vmem:[%s24171_s3 + $0x774] ss:$12 sps:$4 sm:$0xff]  }
 0x363   : > { %17495 = vmatprep.subr.bf16.mxu1 %v18347_v12  ;;  %v18420_v12 = vld [vmem:[%s24171_s3 + $0x748] ss:$12 sps:$4 sm:$0xff]  }
 0x365   : > { %17476 = vmatpush3.bf16.msra.mxu0 %v18346_v43  ;;  %v18423_v43 = vld [vmem:[%s24171_s3 + $0x8e0] ss:$12 sps:$4 sm:$0xff]  }
 0x366   : > { %17496 = vmatpush3.bf16.msra.mxu1 %v18348_v16  ;;  %17477 = vmatprep.subr.bf16.mxu0 %v18349_v49  ;;  %v18418_v16 = vld [vmem:[%s24171_s3 + $0x744] ss:$12 sps:$4 sm:$0xff]   ;;  %v18421_v49 = vld [vmem:[%s24171_s3 + $0x8dc] ss:$12 sps:$4 sm:$0xff]  }
 0x367   : > { %17497 = vmatprep.subr.bf16.mxu1 %v18351_v51  ;;  %v18426_v51 = vld [vmem:[%s24171_s3 + $0x730] ss:$12 sps:$4 sm:$0xff]  }
 0x369   : > { %17478 = vmatpush3.bf16.msra.mxu0 %v18350_v37  ;;  %v18429_v37 = vld [vmem:[%s24171_s3 + $0x8c8] ss:$12 sps:$4 sm:$0xff]  }
 0x36a   : > { %17498 = vmatpush3.bf16.msra.mxu1 %v18352_v9  ;;  %17479 = vmatprep.subr.bf16.mxu0 %v18353_v52  ;;  %v18424_v9 = vld [vmem:[%s24171_s3 + $0x72c] ss:$12 sps:$4 sm:$0xff]   ;;  %v18427_v52 = vld [vmem:[%s24171_s3 + $0x8c4] ss:$12 sps:$4 sm:$0xff]  }
 0x36b   : > { %17499 = vmatprep.subr.bf16.mxu1 %v18355_v54  ;;  %v18432_v54 = vld [vmem:[%s24171_s3 + $0x718] ss:$12 sps:$4 sm:$0xff]  }
 0x36d   : > { %17480 = vmatpush3.bf16.msra.mxu0 %v18354_v56  ;;  %v18435_v56 = vld [vmem:[%s24171_s3 + $0x8b0] ss:$12 sps:$4 sm:$0xff]  }
 0x36e   : > { %17500 = vmatpush3.bf16.msra.mxu1 %v18356_v55  ;;  %17481 = vmatprep.subr.bf16.mxu0 %v18357_v8  ;;  %v18430_v55 = vld [vmem:[%s24171_s3 + $0x714] ss:$12 sps:$4 sm:$0xff]   ;;  %v18433_v8 = vld [vmem:[%s24171_s3 + $0x8ac] ss:$12 sps:$4 sm:$0xff]  }
 0x36f   : > { %17501 = vmatprep.subr.bf16.mxu1 %v18359_v58  ;;  %v18438_v58 = vld [vmem:[%s24171_s3 + $0x700] ss:$12 sps:$4 sm:$0xff]  }
 0x371   : > { %17482 = vmatpush3.bf16.msra.mxu0 %v18358_v45  ;;  %v18441_v45 = vld [vmem:[%s24171_s3 + $0x898] ss:$12 sps:$4 sm:$0xff]  }
 0x372   : > { %17502 = vmatpush3.bf16.msra.mxu1 %v18360_v29  ;;  %17483 = vmatprep.subr.bf16.mxu0 %v18361_v0  ;;  %v18436_v29 = vld [vmem:[%s24171_s3 + $0x6fc] ss:$12 sps:$4 sm:$0xff]   ;;  %v18439_v0 = vld [vmem:[%s24171_s3 + $0x894] ss:$12 sps:$4 sm:$0xff]  }
 0x373   : > { %17503 = vmatprep.subr.bf16.mxu1 %v18363_v33  ;;  %v18444_v33 = vld [vmem:[%s24171_s3 + $0x6e8] ss:$12 sps:$4 sm:$0xff]  }
 0x375   : > { %17484 = vmatpush3.bf16.msra.mxu0 %v18362_v32  ;;  %v18447_v32 = vld [vmem:[%s24171_s3 + $0x880] ss:$12 sps:$4 sm:$0xff]  }
 0x376   : > { %17504 = vmatpush3.bf16.msra.mxu1 %v18364_v59  ;;  %8875 = vmatprep.subr.bf16.mxu0 %v18367_v47  ;;  %v18442_v59 = vld [vmem:[%s24171_s3 + $0x6e4] ss:$12 sps:$4 sm:$0xff]   ;;  %v18445_v47 = vld [vmem:[%s24171_s3 + $0x87c] ss:$12 sps:$4 sm:$0xff]  }
 0x377   : > { %17505 = vmatprep.subr.bf16.mxu1 %v18368_v26  ;;  %v18450_v26 = vld [vmem:[%s24171_s3 + $0x6d0] ss:$12 sps:$4 sm:$0xff]  }
 0x378   : > { %7548 = vmatmul.mubr.bf16.vlgmr.msra.gmra.mxu0 %v21308_v19 }
 0x379   : > { %8876 = vmatpush1.bf16.msra.mxu0 %v18365_v61  ;;  %8907 = vmatprep.mubr.bf16.mxu0 %v21089_v17  ;;  %v18453_v61 = vld [vmem:[%s24171_s3 + $0x868] ss:$12 sps:$4 sm:$0xff]  }
 0x37a   : > { %17506 = vmatpush3.bf16.msra.mxu1 %v18369_v60  ;;  %8877 = vmatprep.subr.bf16.mxu0 %v18372_v13  ;;  %v18448_v60 = vld [vmem:[%s24171_s3 + $0x6cc] ss:$12 sps:$4 sm:$0xff]   ;;  %v18451_v13 = vld [vmem:[%s24171_s3 + $0x864] ss:$12 sps:$4 sm:$0xff]  }
 0x37b   : > { %8916 = vmatprep.subr.bf16.mxu1 %v18375_v63  ;;  %v18456_v63 = vld [vmem:[%s24171_s3 + $0x6b8] ss:$12 sps:$4 sm:$0xff]  }
 0x37d   : > { %7588 = vmatmul.mubr.bf16.vlgmr.msra.gmra.mxu1 %v21327_v39  ;;  %8878 = vmatpush1.bf16.msra.mxu0 %v18370_v4  ;;  %v18459_v4 = vld [vmem:[%s24171_s3 + $0x850] ss:$12 sps:$4 sm:$0xff]  }
 0x37e   : > { %8917 = vmatpush1.bf16.msra.mxu1 %v18373_v2  ;;  %8948 = vmatprep.mubr.bf16.mxu1 %v21110_v23  ;;  %v18454_v2 = vld [vmem:[%s24171_s3 + $0x6b4] ss:$12 sps:$4 sm:$0xff]  }
 0x37f   : > { %8879 = vmatprep.subr.bf16.mxu0 %v18378_v35  ;;  %8918 = vmatprep.subr.bf16.mxu1 %v18381_v21  ;;  %v18457_v35 = vld [vmem:[%s24171_s3 + $0x84c] ss:$12 sps:$4 sm:$0xff]  }
 0x380   : > { %v18462_v21 = vld [vmem:[%s24171_s3 + $0x9a0] ss:$12 sps:$4 sm:$0xff]  }
 0x381   : > { %8880 = vmatpush1.bf16.msra.mxu0 %v18376_v46  ;;  %v18465_v46 = vld [vmem:[%s24171_s3 + $0x838] ss:$12 sps:$4 sm:$0xff]  }
 0x382   : > { %8919 = vmatpush1.bf16.msra.mxu1 %v18379_v50  ;;  %8881 = vmatprep.subr.bf16.mxu0 %v18384_v62  ;;  %v18460_v50 = vld [vmem:[%s24171_s3 + $0x99c] ss:$12 sps:$4 sm:$0xff]   ;;  %v18463_v62 = vld [vmem:[%s24171_s3 + $0x834] ss:$12 sps:$4 sm:$0xff]  }
 0x383   : > { %8920 = vmatprep.subr.bf16.mxu1 %v18387_v18  ;;  %v18468_v18 = vld [vmem:[%s24171_s3 + $0x988] ss:$12 sps:$4 sm:$0xff]  }
 0x385   : > { %8882 = vmatpush1.bf16.msra.mxu0 %v18382_v38  ;;  %v18471_v38 = vld [vmem:[%s24171_s3 + $0xb20] ss:$12 sps:$4 sm:$0xff]  }
 0x386   : > { %8921 = vmatpush1.bf16.msra.mxu1 %v18385_v3  ;;  %8883 = vmatprep.subr.bf16.mxu0 %v18390_v14  ;;  %v18466_v14 = vld [vmem:[%s24171_s3 + $0x984] ss:$12 sps:$4 sm:$0xff]  }
 0x387   : > { %8922 = vmatprep.subr.bf16.mxu1 %v18393_v5 }
 0x389   : > { %8884 = vmatpush1.bf16.msra.mxu0 %v18388_v20  ;;  %v18469_v20 = vld [vmem:[%s24171_s3 + $0xb1c] ss:$12 sps:$4 sm:$0xff]  }
 0x38a   : > { %8923 = vmatpush1.bf16.msra.mxu1 %v18391_v22  ;;  %8885 = vmatprep.subr.bf16.mxu0 %v18396_v27  ;;  %v18474_v22 = vld [vmem:[%s24171_s3 + $0x970] ss:$12 sps:$4 sm:$0xff]   ;;  %v18477_v27 = vld [vmem:[%s24171_s3 + $0xb08] ss:$12 sps:$4 sm:$0xff]  }
 0x38b   : > { %8924 = vmatprep.subr.bf16.mxu1 %v18399_v6 }
 0x38d   : > { %8886 = vmatpush1.bf16.msra.mxu0 %v18394_v28 }
 0x38e   : > { %8925 = vmatpush1.bf16.msra.mxu1 %v18397_v44  ;;  %8887 = vmatprep.subr.bf16.mxu0 %v18402_v10  ;;  %v18472_v44 = vld [vmem:[%s24171_s3 + $0x96c] ss:$12 sps:$4 sm:$0xff]  }
 0x38f   : > { %8926 = vmatprep.subr.bf16.mxu1 %v18405_v11 }
 0x391   : > { %8888 = vmatpush1.bf16.msra.mxu0 %v18400_v30  ;;  %v18475_v30 = vld [vmem:[%s24171_s3 + $0xb04] ss:$12 sps:$4 sm:$0xff]  }
 0x392   : > { %8927 = vmatpush1.bf16.msra.mxu1 %v18403_v57  ;;  %8889 = vmatprep.subr.bf16.mxu0 %v18408_v24  ;;  %v18480_v57 = vld [vmem:[%s24171_s3 + $0x958] ss:$12 sps:$4 sm:$0xff]  }
 0x393   : > { %8928 = vmatprep.subr.bf16.mxu1 %v18411_v25  ;;  %v18483_v25 = vld [vmem:[%s24171_s3 + $0xaf0] ss:$12 sps:$4 sm:$0xff]  }
 0x395   : > { %8890 = vmatpush1.bf16.msra.mxu0 %v18406_v31 }
 0x396   : > { %8929 = vmatpush1.bf16.msra.mxu1 %v18409_v7  ;;  %8891 = vmatprep.subr.bf16.mxu0 %v18414_v36  ;;  %v18478_v36 = vld [vmem:[%s24171_s3 + $0x954] ss:$12 sps:$4 sm:$0xff]  }
 0x397   : > { %8930 = vmatprep.subr.bf16.mxu1 %v18417_v40  ;;  %v18481_v40 = vld [vmem:[%s24171_s3 + $0xaec] ss:$12 sps:$4 sm:$0xff]  }
 0x399   : > { %8892 = vmatpush2.bf16.msra.mxu0 %v18412_v53  ;;  %v18486_v53 = vld [vmem:[%s24171_s3 + $0x940] ss:$12 sps:$4 sm:$0xff]  }
 0x39a   : > { %8931 = vmatpush1.bf16.msra.mxu1 %v18415_v41  ;;  %8893 = vmatprep.subr.bf16.mxu0 %v18420_v12  ;;  %v18489_v12 = vld [vmem:[%s24171_s3 + $0xad8] ss:$12 sps:$4 sm:$0xff]  }
 0x39b   : > { %8932 = vmatprep.subr.bf16.mxu1 %v18423_v43  ;;  %v18484_v43 = vld [vmem:[%s24171_s3 + $0x93c] ss:$12 sps:$4 sm:$0xff]  }
 0x39d   : > { %8894 = vmatpush2.bf16.msra.mxu0 %v18418_v16  ;;  %v18487_v16 = vld [vmem:[%s24171_s3 + $0xad4] ss:$12 sps:$4 sm:$0xff]  }
 0x39e   : > { %8933 = vmatpush2.bf16.msra.mxu1 %v18421_v49  ;;  %8895 = vmatprep.subr.bf16.mxu0 %v18426_v51  ;;  %v18492_v49 = vld [vmem:[%s24171_s3 + $0x928] ss:$12 sps:$4 sm:$0xff]   ;;  %v18495_v51 = vld [vmem:[%s24171_s3 + $0xac0] ss:$12 sps:$4 sm:$0xff]  }
 0x39f   : > { %8934 = vmatprep.subr.bf16.mxu1 %v18429_v37  ;;  %v18490_v37 = vld [vmem:[%s24171_s3 + $0x924] ss:$12 sps:$4 sm:$0xff]  }
 0x3a1   : > { %8896 = vmatpush2.bf16.msra.mxu0 %v18424_v9  ;;  %v18493_v9 = vld [vmem:[%s24171_s3 + $0xabc] ss:$12 sps:$4 sm:$0xff]  }
 0x3a2   : > { %8935 = vmatpush2.bf16.msra.mxu1 %v18427_v52  ;;  %8897 = vmatprep.subr.bf16.mxu0 %v18432_v54  ;;  %v18498_v52 = vld [vmem:[%s24171_s3 + $0x910] ss:$12 sps:$4 sm:$0xff]   ;;  %v18501_v54 = vld [vmem:[%s24171_s3 + $0xaa8] ss:$12 sps:$4 sm:$0xff]  }
 0x3a3   : > { %8936 = vmatprep.subr.bf16.mxu1 %v18435_v56  ;;  %v18496_v56 = vld [vmem:[%s24171_s3 + $0x90c] ss:$12 sps:$4 sm:$0xff]  }
 0x3a5   : > { %8898 = vmatpush2.bf16.msra.mxu0 %v18430_v55  ;;  %v18499_v55 = vld [vmem:[%s24171_s3 + $0xaa4] ss:$12 sps:$4 sm:$0xff]  }
 0x3a6   : > { %8937 = vmatpush2.bf16.msra.mxu1 %v18433_v8  ;;  %8899 = vmatprep.subr.bf16.mxu0 %v18438_v58  ;;  %v18504_v8 = vld [vmem:[%s24171_s3 + $0x8f8] ss:$12 sps:$4 sm:$0xff]   ;;  %v18507_v58 = vld [vmem:[%s24171_s3 + $0xa90] ss:$12 sps:$4 sm:$0xff]  }
 0x3a7   : > { %8938 = vmatprep.subr.bf16.mxu1 %v18441_v45  ;;  %v18502_v45 = vld [vmem:[%s24171_s3 + $0x8f4] ss:$12 sps:$4 sm:$0xff]  }
 0x3a9   : > { %8900 = vmatpush2.bf16.msra.mxu0 %v18436_v29  ;;  %v18505_v29 = vld [vmem:[%s24171_s3 + $0xa8c] ss:$12 sps:$4 sm:$0xff]  }
 0x3aa   : > { %8939 = vmatpush2.bf16.msra.mxu1 %v18439_v0  ;;  %8901 = vmatprep.subr.bf16.mxu0 %v18444_v33  ;;  %v18510_v0 = vld [vmem:[%s24171_s3 + $0xa60] ss:$12 sps:$4 sm:$0xff]   ;;  %v18513_v33 = vld [vmem:[%s24171_s3 + $0xa78] ss:$12 sps:$4 sm:$0xff]  }
 0x3ab   : > { %8940 = vmatprep.subr.bf16.mxu1 %v18447_v32  ;;  %v15995_v32 = vld [vmem:[%s24171_s3 + $0xbdc] sm:$0xff] }
 0x3ad   : > { %8902 = vmatpush2.bf16.msra.mxu0 %v18442_v59  ;;  %v18508_v59 = vld [vmem:[%s24171_s3 + $0xa5c] ss:$12 sps:$4 sm:$0xff]  }
 0x3ae   : > { %8941 = vmatpush2.bf16.msra.mxu1 %v18445_v47  ;;  %8903 = vmatprep.subr.bf16.mxu0 %v18450_v26  ;;  %v18511_v47 = vld [vmem:[%s24171_s3 + $0xa74] ss:$12 sps:$4 sm:$0xff]  }
 0x3af   : > { %8942 = vmatprep.subr.bf16.mxu1 %v18453_v61  ;;  %v18516_v26 = vld [vmem:[%s24171_s3 + $0xa48] ss:$12 sps:$4 sm:$0xff]   ;;  %v16187_v61 = vcombine.high %v15995_v32, %v15995_v32 }
 0x3b1   : > { %8904 = vmatpush2.bf16.msra.mxu0 %v18448_v60  ;;  %v16186_v60 = vcombine.low %v15995_v32, %v15995_v32 }
 0x3b2   : > { %8943 = vmatpush2.bf16.msra.mxu1 %v18451_v13  ;;  %8905 = vmatprep.subr.bf16.mxu0 %v18456_v63  ;;  %v18514_v13 = vld [vmem:[%s24171_s3 + $0xa44] ss:$12 sps:$4 sm:$0xff]  }
 0x3b3   : > { %8944 = vmatprep.subr.bf16.mxu1 %v18459_v4  ;;  %v18521_v63 = vld [vmem:[%s24171_s3 + $0xa30] ss:$12 sps:$4 sm:$0xff]   ;;  %v8867_v4 = vsel %vm7261_vm3, %v16186_v60, 0 }
 0x3b5   : > { %8906 = vmatpush2.bf16.msra.mxu0 %v18454_v2  ;;  %v18524_v2 = vld [vmem:[%s24171_s3 + $0xbc8] ss:$12 sps:$4 sm:$0xff]  }
 0x3b6   : > { %8945 = vmatpush2.bf16.msra.mxu1 %v18457_v35  ;;  %8957 = vmatprep.subr.bf16.mxu0 %v18462_v21  ;;  %v18519_v35 = vld [vmem:[%s24171_s3 + $0xa2c] ss:$12 sps:$4 sm:$0xff]   ;;  %v18522_v21 = vld [vmem:[%s24171_s3 + $0xbc4] ss:$12 sps:$4 sm:$0xff]  }
 0x3b7   : > { %8946 = vmatprep.subr.bf16.mxu1 %v18465_v46  ;;  %v18527_v46 = vld [vmem:[%s24171_s3 + $0xa18] ss:$12 sps:$4 sm:$0xff]  }
 0x3b8   : > { %8908 = vmatmul.mubr.bf16.vlgmr.msra.gmra.mxu0 %v21096_v1  ;;  %v7305_v3 = vpop.f32.mrf.mxu0 }
 0x3b9   : > { %8958 = vmatpush1.bf16.msra.mxu0 %v18460_v50  ;;  %8989 = vmatprep.mubr.bf16.mxu0 %v21130_v42  ;;  %v18530_v50 = vld [vmem:[%s24171_s3 + $0xbb0] ss:$12 sps:$4 sm:$0xff]  }
 0x3ba   : > { %8947 = vmatpush2.bf16.msra.mxu1 %v18463_v62  ;;  %v7307_v5 = vpop.f32.mrf.mxu0  ;;  %8959 = vmatprep.subr.bf16.mxu0 %v18468_v18  ;;  %v18525_v62 = vld [vmem:[%s24171_s3 + $0xa14] ss:$12 sps:$4 sm:$0xff]   ;;  %v18528_v18 = vld [vmem:[%s24171_s3 + $0xbac] ss:$12 sps:$4 sm:$0xff]  }
 0x3bb   : > { %8998 = vmatprep.subr.bf16.mxu1 %v18471_v38  ;;  %v18533_v38 = vld [vmem:[%s24171_s3 + $0xa00] ss:$12 sps:$4 sm:$0xff]  }
 0x3bc   : > { %v7309_v6 = vpop.f32.mrf.mxu0 }
 0x3bd   : > { %8949 = vmatmul.mubr.bf16.vlgmr.msra.gmra.mxu1 %v21118_v34  ;;  %8960 = vmatpush1.bf16.msra.mxu0 %v18466_v14  ;;  %v7346_v28 = vpop.f32.mrf.mxu1  ;;  %v18531_v14 = vld [vmem:[%s24171_s3 + $0x9fc] ss:$12 sps:$4 sm:$0xff]  }
 0x3be   : > { %v21737_v10 = vadd.f32 %v7346_v28, %v7305_v3  ;;  %8999 = vmatpush1.bf16.msra.mxu1 %v18469_v20  ;;  %16190 = vmatprep.mubr.msk.bf16.mxu1 %vm4851_vm15, %v21145_v48  ;;  %v7310_v11 = vpop.f32.mrf.mxu0  ;;  %v18536_v3 = vld [vmem:[%s24171_s3 + $0xb98] ss:$12 sps:$4 sm:$0xff]   ;;  %v18539_v20 = vld [vmem:[%s24171_s3 + $0x9e8] ss:$12 sps:$4 sm:$0xff]   ;;  %v18545_v28 = vld [vmem:[%s24171_s3 + $0x9d0] ss:$12 sps:$4 sm:$0xff]  }
 0x3bf   : > { %v7348_v24 = vpop.f32.mrf.mxu1  ;;  %8961 = vmatprep.subr.bf16.mxu0 %v18474_v22  ;;  %9000 = vmatprep.subr.bf16.mxu1 %v18477_v27  ;;  %v18542_v22 = vld [vmem:[%s24171_s3 + $0xb80] ss:$12 sps:$4 sm:$0xff]   ;;  %v18537_v27 = vld [vmem:[%s24171_s3 + $0x9e4] ss:$12 sps:$4 sm:$0xff]   ;;  %v18540_v6 = vld [vmem:[%s24171_s3 + $0xb7c] ss:$12 sps:$4 sm:$0xff]  }
 0x3c0   : > { %v21750_v31 = vadd.f32 %v7348_v24, %v7307_v5  ;;  %v18534_v5 = vld [vmem:[%s24171_s3 + $0xb94] ss:$12 sps:$4 sm:$0xff]   ;;  %v18543_v11 = vld [vmem:[%s24171_s3 + $0x9cc] ss:$12 sps:$4 sm:$0xff]   ;;  %v18554_v24 = vld [vmem:[%s24171_s3 + $0xb50] ss:$12 sps:$4 sm:$0xff]  }
 0x3c1   : > { %8962 = vmatpush1.bf16.msra.mxu0 %v18472_v44  ;;  %v7350_v7 = vpop.f32.mrf.mxu1  ;;  %v18548_v44 = vld [vmem:[%s24171_s3 + $0xb68] ss:$12 sps:$4 sm:$0xff]  }
 0x3c2   : > { %9001 = vmatpush1.bf16.msra.mxu1 %v18475_v30  ;;  %8963 = vmatprep.subr.bf16.mxu0 %v18480_v57  ;;  %v18546_v30 = vld [vmem:[%s24171_s3 + $0xb64] ss:$12 sps:$4 sm:$0xff]   ;;  %v18552_v7 = vld [vmem:[%s24171_s3 + $0xb4c] ss:$12 sps:$4 sm:$0xff]  }
 0x3c3   : > { %v7351_v41 = vpop.f32.mrf.mxu1  ;;  %9002 = vmatprep.subr.bf16.mxu1 %v18483_v25  ;;  %v18551_v57 = vld [vmem:[%s24171_s3 + $0x9b8] ss:$12 sps:$4 sm:$0xff]   ;;  %v18549_v25 = vld [vmem:[%s24171_s3 + $0x9b4] ss:$12 sps:$4 sm:$0xff]  }
 0x3c4   : > { %v18556_v41 = vld [vmem:[%s24171_s3 + $0xb34] ss:$12 sps:$4 sm:$0xff]  }
 0x3c5   : > { %8964 = vmatpush1.bf16.msra.mxu0 %v18478_v36  ;;  %v18555_v36 = vld [vmem:[%s24171_s3 + $0x764] ss:$12 sps:$4 sm:$0xff]  }
 0x3c6   : > { %9003 = vmatpush1.bf16.msra.mxu1 %v18481_v40  ;;  %8965 = vmatprep.subr.bf16.mxu0 %v18486_v53  ;;  %v18558_v40 = vld [vmem:[%s24171_s3 + $0xb38] ss:$12 sps:$4 sm:$0xff]  }
 0x3c7   : > { %9004 = vmatprep.subr.bf16.mxu1 %v18489_v12  ;;  %v18559_v53 = vld [vmem:[%s24171_s3 + $0x6a4] ss:$12 sps:$4 sm:$0xff]   ;;  %v18560_v12 = vld [vmem:[%s24171_s3 + $0x74c] ss:$12 sps:$4 sm:$0xff]  }
 0x3c9   : > { %8966 = vmatpush1.bf16.msra.mxu0 %v18484_v43  ;;  %v18562_v43 = vld [vmem:[%s24171_s3 + $0x8e4] ss:$12 sps:$4 sm:$0xff]  }
 0x3ca   : > { %9005 = vmatpush1.bf16.msra.mxu1 %v18487_v16  ;;  %8967 = vmatprep.subr.bf16.mxu0 %v18492_v49 }
 0x3cb   : > { %9006 = vmatprep.subr.bf16.mxu1 %v18495_v51  ;;  %v18561_v51 = vld [vmem:[%s24171_s3 + $0x68c] ss:$12 sps:$4 sm:$0xff]  }
 0x3cd   : > { %8968 = vmatpush1.bf16.msra.mxu0 %v18490_v37 }
 0x3ce   : > { %9007 = vmatpush1.bf16.msra.mxu1 %v18493_v9  ;;  %8969 = vmatprep.subr.bf16.mxu0 %v18498_v52  ;;  %v18563_v9 = vld [vmem:[%s24171_s3 + $0x824] ss:$12 sps:$4 sm:$0xff]  }
 0x3cf   : > { %9008 = vmatprep.subr.bf16.mxu1 %v18501_v54  ;;  %v18566_v54 = vld [vmem:[%s24171_s3 + $0x8cc] ss:$12 sps:$4 sm:$0xff]  }
 0x3d1   : > { %8970 = vmatpush1.bf16.msra.mxu0 %v18496_v56 }
 0x3d2   : > { %9009 = vmatpush1.bf16.msra.mxu1 %v18499_v55  ;;  %8971 = vmatprep.subr.bf16.mxu0 %v18504_v8  ;;  %v18565_v8 = vld [vmem:[%s24171_s3 + $0x674] ss:$12 sps:$4 sm:$0xff]  }
 0x3d3   : > { %9010 = vmatprep.subr.bf16.mxu1 %v18507_v58 }
 0x3d5   : > { %8972 = vmatpush1.bf16.msra.mxu0 %v18502_v45  ;;  %v18567_v45 = vld [vmem:[%s24171_s3 + $0x80c] ss:$12 sps:$4 sm:$0xff]  }
 0x3d6   : > { %9011 = vmatpush1.bf16.msra.mxu1 %v18505_v29  ;;  %8973 = vmatprep.subr.bf16.mxu0 %v18510_v0  ;;  %v18568_v29 = vld [vmem:[%s24171_s3 + $0x71c] ss:$12 sps:$4 sm:$0xff]  }
 0x3d7   : > { %9012 = vmatprep.subr.bf16.mxu1 %v18513_v33  ;;  %v18570_v33 = vld [vmem:[%s24171_s3 + $0x8b4] ss:$12 sps:$4 sm:$0xff]  }
 0x3d9   : > { %8974 = vmatpush2.bf16.msra.mxu0 %v18508_v59 }
 0x3da   : > { %9013 = vmatpush1.bf16.msra.mxu1 %v18511_v47  ;;  %8975 = vmatprep.subr.bf16.mxu0 %v18516_v26  ;;  %v18569_v47 = vld [vmem:[%s24171_s3 + $0x65c] ss:$12 sps:$4 sm:$0xff]   ;;  %v18571_v26 = vld [vmem:[%s24171_s3 + $0x7f4] ss:$12 sps:$4 sm:$0xff]  }
 0x3db   : > { %16189 = vmatprep.subr.msk.bf16.mxu1 %vm7261_vm3, %v16187_v61  ;;  %v18572_v61 = vld [vmem:[%s24171_s3 + $0x704] ss:$12 sps:$4 sm:$0xff]  }
 0x3dd   : > { %8976 = vmatpush2.bf16.msra.mxu0 %v18514_v13  ;;  %v18574_v13 = vld [vmem:[%s24171_s3 + $0x89c] ss:$12 sps:$4 sm:$0xff]  }
 0x3de   : > { %9015 = vmatpush2.bf16.msra.mxu1 %v8867_v4  ;;  %8977 = vmatprep.subr.bf16.mxu0 %v18521_v63  ;;  %v18573_v63 = vld [vmem:[%s24171_s3 + $0x644] ss:$12 sps:$4 sm:$0xff]   ;;  %v18575_v4 = vld [vmem:[%s24171_s3 + $0x7dc] ss:$12 sps:$4 sm:$0xff]  }
 0x3df   : > { %9016 = vmatprep.subr.bf16.mxu1 %v18524_v2  ;;  %v18576_v2 = vld [vmem:[%s24171_s3 + $0x6ec] ss:$12 sps:$4 sm:$0xff]  }
 0x3e1   : > { %8978 = vmatpush2.bf16.msra.mxu0 %v18519_v35  ;;  %v18578_v35 = vld [vmem:[%s24171_s3 + $0x884] ss:$12 sps:$4 sm:$0xff]  }
 0x3e2   : > { %9017 = vmatpush2.bf16.msra.mxu1 %v18522_v21  ;;  %8979 = vmatprep.subr.bf16.mxu0 %v18527_v46  ;;  %v18577_v21 = vld [vmem:[%s24171_s3 + $0x62c] ss:$12 sps:$4 sm:$0xff]   ;;  %v18579_v46 = vld [vmem:[%s24171_s3 + $0x7c4] ss:$12 sps:$4 sm:$0xff]  }
 0x3e3   : > { %9018 = vmatprep.subr.bf16.mxu1 %v18530_v50  ;;  %v18580_v50 = vld [vmem:[%s24171_s3 + $0x6d4] ss:$12 sps:$4 sm:$0xff]  }
 0x3e5   : > { %8980 = vmatpush2.bf16.msra.mxu0 %v18525_v62  ;;  %v18582_v62 = vld [vmem:[%s24171_s3 + $0x86c] ss:$12 sps:$4 sm:$0xff]  }
 0x3e6   : > { %9019 = vmatpush2.bf16.msra.mxu1 %v18528_v18  ;;  %8981 = vmatprep.subr.bf16.mxu0 %v18533_v38  ;;  %v18581_v18 = vld [vmem:[%s24171_s3 + $0x614] ss:$12 sps:$4 sm:$0xff]   ;;  %v18583_v38 = vld [vmem:[%s24171_s3 + $0x7ac] ss:$12 sps:$4 sm:$0xff]  }
 0x3e7   : > { %9020 = vmatprep.subr.bf16.mxu1 %v18536_v3  ;;  %v18584_v3 = vld [vmem:[%s24171_s3 + $0x6bc] ss:$12 sps:$4 sm:$0xff]  }
 0x3e9   : > { %8982 = vmatpush2.bf16.msra.mxu0 %v18531_v14  ;;  %v18586_v14 = vld [vmem:[%s24171_s3 + $0x854] ss:$12 sps:$4 sm:$0xff]  }
 0x3ea   : > { %9021 = vmatpush2.bf16.msra.mxu1 %v18534_v5  ;;  %8983 = vmatprep.subr.bf16.mxu0 %v18539_v20  ;;  %v18585_v5 = vld [vmem:[%s24171_s3 + $0x5fc] ss:$12 sps:$4 sm:$0xff]   ;;  %v18587_v20 = vld [vmem:[%s24171_s3 + $0x794] ss:$12 sps:$4 sm:$0xff]  }
 0x3eb   : > { %9022 = vmatprep.subr.bf16.mxu1 %v18542_v22  ;;  %v18588_v22 = vld [vmem:[%s24171_s3 + $0xa64] ss:$12 sps:$4 sm:$0xff]  }
 0x3ed   : > { %8984 = vmatpush2.bf16.msra.mxu0 %v18537_v27  ;;  %v18589_v27 = vld [vmem:[%s24171_s3 + $0x83c] ss:$12 sps:$4 sm:$0xff]  }
 0x3ee   : > { %9023 = vmatpush2.bf16.msra.mxu1 %v18540_v6  ;;  %8985 = vmatprep.subr.bf16.mxu0 %v18545_v28  ;;  %v18590_v6 = vld [vmem:[%s24171_s3 + $0x9a4] ss:$12 sps:$4 sm:$0xff]   ;;  %v18591_v28 = vld [vmem:[%s24171_s3 + $0x77c] ss:$12 sps:$4 sm:$0xff]  }
 0x3ef   : > { %9024 = vmatprep.subr.bf16.mxu1 %v18548_v44  ;;  %v18592_v44 = vld [vmem:[%s24171_s3 + $0xa4c] ss:$12 sps:$4 sm:$0xff]  }
 0x3f1   : > { %8986 = vmatpush2.bf16.msra.mxu0 %v18543_v11  ;;  %v18594_v11 = vld [vmem:[%s24171_s3 + $0xbe4] ss:$0 sps:$4 sm:$0xff]  }
 0x3f2   : > { %9025 = vmatpush2.bf16.msra.mxu1 %v18546_v30  ;;  %8987 = vmatprep.subr.bf16.mxu0 %v18551_v57  ;;  %v18593_v57 = vld [vmem:[%s24171_s3 + $0x98c] ss:$12 sps:$4 sm:$0xff]  }
 0x3f3   : > { %9026 = vmatprep.subr.bf16.mxu1 %v18554_v24 }
 0x3f5   : > { %8988 = vmatpush2.bf16.msra.mxu0 %v18549_v25  ;;  %v18595_v25 = vld [vmem:[%s24171_s3 + $0xb24] ss:$12 sps:$4 sm:$0xff]  }
 0x3f6   : > { %9027 = vmatpush2.bf16.msra.mxu1 %v18552_v7  ;;  %17513 = vmatprep.subr.bf16.mxu0 %v18555_v36  ;;  %v18596_v36 = vld [vmem:[%s24171_s3 + $0xa34] ss:$12 sps:$4 sm:$0xff]  }
 0x3f7   : > { %9028 = vmatprep.subr.bf16.mxu1 %v18558_v40  ;;  %v18598_v40 = vld [vmem:[%s24171_s3 + $0xbcc] ss:$12 sps:$4 sm:$0xff]  }
 0x3f8   : > { %v7387_v16 = vpop.f32.mrf.mxu0  ;;  %8990 = vmatmul.mubr.bf16.vlgmr.msra.gmra.mxu0 %v21308_v19 }
 0x3f9   : > { %v7388_v49 = vadd.f32 %v7387_v16, %v21737_v10  ;;  %17514 = vmatpush3.bf16.msra.mxu0 %v18559_v53  ;;  %9071 = vmatprep.mubr.bf16.mxu0 %v21089_v17  ;;  %v18564_v10 = vld [vmem:[%s24171_s3 + $0x734] ss:$12 sps:$4 sm:$0xff]   ;;  %v18599_v16 = vld [vmem:[%s24171_s3 + $0xb0c] ss:$12 sps:$4 sm:$0xff]  }
 0x3fa   : > { %v7389_v37 = vpop.f32.mrf.mxu0  ;;  %9029 = vmatpush2.bf16.msra.mxu1 %v18556_v41  ;;  %17515 = vmatprep.subr.bf16.mxu0 %v18560_v12  ;;  %v18597_v12 = vld [vmem:[%s24171_s3 + $0x974] ss:$12 sps:$4 sm:$0xff]  }
 0x3fb   : > { %v7390_v52 = vadd.f32 %v7389_v37, %v21750_v31  ;;  %17535 = vmatprep.subr.bf16.mxu1 %v18562_v43  ;;  %v18602_v37 = vld [vmem:[%s24171_s3 + $0xbb4] ss:$12 sps:$4 sm:$0xff]  }
 0x3fc   : > { %v7391_v56 = vpop.f32.mrf.mxu0 }
 0x3fd   : > { %v7428_v55 = vpop.f32.mrf.mxu1  ;;  %9031 = vmatmul.mubr.bf16.vlgmr.msra.gmra.mxu1 %v21327_v39  ;;  %17516 = vmatpush3.bf16.msra.mxu0 %v18561_v51  ;;  %v18603_v56 = vld [vmem:[%s24171_s3 + $0xaf4] ss:$12 sps:$4 sm:$0xff]  }
 0x3fe   : > { %v21939_v58 = vadd.f32 %v7428_v55, %v7388_v49  ;;  %v7392_v31 = vpop.f32.mrf.mxu0  ;;  %17536 = vmatpush3.bf16.msra.mxu1 %v18563_v9  ;;  %9111 = vmatprep.mubr.bf16.mxu1 %v21110_v23  ;;  %v18600_v49 = vld [vmem:[%s24171_s3 + $0xa1c] ss:$12 sps:$4 sm:$0xff]   ;;  %v18604_v55 = vld [vmem:[%s24171_s3 + $0xa04] ss:$12 sps:$4 sm:$0xff]  }
 0x3ff   : > { %v7430_v0 = vpop.f32.mrf.mxu1  ;;  %17517 = vmatprep.subr.bf16.mxu0 %v18564_v10  ;;  %17537 = vmatprep.subr.bf16.mxu1 %v18566_v54  ;;  %v18601_v10 = vld [vmem:[%s24171_s3 + $0x95c] ss:$12 sps:$4 sm:$0xff]  }
 0x400   : > { %v21951_v32 = vadd.f32 %v7430_v0, %v7390_v52  ;;  %v18606_v31 = vld [vmem:[%s24171_s3 + $0xb9c] ss:$12 sps:$4 sm:$0xff]   ;;  %v18608_v0 = vld [vmem:[%s24171_s3 + $0x9ec] ss:$12 sps:$4 sm:$0xff]  }
 0x401   : > { %v7432_v59 = vpop.f32.mrf.mxu1  ;;  %17518 = vmatpush3.bf16.msra.mxu0 %v18565_v8 }
 0x402   : > { %17538 = vmatpush3.bf16.msra.mxu1 %v18567_v45  ;;  %17519 = vmatprep.subr.bf16.mxu0 %v18568_v29  ;;  %v18605_v45 = vld [vmem:[%s24171_s3 + $0x944] ss:$12 sps:$4 sm:$0xff]   ;;  %v18607_v29 = vld [vmem:[%s24171_s3 + $0xadc] ss:$12 sps:$4 sm:$0xff]   ;;  %v18609_v59 = vld [vmem:[%s24171_s3 + $0x92c] ss:$12 sps:$4 sm:$0xff]  }
 0x403   : > { %v7433_v60 = vpop.f32.mrf.mxu1  ;;  %17539 = vmatprep.subr.bf16.mxu1 %v18570_v33  ;;  %v18610_v33 = vld [vmem:[%s24171_s3 + $0xb84] ss:$12 sps:$4 sm:$0xff]  }
 0x404   : > { %v18613_v60 = vld [vmem:[%s24171_s3 + $0x914] ss:$12 sps:$4 sm:$0xff]  }
 0x405   : > { %17520 = vmatpush3.bf16.msra.mxu0 %v18569_v47  ;;  %v18611_v47 = vld [vmem:[%s24171_s3 + $0xac4] ss:$12 sps:$4 sm:$0xff]  }
 0x406   : > { %17540 = vmatpush3.bf16.msra.mxu1 %v18571_v26  ;;  %17521 = vmatprep.subr.bf16.mxu0 %v18572_v61  ;;  %v18612_v26 = vld [vmem:[%s24171_s3 + $0x9d4] ss:$12 sps:$4 sm:$0xff]   ;;  %v18614_v61 = vld [vmem:[%s24171_s3 + $0xb6c] ss:$12 sps:$4 sm:$0xff]  }
 0x407   : > { %17541 = vmatprep.subr.bf16.mxu1 %v18574_v13  ;;  %v18615_v13 = vld [vmem:[%s24171_s3 + $0xaac] ss:$12 sps:$4 sm:$0xff]  }
 0x409   : > { %17522 = vmatpush3.bf16.msra.mxu0 %v18573_v63  ;;  %v18616_v63 = vld [vmem:[%s24171_s3 + $0x9bc] ss:$12 sps:$4 sm:$0xff]  }
 0x40a   : > { %17542 = vmatpush3.bf16.msra.mxu1 %v18575_v4  ;;  %17523 = vmatprep.subr.bf16.mxu0 %v18576_v2  ;;  %v18618_v4 = vld [vmem:[%s24171_s3 + $0xb54] ss:$12 sps:$4 sm:$0xff]   ;;  %v18617_v2 = vld [vmem:[%s24171_s3 + $0x8fc] ss:$12 sps:$4 sm:$0xff]  }
 0x40b   : > { %17543 = vmatprep.subr.bf16.mxu1 %v18578_v35  ;;  %v18619_v35 = vld [vmem:[%s24171_s3 + $0xa94] ss:$12 sps:$4 sm:$0xff]  }
 0x40d   : > { %17524 = vmatpush3.bf16.msra.mxu0 %v18577_v21  ;;  %v18622_v21 = vld [vmem:[%s24171_s3 + $0xc94] ss:$12 sps:$4 sm:$0xff]  }
 0x40e   : > { %17544 = vmatpush3.bf16.msra.mxu1 %v18579_v46  ;;  %17525 = vmatprep.subr.bf16.mxu0 %v18580_v50  ;;  %v18623_v46 = vld [vmem:[%s24171_s3 + $0xb3c] ss:$12 sps:$4 sm:$0xff]  }
 0x40f   : > { %17545 = vmatprep.subr.bf16.mxu1 %v18582_v62  ;;  %v18620_v50 = vld [vmem:[%s24171_s3 + $0xc90] ss:$12 sps:$4 sm:$0xff]  }
 0x410   : > { %v18624_v62 = vld [vmem:[%s24171_s3 + $0xa7c] ss:$12 sps:$4 sm:$0xff]  }
 0x411   : > { %17526 = vmatpush3.bf16.msra.mxu0 %v18581_v18  ;;  %v18627_v18 = vld [vmem:[%s24171_s3 + $0xc7c] ss:$12 sps:$4 sm:$0xff]  }
 0x412   : > { %17546 = vmatpush3.bf16.msra.mxu1 %v18583_v38  ;;  %17527 = vmatprep.subr.bf16.mxu0 %v18584_v3  ;;  %v18630_v38 = vld [vmem:[%s24171_s3 + $0xe14] ss:$12 sps:$4 sm:$0xff]  }
 0x413   : > { %17547 = vmatprep.subr.bf16.mxu1 %v18586_v14  ;;  %v18625_v14 = vld [vmem:[%s24171_s3 + $0xc78] ss:$12 sps:$4 sm:$0xff]  }
 0x415   : > { %17528 = vmatpush3.bf16.msra.mxu0 %v18585_v5 }
 0x416   : > { %17548 = vmatpush3.bf16.msra.mxu1 %v18587_v20  ;;  %17557 = vmatprep.subr.bf16.mxu0 %v18588_v22  ;;  %v18628_v20 = vld [vmem:[%s24171_s3 + $0xe10] ss:$12 sps:$4 sm:$0xff]  }
 0x417   : > { %17549 = vmatprep.subr.bf16.mxu1 %v18589_v27  ;;  %v18633_v27 = vld [vmem:[%s24171_s3 + $0xc64] ss:$12 sps:$4 sm:$0xff]  }
 0x418   : > { %v17441_v30 = vpop.f32.mrf.mxu0  ;;  %9072 = vmatmul.mubr.bf16.vlgmr.msra.gmra.mxu0 %v21096_v1 }
 0x419   : > { %17558 = vmatpush3.bf16.msra.mxu0 %v18590_v6  ;;  %9151 = vmatprep.mubr.bf16.mxu0 %v21130_v42  ;;  %v18636_v6 = vld [vmem:[%s24171_s3 + $0xdfc] ss:$12 sps:$4 sm:$0xff]  }
 0x41a   : > { %v17442_v24 = vpop.f32.mrf.mxu0  ;;  %17550 = vmatpush3.bf16.msra.mxu1 %v18591_v28  ;;  %17559 = vmatprep.subr.bf16.mxu0 %v18592_v44 }
 0x41b   : > { %v17443_v7 = vadd.f32 %v17442_v24, %v17441_v30  ;;  %18018 = vmatprep.subr.msk.bf16.mxu1 %vm7261_vm3, %v18594_v11  ;;  %v18631_v30 = vld [vmem:[%s24171_s3 + $0xc60] ss:$12 sps:$4 sm:$0xff]   ;;  %v18634_v24 = vld [vmem:[%s24171_s3 + $0xdf8] ss:$12 sps:$4 sm:$0xff]  }
 0x41c   : > { %v17444_v53 = vpop.f32.mrf.mxu0 }
 0x41d   : > { %v17463_v41 = vpop.f32.mrf.mxu1  ;;  %9112 = vmatmul.mubr.bf16.vlgmr.msra.gmra.mxu1 %v21118_v34  ;;  %17560 = vmatpush3.bf16.msra.mxu0 %v18593_v57 }
 0x41e   : > { %v17445_v43 = vpop.f32.mrf.mxu0  ;;  %17580 = vmatpush3.bf16.msra.mxu1 %v18595_v25  ;;  %16191 = vmatprep.mubr.msk.bf16.mxu1 %vm4851_vm15, %v21145_v48  ;;  %v18639_v25 = vld [vmem:[%s24171_s3 + $0xc4c] ss:$12 sps:$4 sm:$0xff]  }
 0x41f   : > { %v17464_v51 = vpop.f32.mrf.mxu1  ;;  %17561 = vmatprep.subr.bf16.mxu0 %v18596_v36  ;;  %17581 = vmatprep.subr.bf16.mxu1 %v18598_v40  ;;  %v18642_v36 = vld [vmem:[%s24171_s3 + $0xde4] ss:$12 sps:$4 sm:$0xff]   ;;  %v18640_v43 = vld [vmem:[%s24171_s3 + $0xde0] ss:$12 sps:$4 sm:$0xff]  }
 0x420   : > { %v17465_v9 = vadd.f32 %v17464_v51, %v17463_v41  ;;  %v18637_v41 = vld [vmem:[%s24171_s3 + $0xc48] ss:$12 sps:$4 sm:$0xff]   ;;  %v18648_v51 = vld [vmem:[%s24171_s3 + $0xdcc] ss:$12 sps:$4 sm:$0xff]  }
 0x421   : > { %v17466_v52 = vpop.f32.mrf.mxu1  ;;  %17562 = vmatpush3.bf16.msra.mxu0 %v18597_v12 }
 0x422   : > { %v7510_v54 = vadd.f32 %v17465_v9, %v17443_v7  ;;  %17582 = vmatpush3.bf16.msra.mxu1 %v18599_v16  ;;  %17563 = vmatprep.subr.bf16.mxu0 %v18600_v49  ;;  %v18645_v16 = vld [vmem:[%s24171_s3 + $0xc34] ss:$12 sps:$4 sm:$0xff]   ;;  %v18651_v52 = vld [vmem:[%s24171_s3 + $0xc1c] ss:$12 sps:$4 sm:$0xff]  }
 0x423   : > { %v17467_v8 = vpop.f32.mrf.mxu1  ;;  %17583 = vmatprep.subr.bf16.mxu1 %v18602_v37  ;;  %v18643_v37 = vld [vmem:[%s24171_s3 + $0xc30] ss:$12 sps:$4 sm:$0xff]   ;;  %v18646_v9 = vld [vmem:[%s24171_s3 + $0xdc8] ss:$12 sps:$4 sm:$0xff]  }
 0x424   : > { %v18660_v8 = vld [vmem:[%s24171_s3 + $0xd9c] ss:$12 sps:$4 sm:$0xff]  }
 0x425   : > { %17564 = vmatpush3.bf16.msra.mxu0 %v18601_v10  ;;  %v18654_v10 = vld [vmem:[%s24171_s3 + $0xdb4] ss:$12 sps:$4 sm:$0xff]  }
 0x426   : > { %17584 = vmatpush3.bf16.msra.mxu1 %v18603_v56  ;;  %17565 = vmatprep.subr.bf16.mxu0 %v18604_v55  ;;  %v18652_v56 = vld [vmem:[%s24171_s3 + $0xdb0] ss:$12 sps:$4 sm:$0xff]  }
 0x427   : > { %17585 = vmatprep.subr.bf16.mxu1 %v18606_v31  ;;  %v18657_v55 = vld [vmem:[%s24171_s3 + $0xc04] ss:$12 sps:$4 sm:$0xff]   ;;  %v18655_v31 = vld [vmem:[%s24171_s3 + $0xc00] ss:$12 sps:$4 sm:$0xff]  }
 0x429   : > { %17566 = vmatpush3.bf16.msra.mxu0 %v18605_v45  ;;  %v18658_v45 = vld [vmem:[%s24171_s3 + $0xd98] ss:$12 sps:$4 sm:$0xff]  }
 0x42a   : > { %17586 = vmatpush3.bf16.msra.mxu1 %v18607_v29  ;;  %17567 = vmatprep.subr.bf16.mxu0 %v18608_v0  ;;  %v18663_v29 = vld [vmem:[%s24171_s3 + $0xbec] ss:$12 sps:$4 sm:$0xff]   ;;  %v18666_v0 = vld [vmem:[%s24171_s3 + $0xd84] ss:$12 sps:$4 sm:$0xff]  }
 0x42b   : > { %17587 = vmatprep.subr.bf16.mxu1 %v18610_v33  ;;  %v18661_v33 = vld [vmem:[%s24171_s3 + $0xbe8] ss:$12 sps:$4 sm:$0xff]  }
 0x42d   : > { %17568 = vmatpush3.bf16.msra.mxu0 %v18609_v59  ;;  %v18664_v59 = vld [vmem:[%s24171_s3 + $0xd80] ss:$12 sps:$4 sm:$0xff]  }
 0x42e   : > { %17588 = vmatpush3.bf16.msra.mxu1 %v18611_v47  ;;  %17569 = vmatprep.subr.bf16.mxu0 %v18612_v26  ;;  %v18669_v47 = vld [vmem:[%s24171_s3 + $0xd54] ss:$12 sps:$4 sm:$0xff]   ;;  %v18672_v26 = vld [vmem:[%s24171_s3 + $0xd6c] ss:$12 sps:$4 sm:$0xff]  }
 0x42f   : > { %17589 = vmatprep.subr.bf16.mxu1 %v18614_v61  ;;  %v18667_v61 = vld [vmem:[%s24171_s3 + $0xd50] ss:$12 sps:$4 sm:$0xff]  }
 0x431   : > { %17570 = vmatpush3.bf16.msra.mxu0 %v18613_v60  ;;  %v18670_v60 = vld [vmem:[%s24171_s3 + $0xd68] ss:$12 sps:$4 sm:$0xff]  }
 0x432   : > { %17590 = vmatpush3.bf16.msra.mxu1 %v18615_v13  ;;  %17571 = vmatprep.subr.bf16.mxu0 %v18616_v63  ;;  %v18675_v13 = vld [vmem:[%s24171_s3 + $0xd3c] ss:$12 sps:$4 sm:$0xff]   ;;  %v18678_v63 = vld [vmem:[%s24171_s3 + $0xed4] ss:$12 sps:$4 sm:$0xff]  }
 0x433   : > { %17591 = vmatprep.subr.bf16.mxu1 %v18618_v4  ;;  %v18673_v4 = vld [vmem:[%s24171_s3 + $0xd38] ss:$12 sps:$4 sm:$0xff]  }
 0x435   : > { %17572 = vmatpush3.bf16.msra.mxu0 %v18617_v2  ;;  %v18676_v2 = vld [vmem:[%s24171_s3 + $0xed0] ss:$12 sps:$4 sm:$0xff]  }
 0x436   : > { %17592 = vmatpush3.bf16.msra.mxu1 %v18619_v35  ;;  %10482 = vmatprep.subr.bf16.mxu0 %v18622_v21  ;;  %v18681_v35 = vld [vmem:[%s24171_s3 + $0xd24] ss:$12 sps:$4 sm:$0xff]   ;;  %v18684_v21 = vld [vmem:[%s24171_s3 + $0xebc] ss:$12 sps:$4 sm:$0xff]  }
 0x437   : > { %17593 = vmatprep.subr.bf16.mxu1 %v18623_v46  ;;  %v18679_v46 = vld [vmem:[%s24171_s3 + $0xd20] ss:$12 sps:$4 sm:$0xff]  }
 0x438   : > { %v17485_v3 = vpop.f32.mrf.mxu0  ;;  %9152 = vmatmul.mubr.bf16.vlgmr.msra.gmra.mxu0 %v21308_v19 }
 0x439   : > { %10483 = vmatpush1.bf16.msra.mxu0 %v18620_v50  ;;  %10514 = vmatprep.mubr.bf16.mxu0 %v21089_v17  ;;  %v18682_v50 = vld [vmem:[%s24171_s3 + $0xeb8] ss:$12 sps:$4 sm:$0xff]  }
 0x43a   : > { %v17486_v5 = vpop.f32.mrf.mxu0  ;;  %17594 = vmatpush3.bf16.msra.mxu1 %v18624_v62  ;;  %10484 = vmatprep.subr.bf16.mxu0 %v18627_v18  ;;  %v18687_v62 = vld [vmem:[%s24171_s3 + $0xd0c] ss:$12 sps:$4 sm:$0xff]   ;;  %v18690_v18 = vld [vmem:[%s24171_s3 + $0xea4] ss:$12 sps:$4 sm:$0xff]  }
 0x43b   : > { %v17487_v22 = vadd.f32 %v17486_v5, %v17485_v3  ;;  %10523 = vmatprep.subr.bf16.mxu1 %v18630_v38  ;;  %v18685_v38 = vld [vmem:[%s24171_s3 + $0xd08] ss:$12 sps:$4 sm:$0xff]   ;;  %v18688_v3 = vld [vmem:[%s24171_s3 + $0xea0] ss:$12 sps:$4 sm:$0xff]  }
 0x43c   : > { %v17488_v28 = vpop.f32.mrf.mxu0  ;;  %v18696_v5 = vld [vmem:[%s24171_s3 + $0xe8c] ss:$12 sps:$4 sm:$0xff]  }
 0x43d   : > { %v7550_v44 = vadd.f32 %v17487_v22, %v7510_v54  ;;  %v17507_v11 = vpop.f32.mrf.mxu1  ;;  %9192 = vmatmul.mubr.bf16.vlgmr.msra.gmra.mxu1 %v21327_v39  ;;  %10485 = vmatpush1.bf16.msra.mxu0 %v18625_v14  ;;  %v18649_v54 = vld [vmem:[%s24171_s3 + $0xc18] ss:$12 sps:$4 sm:$0xff]   ;;  %v18693_v14 = vld [vmem:[%s24171_s3 + $0xcf4] ss:$12 sps:$4 sm:$0xff]  }
 0x43e   : > { %v17489_v57 = vpop.f32.mrf.mxu0  ;;  %10524 = vmatpush1.bf16.msra.mxu1 %v18628_v20  ;;  %10555 = vmatprep.mubr.bf16.mxu1 %v21110_v23  ;;  %v18691_v20 = vld [vmem:[%s24171_s3 + $0xcf0] ss:$12 sps:$4 sm:$0xff]   ;;  %v18694_v22 = vld [vmem:[%s24171_s3 + $0xe88] ss:$12 sps:$4 sm:$0xff]   ;;  %v18697_v28 = vld [vmem:[%s24171_s3 + $0xcd8] ss:$12 sps:$4 sm:$0xff]  }
 0x43f   : > { %v17508_v7 = vpop.f32.mrf.mxu1  ;;  %10486 = vmatprep.subr.bf16.mxu0 %v18633_v27  ;;  %10525 = vmatprep.subr.bf16.mxu1 %v18636_v6  ;;  %v18699_v27 = vld [vmem:[%s24171_s3 + $0xcdc] ss:$12 sps:$4 sm:$0xff]   ;;  %v18702_v6 = vld [vmem:[%s24171_s3 + $0xe74] ss:$12 sps:$4 sm:$0xff]  }
 0x440   : > { %v17509_v40 = vadd.f32 %v17508_v7, %v17507_v11  ;;  %v18705_v11 = vld [vmem:[%s24171_s3 + $0xcc4] ss:$12 sps:$4 sm:$0xff]   ;;  %v18703_v57 = vld [vmem:[%s24171_s3 + $0xcc0] ss:$12 sps:$4 sm:$0xff]  }
 0x441   : > { %v17510_v53 = vpop.f32.mrf.mxu1  ;;  %10487 = vmatpush1.bf16.msra.mxu0 %v18631_v30  ;;  %v18708_v30 = vld [vmem:[%s24171_s3 + $0xe5c] ss:$12 sps:$4 sm:$0xff]   ;;  %v18714_v7 = vld [vmem:[%s24171_s3 + $0xe44] ss:$12 sps:$4 sm:$0xff]  }
 0x442   : > { %v22158_v12 = vadd.f32 %v17509_v40, %v7550_v44  ;;  %10526 = vmatpush1.bf16.msra.mxu1 %v18634_v24  ;;  %10488 = vmatprep.subr.bf16.mxu0 %v18639_v25  ;;  %v18700_v44 = vld [vmem:[%s24171_s3 + $0xe70] ss:$12 sps:$4 sm:$0xff]   ;;  %v18706_v24 = vld [vmem:[%s24171_s3 + $0xe58] ss:$12 sps:$4 sm:$0xff]   ;;  %v18712_v40 = vld [vmem:[%s24171_s3 + $0xe40] ss:$12 sps:$4 sm:$0xff]  }
 0x443   : > { %v17511_v49 = vpop.f32.mrf.mxu1  ;;  %10527 = vmatprep.subr.bf16.mxu1 %v18642_v36  ;;  %v18711_v25 = vld [vmem:[%s24171_s3 + $0xcac] ss:$12 sps:$4 sm:$0xff]   ;;  %v18709_v36 = vld [vmem:[%s24171_s3 + $0xca8] ss:$12 sps:$4 sm:$0xff]  }
 0x444   : > { %v18717_v53 = vld [vmem:[%s24171_s3 + $0xf94] ss:$12 sps:$4 sm:$0xff]   ;;  %v18723_v49 = vld [vmem:[%s24171_s3 + $0xf7c] ss:$12 sps:$4 sm:$0xff]  }
 0x445   : > { %10489 = vmatpush1.bf16.msra.mxu0 %v18637_v41  ;;  %v18720_v41 = vld [vmem:[%s24171_s3 + $0xe2c] ss:$12 sps:$4 sm:$0xff]  }
 0x446   : > { %10528 = vmatpush1.bf16.msra.mxu1 %v18640_v43  ;;  %10490 = vmatprep.subr.bf16.mxu0 %v18645_v16  ;;  %v18715_v43 = vld [vmem:[%s24171_s3 + $0xf90] ss:$12 sps:$4 sm:$0xff]   ;;  %v18718_v16 = vld [vmem:[%s24171_s3 + $0xe28] ss:$12 sps:$4 sm:$0xff]  }
 0x447   : > { %10529 = vmatprep.subr.bf16.mxu1 %v18648_v51  ;;  %v18726_v51 = vld [vmem:[%s24171_s3 + $0x1114] ss:$12 sps:$4 sm:$0xff]  }
 0x449   : > { %10491 = vmatpush1.bf16.msra.mxu0 %v18643_v37 }
 0x44a   : > { %10530 = vmatpush1.bf16.msra.mxu1 %v18646_v9  ;;  %10492 = vmatprep.subr.bf16.mxu0 %v18651_v52  ;;  %v18721_v9 = vld [vmem:[%s24171_s3 + $0xf78] ss:$12 sps:$4 sm:$0xff]  }
 0x44b   : > { %10531 = vmatprep.subr.bf16.mxu1 %v18654_v10  ;;  %v18724_v10 = vld [vmem:[%s24171_s3 + $0x1110] ss:$12 sps:$4 sm:$0xff]  }
 0x44d   : > { %10493 = vmatpush1.bf16.msra.mxu0 %v18649_v54  ;;  %v18729_v54 = vld [vmem:[%s24171_s3 + $0xf64] ss:$12 sps:$4 sm:$0xff]  }
 0x44e   : > { %10532 = vmatpush1.bf16.msra.mxu1 %v18652_v56  ;;  %10494 = vmatprep.subr.bf16.mxu0 %v18657_v55  ;;  %v18732_v56 = vld [vmem:[%s24171_s3 + $0x10fc] ss:$12 sps:$4 sm:$0xff]  }
 0x44f   : > { %10533 = vmatprep.subr.bf16.mxu1 %v18660_v8 }
 0x451   : > { %10495 = vmatpush1.bf16.msra.mxu0 %v18655_v31  ;;  %v18727_v31 = vld [vmem:[%s24171_s3 + $0xf60] ss:$12 sps:$4 sm:$0xff]  }
 0x452   : > { %10534 = vmatpush1.bf16.msra.mxu1 %v18658_v45  ;;  %10496 = vmatprep.subr.bf16.mxu0 %v18663_v29 }
 0x453   : > { %10535 = vmatprep.subr.bf16.mxu1 %v18666_v0  ;;  %v18730_v0 = vld [vmem:[%s24171_s3 + $0x10f8] ss:$12 sps:$4 sm:$0xff]  }
 0x455   : > { %10497 = vmatpush1.bf16.msra.mxu0 %v18661_v33  ;;  %v18735_v33 = vld [vmem:[%s24171_s3 + $0xf4c] ss:$12 sps:$4 sm:$0xff]  }
 0x456   : > { %10536 = vmatpush1.bf16.msra.mxu1 %v18664_v59  ;;  %10498 = vmatprep.subr.bf16.mxu0 %v18669_v47  ;;  %v18738_v47 = vld [vmem:[%s24171_s3 + $0x10e4] ss:$12 sps:$4 sm:$0xff]  }
 0x457   : > { %10537 = vmatprep.subr.bf16.mxu1 %v18672_v26 }
 0x459   : > { %10499 = vmatpush2.bf16.msra.mxu0 %v18667_v61 }
 0x45a   : > { %10538 = vmatpush1.bf16.msra.mxu1 %v18670_v60  ;;  %10500 = vmatprep.subr.bf16.mxu0 %v18675_v13  ;;  %v18733_v60 = vld [vmem:[%s24171_s3 + $0xf48] ss:$12 sps:$4 sm:$0xff]   ;;  %v18736_v13 = vld [vmem:[%s24171_s3 + $0x10e0] ss:$12 sps:$4 sm:$0xff]  }
 0x45b   : > { %10539 = vmatprep.subr.bf16.mxu1 %v18678_v63  ;;  %v18741_v63 = vld [vmem:[%s24171_s3 + $0xf34] ss:$12 sps:$4 sm:$0xff]  }
 0x45d   : > { %10501 = vmatpush2.bf16.msra.mxu0 %v18673_v4 }
 0x45e   : > { %10540 = vmatpush2.bf16.msra.mxu1 %v18676_v2  ;;  %10502 = vmatprep.subr.bf16.mxu0 %v18681_v35  ;;  %v18744_v2 = vld [vmem:[%s24171_s3 + $0x10cc] ss:$12 sps:$4 sm:$0xff]   ;;  %v18739_v35 = vld [vmem:[%s24171_s3 + $0xf30] ss:$12 sps:$4 sm:$0xff]  }
 0x45f   : > { %10541 = vmatprep.subr.bf16.mxu1 %v18684_v21  ;;  %v18742_v21 = vld [vmem:[%s24171_s3 + $0x10c8] ss:$12 sps:$4 sm:$0xff]  }
 0x461   : > { %10503 = vmatpush2.bf16.msra.mxu0 %v18679_v46  ;;  %v18747_v46 = vld [vmem:[%s24171_s3 + $0xf1c] ss:$12 sps:$4 sm:$0xff]  }
 0x462   : > { %10542 = vmatpush2.bf16.msra.mxu1 %v18682_v50  ;;  %10504 = vmatprep.subr.bf16.mxu0 %v18687_v62  ;;  %v18750_v50 = vld [vmem:[%s24171_s3 + $0x10b4] ss:$12 sps:$4 sm:$0xff]   ;;  %v18745_v62 = vld [vmem:[%s24171_s3 + $0xf18] ss:$12 sps:$4 sm:$0xff]  }
 0x463   : > { %10543 = vmatprep.subr.bf16.mxu1 %v18690_v18  ;;  %v18748_v18 = vld [vmem:[%s24171_s3 + $0x10b0] ss:$12 sps:$4 sm:$0xff]  }
 0x465   : > { %10505 = vmatpush2.bf16.msra.mxu0 %v18685_v38  ;;  %v18753_v38 = vld [vmem:[%s24171_s3 + $0xf04] ss:$12 sps:$4 sm:$0xff]  }
 0x466   : > { %10544 = vmatpush2.bf16.msra.mxu1 %v18688_v3  ;;  %10506 = vmatprep.subr.bf16.mxu0 %v18693_v14  ;;  %v18756_v3 = vld [vmem:[%s24171_s3 + $0x109c] ss:$12 sps:$4 sm:$0xff]   ;;  %v18751_v14 = vld [vmem:[%s24171_s3 + $0xf00] ss:$12 sps:$4 sm:$0xff]  }
 0x467   : > { %10545 = vmatprep.subr.bf16.mxu1 %v18696_v5  ;;  %v18754_v5 = vld [vmem:[%s24171_s3 + $0x1098] ss:$12 sps:$4 sm:$0xff]  }
 0x469   : > { %10507 = vmatpush2.bf16.msra.mxu0 %v18691_v20  ;;  %v18759_v20 = vld [vmem:[%s24171_s3 + $0xeec] ss:$12 sps:$4 sm:$0xff]  }
 0x46a   : > { %10546 = vmatpush2.bf16.msra.mxu1 %v18694_v22  ;;  %10508 = vmatprep.subr.bf16.mxu0 %v18699_v27  ;;  %v18762_v22 = vld [vmem:[%s24171_s3 + $0x1084] ss:$12 sps:$4 sm:$0xff]   ;;  %v18757_v27 = vld [vmem:[%s24171_s3 + $0xee8] ss:$12 sps:$4 sm:$0xff]  }
 0x46b   : > { %10547 = vmatprep.subr.bf16.mxu1 %v18702_v6  ;;  %v18760_v6 = vld [vmem:[%s24171_s3 + $0x1080] ss:$12 sps:$4 sm:$0xff]  }
 0x46d   : > { %10509 = vmatpush2.bf16.msra.mxu0 %v18697_v28  ;;  %v18765_v28 = vld [vmem:[%s24171_s3 + $0x1054] ss:$12 sps:$4 sm:$0xff]  }
 0x46e   : > { %10548 = vmatpush2.bf16.msra.mxu1 %v18700_v44  ;;  %10510 = vmatprep.subr.bf16.mxu0 %v18705_v11  ;;  %v18768_v44 = vld [vmem:[%s24171_s3 + $0x106c] ss:$12 sps:$4 sm:$0xff]   ;;  %v16444_v11 = vld [vmem:[%s24171_s3 + $0x11d0] sm:$0xff] }
 0x46f   : > { %10549 = vmatprep.subr.bf16.mxu1 %v18708_v30  ;;  %v18763_v30 = vld [vmem:[%s24171_s3 + $0x1050] ss:$12 sps:$4 sm:$0xff]  }
 0x471   : > { %10511 = vmatpush2.bf16.msra.mxu0 %v18703_v57  ;;  %v18766_v57 = vld [vmem:[%s24171_s3 + $0x1068] ss:$12 sps:$4 sm:$0xff]  }
 0x472   : > { %10550 = vmatpush2.bf16.msra.mxu1 %v18706_v24  ;;  %10512 = vmatprep.subr.bf16.mxu0 %v18711_v25  ;;  %v18771_v24 = vld [vmem:[%s24171_s3 + $0x103c] ss:$12 sps:$4 sm:$0xff]   ;;  %v16636_v25 = vcombine.high %v16444_v11, %v16444_v11 }
 0x473   : > { %10551 = vmatprep.subr.bf16.mxu1 %v18714_v7  ;;  %v16635_v7 = vcombine.low %v16444_v11, %v16444_v11  ;;  %v18823_v11 = vld [vmem:[%s24171_s3 + $0xd10] ss:$12 sps:$4 sm:$0xff]  }
 0x475   : > { %10513 = vmatpush2.bf16.msra.mxu0 %v18709_v36  ;;  %v18769_v36 = vld [vmem:[%s24171_s3 + $0x1038] ss:$12 sps:$4 sm:$0xff]  }
 0x476   : > { %10552 = vmatpush2.bf16.msra.mxu1 %v18712_v40  ;;  %10564 = vmatprep.subr.bf16.mxu0 %v18717_v53  ;;  %v18776_v40 = vld [vmem:[%s24171_s3 + $0x1024] ss:$12 sps:$4 sm:$0xff]   ;;  %v10474_v53 = vsel %vm7261_vm3, %v16635_v7, 0 }
 0x477   : > { %10553 = vmatprep.subr.bf16.mxu1 %v18720_v41  ;;  %v18779_v41 = vld [vmem:[%s24171_s3 + $0x11bc] ss:$12 sps:$4 sm:$0xff]  }
 0x478   : > { %v8909_v37 = vpop.f32.mrf.mxu0  ;;  %10515 = vmatmul.mubr.bf16.vlgmr.msra.gmra.mxu0 %v21096_v1 }
 0x479   : > { %10565 = vmatpush1.bf16.msra.mxu0 %v18715_v43  ;;  %10596 = vmatprep.mubr.bf16.mxu0 %v21130_v42  ;;  %v18774_v43 = vld [vmem:[%s24171_s3 + $0x1020] ss:$12 sps:$4 sm:$0xff]  }
 0x47a   : > { %v8911_v52 = vpop.f32.mrf.mxu0  ;;  %10554 = vmatpush2.bf16.msra.mxu1 %v18718_v16  ;;  %10566 = vmatprep.subr.bf16.mxu0 %v18723_v49  ;;  %v18777_v16 = vld [vmem:[%s24171_s3 + $0x11b8] ss:$12 sps:$4 sm:$0xff]  }
 0x47b   : > { %10605 = vmatprep.subr.bf16.mxu1 %v18726_v51  ;;  %v18782_v49 = vld [vmem:[%s24171_s3 + $0x100c] ss:$12 sps:$4 sm:$0xff]   ;;  %v18785_v51 = vld [vmem:[%s24171_s3 + $0x11a4] ss:$12 sps:$4 sm:$0xff]  }
 0x47c   : > { %v8913_v55 = vpop.f32.mrf.mxu0 }
 0x47d   : > { %v8950_v8 = vpop.f32.mrf.mxu1  ;;  %10556 = vmatmul.mubr.bf16.vlgmr.msra.gmra.mxu1 %v21118_v34  ;;  %10567 = vmatpush1.bf16.msra.mxu0 %v18721_v9  ;;  %v18783_v9 = vld [vmem:[%s24171_s3 + $0x11a0] ss:$12 sps:$4 sm:$0xff]   ;;  %v18794_v55 = vld [vmem:[%s24171_s3 + $0xfdc] ss:$12 sps:$4 sm:$0xff]  }
 0x47e   : > { %v22343_v45 = vadd.f32 %v8950_v8, %v8909_v37  ;;  %v8914_v29 = vpop.f32.mrf.mxu0  ;;  %10606 = vmatpush1.bf16.msra.mxu1 %v18724_v10  ;;  %16639 = vmatprep.mubr.msk.bf16.mxu1 %vm4851_vm15, %v21145_v48  ;;  %v18780_v37 = vld [vmem:[%s24171_s3 + $0x1008] ss:$12 sps:$4 sm:$0xff]   ;;  %v18791_v10 = vld [vmem:[%s24171_s3 + $0x118c] ss:$12 sps:$4 sm:$0xff]  }
 0x47f   : > { %v8952_v59 = vpop.f32.mrf.mxu1  ;;  %10568 = vmatprep.subr.bf16.mxu0 %v18729_v54  ;;  %10607 = vmatprep.subr.bf16.mxu1 %v18732_v56  ;;  %v18786_v54 = vld [vmem:[%s24171_s3 + $0xff0] ss:$12 sps:$4 sm:$0xff]   ;;  %v18789_v56 = vld [vmem:[%s24171_s3 + $0x1188] ss:$12 sps:$4 sm:$0xff]  }
 0x480   : > { %v22356_v26 = vadd.f32 %v8952_v59, %v8911_v52  ;;  %v18788_v52 = vld [vmem:[%s24171_s3 + $0xff4] ss:$12 sps:$4 sm:$0xff]   ;;  %v18795_v29 = vld [vmem:[%s24171_s3 + $0x1170] ss:$12 sps:$4 sm:$0xff]  }
 0x481   : > { %v8954_v61 = vpop.f32.mrf.mxu1  ;;  %10569 = vmatpush1.bf16.msra.mxu0 %v18727_v31  ;;  %v18797_v8 = vld [vmem:[%s24171_s3 + $0x1174] ss:$12 sps:$4 sm:$0xff]   ;;  %v18792_v31 = vld [vmem:[%s24171_s3 + $0xfd8] ss:$12 sps:$4 sm:$0xff]  }
 0x482   : > { %10608 = vmatpush1.bf16.msra.mxu1 %v18730_v0  ;;  %10570 = vmatprep.subr.bf16.mxu0 %v18735_v33  ;;  %v18800_v0 = vld [vmem:[%s24171_s3 + $0xfc4] ss:$12 sps:$4 sm:$0xff]   ;;  %v18803_v33 = vld [vmem:[%s24171_s3 + $0x115c] ss:$12 sps:$4 sm:$0xff]   ;;  %v18798_v59 = vld [vmem:[%s24171_s3 + $0xfc0] ss:$12 sps:$4 sm:$0xff]  }
 0x483   : > { %v8955_v4 = vpop.f32.mrf.mxu1  ;;  %10609 = vmatprep.subr.bf16.mxu1 %v18738_v47  ;;  %v18801_v47 = vld [vmem:[%s24171_s3 + $0x1158] ss:$12 sps:$4 sm:$0xff]  }
 0x484   : > { %v18806_v61 = vld [vmem:[%s24171_s3 + $0xfac] ss:$12 sps:$4 sm:$0xff]  }
 0x485   : > { %10571 = vmatpush1.bf16.msra.mxu0 %v18733_v60  ;;  %v18809_v60 = vld [vmem:[%s24171_s3 + $0x1144] ss:$12 sps:$4 sm:$0xff]  }
 0x486   : > { %10610 = vmatpush1.bf16.msra.mxu1 %v18736_v13  ;;  %10572 = vmatprep.subr.bf16.mxu0 %v18741_v63  ;;  %v18804_v13 = vld [vmem:[%s24171_s3 + $0xfa8] ss:$12 sps:$4 sm:$0xff]   ;;  %v18807_v63 = vld [vmem:[%s24171_s3 + $0x1140] ss:$12 sps:$4 sm:$0xff]   ;;  %v18810_v4 = vld [vmem:[%s24171_s3 + $0xd58] ss:$12 sps:$4 sm:$0xff]  }
 0x487   : > { %10611 = vmatprep.subr.bf16.mxu1 %v18744_v2  ;;  %v18813_v2 = vld [vmem:[%s24171_s3 + $0x112c] ss:$12 sps:$4 sm:$0xff]  }
 0x489   : > { %10573 = vmatpush1.bf16.msra.mxu0 %v18739_v35  ;;  %v18814_v35 = vld [vmem:[%s24171_s3 + $0xc98] ss:$12 sps:$4 sm:$0xff]  }
 0x48a   : > { %10612 = vmatpush1.bf16.msra.mxu1 %v18742_v21  ;;  %10574 = vmatprep.subr.bf16.mxu0 %v18747_v46  ;;  %v18811_v21 = vld [vmem:[%s24171_s3 + $0x1128] ss:$12 sps:$4 sm:$0xff]   ;;  %v18815_v46 = vld [vmem:[%s24171_s3 + $0xd40] ss:$12 sps:$4 sm:$0xff]  }
 0x48b   : > { %10613 = vmatprep.subr.bf16.mxu1 %v18750_v50  ;;  %v18817_v50 = vld [vmem:[%s24171_s3 + $0xed8] ss:$12 sps:$4 sm:$0xff]  }
 0x48d   : > { %10575 = vmatpush1.bf16.msra.mxu0 %v18745_v62 }
 0x48e   : > { %10614 = vmatpush1.bf16.msra.mxu1 %v18748_v18  ;;  %10576 = vmatprep.subr.bf16.mxu0 %v18753_v38  ;;  %v18816_v38 = vld [vmem:[%s24171_s3 + $0xc80] ss:$12 sps:$4 sm:$0xff]  }
 0x48f   : > { %10615 = vmatprep.subr.bf16.mxu1 %v18756_v3 }
 0x491   : > { %10577 = vmatpush1.bf16.msra.mxu0 %v18751_v14  ;;  %v18818_v14 = vld [vmem:[%s24171_s3 + $0xe18] ss:$12 sps:$4 sm:$0xff]  }
 0x492   : > { %10616 = vmatpush1.bf16.msra.mxu1 %v18754_v5  ;;  %10578 = vmatprep.subr.bf16.mxu0 %v18759_v20  ;;  %v18821_v20 = vld [vmem:[%s24171_s3 + $0xec0] ss:$12 sps:$4 sm:$0xff]  }
 0x493   : > { %10617 = vmatprep.subr.bf16.mxu1 %v18762_v22 }
 0x495   : > { %10579 = vmatpush1.bf16.msra.mxu0 %v18757_v27 }
 0x496   : > { %10618 = vmatpush1.bf16.msra.mxu1 %v18760_v6  ;;  %10580 = vmatprep.subr.bf16.mxu0 %v18765_v28  ;;  %v18820_v6 = vld [vmem:[%s24171_s3 + $0xc68] ss:$12 sps:$4 sm:$0xff]  }
 0x497   : > { %10619 = vmatprep.subr.bf16.mxu1 %v18768_v44  ;;  %v18822_v44 = vld [vmem:[%s24171_s3 + $0xe00] ss:$12 sps:$4 sm:$0xff]  }
 0x499   : > { %10581 = vmatpush2.bf16.msra.mxu0 %v18763_v30 }
 0x49a   : > { %10620 = vmatpush1.bf16.msra.mxu1 %v18766_v57  ;;  %10582 = vmatprep.subr.bf16.mxu0 %v18771_v24  ;;  %v18825_v57 = vld [vmem:[%s24171_s3 + $0xea8] ss:$12 sps:$4 sm:$0xff]  }
 0x49b   : > { %16638 = vmatprep.subr.msk.bf16.mxu1 %vm7261_vm3, %v16636_v25 }
 0x49d   : > { %10583 = vmatpush2.bf16.msra.mxu0 %v18769_v36  ;;  %v18824_v36 = vld [vmem:[%s24171_s3 + $0xc50] ss:$12 sps:$4 sm:$0xff]  }
 0x49e   : > { %10622 = vmatpush2.bf16.msra.mxu1 %v10474_v53  ;;  %10584 = vmatprep.subr.bf16.mxu0 %v18776_v40  ;;  %v18826_v53 = vld [vmem:[%s24171_s3 + $0xde8] ss:$12 sps:$4 sm:$0xff]  }
 0x49f   : > { %10623 = vmatprep.subr.bf16.mxu1 %v18779_v41  ;;  %v18827_v41 = vld [vmem:[%s24171_s3 + $0xcf8] ss:$12 sps:$4 sm:$0xff]  }
 0x4a1   : > { %10585 = vmatpush2.bf16.msra.mxu0 %v18774_v43 }
 0x4a2   : > { %10624 = vmatpush2.bf16.msra.mxu1 %v18777_v16  ;;  %10586 = vmatprep.subr.bf16.mxu0 %v18782_v49  ;;  %v18829_v16 = vld [vmem:[%s24171_s3 + $0xe90] ss:$12 sps:$4 sm:$0xff]   ;;  %v18828_v49 = vld [vmem:[%s24171_s3 + $0xc38] ss:$12 sps:$4 sm:$0xff]  }
 0x4a3   : > { %10625 = vmatprep.subr.bf16.mxu1 %v18785_v51  ;;  %v18830_v51 = vld [vmem:[%s24171_s3 + $0xdd0] ss:$12 sps:$4 sm:$0xff]  }
 0x4a5   : > { %10587 = vmatpush2.bf16.msra.mxu0 %v18780_v37  ;;  %v18831_v37 = vld [vmem:[%s24171_s3 + $0xce0] ss:$12 sps:$4 sm:$0xff]  }
 0x4a6   : > { %10626 = vmatpush2.bf16.msra.mxu1 %v18783_v9  ;;  %10588 = vmatprep.subr.bf16.mxu0 %v18788_v52  ;;  %v18833_v9 = vld [vmem:[%s24171_s3 + $0xe78] ss:$12 sps:$4 sm:$0xff]   ;;  %v18832_v52 = vld [vmem:[%s24171_s3 + $0xc20] ss:$12 sps:$4 sm:$0xff]  }
 0x4a7   : > { %10627 = vmatprep.subr.bf16.mxu1 %v18791_v10  ;;  %v18834_v10 = vld [vmem:[%s24171_s3 + $0xdb8] ss:$12 sps:$4 sm:$0xff]  }
 0x4a9   : > { %10589 = vmatpush2.bf16.msra.mxu0 %v18786_v54  ;;  %v18835_v54 = vld [vmem:[%s24171_s3 + $0xcc8] ss:$12 sps:$4 sm:$0xff]  }
 0x4aa   : > { %10628 = vmatpush2.bf16.msra.mxu1 %v18789_v56  ;;  %10590 = vmatprep.subr.bf16.mxu0 %v18794_v55  ;;  %v18837_v56 = vld [vmem:[%s24171_s3 + $0xe60] ss:$12 sps:$4 sm:$0xff]   ;;  %v18836_v55 = vld [vmem:[%s24171_s3 + $0xc08] ss:$12 sps:$4 sm:$0xff]  }
 0x4ab   : > { %10629 = vmatprep.subr.bf16.mxu1 %v18797_v8  ;;  %v18838_v8 = vld [vmem:[%s24171_s3 + $0xda0] ss:$12 sps:$4 sm:$0xff]  }
 0x4ad   : > { %10591 = vmatpush2.bf16.msra.mxu0 %v18792_v31  ;;  %v18839_v31 = vld [vmem:[%s24171_s3 + $0xcb0] ss:$12 sps:$4 sm:$0xff]  }
 0x4ae   : > { %10630 = vmatpush2.bf16.msra.mxu1 %v18795_v29  ;;  %10592 = vmatprep.subr.bf16.mxu0 %v18800_v0  ;;  %v18841_v29 = vld [vmem:[%s24171_s3 + $0xe48] ss:$12 sps:$4 sm:$0xff]   ;;  %v18840_v0 = vld [vmem:[%s24171_s3 + $0xbf0] ss:$12 sps:$4 sm:$0xff]  }
 0x4af   : > { %10631 = vmatprep.subr.bf16.mxu1 %v18803_v33  ;;  %v18842_v33 = vld [vmem:[%s24171_s3 + $0xd88] ss:$12 sps:$4 sm:$0xff]  }
 0x4b1   : > { %10593 = vmatpush2.bf16.msra.mxu0 %v18798_v59  ;;  %v18843_v59 = vld [vmem:[%s24171_s3 + $0x1058] ss:$12 sps:$4 sm:$0xff]  }
 0x4b2   : > { %10632 = vmatpush2.bf16.msra.mxu1 %v18801_v47  ;;  %10594 = vmatprep.subr.bf16.mxu0 %v18806_v61  ;;  %v18844_v47 = vld [vmem:[%s24171_s3 + $0xe30] ss:$12 sps:$4 sm:$0xff]   ;;  %v18845_v61 = vld [vmem:[%s24171_s3 + $0xf98] ss:$12 sps:$4 sm:$0xff]  }
 0x4b3   : > { %10633 = vmatprep.subr.bf16.mxu1 %v18809_v60  ;;  %v18846_v60 = vld [vmem:[%s24171_s3 + $0xd70] ss:$12 sps:$4 sm:$0xff]  }
 0x4b5   : > { %10595 = vmatpush2.bf16.msra.mxu0 %v18804_v13  ;;  %v18847_v13 = vld [vmem:[%s24171_s3 + $0x1040] ss:$12 sps:$4 sm:$0xff]  }
 0x4b6   : > { %10634 = vmatpush2.bf16.msra.mxu1 %v18807_v63  ;;  %17601 = vmatprep.subr.bf16.mxu0 %v18810_v4  ;;  %v18849_v63 = vld [vmem:[%s24171_s3 + $0x11d8] ss:$0 sps:$4 sm:$0xff]  }
 0x4b7   : > { %10635 = vmatprep.subr.bf16.mxu1 %v18813_v2  ;;  %v18848_v2 = vld [vmem:[%s24171_s3 + $0xf80] ss:$12 sps:$4 sm:$0xff]  }
 0x4b8   : > { %v8991_v62 = vpop.f32.mrf.mxu0  ;;  %10597 = vmatmul.mubr.bf16.vlgmr.msra.gmra.mxu0 %v21308_v19 }
 0x4b9   : > { %v8992_v18 = vadd.f32 %v8991_v62, %v22343_v45  ;;  %17602 = vmatpush3.bf16.msra.mxu0 %v18814_v35  ;;  %10678 = vmatprep.mubr.bf16.mxu0 %v21089_v17  ;;  %v18819_v45 = vld [vmem:[%s24171_s3 + $0xd28] ss:$12 sps:$4 sm:$0xff]   ;;  %v18853_v62 = vld [vmem:[%s24171_s3 + $0x11c0] ss:$12 sps:$4 sm:$0xff]  }
 0x4ba   : > { %v8993_v3 = vpop.f32.mrf.mxu0  ;;  %10636 = vmatpush2.bf16.msra.mxu1 %v18811_v21  ;;  %17603 = vmatprep.subr.bf16.mxu0 %v18815_v46  ;;  %v18850_v21 = vld [vmem:[%s24171_s3 + $0x1118] ss:$12 sps:$4 sm:$0xff]  }
 0x4bb   : > { %v8994_v5 = vadd.f32 %v8993_v3, %v22356_v26  ;;  %17623 = vmatprep.subr.bf16.mxu1 %v18817_v50  ;;  %v18851_v50 = vld [vmem:[%s24171_s3 + $0x1028] ss:$12 sps:$4 sm:$0xff]  }
 0x4bc   : > { %v8995_v22 = vpop.f32.mrf.mxu0  ;;  %v18852_v3 = vld [vmem:[%s24171_s3 + $0xf68] ss:$12 sps:$4 sm:$0xff]  }
 0x4bd   : > { %v9032_v27 = vpop.f32.mrf.mxu1  ;;  %10638 = vmatmul.mubr.bf16.vlgmr.msra.gmra.mxu1 %v21327_v39  ;;  %17604 = vmatpush3.bf16.msra.mxu0 %v18816_v38  ;;  %v18857_v22 = vld [vmem:[%s24171_s3 + $0x11a8] ss:$12 sps:$4 sm:$0xff]  }
 0x4be   : > { %v22545_v28 = vadd.f32 %v9032_v27, %v8992_v18  ;;  %v8996_v26 = vpop.f32.mrf.mxu0  ;;  %17624 = vmatpush3.bf16.msra.mxu1 %v18818_v14  ;;  %10718 = vmatprep.mubr.bf16.mxu1 %v21110_v23 }
 0x4bf   : > { %v9034_v30 = vpop.f32.mrf.mxu1  ;;  %17605 = vmatprep.subr.bf16.mxu0 %v18819_v45  ;;  %17625 = vmatprep.subr.bf16.mxu1 %v18821_v20  ;;  %v18855_v45 = vld [vmem:[%s24171_s3 + $0x1010] ss:$12 sps:$4 sm:$0xff]  }
 0x4c0   : > { %v9199_v24 = vmax.f32 %v21939_v58, %v22545_v28  ;;  %v22559_v25 = vadd.f32 %v9034_v30, %v8994_v5  ;;  %v18854_v5 = vld [vmem:[%s24171_s3 + $0x1100] ss:$12 sps:$4 sm:$0xff]   ;;  %v18856_v26 = vld [vmem:[%s24171_s3 + $0xf50] ss:$12 sps:$4 sm:$0xff]   ;;  %v18859_v30 = vld [vmem:[%s24171_s3 + $0xff8] ss:$12 sps:$4 sm:$0xff]  }
 0x4c1   : > { %v9036_v7 = vpop.f32.mrf.mxu1  ;;  %17606 = vmatpush3.bf16.msra.mxu0 %v18820_v6  ;;  %v19081_v58 = vld [vmem:[%s24171_s3 + $0x13dc] ss:$12 sps:$4 sm:$0xff]   ;;  %v19082_v28 = vld [vmem:[%s24171_s3 + $0x12ec] ss:$12 sps:$4 sm:$0xff]  }
 0x4c2   : > { %v9200_v40 = vmax.f32 %v21951_v32, %v22559_v25  ;;  %17626 = vmatpush3.bf16.msra.mxu1 %v18822_v44  ;;  %17607 = vmatprep.subr.bf16.mxu0 %v18823_v11  ;;  %v18858_v11 = vld [vmem:[%s24171_s3 + $0x10e8] ss:$12 sps:$4 sm:$0xff]   ;;  %v18861_v7 = vld [vmem:[%s24171_s3 + $0x1190] ss:$12 sps:$4 sm:$0xff]   ;;  %v19083_v32 = vld [vmem:[%s24171_s3 + $0x122c] ss:$12 sps:$4 sm:$0xff]  }
 0x4c3   : > { %v9037_v43 = vpop.f32.mrf.mxu1  ;;  %17627 = vmatprep.subr.bf16.mxu1 %v18825_v57  ;;  %v19085_v25 = vld [vmem:[%s24171_s3 + $0x13c4] ss:$12 sps:$4 sm:$0xff]  }
 0x4c4   : > { %v18865_v43 = vld [vmem:[%s24171_s3 + $0x1178] ss:$12 sps:$4 sm:$0xff]  }
 0x4c5   : > { %17608 = vmatpush3.bf16.msra.mxu0 %v18824_v36  ;;  %v18860_v36 = vld [vmem:[%s24171_s3 + $0xf38] ss:$12 sps:$4 sm:$0xff]  }
 0x4c6   : > { %17628 = vmatpush3.bf16.msra.mxu1 %v18826_v53  ;;  %17609 = vmatprep.subr.bf16.mxu0 %v18827_v41  ;;  %v18862_v53 = vld [vmem:[%s24171_s3 + $0x10d0] ss:$12 sps:$4 sm:$0xff]   ;;  %v18863_v41 = vld [vmem:[%s24171_s3 + $0xfe0] ss:$12 sps:$4 sm:$0xff]  }
 0x4c7   : > { %17629 = vmatprep.subr.bf16.mxu1 %v18829_v16  ;;  %v18864_v16 = vld [vmem:[%s24171_s3 + $0xf20] ss:$12 sps:$4 sm:$0xff]  }
 0x4c9   : > { %17610 = vmatpush3.bf16.msra.mxu0 %v18828_v49  ;;  %v18866_v49 = vld [vmem:[%s24171_s3 + $0x10b8] ss:$12 sps:$4 sm:$0xff]  }
 0x4ca   : > { %17630 = vmatpush3.bf16.msra.mxu1 %v18830_v51  ;;  %17611 = vmatprep.subr.bf16.mxu0 %v18831_v37  ;;  %v18867_v51 = vld [vmem:[%s24171_s3 + $0xfc8] ss:$12 sps:$4 sm:$0xff]   ;;  %v18869_v37 = vld [vmem:[%s24171_s3 + $0x1160] ss:$12 sps:$4 sm:$0xff]  }
 0x4cb   : > { %17631 = vmatprep.subr.bf16.mxu1 %v18833_v9  ;;  %v18868_v9 = vld [vmem:[%s24171_s3 + $0xf08] ss:$12 sps:$4 sm:$0xff]  }
 0x4cd   : > { %17612 = vmatpush3.bf16.msra.mxu0 %v18832_v52  ;;  %v18870_v52 = vld [vmem:[%s24171_s3 + $0x10a0] ss:$12 sps:$4 sm:$0xff]  }
 0x4ce   : > { %17632 = vmatpush3.bf16.msra.mxu1 %v18834_v10  ;;  %17613 = vmatprep.subr.bf16.mxu0 %v18835_v54  ;;  %v18871_v10 = vld [vmem:[%s24171_s3 + $0xfb0] ss:$12 sps:$4 sm:$0xff]   ;;  %v18873_v54 = vld [vmem:[%s24171_s3 + $0x1148] ss:$12 sps:$4 sm:$0xff]  }
 0x4cf   : > { %17633 = vmatprep.subr.bf16.mxu1 %v18837_v56  ;;  %v18872_v56 = vld [vmem:[%s24171_s3 + $0xef0] ss:$12 sps:$4 sm:$0xff]  }
 0x4d1   : > { %17614 = vmatpush3.bf16.msra.mxu0 %v18836_v55  ;;  %v18874_v55 = vld [vmem:[%s24171_s3 + $0x1088] ss:$12 sps:$4 sm:$0xff]  }
 0x4d2   : > { %17634 = vmatpush3.bf16.msra.mxu1 %v18838_v8  ;;  %17615 = vmatprep.subr.bf16.mxu0 %v18839_v31  ;;  %v18877_v8 = vld [vmem:[%s24171_s3 + $0x1288] ss:$12 sps:$4 sm:$0xff]   ;;  %v18878_v31 = vld [vmem:[%s24171_s3 + $0x1130] ss:$12 sps:$4 sm:$0xff]  }
 0x4d3   : > { %17635 = vmatprep.subr.bf16.mxu1 %v18841_v29  ;;  %v18875_v29 = vld [vmem:[%s24171_s3 + $0x1284] ss:$12 sps:$4 sm:$0xff]  }
 0x4d5   : > { %17616 = vmatpush3.bf16.msra.mxu0 %v18840_v0  ;;  %v18879_v0 = vld [vmem:[%s24171_s3 + $0x1070] ss:$12 sps:$4 sm:$0xff]  }
 0x4d6   : > { %17636 = vmatpush3.bf16.msra.mxu1 %v18842_v33  ;;  %17645 = vmatprep.subr.bf16.mxu0 %v18843_v59  ;;  %v18882_v33 = vld [vmem:[%s24171_s3 + $0x1270] ss:$12 sps:$4 sm:$0xff]   ;;  %v18885_v59 = vld [vmem:[%s24171_s3 + $0x1408] ss:$12 sps:$4 sm:$0xff]  }
 0x4d7   : > { %17637 = vmatprep.subr.bf16.mxu1 %v18844_v47 }
 0x4d8   : > { %v17529_v4 = vpop.f32.mrf.mxu0  ;;  %10679 = vmatmul.mubr.bf16.vlgmr.msra.gmra.mxu0 %v21096_v1 }
 0x4d9   : > { %17646 = vmatpush3.bf16.msra.mxu0 %v18845_v61  ;;  %10758 = vmatprep.mubr.bf16.mxu0 %v21130_v42  ;;  %v18880_v61 = vld [vmem:[%s24171_s3 + $0x126c] ss:$12 sps:$4 sm:$0xff]  }
 0x4da   : > { %v17530_v35 = vpop.f32.mrf.mxu0  ;;  %17638 = vmatpush3.bf16.msra.mxu1 %v18846_v60  ;;  %17647 = vmatprep.subr.bf16.mxu0 %v18847_v13  ;;  %v18883_v13 = vld [vmem:[%s24171_s3 + $0x1404] ss:$12 sps:$4 sm:$0xff]  }
 0x4db   : > { %v17531_v46 = vadd.f32 %v17530_v35, %v17529_v4  ;;  %18019 = vmatprep.subr.msk.bf16.mxu1 %vm7261_vm3, %v18849_v63  ;;  %v18888_v4 = vld [vmem:[%s24171_s3 + $0x1258] ss:$12 sps:$4 sm:$0xff]  }
 0x4dc   : > { %v17532_v18 = vpop.f32.mrf.mxu0 }
 0x4dd   : > { %v17551_v38 = vpop.f32.mrf.mxu1  ;;  %10719 = vmatmul.mubr.bf16.vlgmr.msra.gmra.mxu1 %v21118_v34  ;;  %17648 = vmatpush3.bf16.msra.mxu0 %v18848_v2  ;;  %v18891_v2 = vld [vmem:[%s24171_s3 + $0x13f0] ss:$12 sps:$4 sm:$0xff]   ;;  %v18889_v18 = vld [vmem:[%s24171_s3 + $0x13ec] ss:$12 sps:$4 sm:$0xff]  }
 0x4de   : > { %v17533_v14 = vpop.f32.mrf.mxu0  ;;  %17668 = vmatpush3.bf16.msra.mxu1 %v18850_v21  ;;  %16640 = vmatprep.mubr.msk.bf16.mxu1 %vm4851_vm15, %v21145_v48 }
 0x4df   : > { %v17552_v20 = vpop.f32.mrf.mxu1  ;;  %17649 = vmatprep.subr.bf16.mxu0 %v18851_v50  ;;  %17669 = vmatprep.subr.bf16.mxu1 %v18853_v62  ;;  %v18886_v50 = vld [vmem:[%s24171_s3 + $0x1254] ss:$12 sps:$4 sm:$0xff]   ;;  %v18897_v14 = vld [vmem:[%s24171_s3 + $0x13d8] ss:$12 sps:$4 sm:$0xff]  }
 0x4e0   : > { %v17553_v27 = vadd.f32 %v17552_v20, %v17551_v38  ;;  %v18894_v38 = vld [vmem:[%s24171_s3 + $0x1240] ss:$12 sps:$4 sm:$0xff]   ;;  %v18892_v20 = vld [vmem:[%s24171_s3 + $0x123c] ss:$12 sps:$4 sm:$0xff]  }
 0x4e1   : > { %v17554_v6 = vpop.f32.mrf.mxu1  ;;  %17650 = vmatpush3.bf16.msra.mxu0 %v18852_v3 }
 0x4e2   : > { %v9114_v44 = vadd.f32 %v17553_v27, %v17531_v46  ;;  %17670 = vmatpush3.bf16.msra.mxu1 %v18854_v5  ;;  %17651 = vmatprep.subr.bf16.mxu0 %v18855_v45  ;;  %v18895_v27 = vld [vmem:[%s24171_s3 + $0x13d4] ss:$12 sps:$4 sm:$0xff]  }
 0x4e3   : > { %v17555_v57 = vpop.f32.mrf.mxu1  ;;  %17671 = vmatprep.subr.bf16.mxu1 %v18857_v22  ;;  %v18900_v6 = vld [vmem:[%s24171_s3 + $0x1228] ss:$12 sps:$4 sm:$0xff]  }
 0x4e4   : > { %v18901_v57 = vld [vmem:[%s24171_s3 + $0x13bc] ss:$12 sps:$4 sm:$0xff]  }
 0x4e5   : > { %17652 = vmatpush3.bf16.msra.mxu0 %v18856_v26 }
 0x4e6   : > { %17672 = vmatpush3.bf16.msra.mxu1 %v18858_v11  ;;  %17653 = vmatprep.subr.bf16.mxu0 %v18859_v30  ;;  %v18898_v30 = vld [vmem:[%s24171_s3 + $0x1224] ss:$12 sps:$4 sm:$0xff]  }
 0x4e7   : > { %17673 = vmatprep.subr.bf16.mxu1 %v18861_v7  ;;  %v18906_v7 = vld [vmem:[%s24171_s3 + $0x1210] ss:$12 sps:$4 sm:$0xff]  }
 0x4e9   : > { %17654 = vmatpush3.bf16.msra.mxu0 %v18860_v36  ;;  %v18909_v36 = vld [vmem:[%s24171_s3 + $0x13a8] ss:$12 sps:$4 sm:$0xff]  }
 0x4ea   : > { %17674 = vmatpush3.bf16.msra.mxu1 %v18862_v53  ;;  %17655 = vmatprep.subr.bf16.mxu0 %v18863_v41  ;;  %v18904_v53 = vld [vmem:[%s24171_s3 + $0x120c] ss:$12 sps:$4 sm:$0xff]   ;;  %v18907_v41 = vld [vmem:[%s24171_s3 + $0x13a4] ss:$12 sps:$4 sm:$0xff]  }
 0x4eb   : > { %17675 = vmatprep.subr.bf16.mxu1 %v18865_v43  ;;  %v18912_v43 = vld [vmem:[%s24171_s3 + $0x11f8] ss:$12 sps:$4 sm:$0xff]  }
 0x4ed   : > { %17656 = vmatpush3.bf16.msra.mxu0 %v18864_v16  ;;  %v18915_v16 = vld [vmem:[%s24171_s3 + $0x1390] ss:$12 sps:$4 sm:$0xff]  }
 0x4ee   : > { %17676 = vmatpush3.bf16.msra.mxu1 %v18866_v49  ;;  %17657 = vmatprep.subr.bf16.mxu0 %v18867_v51  ;;  %v18910_v49 = vld [vmem:[%s24171_s3 + $0x11f4] ss:$12 sps:$4 sm:$0xff]   ;;  %v18913_v51 = vld [vmem:[%s24171_s3 + $0x138c] ss:$12 sps:$4 sm:$0xff]  }
 0x4ef   : > { %17677 = vmatprep.subr.bf16.mxu1 %v18869_v37  ;;  %v18918_v37 = vld [vmem:[%s24171_s3 + $0x11e0] ss:$12 sps:$4 sm:$0xff]  }
 0x4f1   : > { %17658 = vmatpush3.bf16.msra.mxu0 %v18868_v9  ;;  %v18921_v9 = vld [vmem:[%s24171_s3 + $0x1378] ss:$12 sps:$4 sm:$0xff]  }
 0x4f2   : > { %17678 = vmatpush3.bf16.msra.mxu1 %v18870_v52  ;;  %17659 = vmatprep.subr.bf16.mxu0 %v18871_v10  ;;  %v18916_v52 = vld [vmem:[%s24171_s3 + $0x11dc] ss:$12 sps:$4 sm:$0xff]   ;;  %v18919_v10 = vld [vmem:[%s24171_s3 + $0x1374] ss:$12 sps:$4 sm:$0xff]  }
 0x4f3   : > { %17679 = vmatprep.subr.bf16.mxu1 %v18873_v54  ;;  %v18924_v54 = vld [vmem:[%s24171_s3 + $0x1348] ss:$12 sps:$4 sm:$0xff]  }
 0x4f5   : > { %17660 = vmatpush3.bf16.msra.mxu0 %v18872_v56  ;;  %v18927_v56 = vld [vmem:[%s24171_s3 + $0x1360] ss:$12 sps:$4 sm:$0xff]  }
 0x4f6   : > { %17680 = vmatpush3.bf16.msra.mxu1 %v18874_v55  ;;  %12089 = vmatprep.subr.bf16.mxu0 %v18877_v8  ;;  %v18922_v55 = vld [vmem:[%s24171_s3 + $0x1344] ss:$12 sps:$4 sm:$0xff]   ;;  %v18925_v8 = vld [vmem:[%s24171_s3 + $0x135c] ss:$12 sps:$4 sm:$0xff]  }
 0x4f7   : > { %17681 = vmatprep.subr.bf16.mxu1 %v18878_v31  ;;  %v18930_v31 = vld [vmem:[%s24171_s3 + $0x1330] ss:$12 sps:$4 sm:$0xff]  }
 0x4f8   : > { %v17573_v47 = vpop.f32.mrf.mxu0  ;;  %10759 = vmatmul.mubr.bf16.vlgmr.msra.gmra.mxu0 %v21308_v19 }
 0x4f9   : > { %12090 = vmatpush1.bf16.msra.mxu0 %v18875_v29  ;;  %12121 = vmatprep.mubr.bf16.mxu0 %v21089_v17  ;;  %v18933_v29 = vld [vmem:[%s24171_s3 + $0x14c8] ss:$12 sps:$4 sm:$0xff]  }
 0x4fa   : > { %v17574_v60 = vpop.f32.mrf.mxu0  ;;  %17682 = vmatpush3.bf16.msra.mxu1 %v18879_v0  ;;  %12091 = vmatprep.subr.bf16.mxu0 %v18882_v33  ;;  %v18928_v0 = vld [vmem:[%s24171_s3 + $0x132c] ss:$12 sps:$4 sm:$0xff]   ;;  %v18931_v33 = vld [vmem:[%s24171_s3 + $0x14c4] ss:$12 sps:$4 sm:$0xff]  }
 0x4fb   : > { %v17575_v63 = vadd.f32 %v17574_v60, %v17573_v47  ;;  %12130 = vmatprep.subr.bf16.mxu1 %v18885_v59  ;;  %v18936_v59 = vld [vmem:[%s24171_s3 + $0x1318] ss:$12 sps:$4 sm:$0xff]   ;;  %v18939_v47 = vld [vmem:[%s24171_s3 + $0x14b0] ss:$12 sps:$4 sm:$0xff]  }
 0x4fc   : > { %v17576_v35 = vpop.f32.mrf.mxu0  ;;  %v18937_v60 = vld [vmem:[%s24171_s3 + $0x14ac] ss:$12 sps:$4 sm:$0xff]  }
 0x4fd   : > { %v9154_v21 = vadd.f32 %v17575_v63, %v9114_v44  ;;  %v17595_v46 = vpop.f32.mrf.mxu1  ;;  %10799 = vmatmul.mubr.bf16.vlgmr.msra.gmra.mxu1 %v21327_v39  ;;  %12092 = vmatpush1.bf16.msra.mxu0 %v18880_v61  ;;  %v18903_v44 = vld [vmem:[%s24171_s3 + $0x13c0] ss:$12 sps:$4 sm:$0xff]   ;;  %v18945_v63 = vld [vmem:[%s24171_s3 + $0x1498] ss:$12 sps:$4 sm:$0xff]   ;;  %v18948_v35 = vld [vmem:[%s24171_s3 + $0x12e8] ss:$12 sps:$4 sm:$0xff]  }
 0x4fe   : > { %v17577_v62 = vpop.f32.mrf.mxu0  ;;  %12131 = vmatpush1.bf16.msra.mxu1 %v18883_v13  ;;  %12162 = vmatprep.mubr.bf16.mxu1 %v21110_v23  ;;  %v18934_v61 = vld [vmem:[%s24171_s3 + $0x1314] ss:$12 sps:$4 sm:$0xff]  }
 0x4ff   : > { %v17596_v3 = vpop.f32.mrf.mxu1  ;;  %12093 = vmatprep.subr.bf16.mxu0 %v18888_v4  ;;  %12132 = vmatprep.subr.bf16.mxu1 %v18891_v2  ;;  %v18942_v13 = vld [vmem:[%s24171_s3 + $0x1300] ss:$12 sps:$4 sm:$0xff]   ;;  %v18940_v4 = vld [vmem:[%s24171_s3 + $0x12fc] ss:$12 sps:$4 sm:$0xff]  }
 0x500   : > { %v17597_v5 = vadd.f32 %v17596_v3, %v17595_v46  ;;  %v18943_v2 = vld [vmem:[%s24171_s3 + $0x1494] ss:$12 sps:$4 sm:$0xff]   ;;  %v18946_v46 = vld [vmem:[%s24171_s3 + $0x12e4] ss:$12 sps:$4 sm:$0xff]  }
 0x501   : > { %v17598_v45 = vpop.f32.mrf.mxu1  ;;  %12094 = vmatpush1.bf16.msra.mxu0 %v18886_v50  ;;  %v18949_v50 = vld [vmem:[%s24171_s3 + $0x147c] ss:$12 sps:$4 sm:$0xff]   ;;  %v18955_v3 = vld [vmem:[%s24171_s3 + $0x1464] ss:$12 sps:$4 sm:$0xff]  }
 0x502   : > { %v22768_v22 = vadd.f32 %v17597_v5, %v9154_v21  ;;  %12133 = vmatpush1.bf16.msra.mxu1 %v18889_v18  ;;  %12095 = vmatprep.subr.bf16.mxu0 %v18894_v38  ;;  %v18951_v21 = vld [vmem:[%s24171_s3 + $0x1480] ss:$12 sps:$4 sm:$0xff]   ;;  %v18954_v62 = vld [vmem:[%s24171_s3 + $0x12d0] ss:$12 sps:$4 sm:$0xff]   ;;  %v18957_v18 = vld [vmem:[%s24171_s3 + $0x1468] ss:$12 sps:$4 sm:$0xff]  }
 0x503   : > { %v17599_v26 = vpop.f32.mrf.mxu1  ;;  %12134 = vmatprep.subr.bf16.mxu1 %v18897_v14  ;;  %v18952_v38 = vld [vmem:[%s24171_s3 + $0x12cc] ss:$12 sps:$4 sm:$0xff]   ;;  %v18963_v5 = vld [vmem:[%s24171_s3 + $0x1450] ss:$12 sps:$4 sm:$0xff]   ;;  %v18958_v45 = vld [vmem:[%s24171_s3 + $0x12b4] ss:$12 sps:$4 sm:$0xff]  }
 0x504   : > { %v9201_v11 = vmax.f32 %v22158_v12, %v22768_v22  ;;  %v18960_v14 = vld [vmem:[%s24171_s3 + $0x12b8] ss:$12 sps:$4 sm:$0xff]   ;;  %v18964_v26 = vld [vmem:[%s24171_s3 + $0x129c] ss:$12 sps:$4 sm:$0xff]  }
 0x505   : > { %12096 = vmatpush1.bf16.msra.mxu0 %v18892_v20  ;;  %v18961_v20 = vld [vmem:[%s24171_s3 + $0x144c] ss:$12 sps:$4 sm:$0xff]  }
 0x506   : > { %12135 = vmatpush1.bf16.msra.mxu1 %v18895_v27  ;;  %12097 = vmatprep.subr.bf16.mxu0 %v18900_v6  ;;  %v18966_v27 = vld [vmem:[%s24171_s3 + $0x12a0] ss:$12 sps:$4 sm:$0xff]   ;;  %v18969_v6 = vld [vmem:[%s24171_s3 + $0x1438] ss:$12 sps:$4 sm:$0xff]  }
 0x507   : > { %12136 = vmatprep.subr.bf16.mxu1 %v18903_v44  ;;  %v18967_v44 = vld [vmem:[%s24171_s3 + $0x1434] ss:$12 sps:$4 sm:$0xff]  }
 0x509   : > { %12098 = vmatpush1.bf16.msra.mxu0 %v18898_v30  ;;  %v18972_v30 = vld [vmem:[%s24171_s3 + $0x1588] ss:$12 sps:$4 sm:$0xff]  }
 0x50a   : > { %12137 = vmatpush1.bf16.msra.mxu1 %v18901_v57  ;;  %12099 = vmatprep.subr.bf16.mxu0 %v18906_v7  ;;  %v18975_v57 = vld [vmem:[%s24171_s3 + $0x1420] ss:$12 sps:$4 sm:$0xff]   ;;  %v18970_v7 = vld [vmem:[%s24171_s3 + $0x1584] ss:$12 sps:$4 sm:$0xff]  }
 0x50b   : > { %12138 = vmatprep.subr.bf16.mxu1 %v18909_v36  ;;  %v18973_v36 = vld [vmem:[%s24171_s3 + $0x141c] ss:$12 sps:$4 sm:$0xff]  }
 0x50d   : > { %12100 = vmatpush1.bf16.msra.mxu0 %v18904_v53  ;;  %v18978_v53 = vld [vmem:[%s24171_s3 + $0x1570] ss:$12 sps:$4 sm:$0xff]  }
 0x50e   : > { %12139 = vmatpush1.bf16.msra.mxu1 %v18907_v41  ;;  %12101 = vmatprep.subr.bf16.mxu0 %v18912_v43  ;;  %v18981_v41 = vld [vmem:[%s24171_s3 + $0x1708] ss:$12 sps:$4 sm:$0xff]  }
 0x50f   : > { %12140 = vmatprep.subr.bf16.mxu1 %v18915_v16  ;;  %v18976_v16 = vld [vmem:[%s24171_s3 + $0x156c] ss:$12 sps:$4 sm:$0xff]  }
 0x511   : > { %12102 = vmatpush1.bf16.msra.mxu0 %v18910_v49 }
 0x512   : > { %12141 = vmatpush1.bf16.msra.mxu1 %v18913_v51  ;;  %12103 = vmatprep.subr.bf16.mxu0 %v18918_v37  ;;  %v18979_v51 = vld [vmem:[%s24171_s3 + $0x1704] ss:$12 sps:$4 sm:$0xff]  }
 0x513   : > { %12142 = vmatprep.subr.bf16.mxu1 %v18921_v9  ;;  %v18984_v37 = vld [vmem:[%s24171_s3 + $0x1558] ss:$12 sps:$4 sm:$0xff]   ;;  %v18987_v9 = vld [vmem:[%s24171_s3 + $0x16f0] ss:$12 sps:$4 sm:$0xff]  }
 0x515   : > { %12104 = vmatpush1.bf16.msra.mxu0 %v18916_v52 }
 0x516   : > { %12143 = vmatpush1.bf16.msra.mxu1 %v18919_v10  ;;  %12105 = vmatprep.subr.bf16.mxu0 %v18924_v54  ;;  %v18982_v54 = vld [vmem:[%s24171_s3 + $0x1554] ss:$12 sps:$4 sm:$0xff]  }
 0x517   : > { %12144 = vmatprep.subr.bf16.mxu1 %v18927_v56 }
 0x519   : > { %12106 = vmatpush2.bf16.msra.mxu0 %v18922_v55 }
 0x51a   : > { %12145 = vmatpush1.bf16.msra.mxu1 %v18925_v8  ;;  %12107 = vmatprep.subr.bf16.mxu0 %v18930_v31  ;;  %v18985_v8 = vld [vmem:[%s24171_s3 + $0x16ec] ss:$12 sps:$4 sm:$0xff]  }
 0x51b   : > { %12146 = vmatprep.subr.bf16.mxu1 %v18933_v29  ;;  %v18990_v31 = vld [vmem:[%s24171_s3 + $0x1540] ss:$12 sps:$4 sm:$0xff]  }
 0x51d   : > { %12108 = vmatpush2.bf16.msra.mxu0 %v18928_v0  ;;  %v18993_v0 = vld [vmem:[%s24171_s3 + $0x16d8] ss:$12 sps:$4 sm:$0xff]  }
 0x51e   : > { %12147 = vmatpush2.bf16.msra.mxu1 %v18931_v33  ;;  %12109 = vmatprep.subr.bf16.mxu0 %v18936_v59 }
 0x51f   : > { %12148 = vmatprep.subr.bf16.mxu1 %v18939_v47  ;;  %v18988_v47 = vld [vmem:[%s24171_s3 + $0x153c] ss:$12 sps:$4 sm:$0xff]  }
 0x521   : > { %12110 = vmatpush2.bf16.msra.mxu0 %v18934_v61  ;;  %v18991_v61 = vld [vmem:[%s24171_s3 + $0x16d4] ss:$12 sps:$4 sm:$0xff]  }
 0x522   : > { %12149 = vmatpush2.bf16.msra.mxu1 %v18937_v60  ;;  %12111 = vmatprep.subr.bf16.mxu0 %v18942_v13  ;;  %v18996_v60 = vld [vmem:[%s24171_s3 + $0x1528] ss:$12 sps:$4 sm:$0xff]  }
 0x523   : > { %12150 = vmatprep.subr.bf16.mxu1 %v18945_v63  ;;  %v18999_v63 = vld [vmem:[%s24171_s3 + $0x16c0] ss:$12 sps:$4 sm:$0xff]  }
 0x525   : > { %12112 = vmatpush2.bf16.msra.mxu0 %v18940_v4  ;;  %v18994_v4 = vld [vmem:[%s24171_s3 + $0x1524] ss:$12 sps:$4 sm:$0xff]  }
 0x526   : > { %12151 = vmatpush2.bf16.msra.mxu1 %v18943_v2  ;;  %12113 = vmatprep.subr.bf16.mxu0 %v18948_v35  ;;  %v18997_v2 = vld [vmem:[%s24171_s3 + $0x16bc] ss:$12 sps:$4 sm:$0xff]  }
 0x527   : > { %12152 = vmatprep.subr.bf16.mxu1 %v18951_v21  ;;  %v19002_v35 = vld [vmem:[%s24171_s3 + $0x1510] ss:$12 sps:$4 sm:$0xff]   ;;  %v19005_v21 = vld [vmem:[%s24171_s3 + $0x16a8] ss:$12 sps:$4 sm:$0xff]  }
 0x529   : > { %12114 = vmatpush2.bf16.msra.mxu0 %v18946_v46  ;;  %v19000_v46 = vld [vmem:[%s24171_s3 + $0x150c] ss:$12 sps:$4 sm:$0xff]  }
 0x52a   : > { %12153 = vmatpush2.bf16.msra.mxu1 %v18949_v50  ;;  %12115 = vmatprep.subr.bf16.mxu0 %v18954_v62  ;;  %v19003_v50 = vld [vmem:[%s24171_s3 + $0x16a4] ss:$12 sps:$4 sm:$0xff]  }
 0x52b   : > { %12154 = vmatprep.subr.bf16.mxu1 %v18957_v18  ;;  %v19008_v62 = vld [vmem:[%s24171_s3 + $0x14f8] ss:$12 sps:$4 sm:$0xff]   ;;  %v19011_v18 = vld [vmem:[%s24171_s3 + $0x1690] ss:$12 sps:$4 sm:$0xff]  }
 0x52d   : > { %12116 = vmatpush2.bf16.msra.mxu0 %v18952_v38  ;;  %v19006_v38 = vld [vmem:[%s24171_s3 + $0x14f4] ss:$12 sps:$4 sm:$0xff]  }
 0x52e   : > { %12155 = vmatpush2.bf16.msra.mxu1 %v18955_v3  ;;  %12117 = vmatprep.subr.bf16.mxu0 %v18960_v14  ;;  %v19009_v3 = vld [vmem:[%s24171_s3 + $0x168c] ss:$12 sps:$4 sm:$0xff]  }
 0x52f   : > { %12156 = vmatprep.subr.bf16.mxu1 %v18963_v5  ;;  %v19014_v14 = vld [vmem:[%s24171_s3 + $0x14e0] ss:$12 sps:$4 sm:$0xff]   ;;  %v19017_v5 = vld [vmem:[%s24171_s3 + $0x1678] ss:$12 sps:$4 sm:$0xff]  }
 0x531   : > { %12118 = vmatpush2.bf16.msra.mxu0 %v18958_v45  ;;  %v19012_v45 = vld [vmem:[%s24171_s3 + $0x14dc] ss:$12 sps:$4 sm:$0xff]  }
 0x532   : > { %12157 = vmatpush2.bf16.msra.mxu1 %v18961_v20  ;;  %12119 = vmatprep.subr.bf16.mxu0 %v18966_v27  ;;  %v19015_v20 = vld [vmem:[%s24171_s3 + $0x1674] ss:$12 sps:$4 sm:$0xff]  }
 0x533   : > { %12158 = vmatprep.subr.bf16.mxu1 %v18969_v6  ;;  %v19020_v27 = vld [vmem:[%s24171_s3 + $0x1648] ss:$12 sps:$4 sm:$0xff]   ;;  %v19023_v6 = vld [vmem:[%s24171_s3 + $0x1660] ss:$12 sps:$4 sm:$0xff]  }
 0x535   : > { %12120 = vmatpush2.bf16.msra.mxu0 %v18964_v26  ;;  %v16893_v26 = vld [vmem:[%s24171_s3 + $0x17c4] sm:$0xff] }
 0x536   : > { %12159 = vmatpush2.bf16.msra.mxu1 %v18967_v44  ;;  %12171 = vmatprep.subr.bf16.mxu0 %v18972_v30  ;;  %v19018_v44 = vld [vmem:[%s24171_s3 + $0x1644] ss:$12 sps:$4 sm:$0xff]   ;;  %v19021_v30 = vld [vmem:[%s24171_s3 + $0x165c] ss:$12 sps:$4 sm:$0xff]  }
 0x537   : > { %12160 = vmatprep.subr.bf16.mxu1 %v18975_v57  ;;  %v19026_v57 = vld [vmem:[%s24171_s3 + $0x1630] ss:$12 sps:$4 sm:$0xff]  }
 0x538   : > { %v10516_v43 = vpop.f32.mrf.mxu0  ;;  %12122 = vmatmul.mubr.bf16.vlgmr.msra.gmra.mxu0 %v21096_v1 }
 0x539   : > { %12172 = vmatpush1.bf16.msra.mxu0 %v18970_v7  ;;  %12203 = vmatprep.mubr.bf16.mxu0 %v21130_v42  ;;  %v17085_v7 = vcombine.high %v16893_v26, %v16893_v26 }
 0x53a   : > { %v10518_v49 = vpop.f32.mrf.mxu0  ;;  %12161 = vmatpush2.bf16.msra.mxu1 %v18973_v36  ;;  %12173 = vmatprep.subr.bf16.mxu0 %v18978_v53  ;;  %v17084_v36 = vcombine.low %v16893_v26, %v16893_v26  ;;  %v19024_v53 = vld [vmem:[%s24171_s3 + $0x162c] ss:$12 sps:$4 sm:$0xff]  }
 0x53b   : > { %12212 = vmatprep.subr.bf16.mxu1 %v18981_v41  ;;  %v19031_v41 = vld [vmem:[%s24171_s3 + $0x1618] ss:$12 sps:$4 sm:$0xff]  }
 0x53c   : > { %v10520_v52 = vpop.f32.mrf.mxu0 }
 0x53d   : > { %v10557_v10 = vpop.f32.mrf.mxu1  ;;  %12163 = vmatmul.mubr.bf16.vlgmr.msra.gmra.mxu1 %v21118_v34  ;;  %12174 = vmatpush1.bf16.msra.mxu0 %v18976_v16  ;;  %v19034_v16 = vld [vmem:[%s24171_s3 + $0x17b0] ss:$12 sps:$4 sm:$0xff]  }
 0x53e   : > { %v22955_v56 = vadd.f32 %v10557_v10, %v10516_v43  ;;  %v10521_v55 = vpop.f32.mrf.mxu0  ;;  %12213 = vmatpush1.bf16.msra.mxu1 %v18979_v51  ;;  %17088 = vmatprep.mubr.msk.bf16.mxu1 %vm4851_vm15, %v21145_v48  ;;  %v12081_v43 = vsel %vm7261_vm3, %v17084_v36, 0  ;;  %v19032_v51 = vld [vmem:[%s24171_s3 + $0x17ac] ss:$12 sps:$4 sm:$0xff]   ;;  %v19035_v52 = vld [vmem:[%s24171_s3 + $0x15fc] ss:$12 sps:$4 sm:$0xff]  }
 0x53f   : > { %v10559_v29 = vpop.f32.mrf.mxu1  ;;  %12175 = vmatprep.subr.bf16.mxu0 %v18984_v37  ;;  %12214 = vmatprep.subr.bf16.mxu1 %v18987_v9  ;;  %v19037_v37 = vld [vmem:[%s24171_s3 + $0x1600] ss:$12 sps:$4 sm:$0xff]   ;;  %v19040_v9 = vld [vmem:[%s24171_s3 + $0x1798] ss:$12 sps:$4 sm:$0xff]  }
 0x540   : > { %v22968_v33 = vadd.f32 %v10559_v29, %v10518_v49  ;;  %v19029_v49 = vld [vmem:[%s24171_s3 + $0x1614] ss:$12 sps:$4 sm:$0xff]   ;;  %v19049_v29 = vld [vmem:[%s24171_s3 + $0x15d0] ss:$12 sps:$4 sm:$0xff]  }
 0x541   : > { %v10561_v59 = vpop.f32.mrf.mxu1  ;;  %12176 = vmatpush1.bf16.msra.mxu0 %v18982_v54  ;;  %v19038_v10 = vld [vmem:[%s24171_s3 + $0x1794] ss:$12 sps:$4 sm:$0xff]   ;;  %v19078_v36 = vld [vmem:[%s24171_s3 + $0x1304] ss:$12 sps:$4 sm:$0xff]  }
 0x542   : > { %12215 = vmatpush1.bf16.msra.mxu1 %v18985_v8  ;;  %12177 = vmatprep.subr.bf16.mxu0 %v18990_v31  ;;  %v19043_v54 = vld [vmem:[%s24171_s3 + $0x15e8] ss:$12 sps:$4 sm:$0xff]   ;;  %v19046_v55 = vld [vmem:[%s24171_s3 + $0x1780] ss:$12 sps:$4 sm:$0xff]   ;;  %v19041_v8 = vld [vmem:[%s24171_s3 + $0x15e4] ss:$12 sps:$4 sm:$0xff]  }
 0x543   : > { %v10562_v13 = vpop.f32.mrf.mxu1  ;;  %12216 = vmatprep.subr.bf16.mxu1 %v18993_v0  ;;  %v19044_v31 = vld [vmem:[%s24171_s3 + $0x177c] ss:$12 sps:$4 sm:$0xff]   ;;  %v19047_v59 = vld [vmem:[%s24171_s3 + $0x15cc] ss:$12 sps:$4 sm:$0xff]  }
 0x544   : > { %v19052_v0 = vld [vmem:[%s24171_s3 + $0x1768] ss:$12 sps:$4 sm:$0xff]  }
 0x545   : > { %12178 = vmatpush1.bf16.msra.mxu0 %v18988_v47  ;;  %v19050_v47 = vld [vmem:[%s24171_s3 + $0x1764] ss:$12 sps:$4 sm:$0xff]   ;;  %v19053_v13 = vld [vmem:[%s24171_s3 + $0x15b4] ss:$12 sps:$4 sm:$0xff]  }
 0x546   : > { %12217 = vmatpush1.bf16.msra.mxu1 %v18991_v61  ;;  %12179 = vmatprep.subr.bf16.mxu0 %v18996_v60  ;;  %v19055_v61 = vld [vmem:[%s24171_s3 + $0x15b8] ss:$12 sps:$4 sm:$0xff]   ;;  %v19058_v60 = vld [vmem:[%s24171_s3 + $0x1750] ss:$12 sps:$4 sm:$0xff]  }
 0x547   : > { %12218 = vmatprep.subr.bf16.mxu1 %v18999_v63  ;;  %v19056_v63 = vld [vmem:[%s24171_s3 + $0x174c] ss:$12 sps:$4 sm:$0xff]  }
 0x549   : > { %12180 = vmatpush1.bf16.msra.mxu0 %v18994_v4  ;;  %v19061_v4 = vld [vmem:[%s24171_s3 + $0x15a0] ss:$12 sps:$4 sm:$0xff]  }
 0x54a   : > { %12219 = vmatpush1.bf16.msra.mxu1 %v18997_v2  ;;  %12181 = vmatprep.subr.bf16.mxu0 %v19002_v35  ;;  %v19064_v2 = vld [vmem:[%s24171_s3 + $0x1738] ss:$12 sps:$4 sm:$0xff]   ;;  %v19059_v35 = vld [vmem:[%s24171_s3 + $0x159c] ss:$12 sps:$4 sm:$0xff]  }
 0x54b   : > { %12220 = vmatprep.subr.bf16.mxu1 %v19005_v21  ;;  %v19062_v21 = vld [vmem:[%s24171_s3 + $0x1734] ss:$12 sps:$4 sm:$0xff]  }
 0x54d   : > { %12182 = vmatpush1.bf16.msra.mxu0 %v19000_v46  ;;  %v19065_v46 = vld [vmem:[%s24171_s3 + $0x134c] ss:$12 sps:$4 sm:$0xff]  }
 0x54e   : > { %12221 = vmatpush1.bf16.msra.mxu1 %v19003_v50  ;;  %12183 = vmatprep.subr.bf16.mxu0 %v19008_v62  ;;  %v19068_v50 = vld [vmem:[%s24171_s3 + $0x1720] ss:$12 sps:$4 sm:$0xff]  }
 0x54f   : > { %12222 = vmatprep.subr.bf16.mxu1 %v19011_v18  ;;  %v19069_v62 = vld [vmem:[%s24171_s3 + $0x128c] ss:$12 sps:$4 sm:$0xff]   ;;  %v19066_v18 = vld [vmem:[%s24171_s3 + $0x171c] ss:$12 sps:$4 sm:$0xff]  }
 0x551   : > { %12184 = vmatpush1.bf16.msra.mxu0 %v19006_v38  ;;  %v19070_v38 = vld [vmem:[%s24171_s3 + $0x1334] ss:$12 sps:$4 sm:$0xff]  }
 0x552   : > { %12223 = vmatpush1.bf16.msra.mxu1 %v19009_v3  ;;  %12185 = vmatprep.subr.bf16.mxu0 %v19014_v14  ;;  %v19072_v3 = vld [vmem:[%s24171_s3 + $0x14cc] ss:$12 sps:$4 sm:$0xff]  }
 0x553   : > { %12224 = vmatprep.subr.bf16.mxu1 %v19017_v5 }
 0x555   : > { %12186 = vmatpush1.bf16.msra.mxu0 %v19012_v45  ;;  %v19071_v45 = vld [vmem:[%s24171_s3 + $0x1274] ss:$12 sps:$4 sm:$0xff]  }
 0x556   : > { %12225 = vmatpush1.bf16.msra.mxu1 %v19015_v20  ;;  %12187 = vmatprep.subr.bf16.mxu0 %v19020_v27  ;;  %v19073_v27 = vld [vmem:[%s24171_s3 + $0x140c] ss:$12 sps:$4 sm:$0xff]  }
 0x557   : > { %12226 = vmatprep.subr.bf16.mxu1 %v19023_v6 }
 0x559   : > { %12188 = vmatpush2.bf16.msra.mxu0 %v19018_v44 }
 0x55a   : > { %12227 = vmatpush1.bf16.msra.mxu1 %v19021_v30  ;;  %12189 = vmatprep.subr.bf16.mxu0 %v19026_v57  ;;  %v19075_v30 = vld [vmem:[%s24171_s3 + $0x125c] ss:$12 sps:$4 sm:$0xff]  }
 0x55b   : > { %17087 = vmatprep.subr.msk.bf16.mxu1 %vm7261_vm3, %v17085_v7  ;;  %v19077_v7 = vld [vmem:[%s24171_s3 + $0x13f4] ss:$12 sps:$4 sm:$0xff]  }
 0x55d   : > { %12190 = vmatpush2.bf16.msra.mxu0 %v19024_v53 }
 0x55e   : > { %12229 = vmatpush2.bf16.msra.mxu1 %v12081_v43  ;;  %12191 = vmatprep.subr.bf16.mxu0 %v19031_v41  ;;  %v19080_v41 = vld [vmem:[%s24171_s3 + $0x149c] ss:$12 sps:$4 sm:$0xff]  }
 0x55f   : > { %12230 = vmatprep.subr.bf16.mxu1 %v19034_v16 }
 0x561   : > { %12192 = vmatpush2.bf16.msra.mxu0 %v19029_v49  ;;  %v19079_v49 = vld [vmem:[%s24171_s3 + $0x1244] ss:$12 sps:$4 sm:$0xff]  }
 0x562   : > { %12231 = vmatpush2.bf16.msra.mxu1 %v19032_v51  ;;  %12193 = vmatprep.subr.bf16.mxu0 %v19037_v37  ;;  %v19084_v37 = vld [vmem:[%s24171_s3 + $0x1484] ss:$12 sps:$4 sm:$0xff]  }
 0x563   : > { %12232 = vmatprep.subr.bf16.mxu1 %v19040_v9  ;;  %v19088_v9 = vld [vmem:[%s24171_s3 + $0x146c] ss:$12 sps:$4 sm:$0xff]  }
 0x565   : > { %12194 = vmatpush2.bf16.msra.mxu0 %v19035_v52  ;;  %v19087_v52 = vld [vmem:[%s24171_s3 + $0x1214] ss:$12 sps:$4 sm:$0xff]  }
 0x566   : > { %12233 = vmatpush2.bf16.msra.mxu1 %v19038_v10  ;;  %12195 = vmatprep.subr.bf16.mxu0 %v19043_v54  ;;  %v19089_v10 = vld [vmem:[%s24171_s3 + $0x13ac] ss:$12 sps:$4 sm:$0xff]   ;;  %v19090_v54 = vld [vmem:[%s24171_s3 + $0x12bc] ss:$12 sps:$4 sm:$0xff]  }
 0x567   : > { %12234 = vmatprep.subr.bf16.mxu1 %v19046_v55  ;;  %v19092_v55 = vld [vmem:[%s24171_s3 + $0x1454] ss:$12 sps:$4 sm:$0xff]  }
 0x569   : > { %12196 = vmatpush2.bf16.msra.mxu0 %v19041_v8  ;;  %v19091_v8 = vld [vmem:[%s24171_s3 + $0x11fc] ss:$12 sps:$4 sm:$0xff]  }
 0x56a   : > { %12235 = vmatpush2.bf16.msra.mxu1 %v19044_v31  ;;  %12197 = vmatprep.subr.bf16.mxu0 %v19049_v29  ;;  %v19093_v31 = vld [vmem:[%s24171_s3 + $0x1394] ss:$12 sps:$4 sm:$0xff]   ;;  %v19094_v29 = vld [vmem:[%s24171_s3 + $0x12a4] ss:$12 sps:$4 sm:$0xff]  }
 0x56b   : > { %12236 = vmatprep.subr.bf16.mxu1 %v19052_v0  ;;  %v19096_v0 = vld [vmem:[%s24171_s3 + $0x143c] ss:$12 sps:$4 sm:$0xff]  }
 0x56d   : > { %12198 = vmatpush2.bf16.msra.mxu0 %v19047_v59  ;;  %v19095_v59 = vld [vmem:[%s24171_s3 + $0x11e4] ss:$12 sps:$4 sm:$0xff]  }
 0x56e   : > { %12237 = vmatpush2.bf16.msra.mxu1 %v19050_v47  ;;  %12199 = vmatprep.subr.bf16.mxu0 %v19055_v61  ;;  %v19097_v47 = vld [vmem:[%s24171_s3 + $0x137c] ss:$12 sps:$4 sm:$0xff]   ;;  %v19098_v61 = vld [vmem:[%s24171_s3 + $0x164c] ss:$12 sps:$4 sm:$0xff]  }
 0x56f   : > { %12238 = vmatprep.subr.bf16.mxu1 %v19058_v60  ;;  %v19099_v60 = vld [vmem:[%s24171_s3 + $0x1424] ss:$12 sps:$4 sm:$0xff]  }
 0x571   : > { %12200 = vmatpush2.bf16.msra.mxu0 %v19053_v13  ;;  %v19100_v13 = vld [vmem:[%s24171_s3 + $0x158c] ss:$12 sps:$4 sm:$0xff]  }
 0x572   : > { %12239 = vmatpush2.bf16.msra.mxu1 %v19056_v63  ;;  %12201 = vmatprep.subr.bf16.mxu0 %v19061_v4  ;;  %v19101_v63 = vld [vmem:[%s24171_s3 + $0x1364] ss:$12 sps:$4 sm:$0xff]   ;;  %v19102_v4 = vld [vmem:[%s24171_s3 + $0x1634] ss:$12 sps:$4 sm:$0xff]  }
 0x573   : > { %12240 = vmatprep.subr.bf16.mxu1 %v19064_v2  ;;  %v19104_v2 = vld [vmem:[%s24171_s3 + $0x17cc] ss:$0 sps:$4 sm:$0xff]  }
 0x575   : > { %12202 = vmatpush2.bf16.msra.mxu0 %v19059_v35 }
 0x576   : > { %12241 = vmatpush2.bf16.msra.mxu1 %v19062_v21  ;;  %17689 = vmatprep.subr.bf16.mxu0 %v19065_v46  ;;  %v19103_v21 = vld [vmem:[%s24171_s3 + $0x1574] ss:$12 sps:$4 sm:$0xff]  }
 0x577   : > { %12242 = vmatprep.subr.bf16.mxu1 %v19068_v50  ;;  %v19105_v50 = vld [vmem:[%s24171_s3 + $0x170c] ss:$12 sps:$4 sm:$0xff]  }
 0x578   : > { %v10598_v14 = vpop.f32.mrf.mxu0  ;;  %12204 = vmatmul.mubr.bf16.vlgmr.msra.gmra.mxu0 %v21308_v19 }
 0x579   : > { %v10599_v5 = vadd.f32 %v10598_v14, %v22955_v56  ;;  %17690 = vmatpush3.bf16.msra.mxu0 %v19069_v62  ;;  %12285 = vmatprep.mubr.bf16.mxu0 %v21089_v17  ;;  %v19074_v56 = vld [vmem:[%s24171_s3 + $0x131c] ss:$12 sps:$4 sm:$0xff]   ;;  %v19076_v17 = vld [vmem:[%s24171_s3 + $0x14b4] ss:$12 sps:$4 sm:$0xff]  }
 0x57a   : > { %v10600_v20 = vpop.f32.mrf.mxu0  ;;  %12243 = vmatpush2.bf16.msra.mxu1 %v19066_v18  ;;  %17691 = vmatprep.subr.bf16.mxu0 %v19070_v38 }
 0x57b   : > { %v10601_v6 = vadd.f32 %v10600_v20, %v22968_v33  ;;  %17711 = vmatprep.subr.bf16.mxu1 %v19072_v3  ;;  %v19107_v3 = vld [vmem:[%s24171_s3 + $0x155c] ss:$12 sps:$4 sm:$0xff]  }
 0x57c   : > { %v10602_v26 = vpop.f32.mrf.mxu0 }
 0x57d   : > { %v10639_v44 = vpop.f32.mrf.mxu1  ;;  %12245 = vmatmul.mubr.bf16.vlgmr.msra.gmra.mxu1 %v21327_v39  ;;  %17692 = vmatpush3.bf16.msra.mxu0 %v19071_v45  ;;  %v19110_v45 = vld [vmem:[%s24171_s3 + $0x1604] ss:$12 sps:$4 sm:$0xff]   ;;  %v19114_v26 = vld [vmem:[%s24171_s3 + $0x15ec] ss:$12 sps:$4 sm:$0xff]  }
 0x57e   : > { %v10640_v57 = vadd.f32 %v10639_v44, %v10599_v5  ;;  %v10603_v33 = vpop.f32.mrf.mxu0  ;;  %17712 = vmatpush3.bf16.msra.mxu1 %v19073_v27  ;;  %12325 = vmatprep.mubr.bf16.mxu1 %v21110_v23  ;;  %v19109_v5 = vld [vmem:[%s24171_s3 + $0x16f4] ss:$12 sps:$4 sm:$0xff]  }
 0x57f   : > { %v10641_v53 = vpop.f32.mrf.mxu1  ;;  %17693 = vmatprep.subr.bf16.mxu0 %v19074_v56  ;;  %17713 = vmatprep.subr.bf16.mxu1 %v19076_v17  ;;  %v19113_v17 = vld [vmem:[%s24171_s3 + $0x16dc] ss:$12 sps:$4 sm:$0xff]   ;;  %v19117_v33 = vld [vmem:[%s24171_s3 + $0x16c4] ss:$12 sps:$4 sm:$0xff]  }
 0x580   : > { %v23170_v43 = vmax.f32 %v9199_v24, %v10640_v57  ;;  %v10642_v23 = vadd.f32 %v10641_v53, %v10601_v6  ;;  %v19115_v57 = vld [vmem:[%s24171_s3 + $0x152c] ss:$12 sps:$4 sm:$0xff]   ;;  %v19119_v53 = vld [vmem:[%s24171_s3 + $0x1514] ss:$12 sps:$4 sm:$0xff]  }
 0x581   : > { %v10643_v16 = vpop.f32.mrf.mxu1  ;;  %17694 = vmatpush3.bf16.msra.mxu0 %v19075_v30  ;;  %v19116_v30 = vld [vmem:[%s24171_s3 + $0x1784] ss:$12 sps:$4 sm:$0xff]  }
 0x582   : > { %v23178_v51 = vmax.f32 %v9200_v40, %v10642_v23  ;;  %17714 = vmatpush3.bf16.msra.mxu1 %v19077_v7  ;;  %17695 = vmatprep.subr.bf16.mxu0 %v19078_v36  ;;  %v19086_v40 = vld [vmem:[%s24171_s3 + $0x12d4] ss:$12 sps:$4 sm:$0xff]   ;;  %v19120_v36 = vld [vmem:[%s24171_s3 + $0x176c] ss:$12 sps:$4 sm:$0xff]   ;;  %v19122_v23 = vld [vmem:[%s24171_s3 + $0x15bc] ss:$12 sps:$4 sm:$0xff]  }
 0x583   : > { %v10644_v24 = vpop.f32.mrf.mxu1  ;;  %17715 = vmatprep.subr.bf16.mxu1 %v19080_v41  ;;  %v19118_v7 = vld [vmem:[%s24171_s3 + $0x15d4] ss:$12 sps:$4 sm:$0xff]   ;;  %v19121_v41 = vld [vmem:[%s24171_s3 + $0x16ac] ss:$12 sps:$4 sm:$0xff]  }
 0x584   : > { %v19124_v16 = vld [vmem:[%s24171_s3 + $0x1754] ss:$12 sps:$4 sm:$0xff]   ;;  %v19128_v24 = vld [vmem:[%s24171_s3 + $0x173c] ss:$12 sps:$4 sm:$0xff]  }
 0x585   : > { %17696 = vmatpush3.bf16.msra.mxu0 %v19079_v49  ;;  %v19123_v49 = vld [vmem:[%s24171_s3 + $0x14fc] ss:$12 sps:$4 sm:$0xff]  }
 0x586   : > { %17716 = vmatpush3.bf16.msra.mxu1 %v19081_v58  ;;  %17697 = vmatprep.subr.bf16.mxu0 %v19082_v28  ;;  %v19125_v58 = vld [vmem:[%s24171_s3 + $0x1694] ss:$12 sps:$4 sm:$0xff]   ;;  %v19126_v28 = vld [vmem:[%s24171_s3 + $0x15a4] ss:$12 sps:$4 sm:$0xff]  }
 0x587   : > { %17717 = vmatprep.subr.bf16.mxu1 %v19084_v37  ;;  %v19127_v37 = vld [vmem:[%s24171_s3 + $0x14e4] ss:$12 sps:$4 sm:$0xff]  }
 0x589   : > { %17698 = vmatpush3.bf16.msra.mxu0 %v19083_v32  ;;  %v19129_v32 = vld [vmem:[%s24171_s3 + $0x167c] ss:$12 sps:$4 sm:$0xff]  }
 0x58a   : > { %17718 = vmatpush3.bf16.msra.mxu1 %v19085_v25  ;;  %17699 = vmatprep.subr.bf16.mxu0 %v19086_v40  ;;  %v19130_v25 = vld [vmem:[%s24171_s3 + $0x1724] ss:$12 sps:$4 sm:$0xff]  }
 0x58b   : > { %17719 = vmatprep.subr.bf16.mxu1 %v19088_v9  ;;  %v19131_v40 = vld [vmem:[%s24171_s3 + $0x1664] ss:$12 sps:$4 sm:$0xff]  }
 0x58d   : > { %17700 = vmatpush3.bf16.msra.mxu0 %v19087_v52 }
 0x58e   : > { %17720 = vmatpush3.bf16.msra.mxu1 %v19089_v10  ;;  %17701 = vmatprep.subr.bf16.mxu0 %v19090_v54 }
 0x58f   : > { %17721 = vmatprep.subr.bf16.mxu1 %v19092_v55 }
 0x591   : > { %17702 = vmatpush3.bf16.msra.mxu0 %v19091_v8 }
 0x592   : > { %17722 = vmatpush3.bf16.msra.mxu1 %v19093_v31  ;;  %17703 = vmatprep.subr.bf16.mxu0 %v19094_v29 }
 0x593   : > { %17723 = vmatprep.subr.bf16.mxu1 %v19096_v0 }
 0x595   : > { %17704 = vmatpush3.bf16.msra.mxu0 %v19095_v59 }
 0x596   : > { %17724 = vmatpush3.bf16.msra.mxu1 %v19097_v47  ;;  %17733 = vmatprep.subr.bf16.mxu0 %v19098_v61 }
 0x597   : > { %17725 = vmatprep.subr.bf16.mxu1 %v19099_v60 }
 0x598   : > { %v17617_v35 = vpop.f32.mrf.mxu0  ;;  %12286 = vmatmul.mubr.bf16.vlgmr.msra.gmra.mxu0 %v21096_v1  ;;  %v19106_v1 = vld [vmem:[%s24171_s3 + $0x161c] ss:$12 sps:$4 sm:$0xff]  }
 0x599   : > { %17734 = vmatpush3.bf16.msra.mxu0 %v19100_v13  ;;  %12365 = vmatprep.mubr.bf16.mxu0 %v21130_v42  ;;  %v19108_v42 = vld [vmem:[%s24171_s3 + $0x17b4] ss:$12 sps:$4 sm:$0xff]  }
 0x59a   : > { %v17618_v46 = vpop.f32.mrf.mxu0  ;;  %17726 = vmatpush3.bf16.msra.mxu1 %v19101_v63  ;;  %17735 = vmatprep.subr.bf16.mxu0 %v19102_v4 }
 0x59b   : > { %v17619_v62 = vadd.f32 %v17618_v46, %v17617_v35  ;;  %18020 = vmatprep.subr.msk.bf16.mxu1 %vm7261_vm3, %v19104_v2 }
 0x59c   : > { %v17620_v18 = vpop.f32.mrf.mxu0 }
 0x59d   : > { %v17639_v38 = vpop.f32.mrf.mxu1  ;;  %12326 = vmatmul.mubr.bf16.vlgmr.msra.gmra.mxu1 %v21118_v34  ;;  %17736 = vmatpush3.bf16.msra.mxu0 %v19103_v21  ;;  %v19112_v34 = vld [vmem:[%s24171_s3 + $0x179c] ss:$12 sps:$4 sm:$0xff]  }
 0x59e   : > { %v17621_v14 = vpop.f32.mrf.mxu0  ;;  %17756 = vmatpush3.bf16.msra.mxu1 %v19105_v50  ;;  %17089 = vmatprep.mubr.msk.bf16.mxu1 %vm4851_vm15, %v21145_v48  ;;  %v19111_v48 = vld [vmem:[%s24171_s3 + $0x1544] ss:$12 sps:$4 sm:$0xff]  }
 0x59f   : > { %v17640_v20 = vpop.f32.mrf.mxu1  ;;  %17737 = vmatprep.subr.bf16.mxu0 %v19106_v1  ;;  %17757 = vmatprep.subr.bf16.mxu1 %v19108_v42 }
 0x5a0   : > { %v17641_v27 = vadd.f32 %v17640_v20, %v17639_v38 }
 0x5a1   : > { %v17642_v6 = vpop.f32.mrf.mxu1  ;;  %17738 = vmatpush3.bf16.msra.mxu0 %v19107_v3 }
 0x5a2   : > { %v10721_v56 = vadd.f32 %v17641_v27, %v17619_v62  ;;  %17758 = vmatpush3.bf16.msra.mxu1 %v19109_v5  ;;  %17739 = vmatprep.subr.bf16.mxu0 %v19110_v45 }
 0x5a3   : > { %v17643_v44 = vpop.f32.mrf.mxu1  ;;  %17759 = vmatprep.subr.bf16.mxu1 %v19112_v34 }
 0x5a5   : > { %17740 = vmatpush3.bf16.msra.mxu0 %v19111_v48 }
 0x5a6   : > { %17760 = vmatpush3.bf16.msra.mxu1 %v19113_v17  ;;  %17741 = vmatprep.subr.bf16.mxu0 %v19114_v26 }
 0x5a7   : > { %17761 = vmatprep.subr.bf16.mxu1 %v19116_v30 }
 0x5a9   : > { %17742 = vmatpush3.bf16.msra.mxu0 %v19115_v57 }
 0x5aa   : > { %17762 = vmatpush3.bf16.msra.mxu1 %v19117_v33  ;;  %17743 = vmatprep.subr.bf16.mxu0 %v19118_v7 }
 0x5ab   : > { %17763 = vmatprep.subr.bf16.mxu1 %v19120_v36 }
 0x5ad   : > { %17744 = vmatpush3.bf16.msra.mxu0 %v19119_v53 }
 0x5ae   : > { %17764 = vmatpush3.bf16.msra.mxu1 %v19121_v41  ;;  %17745 = vmatprep.subr.bf16.mxu0 %v19122_v23 }
 0x5af   : > { %17765 = vmatprep.subr.bf16.mxu1 %v19124_v16 }
 0x5b1   : > { %17746 = vmatpush3.bf16.msra.mxu0 %v19123_v49 }
 0x5b2   : > { %17766 = vmatpush3.bf16.msra.mxu1 %v19125_v58  ;;  %17747 = vmatprep.subr.bf16.mxu0 %v19126_v28 }
 0x5b3   : > { %17767 = vmatprep.subr.bf16.mxu1 %v19128_v24 }
 0x5b5   : > { %17748 = vmatpush3.bf16.msra.mxu0 %v19127_v37 }
 0x5b6   : > { %17768 = vmatpush3.bf16.msra.mxu1 %v19129_v32 }
 0x5b7   : > { %17769 = vmatprep.subr.bf16.mxu1 %v19130_v25 }
 0x5b8   : > { %v17661_v9 = vpop.f32.mrf.mxu0  ;;  %12366 = vmatmul.mubr.bf16.vlgmr.msra.gmra.mxu0 %v21308_v19 }
 0x5b9   : > { %12471 = vmatprep.mubr.bf16.mxu0 %v19295_v15 }
 0x5ba   : > { %v17662_v52 = vpop.f32.mrf.mxu0  ;;  %17770 = vmatpush3.bf16.msra.mxu1 %v19131_v40 }
 0x5bb   : > { %v17663_v10 = vadd.f32 %v17662_v52, %v17661_v9 }
 0x5bc   : > { %v17664_v54 = vpop.f32.mrf.mxu0 }
 0x5bd   : > { %v10761_v55 = vadd.f32 %v17663_v10, %v10721_v56  ;;  %v17683_v8 = vpop.f32.mrf.mxu1  ;;  %12406 = vmatmul.mubr.bf16.vlgmr.msra.gmra.mxu1 %v21327_v39 }
 0x5be   : > { %v17665_v31 = vpop.f32.mrf.mxu0  ;;  %12521 = vmatprep.mubr.bf16.mxu1 %v19295_v15 }
 0x5bf   : > { %v17684_v29 = vpop.f32.mrf.mxu1 }
 0x5c0   : > { %v17685_v0 = vadd.f32 %v17684_v29, %v17683_v8 }
 0x5c1   : > { %v17686_v59 = vpop.f32.mrf.mxu1 }
 0x5c2   : > { %v10801_v47 = vadd.f32 %v17685_v0, %v10761_v55 }
 0x5c3   : > { %v17687_v61 = vpop.f32.mrf.mxu1 }
 0x5c4   : > { %v23346_v19 = vmax.f32 %v9201_v11, %v10801_v47 }
 0x5f8   : > { %v12123_v60 = vpop.f32.mrf.mxu0 }
 0x5fa   : > { %v12125_v13 = vpop.f32.mrf.mxu0 }
 0x5fc   : > { %v12127_v63 = vpop.f32.mrf.mxu0 }
 0x5fd   : > { %v12164_v4 = vpop.f32.mrf.mxu1 }
 0x5fe   : > { %v12128_v2 = vpop.f32.mrf.mxu0  ;;  %v12165_v50 = vadd.f32 %v12164_v4, %v12123_v60 }
 0x5ff   : > { %v12166_v35 = vpop.f32.mrf.mxu1 }
 0x600   : > { %v12167_v1 = vadd.f32 %v12166_v35, %v12125_v13 }
 0x601   : > { %v12168_v39 = vpop.f32.mrf.mxu1 }
 0x602   : > { %v17090_v39 = vld [vmem:[%s24170_s2 + $0x4] sm:$0xf] }
 0x603   : > { %v12169_v21 = vpop.f32.mrf.mxu1 }
 0x638   : > { %v12205_v46 = vpop.f32.mrf.mxu0 }
 0x639   : > { %v12206_v42 = vadd.f32 %v12205_v46, %v12165_v50 }
 0x63a   : > { %v12207_v62 = vpop.f32.mrf.mxu0 }
 0x63b   : > { %v12208_v3 = vadd.f32 %v12207_v62, %v12167_v1 }
 0x63c   : > { %v12209_v18 = vpop.f32.mrf.mxu0 }
 0x63d   : > { %v12246_v38 = vpop.f32.mrf.mxu1  ;;  %v17098_v18 = vld [vmem:[%s24170_s2 + $0xc] sm:$0xf] }
 0x63e   : > { %v12247_v14 = vadd.f32 %v12246_v38, %v12206_v42  ;;  %v12210_v12 = vpop.f32.mrf.mxu0 }
 0x63f   : > { %v12248_v22 = vpop.f32.mrf.mxu1 }
 0x640   : > { %v12413_v11 = vmax.f32 %v23170_v43, %v12247_v14  ;;  %v12249_v5 = vadd.f32 %v12248_v22, %v12208_v3  ;;  %v17095_v3 = vld [vmem:[%s24170_s2 + $0x8] sm:$0xf] }
 0x641   : > { %v12250_v45 = vpop.f32.mrf.mxu1 }
 0x642   : > { %v23349_v20 = vpack.c.bf16 %v12413_v11, %v12413_v11  ;;  %v12414_v34 = vmax.f32 %v23178_v51, %v12249_v5  ;;  %v12419_v51 = vld [vmem:[%s24170_s2] sm:$0xf] }
 0x643   : > { %v12251_v27 = vpop.f32.mrf.mxu1 }
 0x644   : > { %v23352_v6 = vpack.c.bf16 %v12414_v34, %v12414_v34  ;;  %12773 = vrot.lane.b32.xlu0 %v23349_v20, %s19320_s21  ;;  %12424 = vrot.lane.b32.xlu1 %v23349_v20, %s19294_s18  ;;  %v12484_v43 = vsel %vm348_vm2, %v23349_v20, 0 }
 0x646   : > { %17093 = vmatprep.subr.msk.bf16.mxu1 %vm348_vm2, %v23352_v6 }
 0x647   : > { %12504 = vmatpush1.bf16.msra.mxu1 %v12484_v43 }
 0x648   : > { %12899 = vrot.lane.b32.xlu0 %v23349_v20, %s19321_s14  ;;  %12532 = vrot.lane.b32.xlu1 %v23349_v20, %s19296_s19 }
 0x64a   : > { %17094 = vmatmul.mubr.msk.bf16.vlgmr.msra.gmra.mxu1 %vm12429_vm14, %v12419_v51 }
 0x64b   : > { %12637 = vmatprep.mubr.bf16.mxu1 %v19295_v15 }
 0x64c   : > { %13025 = vrot.lane.b32.xlu0 %v23349_v20, %s19301_s29  ;;  %12591 = vrot.lane.b32.xlu1 %v23349_v20, %s19297_s20 }
 0x650   : > { %13149 = vrot.lane.b32.xlu0 %v23349_v20, %s24186_s22  ;;  %12650 = vrot.lane.b32.xlu1 %v23349_v20, %s24187_s13 }
 0x654   : > { %13274 = vrot.lane.b32.xlu0 %v23349_v20, %s19322_s8  ;;  %12710 = vrot.lane.b32.xlu1 %v23349_v20, %s19323_s9 }
 0x658   : > { %v17705_v48 = vpop.f32.mrf.mxu0  ;;  %12426 = vrot.lane.b32.xlu0 %v23352_v6, %s19294_s18  ;;  %12836 = vrot.lane.b32.xlu1 %v23349_v20, %s19324_s16  ;;  %s24188_s18 = smov 91  }
 0x65a   : > { %v17706_v56 = vpop.f32.mrf.mxu0 }
 0x65b   : > { %v17707_v41 = vadd.f32 %v17706_v56, %v17705_v48 }
 0x65c   : > { %v17708_v17 = vpop.f32.mrf.mxu0  ;;  %12534 = vrot.lane.b32.xlu0 %v23352_v6, %s19296_s19  ;;  %12962 = vrot.lane.b32.xlu1 %v23349_v20, %s19325_s17  ;;  %s19327_s19 = smov 74  }
 0x65d   : > { %v17727_v26 = vpop.f32.mrf.mxu1 }
 0x65e   : > { %v17709_v44 = vpop.f32.mrf.mxu0 }
 0x65f   : > { %v17728_v30 = vpop.f32.mrf.mxu1 }
 0x660   : > { %12593 = vrot.lane.b32.xlu0 %v23352_v6, %s19297_s20  ;;  %13087 = vrot.lane.b32.xlu1 %v23349_v20, %s24188_s18  ;;  %v17729_v36 = vadd.f32 %v17728_v30, %v17727_v26  ;;  %s19328_s20 = smov 73  }
 0x661   : > { %v17730_v57 = vpop.f32.mrf.mxu1 }
 0x662   : > { %v12328_v58 = vadd.f32 %v17729_v36, %v17707_v41  ;;  %v17104_v41 = vld [vmem:[%s24170_s2 + $0x14] sm:$0xf] }
 0x663   : > { %v17731_v33 = vpop.f32.mrf.mxu1 }
 0x664   : > { %12652 = vrot.lane.b32.xlu0 %v23352_v6, %s24187_s13  ;;  %13211 = vrot.lane.b32.xlu1 %v23349_v20, %s19326_s23  ;;  %s19329_s13 = smov 72  }
 0x668   : > { %12712 = vrot.lane.b32.xlu0 %v23352_v6, %s19323_s9  ;;  %12775 = vrot.lane.b32.xlu1 %v23352_v6, %s19320_s21 }
 0x66c   : > { %12838 = vrot.lane.b32.xlu0 %v23352_v6, %s19324_s16  ;;  %12901 = vrot.lane.b32.xlu1 %v23352_v6, %s19321_s14 }
 0x670   : > { %12964 = vrot.lane.b32.xlu0 %v23352_v6, %s19325_s17  ;;  %13027 = vrot.lane.b32.xlu1 %v23352_v6, %s19301_s29 }
 0x674   : > { %13089 = vrot.lane.b32.xlu0 %v23352_v6, %s24188_s18  ;;  %13151 = vrot.lane.b32.xlu1 %v23352_v6, %s24186_s22 }
 0x678   : > { %v17749_v7 = vpop.f32.mrf.mxu0  ;;  %13213 = vrot.lane.b32.xlu0 %v23352_v6, %s19326_s23  ;;  %13276 = vrot.lane.b32.xlu1 %v23352_v6, %s19322_s8 }
 0x67a   : > { %v17750_v53 = vpop.f32.mrf.mxu0 }
 0x67b   : > { %v17751_v23 = vadd.f32 %v17750_v53, %v17749_v7 }
 0x67c   : > { %v17752_v16 = vpop.f32.mrf.mxu0  ;;  %13339 = vrot.lane.b32.xlu0 %v23352_v6, %s19327_s19 }
 0x67d   : > { %v17771_v49 = vpop.f32.mrf.mxu1  ;;  %v12368_v37 = vadd.f32 %v17751_v23, %v12328_v58  ;;  %v17107_v23 = vld [vmem:[%s24170_s2 + $0x18] sm:$0xf] }
 0x67e   : > { %v17753_v28 = vpop.f32.mrf.mxu0 }
 0x67f   : > { %v17772_v24 = vpop.f32.mrf.mxu1 }
 0x680   : > { %v17773_v32 = vadd.f32 %v17772_v24, %v17771_v49 }
 0x681   : > { %v17774_v25 = vpop.f32.mrf.mxu1 }
 0x682   : > { %v12408_v40 = vadd.f32 %v17773_v32, %v12368_v37 }
 0x683   : > { %v17775_v9 = vpop.f32.mrf.mxu1 }
 0x684   : > { %v12415_v52 = vmax.f32 %v23346_v19, %v12408_v40 }
 0x686   : > { %v23422_v10 = vpack.c.bf16 %v12415_v52, %v12415_v52  ;;  %v17110_v52 = vld [vmem:[%s24170_s2 + $0x1c] sm:$0xf] }
 0x688   : > { %12777 = vrot.lane.b32.xlu0 %v23422_v10, %s19320_s21  ;;  %12714 = vrot.lane.b32.xlu1 %v23422_v10, %s19323_s9  ;;  %s19330_s21 = smov 71   ;;  %s19334_s9 = smov 53  }
 0x68c   : > { %13400 = vrot.lane.b32.xlu0 %v23349_v20, %s19328_s20  ;;  %13337 = vrot.lane.b32.xlu1 %v23349_v20, %s19327_s19 }
 0x690   : > { %12903 = vrot.lane.b32.xlu0 %v23422_v10, %s19321_s14  ;;  %12840 = vrot.lane.b32.xlu1 %v23422_v10, %s19324_s16  ;;  %s19331_s14 = smov 70  }
 0x694   : > { %13465 = vrot.lane.b32.xlu0 %v23352_v6, %s19329_s13  ;;  %13402 = vrot.lane.b32.xlu1 %v23352_v6, %s19328_s20 }
 0x698   : > { %13029 = vrot.lane.b32.xlu0 %v23422_v10, %s19301_s29  ;;  %12966 = vrot.lane.b32.xlu1 %v23422_v10, %s19325_s17  ;;  %s24189_s29 = smov 56  }
 0x69c   : > { %13526 = vrot.lane.b32.xlu0 %v23349_v20, %s19330_s21  ;;  %13463 = vrot.lane.b32.xlu1 %v23349_v20, %s19329_s13 }
 0x6a0   : > { %13153 = vrot.lane.b32.xlu0 %v23422_v10, %s24186_s22  ;;  %13091 = vrot.lane.b32.xlu1 %v23422_v10, %s24188_s18  ;;  %s19332_s22 = smov 55  }
 0x6a4   : > { %13591 = vrot.lane.b32.xlu0 %v23352_v6, %s19331_s14  ;;  %13528 = vrot.lane.b32.xlu1 %v23352_v6, %s19330_s21 }
 0x6a8   : > { %13278 = vrot.lane.b32.xlu0 %v23422_v10, %s19322_s8  ;;  %13215 = vrot.lane.b32.xlu1 %v23422_v10, %s19326_s23  ;;  %s19333_s8 = smov 54  }
 0x6ac   : > { %13652 = vrot.lane.b32.xlu0 %v23349_v20, %s24189_s29  ;;  %13589 = vrot.lane.b32.xlu1 %v23349_v20, %s19331_s14 }
 0x6b0   : > { %13404 = vrot.lane.b32.xlu0 %v23422_v10, %s19328_s20  ;;  %13341 = vrot.lane.b32.xlu1 %v23422_v10, %s19327_s19 }
 0x6b4   : > { %13716 = vrot.lane.b32.xlu0 %v23352_v6, %s19332_s22  ;;  %13654 = vrot.lane.b32.xlu1 %v23352_v6, %s24189_s29 }
 0x6b6   : > { %v23462_v54 = vpop.permute.xlu0 %12773  ;;  %v12425_v55 = vpop.permute.xlu1 %12424 }
 0x6b8   : > { %13530 = vrot.lane.b32.xlu0 %v23422_v10, %s19330_s21  ;;  %13467 = vrot.lane.b32.xlu1 %v23422_v10, %s19329_s13 }
 0x6ba   : > { %v23466_v8 = vpop.permute.xlu0 %12899  ;;  %v12533_v31 = vpop.permute.xlu1 %12532 }
 0x6bc   : > { %13777 = vrot.lane.b32.xlu0 %v23349_v20, %s19333_s8  ;;  %13714 = vrot.lane.b32.xlu1 %v23349_v20, %s19332_s22 }
 0x6be   : > { %v23470_v29 = vpop.permute.xlu0 %13025  ;;  %v12592_v0 = vpop.permute.xlu1 %12591 }
 0x6c0   : > { %13656 = vrot.lane.b32.xlu0 %v23422_v10, %s24189_s29  ;;  %13593 = vrot.lane.b32.xlu1 %v23422_v10, %s19331_s14 }
 0x6c2   : > { %v23475_v59 = vpop.permute.xlu0 %13149  ;;  %v12651_v47 = vpop.permute.xlu1 %12650 }
 0x6c4   : > { %13842 = vrot.lane.b32.xlu0 %v23352_v6, %s19334_s9  ;;  %13779 = vrot.lane.b32.xlu1 %v23352_v6, %s19333_s8 }
 0x6c6   : > { %v23479_v61 = vpop.permute.xlu0 %13274  ;;  %v12711_v19 = vpop.permute.xlu1 %12710 }
 0x6c8   : > { %13781 = vrot.lane.b32.xlu0 %v23422_v10, %s19333_s8  ;;  %13718 = vrot.lane.b32.xlu1 %v23422_v10, %s19332_s22  ;;  %s269_s22 = sand.u32 1, %s19283_s25   ;;  %s17422_s8 = sshll.u32 %s19400_s28, 4 }
 0x6c9   : > { %s24127_s18 = scalar_lea.hbm %s24175_s7, %s17422_s8  ;;  %s15351_s23 = scalar_lea.sflag [#allocation3], %s269_s22 }
 0x6ca   : > { %v12427_v60 = vpop.permute.xlu0 %12426  ;;  %v23483_v13 = vpop.permute.xlu1 %12836  ;;  %s19338_s28 = smov [#allocation2]  }
 0x6cb   : > { %v12428_v63 = vsel %vm335_vm1, %v12425_v55, %v12427_v60  ;;  %17091 = vmatprep.subr.msk.bf16.mxu0 %vm348_vm2, %v12427_v60  ;;  %vm12716_vm1 = vcmask 900096   ;;  %s19235_s20 = sshll.u32 %s19338_s28, 4  ;;  %s19236_s20 = int_to_ptr.vmem [resolvable:$false] %s19235_s20 }
 0x6cc   : > { %v12434_v4 = vsel %vm348_vm2, %v12428_v63, 0  ;;  %13903 = vrot.lane.b32.xlu0 %v23349_v20, %s19335_s15  ;;  %13840 = vrot.lane.b32.xlu1 %v23349_v20, %s19334_s9  ;;  %v17101_v20 = vld [vmem:[%s24170_s2 + $0x10] sm:$0xf]  ;;  %s19237_s13 = scalar_lea.vmem %s19236_s20, 32 }
 0x6cd   : > { %12454 = vmatpush1.bf16.msra.mxu0 %v12434_v4  ;;  %v17119_v4 = vld [vmem:[%s24170_s2 + $0x28] sm:$0xf] }
 0x6ce   : > { %v12535_v2 = vpop.permute.xlu0 %12534  ;;  %v23490_v35 = vpop.permute.xlu1 %12962 }
 0x6cf   : > { %v12536_v21 = vsel %vm748_vm4, %v12533_v31, %v12535_v2  ;;  %17096 = vmatprep.subr.msk.bf16.mxu0 %vm348_vm2, %v12535_v2  ;;  %vm12779_vm4 = vcmask 891904  }
 0x6d0   : > { %v12541_v46 = vsel %vm348_vm2, %v12536_v21, 0  ;;  %13907 = vrot.lane.b32.xlu0 %v23422_v10, %s19335_s15  ;;  %13844 = vrot.lane.b32.xlu1 %v23422_v10, %s19334_s9  ;;  %v17113_v10 = vld [vmem:[%s24170_s2 + $0x20] sm:$0xf]  ;;  %s270_s9 = scalar_lea.vmem [#allocation2], %s269_s22 }
 0x6d1   : > { %17092 = vmatmul.mubr.msk.bf16.vlgmr.msra.gmra.mxu0 %vm12429_vm14, %v17090_v39 }
 0x6d2   : > { %12561 = vmatpush1.bf16.msra.mxu0 %v12541_v46  ;;  %v12594_v50 = vpop.permute.xlu0 %12593  ;;  %v23501_v62 = vpop.permute.xlu1 %13087  ;;  %12578 = vmatprep.mubr.bf16.mxu0 %v19295_v15 }
 0x6d3   : > { %v12595_v1 = vsel %vm973_vm5, %v12592_v0, %v12594_v50  ;;  %17099 = vmatprep.subr.msk.bf16.mxu1 %vm348_vm2, %v12594_v50  ;;  %vm12842_vm5 = vcmask 883712  }
 0x6d4   : > { %v12600_v42 = vsel %vm348_vm2, %v12595_v1, 0  ;;  %13905 = vrot.lane.b32.xlu1 %v23352_v6, %s19335_s15  ;;  %s15363_s15 = sshll.u32 %s270_s9, 4  ;;  %s24129_s15 = int_to_ptr.vmem [resolvable:$true] %s15363_s15 }
 0x6d5   : > { %12620 = vmatpush1.bf16.msra.mxu1 %v12600_v42  ;;  %s19231_s19 = scalar_lea.vmem %s24129_s15, 16  ;;  %p19238_p0 = scmp.lt.s32.totalorder %s24129_s15, %s19236_s20 }
 0x6d6   : > { %v12653_v38 = vpop.permute.xlu0 %12652  ;;  %v23517_v22 = vpop.permute.xlu1 %13211  ;;  %p19232_p11 = scmp.ne.s32.totalorder %s24129_s15, %s19231_s19  ;;  %p19239_p1 = scmp.lt.s32.totalorder %s19237_s13, %s19231_s19 }
 0x6d7   : > { %v12654_v14 = vsel %vm1198_vm6, %v12651_v47, %v12653_v38  ;;  %17102 = vmatprep.subr.msk.bf16.mxu0 %vm348_vm2, %v12653_v38  ;;  %vm12905_vm6 = vcmask 875520   ;;  %v17125_v38 = vld [vmem:[%s24170_s2 + $0x30] sm:$0xf] }
 0x6d8   : > { %v12659_v12 = vsel %vm348_vm2, %v12654_v14, 0  ;;  %17100 = vmatmul.mubr.msk.bf16.vlgmr.msra.gmra.mxu1 %vm12429_vm14, %v17098_v18  ;;  %p19233_p12 = pnand %p19232_p11, %p19417_p5  ;;  %p19240_p2 = por %p19239_p1, %p19238_p0 }
 0x6d9   : > { %17097 = vmatmul.mubr.msk.bf16.vlgmr.msra.gmra.mxu0 %vm12429_vm14, %v17095_v3  ;;  %12760 = vmatprep.mubr.bf16.mxu1 %v19295_v15 }
 0x6da   : > { %12679 = vmatpush1.bf16.msra.mxu0 %v12659_v12  ;;  %v12713_v11 = vpop.permute.xlu0 %12712  ;;  %12696 = vmatprep.mubr.bf16.mxu0 %v19295_v15  ;;  %v12776_v5 = vpop.permute.xlu1 %12775  ;;  %p19234_p13 = pneg %p19233_p12 }
 0x6db   : > { %v12717_v26 = vsel %vm12716_vm1, %v12711_v19, %v12713_v11  ;;  %v12780_v44 = vsel %vm12779_vm4, %v23462_v54, %v12776_v5 }
 0x6dc   : > { %v12723_v36 = vsel %vm348_vm2, %v12717_v26, 0  ;;  %v12786_v53 = vsel %vm348_vm2, %v12780_v44, 0  ;;  %p19241_p3 = pnand %p19240_p2, %p19234_p13 }
 0x6de   : > { %v12839_v45 = vpop.permute.xlu0 %12838  ;;  %v12902_v34 = vpop.permute.xlu1 %12901 }
 0x6df   : > { %v12843_v58 = vsel %vm12842_vm5, %v23483_v13, %v12839_v45  ;;  %v12906_v28 = vsel %vm12905_vm6, %v23466_v8, %v12902_v34 }
 0x6e0   : > { %v12849_v40 = vsel %vm348_vm2, %v12843_v58, 0  ;;  %v12912_v9 = vsel %vm348_vm2, %v12906_v28, 0 }
 0x6e1   : > { %17103 = vmatmul.mubr.msk.bf16.vlgmr.msra.gmra.mxu0 %vm12429_vm14, %v17101_v20 }
 0x6e2   : > { %12823 = vmatprep.mubr.bf16.mxu0 %v19295_v15  ;;  %v12965_v27 = vpop.permute.xlu0 %12964  ;;  %v13028_v6 = vpop.permute.xlu1 %13027 }
 0x6e3   : > { %v12969_v8 = vsel %vm12968_vm7, %v23490_v35, %v12965_v27  ;;  %v13031_v31 = vsel %vm1889_vm9, %v23470_v29, %v13028_v6  ;;  %v17116_v29 = vld [vmem:[%s24170_s2 + $0x24] sm:$0xf] }
 0x6e4   : > { %v12975_v13 = vsel %vm348_vm2, %v12969_v8, 0  ;;  %v13037_v63 = vsel %vm348_vm2, %v13031_v31, 0 }
 0x6e6   : > { %v23528_v43 = vpop.permute.xlu0 %13089  ;;  %v23530_v51 = vpop.permute.xlu1 %13151 }
 0x6e7   : > { %v13093_v39 = vsel %vm2117_vm10, %v23501_v62, %v23528_v43  ;;  %v13155_v21 = vsel %vm2345_vm11, %v23475_v59, %v23530_v51  ;;  %v17122_v59 = vld [vmem:[%s24170_s2 + $0x2c] sm:$0xf] }
 0x6e8   : > { %v13099_v18 = vsel %vm348_vm2, %v13093_v39, 0  ;;  %v13161_v62 = vsel %vm348_vm2, %v13155_v21, 0 }
 0x6ea   : > { %v23532_v48 = vpop.permute.xlu0 %13213  ;;  %v23534_v56 = vpop.permute.xlu1 %13276 }
 0x6ee   : > { %v23536_v17 = vpop.permute.xlu0 %13339 }
 0x6fa   : > { %v12778_v30 = vpop.permute.xlu0 %12777  ;;  %v12715_v57 = vpop.permute.xlu1 %12714 }
 0x6fb   : > { %v12781_v33 = vsel %vm12779_vm4, %v12776_v5, %v12778_v30  ;;  %v12718_v7 = vsel %vm12716_vm1, %v12713_v11, %v12715_v57  ;;  %vm13595_vm1 = vcmask 572416   ;;  %vm13783_vm4 = vcmask 441344  }
 0x6fc   : > { %17105 = vmatprep.subr.msk.bf16.mxu1 %vm348_vm2, %v12718_v7  ;;  %17108 = vmatprep.subr.msk.bf16.mxu0 %vm348_vm2, %v12781_v33 }
 0x6fd   : > { %12743 = vmatpush1.bf16.msra.mxu1 %v12723_v36  ;;  %12806 = vmatpush1.bf16.msra.mxu0 %v12786_v53 }
 0x6fe   : > { %v23549_v16 = vpop.permute.xlu0 %13400  ;;  %v23551_v49 = vpop.permute.xlu1 %13337 }
 0x700   : > { %17106 = vmatmul.mubr.msk.bf16.vlgmr.msra.gmra.mxu1 %vm12429_vm14, %v17104_v41  ;;  %17109 = vmatmul.mubr.msk.bf16.vlgmr.msra.gmra.mxu0 %vm12429_vm14, %v17107_v23 }
 0x701   : > { %12886 = vmatprep.mubr.bf16.mxu1 %v19295_v15  ;;  %12949 = vmatprep.mubr.bf16.mxu0 %v19295_v15 }
 0x702   : > { %v12904_v24 = vpop.permute.xlu0 %12903  ;;  %v12841_v37 = vpop.permute.xlu1 %12840 }
 0x703   : > { %v12907_v32 = vsel %vm12905_vm6, %v12902_v34, %v12904_v24  ;;  %v12844_v25 = vsel %vm12842_vm5, %v12839_v45, %v12841_v37  ;;  %vm13846_vm5 = vcmask 433152   ;;  %vm13909_vm6 = vcmask 424960  }
 0x704   : > { %17111 = vmatprep.subr.msk.bf16.mxu1 %vm348_vm2, %v12844_v25  ;;  %17114 = vmatprep.subr.msk.bf16.mxu0 %vm348_vm2, %v12907_v32 }
 0x705   : > { %12869 = vmatpush1.bf16.msra.mxu1 %v12849_v40  ;;  %12932 = vmatpush1.bf16.msra.mxu0 %v12912_v9 }
 0x706   : > { %v23569_v54 = vpop.permute.xlu0 %13465  ;;  %v23571_v55 = vpop.permute.xlu1 %13402 }
 0x707   : > { %v13407_v57 = vsel %vm13406_vm8, %v23549_v16, %v23571_v55  ;;  %v17134_v16 = vld [vmem:[%s24170_s2 + $0x3c] sm:$0xf] }
 0x708   : > { %17112 = vmatmul.mubr.msk.bf16.vlgmr.msra.gmra.mxu1 %vm12429_vm14, %v17110_v52  ;;  %17115 = vmatmul.mubr.msk.bf16.vlgmr.msra.gmra.mxu0 %vm12429_vm14, %v17113_v10  ;;  %v13413_v23 = vsel %vm348_vm2, %v13407_v57, 0  ;;  %v17140_v10 = vld [vmem:[%s24170_s2 + $0x44] sm:$0xf]  ;;  %v19136_v57 = vld [vmem:[%s24172_s4 + $0x70] sm:$0xff]  }
 0x709   : > { %13012 = vmatprep.mubr.bf16.mxu1 %v19295_v15  ;;  %13074 = vmatprep.mubr.bf16.mxu0 %v19295_v15 }
 0x70a   : > { %v13030_v0 = vpop.permute.xlu0 %13029  ;;  %v12967_v47 = vpop.permute.xlu1 %12966 }
 0x70b   : > { %v13032_v19 = vsel %vm1889_vm9, %v13028_v6, %v13030_v0  ;;  %v12970_v60 = vsel %vm12968_vm7, %v12965_v27, %v12967_v47  ;;  %vm13217_vm9 = vcmask 728064   ;;  %v23621_v12 = vpop.f32.mrf.mxu1 }
 0x70c   : > { %17117 = vmatprep.subr.msk.bf16.mxu1 %vm348_vm2, %v12970_v60  ;;  %17120 = vmatprep.subr.msk.bf16.mxu0 %vm348_vm2, %v13032_v19  ;;  %v13218_v11 = vsel %vm13217_vm9, %v23517_v22, %v23532_v48 }
 0x70d   : > { %12995 = vmatpush1.bf16.msra.mxu1 %v12975_v13  ;;  %13057 = vmatpush1.bf16.msra.mxu0 %v13037_v63  ;;  %v23631_v45 = vpop.f32.mrf.mxu1 }
 0x70e   : > { %v23591_v2 = vpop.permute.xlu0 %13526  ;;  %v23593_v35 = vpop.permute.xlu1 %13463 }
 0x70f   : > { %v13470_v28 = vsel %vm13469_vm12, %v23593_v35, %v23569_v54 }
 0x710   : > { %17118 = vmatmul.mubr.msk.bf16.vlgmr.msra.gmra.mxu1 %vm12429_vm14, %v17116_v29  ;;  %17121 = vmatmul.mubr.msk.bf16.vlgmr.msra.gmra.mxu0 %vm12429_vm14, %v17119_v4  ;;  %v13476_v9 = vsel %vm348_vm2, %v13470_v28, 0  ;;  %v17146_v4 = vld [vmem:[%s24170_s2 + $0x4c] sm:$0xf]  ;;  %v19147_v28 = vld [vmem:[%s24172_s4 + $0x9c] sm:$0xff]  }
 0x711   : > { %13136 = vmatprep.mubr.bf16.mxu1 %v19295_v15  ;;  %13198 = vmatprep.mubr.bf16.mxu0 %v19295_v15 }
 0x712   : > { %v13154_v46 = vpop.permute.xlu0 %13153  ;;  %v13092_v50 = vpop.permute.xlu1 %13091 }
 0x713   : > { %v13156_v1 = vsel %vm2345_vm11, %v23530_v51, %v13154_v46  ;;  %v13094_v42 = vsel %vm2117_vm10, %v23528_v43, %v13092_v50  ;;  %vm13280_vm10 = vcmask 719872   ;;  %v12527_v43 = vpop.f32.mrf.mxu1  ;;  %v13224_v51 = vsel %vm348_vm2, %v13218_v11, 0 }
 0x714   : > { %17123 = vmatprep.subr.msk.bf16.mxu1 %vm348_vm2, %v13094_v42  ;;  %17126 = vmatprep.subr.msk.bf16.mxu0 %vm348_vm2, %v13156_v1  ;;  %v13281_v5 = vsel %vm13280_vm10, %v23479_v61, %v23534_v56  ;;  %v17128_v61 = vld [vmem:[%s24170_s2 + $0x34] sm:$0xf]  ;;  %vm13343_vm11 = vcmask 605184  }
 0x715   : > { %13119 = vmatpush1.bf16.msra.mxu1 %v13099_v18  ;;  %13181 = vmatpush1.bf16.msra.mxu0 %v13161_v62  ;;  %v13287_v22 = vsel %vm348_vm2, %v13281_v5, 0  ;;  %v13344_v30 = vsel %vm13343_vm11, %v23551_v49, %v23536_v17  ;;  %v17137_v49 = vld [vmem:[%s24170_s2 + $0x40] sm:$0xf] }
 0x716   : > { %v23619_v3 = vpop.permute.xlu0 %13591  ;;  %v13529_v14 = vpop.permute.xlu1 %13528  ;;  %v13350_v41 = vsel %vm348_vm2, %v13344_v30, 0  ;;  %v19135_v30 = vld [vmem:[%s24172_s4 + $0xb4] sm:$0xff]  }
 0x717   : > { %v13533_v24 = vsel %vm13532_vm13, %v23591_v2, %v13529_v14  ;;  %v17149_v2 = vld [vmem:[%s24170_s2 + $0x50] sm:$0xf] }
 0x718   : > { %17124 = vmatmul.mubr.msk.bf16.vlgmr.msra.gmra.mxu1 %vm12429_vm14, %v17122_v59  ;;  %17127 = vmatmul.mubr.msk.bf16.vlgmr.msra.gmra.mxu0 %vm12429_vm14, %v17125_v38  ;;  %v13539_v52 = vsel %vm348_vm2, %v13533_v24, 0  ;;  %v17152_v38 = vld [vmem:[%s24170_s2 + $0x54] sm:$0xf]  ;;  %v19148_v24 = vld [vmem:[%s24172_s4 + $0x58] sm:$0xff]  }
 0x719   : > { %13261 = vmatprep.mubr.bf16.mxu1 %v19295_v15  ;;  %13324 = vmatprep.mubr.bf16.mxu0 %v19295_v15 }
 0x71a   : > { %v13279_v20 = vpop.permute.xlu0 %13278  ;;  %v13216_v34 = vpop.permute.xlu1 %13215 }
 0x71b   : > { %v13282_v27 = vsel %vm13280_vm10, %v23534_v56, %v13279_v20  ;;  %v13219_v6 = vsel %vm13217_vm9, %v23532_v48, %v13216_v34  ;;  %v17131_v56 = vld [vmem:[%s24170_s2 + $0x38] sm:$0xf]  ;;  %v12528_v48 = vpop.f32.mrf.mxu1 }
 0x71c   : > { %17129 = vmatprep.subr.msk.bf16.mxu1 %vm348_vm2, %v13219_v6  ;;  %17132 = vmatprep.subr.msk.bf16.mxu0 %vm348_vm2, %v13282_v27  ;;  %v17158_v6 = vld [vmem:[%s24170_s2 + $0x5c] sm:$0xf]  ;;  %v19132_v48 = vld [vmem:[%s24172_s4 + $0x78] ss:$0 sps:$4 sm:$0xff]  }
 0x71d   : > { %13244 = vmatpush1.bf16.msra.mxu1 %v13224_v51  ;;  %13307 = vmatpush1.bf16.msra.mxu0 %v13287_v22 }
 0x71e   : > { %v13653_v26 = vpop.permute.xlu0 %13652  ;;  %v13590_v44 = vpop.permute.xlu1 %13589 }
 0x71f   : > { %v13596_v31 = vsel %vm13595_vm1, %v13590_v44, %v23619_v3  ;;  %v19134_v44 = vld [vmem:[%s24172_s4 + $0x38] sm:$0xff]  }
 0x720   : > { %17130 = vmatmul.mubr.msk.bf16.vlgmr.msra.gmra.mxu1 %vm12429_vm14, %v17128_v61  ;;  %17133 = vmatmul.mubr.msk.bf16.vlgmr.msra.gmra.mxu0 %vm12429_vm14, %v17131_v56  ;;  %v13602_v63 = vsel %vm348_vm2, %v13596_v31, 0  ;;  %v19159_v31 = vld [vmem:[%s24172_s4 + $0x84] sm:$0xff]  }
 0x721   : > { %13387 = vmatprep.mubr.bf16.mxu1 %v19295_v15  ;;  %13450 = vmatprep.mubr.bf16.mxu0 %v19295_v15 }
 0x722   : > { %v13405_v33 = vpop.permute.xlu0 %13404  ;;  %v13342_v7 = vpop.permute.xlu1 %13341 }
 0x723   : > { %v13408_v36 = vsel %vm13406_vm8, %v23571_v55, %v13405_v33  ;;  %v13345_v53 = vsel %vm13343_vm11, %v23536_v17, %v13342_v7  ;;  %v17143_v55 = vld [vmem:[%s24170_s2 + $0x48] sm:$0xf]  ;;  %v19137_v33 = vld [vmem:[%s24172_s4 + $0xec] sm:$0xff]  }
 0x724   : > { %17135 = vmatprep.subr.msk.bf16.mxu1 %vm348_vm2, %v13345_v53  ;;  %17138 = vmatprep.subr.msk.bf16.mxu0 %vm348_vm2, %v13408_v36  ;;  %v19138_v7 = vld [vmem:[%s24172_s4 + $0x30] sm:$0xff]   ;;  %v19140_v53 = vld [vmem:[%s24172_s4 + $0x68] sm:$0xff]  }
 0x725   : > { %13370 = vmatpush1.bf16.msra.mxu1 %v13350_v41  ;;  %13433 = vmatpush1.bf16.msra.mxu0 %v13413_v23  ;;  %v19139_v36 = vld [vmem:[%s24172_s4 + $0xac] sm:$0xff]   ;;  %v19141_v41 = vld [vmem:[%s24172_s4 + $0xe4] sm:$0xff]  }
 0x726   : > { %v13717_v17 = vpop.permute.xlu0 %13716  ;;  %v13655_v58 = vpop.permute.xlu1 %13654  ;;  %v19142_v23 = vld [vmem:[%s24172_s4 + $0x28] sm:$0xff]  }
 0x727   : > { %v13658_v0 = vsel %vm3485_vm0, %v13653_v26, %v13655_v58  ;;  %v19133_v26 = vld [vmem:[%s24172_s4 + $0xf4] ss:$0 sps:$4 sm:$0xff]  }
 0x728   : > { %17136 = vmatmul.mubr.msk.bf16.vlgmr.msra.gmra.mxu1 %vm12429_vm14, %v17134_v16  ;;  %17139 = vmatmul.mubr.msk.bf16.vlgmr.msra.gmra.mxu0 %vm12429_vm14, %v17137_v49  ;;  %v13664_v29 = vsel %vm348_vm2, %v13658_v0, 0  ;;  %v19143_v16 = vld [vmem:[%s24172_s4 + $0xa4] sm:$0xff]  }
 0x729   : > { %13513 = vmatprep.mubr.bf16.mxu1 %v19295_v15  ;;  %13576 = vmatprep.mubr.bf16.mxu0 %v19295_v15  ;;  %v19144_v49 = vld [vmem:[%s24172_s4 + $0x60] sm:$0xff]  }
 0x72a   : > { %v13531_v37 = vpop.permute.xlu0 %13530  ;;  %v13468_v32 = vpop.permute.xlu1 %13467  ;;  %v19160_v0 = vld [vmem:[%s24172_s4 + $0x40] sm:$0xff]  }
 0x72b   : > { %v13534_v25 = vsel %vm13532_vm13, %v13529_v14, %v13531_v37  ;;  %v13471_v40 = vsel %vm13469_vm12, %v23569_v54, %v13468_v32  ;;  %v19149_v37 = vld [vmem:[%s24172_s4 + $0xd4] sm:$0xff]  }
 0x72c   : > { %17141 = vmatprep.subr.msk.bf16.mxu1 %vm348_vm2, %v13471_v40  ;;  %17144 = vmatprep.subr.msk.bf16.mxu0 %vm348_vm2, %v13534_v25  ;;  %v19150_v32 = vld [vmem:[%s24172_s4 + $0x18] sm:$0xff]   ;;  %v19152_v40 = vld [vmem:[%s24172_s4 + $0x50] sm:$0xff]  }
 0x72d   : > { %13496 = vmatpush1.bf16.msra.mxu1 %v13476_v9  ;;  %13559 = vmatpush1.bf16.msra.mxu0 %v13539_v52  ;;  %v19151_v25 = vld [vmem:[%s24172_s4 + $0x94] sm:$0xff]   ;;  %v19153_v9 = vld [vmem:[%s24172_s4 + $0xcc] sm:$0xff]  }
 0x72e   : > { %v13778_v54 = vpop.permute.xlu0 %13777  ;;  %v13715_v8 = vpop.permute.xlu1 %13714  ;;  %v19154_v52 = vld [vmem:[%s24172_s4 + $0x10] sm:$0xff]  }
 0x730   : > { %17142 = vmatmul.mubr.msk.bf16.vlgmr.msra.gmra.mxu1 %vm12429_vm14, %v17140_v10  ;;  %17145 = vmatmul.mubr.msk.bf16.vlgmr.msra.gmra.mxu0 %vm12429_vm14, %v17143_v55  ;;  %v19155_v10 = vld [vmem:[%s24172_s4 + $0x8c] sm:$0xff]  }
 0x731   : > { %13639 = vmatprep.mubr.bf16.mxu1 %v19295_v15  ;;  %13701 = vmatprep.mubr.bf16.mxu0 %v19295_v15  ;;  %v19156_v55 = vld [vmem:[%s24172_s4 + $0x48] sm:$0xff]  }
 0x732   : > { %v13657_v47 = vpop.permute.xlu0 %13656  ;;  %v13594_v19 = vpop.permute.xlu1 %13593 }
 0x733   : > { %v13659_v60 = vsel %vm3485_vm0, %v13655_v58, %v13657_v47  ;;  %v13597_v13 = vsel %vm13595_vm1, %v23619_v3, %v13594_v19  ;;  %vm13720_vm0 = vcmask 449536   ;;  %v17155_v3 = vld [vmem:[%s24170_s2 + $0x58] sm:$0xf]  ;;  %v19146_v58 = vld [vmem:[%s24172_s4 + $0x20] sm:$0xff]  }
 0x734   : > { %17147 = vmatprep.subr.msk.bf16.mxu1 %vm348_vm2, %v13597_v13  ;;  %17150 = vmatprep.subr.msk.bf16.mxu0 %vm348_vm2, %v13659_v60  ;;  %v13721_v21 = vsel %vm13720_vm0, %v13715_v8, %v13717_v17  ;;  %v19158_v8 = vld [vmem:[%s24172_s4 + $0x8] sm:$0xff]   ;;  %v19161_v47 = vld [vmem:[%s24172_s4 + $0xbc] sm:$0xff]  }
 0x735   : > { %13622 = vmatpush1.bf16.msra.mxu1 %v13602_v63  ;;  %13684 = vmatpush1.bf16.msra.mxu0 %v13664_v29  ;;  %v13727_v62 = vsel %vm348_vm2, %v13721_v21, 0  ;;  %v19162_v60 = vld [vmem:[%s24172_s4] sm:$0xff]   ;;  %v19164_v29 = vld [vmem:[%s24172_s4 + $0x170] ss:$0 sps:$4 sm:$0xff]  }
 0x736   : > { %v13843_v35 = vpop.permute.xlu0 %13842  ;;  %v13780_v39 = vpop.permute.xlu1 %13779  ;;  %v19163_v13 = vld [vmem:[%s24172_s4 + $0x7c] sm:$0xff]  }
 0x737   : > { %v13784_v46 = vsel %vm13783_vm4, %v13778_v54, %v13780_v39  ;;  %v19157_v54 = vld [vmem:[%s24172_s4 + $0xc4] sm:$0xff]  }
 0x738   : > { %17148 = vmatmul.mubr.msk.bf16.vlgmr.msra.gmra.mxu1 %vm12429_vm14, %v17146_v4  ;;  %17151 = vmatmul.mubr.msk.bf16.vlgmr.msra.gmra.mxu0 %vm12429_vm14, %v17149_v2  ;;  %v13790_v59 = vsel %vm348_vm2, %v13784_v46, 0  ;;  %v19165_v4 = vld [vmem:[%s24172_s4 + $0x1ec] ss:$0 sps:$4 sm:$0xff]  }
 0x739   : > { %13764 = vmatprep.mubr.bf16.mxu1 %v19295_v15  ;;  %13827 = vmatprep.mubr.bf16.mxu0 %v19295_v15 }
 0x73a   : > { %v13782_v50 = vpop.permute.xlu0 %13781  ;;  %v13719_v1 = vpop.permute.xlu1 %13718 }
 0x73b   : > { %v13785_v42 = vsel %vm13783_vm4, %v13780_v39, %v13782_v50  ;;  %v13722_v18 = vsel %vm13720_vm0, %v13717_v17, %v13719_v1  ;;  %v19145_v17 = vld [vmem:[%s24172_s4 + $0xdc] sm:$0xff]  }
 0x73c   : > { %17153 = vmatprep.subr.msk.bf16.mxu1 %vm348_vm2, %v13722_v18  ;;  %17156 = vmatprep.subr.msk.bf16.mxu0 %vm348_vm2, %v13785_v42 }
 0x73d   : > { %13747 = vmatpush1.bf16.msra.mxu1 %v13727_v62  ;;  %13810 = vmatpush1.bf16.msra.mxu0 %v13790_v59 }
 0x73e   : > { %v13841_v14 = vpop.permute.xlu1 %13840  ;;  %v13904_v11 = vpop.permute.xlu0 %13903 }
 0x73f   : > { %v13847_v5 = vsel %vm13846_vm5, %v13841_v14, %v13843_v35 }
 0x740   : > { %17154 = vmatmul.mubr.msk.bf16.vlgmr.msra.gmra.mxu1 %vm12429_vm14, %v17152_v38  ;;  %17157 = vmatmul.mubr.msk.bf16.vlgmr.msra.gmra.mxu0 %vm12429_vm14, %v17155_v3  ;;  %v13853_v27 = vsel %vm348_vm2, %v13847_v5, 0 }
 0x741   : > { %13890 = vmatprep.mubr.bf16.mxu1 %v19295_v15  ;;  %13953 = vmatprep.mubr.bf16.mxu0 %v19295_v15  ;;  %v17161_v15 = vld [vmem:[%s24170_s2 + $0x60] sm:$0xf] }
 0x742   : > { %v13845_v20 = vpop.permute.xlu1 %13844  ;;  %v13908_v43 = vpop.permute.xlu0 %13907 }
 0x743   : > { %v13848_v34 = vsel %vm13846_vm5, %v13843_v35, %v13845_v20 }
 0x744   : > { %17159 = vmatprep.subr.msk.bf16.mxu1 %vm348_vm2, %v13848_v34 }
 0x745   : > { %13873 = vmatpush1.bf16.msra.mxu1 %v13853_v27 }
 0x746   : > { %v13906_v51 = vpop.permute.xlu1 %13905  ;;  %18021 = vmatprep.subr.msk.bf16.mxu1 %vm7261_vm3, %v19132_v48 }
 0x747   : > { %v13910_v22 = vsel %vm13909_vm6, %v13904_v11, %v13906_v51  ;;  %v13911_v61 = vsel %vm13909_vm6, %v13906_v51, %v13908_v43 }
 0x748   : > { %v13916_v56 = vsel %vm348_vm2, %v13910_v22, 0  ;;  %17160 = vmatmul.mubr.msk.bf16.vlgmr.msra.gmra.mxu1 %vm12429_vm14, %v17158_v6  ;;  %17162 = vmatprep.subr.msk.bf16.mxu0 %vm348_vm2, %v13911_v61  ;;  %vm19337_vm2 = vmmov 0  }
 0x749   : > { %13936 = vmatpush1.bf16.msra.mxu0 %v13916_v56  ;;  %17778 = vmatpush3.bf16.msra.mxu1 %v19134_v44 }
 0x74a   : > { %18022 = vmatprep.subr.msk.bf16.mxu0 %vm7261_vm3, %v19133_v26  ;;  %17779 = vmatprep.subr.bf16.mxu1 %v19136_v57 }
 0x74c   : > { %17163 = vmatmul.mubr.msk.bf16.vlgmr.msra.gmra.mxu0 %vm12429_vm14, %v17161_v15  ;;  %vm15348_vm14 = vcmask 73728  }
 0x74d   : > { %17800 = vmatpush3.bf16.msra.mxu0 %v19135_v30  ;;  %17780 = vmatpush3.bf16.msra.mxu1 %v19138_v7 }
 0x74e   : > { %17801 = vmatprep.subr.bf16.mxu0 %v19137_v33  ;;  %17781 = vmatprep.subr.bf16.mxu1 %v19140_v53 }
 0x751   : > { %17802 = vmatpush3.bf16.msra.mxu0 %v19139_v36  ;;  %17782 = vmatpush3.bf16.msra.mxu1 %v19142_v23 }
 0x752   : > { %17803 = vmatprep.subr.bf16.mxu0 %v19141_v41  ;;  %17783 = vmatprep.subr.bf16.mxu1 %v19144_v49 }
 0x755   : > { %17804 = vmatpush3.bf16.msra.mxu0 %v19143_v16  ;;  %17784 = vmatpush3.bf16.msra.mxu1 %v19146_v58 }
 0x756   : > { %17805 = vmatprep.subr.bf16.mxu0 %v19145_v17  ;;  %17785 = vmatprep.subr.bf16.mxu1 %v19148_v24 }
 0x759   : > { %17806 = vmatpush3.bf16.msra.mxu0 %v19147_v28  ;;  %17786 = vmatpush3.bf16.msra.mxu1 %v19150_v32 }
 0x75a   : > { %17807 = vmatprep.subr.bf16.mxu0 %v19149_v37  ;;  %17787 = vmatprep.subr.bf16.mxu1 %v19152_v40 }
 0x75d   : > { %17808 = vmatpush3.bf16.msra.mxu0 %v19151_v25  ;;  %17788 = vmatpush3.bf16.msra.mxu1 %v19154_v52 }
 0x75e   : > { %17809 = vmatprep.subr.bf16.mxu0 %v19153_v9  ;;  %17789 = vmatprep.subr.bf16.mxu1 %v19156_v55 }
 0x761   : > { %17810 = vmatpush3.bf16.msra.mxu0 %v19155_v10  ;;  %17790 = vmatpush3.bf16.msra.mxu1 %v19158_v8 }
 0x762   : > { %17811 = vmatprep.subr.bf16.mxu0 %v19157_v54  ;;  %17791 = vmatprep.subr.bf16.mxu1 %v19160_v0 }
 0x765   : > { %17812 = vmatpush3.bf16.msra.mxu0 %v19159_v31  ;;  %17792 = vmatpush3.bf16.msra.mxu1 %v19162_v60 }
 0x766   : > { %17813 = vmatprep.subr.bf16.mxu0 %v19161_v47  ;;  %18023 = vmatprep.subr.msk.bf16.mxu1 %vm7261_vm3, %v19164_v29 }
 0x769   : > { %17814 = vmatpush3.bf16.msra.mxu0 %v19163_v13 }
 0x76a   : > { %18024 = vmatprep.subr.msk.bf16.mxu0 %vm7261_vm3, %v19165_v4  ;;  %vm15274_vm3 = vcmask 261120  }
 0x791   : > { %v12473_v19 = vpop.f32.mrf.mxu0 }
 0x792   : > { %v12524_v35 = vadd.f32 %v23621_v12, %v12473_v19 }
 0x793   : > { %v12475_v63 = vpop.f32.mrf.mxu0 }
 0x794   : > { %v12526_v21 = vadd.f32 %v23631_v45, %v12475_v63 }
 0x795   : > { %v12477_v2 = vpop.f32.mrf.mxu0 }
 0x797   : > { %v12478_v39 = vpop.f32.mrf.mxu0 }
 0x798   : > { %v12639_v46 = vpop.f32.mrf.mxu1 }
 0x799   : > { %v12580_v50 = vpop.f32.mrf.mxu0 }
 0x79a   : > { %v12587_v1 = vadd.f32 %v12580_v50, %v12524_v35  ;;  %v12641_v42 = vpop.f32.mrf.mxu1 }
 0x79b   : > { %v12582_v18 = vpop.f32.mrf.mxu0 }
 0x79c   : > { %v12588_v62 = vadd.f32 %v12582_v18, %v12526_v21  ;;  %v12646_v59 = vadd.f32 %v12639_v46, %v12587_v1  ;;  %v12643_v38 = vpop.f32.mrf.mxu1 }
 0x79d   : > { %v12584_v3 = vpop.f32.mrf.mxu0 }
 0x79e   : > { %v12647_v14 = vadd.f32 %v12641_v42, %v12588_v62  ;;  %v12644_v11 = vpop.f32.mrf.mxu1 }
 0x79f   : > { %v12585_v5 = vpop.f32.mrf.mxu0 }
 0x7a1   : > { %v12698_v12 = vpop.f32.mrf.mxu0 }
 0x7a2   : > { %v12705_v20 = vadd.f32 %v12698_v12, %v12646_v59 }
 0x7a3   : > { %v12700_v34 = vpop.f32.mrf.mxu0 }
 0x7a4   : > { %v12706_v27 = vadd.f32 %v12700_v34, %v12647_v14 }
 0x7a5   : > { %v12702_v6 = vpop.f32.mrf.mxu0 }
 0x7a7   : > { %v12703_v43 = vpop.f32.mrf.mxu0 }
 0x7c0   : > { %v12762_v51 = vpop.f32.mrf.mxu1  ;;  %v12825_v45 = vpop.f32.mrf.mxu0 }
 0x7c1   : > { %v12769_v24 = vadd.f32 %v12762_v51, %v12705_v20 }
 0x7c2   : > { %v12764_v22 = vpop.f32.mrf.mxu1  ;;  %v12827_v61 = vpop.f32.mrf.mxu0 }
 0x7c3   : > { %v12770_v25 = vadd.f32 %v12764_v22, %v12706_v27  ;;  %v12832_v52 = vadd.f32 %v12825_v45, %v12769_v24 }
 0x7c4   : > { %v12766_v56 = vpop.f32.mrf.mxu1  ;;  %v12829_v15 = vpop.f32.mrf.mxu0 }
 0x7c5   : > { %v12833_v54 = vadd.f32 %v12827_v61, %v12770_v25 }
 0x7c6   : > { %v12767_v48 = vpop.f32.mrf.mxu1  ;;  %v12830_v26 = vpop.f32.mrf.mxu0 }
 0x7c8   : > { %v12888_v44 = vpop.f32.mrf.mxu1  ;;  %v12951_v30 = vpop.f32.mrf.mxu0 }
 0x7c9   : > { %v12895_v8 = vadd.f32 %v12888_v44, %v12832_v52 }
 0x7ca   : > { %v12890_v57 = vpop.f32.mrf.mxu1  ;;  %v12953_v33 = vpop.f32.mrf.mxu0 }
 0x7cb   : > { %v12896_v47 = vadd.f32 %v12890_v57, %v12833_v54  ;;  %v12958_v13 = vadd.f32 %v12951_v30, %v12895_v8 }
 0x7cc   : > { %v12892_v7 = vpop.f32.mrf.mxu1  ;;  %v12955_v36 = vpop.f32.mrf.mxu0 }
 0x7cd   : > { %v12959_v4 = vadd.f32 %v12953_v33, %v12896_v47 }
 0x7ce   : > { %v12893_v53 = vpop.f32.mrf.mxu1  ;;  %v12956_v41 = vpop.f32.mrf.mxu0 }
 0x7d0   : > { %v13014_v23 = vpop.f32.mrf.mxu1  ;;  %v13076_v16 = vpop.f32.mrf.mxu0 }
 0x7d1   : > { %v13021_v2 = vadd.f32 %v13014_v23, %v12958_v13 }
 0x7d2   : > { %v13016_v49 = vpop.f32.mrf.mxu1  ;;  %v13078_v17 = vpop.f32.mrf.mxu0 }
 0x7d3   : > { %v13022_v21 = vadd.f32 %v13016_v49, %v12959_v4  ;;  %v13083_v1 = vadd.f32 %v13076_v16, %v13021_v2 }
 0x7d4   : > { %v13018_v58 = vpop.f32.mrf.mxu1  ;;  %v13080_v28 = vpop.f32.mrf.mxu0 }
 0x7d5   : > { %v13084_v62 = vadd.f32 %v13078_v17, %v13022_v21 }
 0x7d6   : > { %v13019_v37 = vpop.f32.mrf.mxu1  ;;  %v13081_v32 = vpop.f32.mrf.mxu0 }
 0x7d8   : > { %v13138_v40 = vpop.f32.mrf.mxu1  ;;  %v13200_v9 = vpop.f32.mrf.mxu0 }
 0x7d9   : > { %v13145_v59 = vadd.f32 %v13138_v40, %v13083_v1 }
 0x7da   : > { %v13140_v10 = vpop.f32.mrf.mxu1  ;;  %v13202_v55 = vpop.f32.mrf.mxu0 }
 0x7db   : > { %v13146_v14 = vadd.f32 %v13140_v10, %v13084_v62  ;;  %v13207_v12 = vadd.f32 %v13200_v9, %v13145_v59 }
 0x7dc   : > { %v13142_v31 = vpop.f32.mrf.mxu1  ;;  %v13204_v0 = vpop.f32.mrf.mxu0 }
 0x7dd   : > { %v13208_v27 = vadd.f32 %v13202_v55, %v13146_v14 }
 0x7de   : > { %v13143_v19 = vpop.f32.mrf.mxu1  ;;  %v13205_v60 = vpop.f32.mrf.mxu0 }
 0x7e0   : > { %v13263_v63 = vpop.f32.mrf.mxu1  ;;  %v13326_v29 = vpop.f32.mrf.mxu0 }
 0x7e1   : > { %v13270_v6 = vadd.f32 %v13263_v63, %v13207_v12 }
 0x7e2   : > { %v13265_v35 = vpop.f32.mrf.mxu1  ;;  %v13328_v39 = vpop.f32.mrf.mxu0 }
 0x7e3   : > { %v13271_v45 = vadd.f32 %v13265_v35, %v13208_v27  ;;  %v13333_v56 = vadd.f32 %v13326_v29, %v13270_v6  ;;  %v19168_v6 = vld [vmem:[%s24172_s4 + $0x168] sm:$0xff]  }
 0x7e4   : > { %v13267_v46 = vpop.f32.mrf.mxu1  ;;  %v13330_v50 = vpop.f32.mrf.mxu0 }
 0x7e5   : > { %v13334_v26 = vadd.f32 %v13328_v39, %v13271_v45  ;;  %v19171_v45 = vld [vmem:[%s24172_s4 + $0x1a4] sm:$0xff]  }
 0x7e6   : > { %v13268_v42 = vpop.f32.mrf.mxu1  ;;  %v13331_v18 = vpop.f32.mrf.mxu0 }
 0x7e8   : > { %v13389_v38 = vpop.f32.mrf.mxu1  ;;  %v13452_v3 = vpop.f32.mrf.mxu0 }
 0x7e9   : > { %v13396_v44 = vadd.f32 %v13389_v38, %v13333_v56  ;;  %v19174_v56 = vld [vmem:[%s24172_s4 + $0x120] sm:$0xff]  }
 0x7ea   : > { %v13391_v11 = vpop.f32.mrf.mxu1  ;;  %v13454_v5 = vpop.f32.mrf.mxu0 }
 0x7eb   : > { %v13397_v33 = vadd.f32 %v13391_v11, %v13334_v26  ;;  %v13459_v53 = vadd.f32 %v13452_v3, %v13396_v44  ;;  %v19177_v26 = vld [vmem:[%s24172_s4 + $0x1d4] sm:$0xff]  }
 0x7ec   : > { %v13393_v20 = vpop.f32.mrf.mxu1  ;;  %v13456_v34 = vpop.f32.mrf.mxu0  ;;  %v19178_v44 = vld [vmem:[%s24172_s4 + $0x118] sm:$0xff]  }
 0x7ed   : > { %v13460_v16 = vadd.f32 %v13454_v5, %v13397_v33  ;;  %v19166_v20 = vld [vmem:[%s24172_s4 + $0x130] sm:$0xff]  }
 0x7ee   : > { %v13394_v43 = vpop.f32.mrf.mxu1  ;;  %v13457_v51 = vpop.f32.mrf.mxu0  ;;  %v19167_v34 = vld [vmem:[%s24172_s4 + $0x1ac] sm:$0xff]  }
 0x7ef   : > { %v19169_v43 = vld [vmem:[%s24172_s4 + $0x1e4] sm:$0xff]   ;;  %v19181_v33 = vld [vmem:[%s24172_s4 + $0x1cc] sm:$0xff]  }
 0x7f0   : > { %v13515_v22 = vpop.f32.mrf.mxu1  ;;  %v13578_v61 = vpop.f32.mrf.mxu0  ;;  %v19170_v51 = vld [vmem:[%s24172_s4 + $0x128] sm:$0xff]  }
 0x7f1   : > { %v13522_v49 = vadd.f32 %v13515_v22, %v13459_v53  ;;  %v19172_v22 = vld [vmem:[%s24172_s4 + $0x160] sm:$0xff]   ;;  %v19184_v53 = vld [vmem:[%s24172_s4 + $0x148] sm:$0xff]  }
 0x7f2   : > { %v13517_v15 = vpop.f32.mrf.mxu1  ;;  %v13580_v48 = vpop.f32.mrf.mxu0 }
 0x7f3   : > { %v13523_v28 = vadd.f32 %v13517_v15, %v13460_v16  ;;  %v13585_v32 = vadd.f32 %v13578_v61, %v13522_v49  ;;  %v19173_v61 = vld [vmem:[%s24172_s4 + $0x1dc] sm:$0xff]   ;;  %v19187_v16 = vld [vmem:[%s24172_s4 + $0x184] sm:$0xff]  }
 0x7f4   : > { %v13519_v30 = vpop.f32.mrf.mxu1  ;;  %v13582_v57 = vpop.f32.mrf.mxu0  ;;  %v19175_v15 = vld [vmem:[%s24172_s4 + $0x19c] sm:$0xff]  }
 0x7f5   : > { %v13586_v9 = vadd.f32 %v13580_v48, %v13523_v28  ;;  %v19176_v48 = vld [vmem:[%s24172_s4 + $0x158] sm:$0xff]   ;;  %v19180_v57 = vld [vmem:[%s24172_s4 + $0x150] sm:$0xff]   ;;  %v19188_v49 = vld [vmem:[%s24172_s4 + $0x140] sm:$0xff]  }
 0x7f6   : > { %v13520_v7 = vpop.f32.mrf.mxu1  ;;  %v13583_v36 = vpop.f32.mrf.mxu0  ;;  %v19179_v30 = vld [vmem:[%s24172_s4 + $0x194] sm:$0xff]   ;;  %v19191_v28 = vld [vmem:[%s24172_s4 + $0x17c] sm:$0xff]  }
 0x7f7   : > { %v19182_v7 = vld [vmem:[%s24172_s4 + $0x110] sm:$0xff]  }
 0x7f8   : > { %v13641_v41 = vpop.f32.mrf.mxu1  ;;  %v13703_v23 = vpop.f32.mrf.mxu0  ;;  %v19183_v36 = vld [vmem:[%s24172_s4 + $0x18c] sm:$0xff]  }
 0x7f9   : > { %v13648_v52 = vadd.f32 %v13641_v41, %v13585_v32  ;;  %v19185_v41 = vld [vmem:[%s24172_s4 + $0x1c4] sm:$0xff]   ;;  %v19194_v32 = vld [vmem:[%s24172_s4 + $0xf8] sm:$0xff]  }
 0x7fa   : > { %v13643_v17 = vpop.f32.mrf.mxu1  ;;  %v13705_v58 = vpop.f32.mrf.mxu0 }
 0x7fb   : > { %v13649_v54 = vadd.f32 %v13643_v17, %v13586_v9  ;;  %v13710_v0 = vadd.f32 %v13703_v23, %v13648_v52  ;;  %v19186_v23 = vld [vmem:[%s24172_s4 + $0x108] sm:$0xff]   ;;  %v19189_v17 = vld [vmem:[%s24172_s4 + $0x1bc] sm:$0xff]   ;;  %v19336_v52 = vmov 0.0  }
 0x7fc   : > { %v13645_v24 = vpop.f32.mrf.mxu1  ;;  %v13707_v37 = vpop.f32.mrf.mxu0  ;;  %v19197_v9 = vld [vmem:[%s24173_s5 + $0x38] sm:$0xff]  }
 0x7fd   : > { %v13711_v60 = vadd.f32 %v13705_v58, %v13649_v54  ;;  %v19190_v58 = vld [vmem:[%s24172_s4 + $0x100] sm:$0xff]   ;;  %v19192_v24 = vld [vmem:[%s24172_s4 + $0x138] sm:$0xff]   ;;  %v19200_v54 = vld [vmem:[%s24173_s5 + $0x8] sm:$0xff]  }
 0x7fe   : > { %v13646_v25 = vpop.f32.mrf.mxu1  ;;  %v13708_v40 = vpop.f32.mrf.mxu0  ;;  %v19193_v37 = vld [vmem:[%s24172_s4 + $0x1b4] sm:$0xff]  }
 0x7ff   : > { %v19195_v25 = vld [vmem:[%s24172_s4 + $0x174] sm:$0xff]  }
 0x800   : > { %v13766_v10 = vpop.f32.mrf.mxu1  ;;  %v13829_v55 = vpop.f32.mrf.mxu0  ;;  %v19196_v40 = vld [vmem:[%s24173_s5 + $0x18] sm:$0xff]  }
 0x801   : > { %v13773_v13 = vadd.f32 %v13766_v10, %v13710_v0  ;;  %v19198_v10 = vld [vmem:[%s24173_s5 + $0x10] sm:$0xff]   ;;  %v19203_v0 = vld [vmem:[%s24173_s5 + $0x20] sm:$0xff]  }
 0x802   : > { %v13768_v8 = vpop.f32.mrf.mxu1  ;;  %v13831_v31 = vpop.f32.mrf.mxu0 }
 0x803   : > { %v13774_v4 = vadd.f32 %v13768_v8, %v13711_v60  ;;  %v13836_v35 = vadd.f32 %v13829_v55, %v13773_v13  ;;  %v19199_v55 = vld [vmem:[%s24173_s5 + $0x30] sm:$0xff]   ;;  %v19201_v8 = vld [vmem:[%s24173_s5 + $0x28] sm:$0xff]  }
 0x804   : > { %v13770_v47 = vpop.f32.mrf.mxu1  ;;  %v13833_v19 = vpop.f32.mrf.mxu0 }
 0x805   : > { %v13837_v21 = vadd.f32 %v13831_v31, %v13774_v4  ;;  %v19202_v31 = vld [vmem:[%s24173_s5] sm:$0xff]  }
 0x806   : > { %v13771_v63 = vpop.f32.mrf.mxu1  ;;  %v13834_v29 = vpop.f32.mrf.mxu0 }
 0x808   : > { %v13892_v2 = vpop.f32.mrf.mxu1 }
 0x809   : > { %v13899_v46 = vadd.f32 %v13892_v2, %v13836_v35 }
 0x80a   : > { %v13894_v39 = vpop.f32.mrf.mxu1 }
 0x80b   : > { %v13900_v42 = vadd.f32 %v13894_v39, %v13837_v21 }
 0x80c   : > { %v13955_v50 = vpop.f32.mrf.mxu0  ;;  %v13896_v1 = vpop.f32.mrf.mxu1 }
 0x80d   : > { %v13962_v18 = vadd.f32 %v13955_v50, %v13899_v46 }
 0x80e   : > { %v13957_v62 = vpop.f32.mrf.mxu0  ;;  %v13897_v59 = vpop.f32.mrf.mxu1 }
 0x80f   : > { %v13963_v38 = vadd.f32 %v13957_v62, %v13900_v42  ;;  %v13964_v3 = vmax.f32 %v13962_v18, 0.0 }
 0x810   : > { %v13959_v14 = vpop.f32.mrf.mxu0 }
 0x811   : > { %v13965_v11 = vmax.f32 %v13963_v38, 0.0  ;;  %v23845_v27 = vpack.c.bf16 %v13964_v3, %v13964_v3 }
 0x812   : > { %v13960_v5 = vpop.f32.mrf.mxu0 }
 0x813   : > { %v13967_v12 = vpack.c.bf16 %v13965_v11, %v13965_v11 }
 0x815   : > { %17180 = vmatprep.mubr.msk.bf16.mxu1 %vm4851_vm15, %v13967_v12  ;;  %17228 = vmatprep.mubr.msk.bf16.mxu0 %vm4851_vm15, %v13967_v12 }
 0x816   : > { %14131 = vmatmul.mubr.bf16.vlgmr.msra.gmra.mxu1 %v23845_v27  ;;  %14299 = vmatmul.mubr.bf16.vlgmr.msra.gmra.mxu0 %v23845_v27 }
 0x817   : > { %17822 = vmatpush3.bf16.msra.mxu1 %v19166_v20  ;;  %17844 = vmatpush3.bf16.msra.mxu0 %v19167_v34  ;;  %v19205_v34 = vld [vmem:[%s24173_s5 + $0x58] sm:$0xff]  }
 0x818   : > { %17276 = vmatprep.mubr.msk.bf16.mxu1 %vm4851_vm15, %v13967_v12  ;;  %17324 = vmatprep.mubr.msk.bf16.mxu0 %vm4851_vm15, %v13967_v12  ;;  %vm14690_vm15 = vcmask 523264   ;;  %v19204_v12 = vld [vmem:[%s24173_s5 + $0x78] sm:$0xff]  }
 0x819   : > { %17823 = vmatprep.subr.bf16.mxu1 %v19168_v6  ;;  %17845 = vmatprep.subr.bf16.mxu0 %v19169_v43  ;;  %v19206_v6 = vld [vmem:[%s24173_s5 + $0x70] sm:$0xff]  }
 0x81a   : > { %v19207_v43 = vld [vmem:[%s24173_s5 + $0x50] sm:$0xff]  }
 0x81b   : > { %17824 = vmatpush3.bf16.msra.mxu1 %v19170_v51  ;;  %17846 = vmatpush3.bf16.msra.mxu0 %v19171_v45  ;;  %v19208_v51 = vld [vmem:[%s24173_s5 + $0x68] sm:$0xff]  }
 0x81c   : > { %17825 = vmatprep.subr.bf16.mxu1 %v19172_v22  ;;  %17847 = vmatprep.subr.bf16.mxu0 %v19173_v61  ;;  %v19209_v45 = vld [vmem:[%s24173_s5 + $0x48] sm:$0xff]   ;;  %v19210_v22 = vld [vmem:[%s24173_s5 + $0x60] sm:$0xff]  }
 0x81d   : > { %v19211_v61 = vld [vmem:[%s24173_s5 + $0x40] sm:$0xff]  }
 0x81f   : > { %17826 = vmatpush3.bf16.msra.mxu1 %v19174_v56  ;;  %17848 = vmatpush3.bf16.msra.mxu0 %v19175_v15  ;;  %v19212_v56 = vld [vmem:[%s24173_s5 + $0xb8] sm:$0xff]  }
 0x820   : > { %17827 = vmatprep.subr.bf16.mxu1 %v19176_v48  ;;  %17849 = vmatprep.subr.bf16.mxu0 %v19177_v26  ;;  %v19213_v48 = vld [vmem:[%s24173_s5 + $0x98] sm:$0xff]  }
 0x823   : > { %17828 = vmatpush3.bf16.msra.mxu1 %v19178_v44  ;;  %17850 = vmatpush3.bf16.msra.mxu0 %v19179_v30  ;;  %v19214_v44 = vld [vmem:[%s24173_s5 + $0xb0] sm:$0xff]  }
 0x824   : > { %17829 = vmatprep.subr.bf16.mxu1 %v19180_v57  ;;  %17851 = vmatprep.subr.bf16.mxu0 %v19181_v33  ;;  %v19215_v30 = vld [vmem:[%s24173_s5 + $0x90] sm:$0xff]   ;;  %v19216_v57 = vld [vmem:[%s24173_s5 + $0xa8] sm:$0xff]  }
 0x825   : > { %v19217_v33 = vld [vmem:[%s24173_s5 + $0x88] sm:$0xff]  }
 0x827   : > { %17830 = vmatpush3.bf16.msra.mxu1 %v19182_v7  ;;  %17852 = vmatpush3.bf16.msra.mxu0 %v19183_v36  ;;  %v19218_v7 = vld [vmem:[%s24173_s5 + $0xa0] sm:$0xff]  }
 0x828   : > { %17831 = vmatprep.subr.bf16.mxu1 %v19184_v53  ;;  %17853 = vmatprep.subr.bf16.mxu0 %v19185_v41  ;;  %v19219_v36 = vld [vmem:[%s24173_s5 + $0x80] sm:$0xff]   ;;  %v19220_v53 = vld [vmem:[%s24173_s5 + $0xf8] sm:$0xff]  }
 0x82b   : > { %17832 = vmatpush3.bf16.msra.mxu1 %v19186_v23  ;;  %17854 = vmatpush3.bf16.msra.mxu0 %v19187_v16  ;;  %v19221_v23 = vld [vmem:[%s24173_s5 + $0xd8] sm:$0xff]  }
 0x82c   : > { %17833 = vmatprep.subr.bf16.mxu1 %v19188_v49  ;;  %17855 = vmatprep.subr.bf16.mxu0 %v19189_v17  ;;  %v19222_v49 = vld [vmem:[%s24173_s5 + $0xf0] sm:$0xff]  }
 0x82d   : > { %v19223_v17 = vld [vmem:[%s24173_s5 + $0xd0] sm:$0xff]  }
 0x82f   : > { %17834 = vmatpush3.bf16.msra.mxu1 %v19190_v58  ;;  %17856 = vmatpush3.bf16.msra.mxu0 %v19191_v28  ;;  %v19224_v58 = vld [vmem:[%s24173_s5 + $0xe8] sm:$0xff]  }
 0x830   : > { %17835 = vmatprep.subr.bf16.mxu1 %v19192_v24  ;;  %17857 = vmatprep.subr.bf16.mxu0 %v19193_v37  ;;  %v19225_v28 = vld [vmem:[%s24173_s5 + $0xc8] sm:$0xff]   ;;  %v19226_v24 = vld [vmem:[%s24173_s5 + $0xe0] sm:$0xff]  }
 0x831   : > { %v19227_v37 = vld [vmem:[%s24173_s5 + $0xc0] sm:$0xff]  }
 0x833   : > { %17836 = vmatpush3.bf16.msra.mxu1 %v19194_v32  ;;  %17858 = vmatpush3.bf16.msra.mxu0 %v19195_v25 }
 0x834   : > { %17922 = vmatprep.subr.bf16.mxu0 %v19336_v52  ;;  %17910 = vmatprep.subr.bf16.mxu1 %v19336_v52 }
 0x836   : > { %14468 = vmatmul.mubr.bf16.vlgmr.msra.gmra.mxu1 %v23845_v27  ;;  %14637 = vmatmul.mubr.bf16.vlgmr.msra.gmra.mxu0 %v23845_v27 }
 0x837   : > { %17923 = vmatpush3.bf16.msra.mxu0 %v19196_v40  ;;  %17911 = vmatpush3.bf16.msra.mxu1 %v19197_v9  ;;  %v15273_v40 = vld [vmem:[%s24174_s6 + $0x18] sm:$0xff]  ;;  %v15272_v9 = vld [vmem:[%s24174_s6 + $0x10] sm:$0xff] }
 0x838   : > { %17924 = vmatprep.subr.bf16.mxu0 %v19336_v52  ;;  %17912 = vmatprep.subr.bf16.mxu1 %v19336_v52 }
 0x839   : > { %17930 = vmatprep.mubr.msk.bf16.mxu0 %vm19337_vm2, %v19336_v52  ;;  %17918 = vmatprep.mubr.msk.bf16.mxu1 %vm19337_vm2, %v19336_v52 }
 0x83b   : > { %17925 = vmatpush3.bf16.msra.mxu0 %v19198_v10  ;;  %17913 = vmatpush3.bf16.msra.mxu1 %v19199_v55  ;;  %v15271_v10 = vld [vmem:[%s24174_s6 + $0x8] sm:$0xff]  ;;  %v15270_v55 = vld [vmem:[%s24174_s6] sm:$0xff] }
 0x83c   : > { %17926 = vmatprep.subr.bf16.mxu0 %v19336_v52  ;;  %17914 = vmatprep.subr.bf16.mxu1 %v19336_v52 }
 0x83f   : > { %17927 = vmatpush3.bf16.msra.mxu0 %v19200_v54  ;;  %17915 = vmatpush3.bf16.msra.mxu1 %v19201_v8 }
 0x840   : > { %17928 = vmatprep.subr.bf16.mxu0 %v19336_v52  ;;  %17916 = vmatprep.subr.bf16.mxu1 %v19336_v52 }
 0x843   : > { %17929 = vmatpush3.bf16.msra.mxu0 %v19202_v31  ;;  %17917 = vmatpush3.bf16.msra.mxu1 %v19203_v0 }
 0x844   : > { %17946 = vmatprep.subr.bf16.mxu0 %v19336_v52  ;;  %17934 = vmatprep.subr.bf16.mxu1 %v19336_v52 }
 0x8d6   : > { %v17793_v47 = vpop.f32.mrf.mxu1  ;;  %v17815_v19 = vpop.f32.mrf.mxu0 }
 0x8d8   : > { %v17794_v60 = vpop.f32.mrf.mxu1  ;;  %v17816_v13 = vpop.f32.mrf.mxu0 }
 0x8d9   : > { %v17795_v35 = vadd.f32 %v17794_v60, %v17793_v47  ;;  %v17817_v39 = vadd.f32 %v17816_v13, %v17815_v19 }
 0x8da   : > { %v17796_v63 = vpop.f32.mrf.mxu1  ;;  %v17818_v29 = vpop.f32.mrf.mxu0 }
 0x8db   : > { %v14306_v42 = vmax.f32 %v17795_v35, %v17817_v39 }
 0x8dc   : > { %v17797_v4 = vpop.f32.mrf.mxu1  ;;  %v17819_v2 = vpop.f32.mrf.mxu0 }
 0x8f6   : > { %v17837_v21 = vpop.f32.mrf.mxu1  ;;  %v17859_v46 = vpop.f32.mrf.mxu0 }
 0x8f8   : > { %v17838_v50 = vpop.f32.mrf.mxu1  ;;  %v17860_v1 = vpop.f32.mrf.mxu0 }
 0x8f9   : > { %v17839_v18 = vadd.f32 %v17838_v50, %v17837_v21  ;;  %v17861_v3 = vadd.f32 %v17860_v1, %v17859_v46 }
 0x8fa   : > { %v17840_v62 = vpop.f32.mrf.mxu1  ;;  %v17862_v59 = vpop.f32.mrf.mxu0 }
 0x8fb   : > { %v14475_v38 = vmax.f32 %v14306_v42, %v17839_v18 }
 0x8fc   : > { %v17841_v14 = vpop.f32.mrf.mxu1  ;;  %v17863_v11 = vpop.f32.mrf.mxu0 }
 0x8fd   : > { %v14644_v5 = vmax.f32 %v14475_v38, %v17861_v3 }
 0x8ff   : > { %v23980_v20 = vpack.c.bf16 %v14644_v5, %v14644_v5 }
 0x901   : > { %v23986_v27 = vshrl.u32 %v23980_v20, 16  ;;  %17931 = vmatmul.mubr.msk.bf16.vlgmr.msra.gmra.mxu0 %vm14690_vm15, %v23980_v20  ;;  %v14810_v26 = vrot.slane %v23980_v20, 1  ;;  %v14966_v16 = vrot.slane %v23980_v20, 2  ;;  %v15122_v25 = vrot.slane %v23980_v20, 3 }
 0x902   : > { %17947 = vmatpush3.bf16.msra.mxu0 %v19204_v12  ;;  %17954 = vmatprep.mubr.msk.bf16.mxu0 %vm19337_vm2, %v19336_v52 }
 0x903   : > { %17919 = vmatmul.mubr.msk.bf16.vlgmr.msra.gmra.mxu1 %vm14690_vm15, %v23986_v27  ;;  %17948 = vmatprep.subr.bf16.mxu0 %v19336_v52  ;;  %v14888_v15 = vrot.slane %v23986_v27, 1  ;;  %v15044_v41 = vrot.slane %v23986_v27, 2  ;;  %v15200_v32 = vrot.slane %v23986_v27, 3 }
 0x904   : > { %17935 = vmatpush3.bf16.msra.mxu1 %v19205_v34  ;;  %17942 = vmatprep.mubr.msk.bf16.mxu1 %vm19337_vm2, %v19336_v52 }
 0x905   : > { %17936 = vmatprep.subr.bf16.mxu1 %v19336_v52 }
 0x906   : > { %17949 = vmatpush3.bf16.msra.mxu0 %v19206_v6 }
 0x907   : > { %17950 = vmatprep.subr.bf16.mxu0 %v19336_v52 }
 0x908   : > { %17937 = vmatpush3.bf16.msra.mxu1 %v19207_v43 }
 0x909   : > { %17938 = vmatprep.subr.bf16.mxu1 %v19336_v52 }
 0x90a   : > { %17951 = vmatpush3.bf16.msra.mxu0 %v19208_v51 }
 0x90b   : > { %17952 = vmatprep.subr.bf16.mxu0 %v19336_v52 }
 0x90c   : > { %17939 = vmatpush3.bf16.msra.mxu1 %v19209_v45 }
 0x90d   : > { %17940 = vmatprep.subr.bf16.mxu1 %v19336_v52 }
 0x90e   : > { %17953 = vmatpush3.bf16.msra.mxu0 %v19210_v22 }
 0x90f   : > { %17970 = vmatprep.subr.bf16.mxu0 %v19336_v52 }
 0x910   : > { %17941 = vmatpush3.bf16.msra.mxu1 %v19211_v61 }
 0x911   : > { %17955 = vmatmul.mubr.msk.bf16.vlgmr.msra.gmra.mxu0 %vm14690_vm15, %v14888_v15  ;;  %17958 = vmatprep.subr.bf16.mxu1 %v19336_v52 }
 0x912   : > { %17971 = vmatpush3.bf16.msra.mxu0 %v19212_v56  ;;  %17978 = vmatprep.mubr.msk.bf16.mxu0 %vm19337_vm2, %v19336_v52 }
 0x913   : > { %17943 = vmatmul.mubr.msk.bf16.vlgmr.msra.gmra.mxu1 %vm14690_vm15, %v14810_v26  ;;  %17972 = vmatprep.subr.bf16.mxu0 %v19336_v52 }
 0x914   : > { %17959 = vmatpush3.bf16.msra.mxu1 %v19213_v48  ;;  %17966 = vmatprep.mubr.msk.bf16.mxu1 %vm19337_vm2, %v19336_v52 }
 0x915   : > { %17960 = vmatprep.subr.bf16.mxu1 %v19336_v52 }
 0x916   : > { %17973 = vmatpush3.bf16.msra.mxu0 %v19214_v44 }
 0x917   : > { %17974 = vmatprep.subr.bf16.mxu0 %v19336_v52 }
 0x918   : > { %17961 = vmatpush3.bf16.msra.mxu1 %v19215_v30 }
 0x919   : > { %17962 = vmatprep.subr.bf16.mxu1 %v19336_v52 }
 0x91a   : > { %17975 = vmatpush3.bf16.msra.mxu0 %v19216_v57 }
 0x91b   : > { %17976 = vmatprep.subr.bf16.mxu0 %v19336_v52 }
 0x91c   : > { %17963 = vmatpush3.bf16.msra.mxu1 %v19217_v33 }
 0x91d   : > { %17964 = vmatprep.subr.bf16.mxu1 %v19336_v52 }
 0x91e   : > { %17977 = vmatpush3.bf16.msra.mxu0 %v19218_v7 }
 0x91f   : > { %17994 = vmatprep.subr.bf16.mxu0 %v19336_v52 }
 0x920   : > { %17965 = vmatpush3.bf16.msra.mxu1 %v19219_v36 }
 0x921   : > { %17979 = vmatmul.mubr.msk.bf16.vlgmr.msra.gmra.mxu0 %vm14690_vm15, %v15044_v41  ;;  %17982 = vmatprep.subr.bf16.mxu1 %v19336_v52 }
 0x922   : > { %17995 = vmatpush3.bf16.msra.mxu0 %v19220_v53  ;;  %18002 = vmatprep.mubr.msk.bf16.mxu0 %vm19337_vm2, %v19336_v52 }
 0x923   : > { %17967 = vmatmul.mubr.msk.bf16.vlgmr.msra.gmra.mxu1 %vm14690_vm15, %v14966_v16  ;;  %17996 = vmatprep.subr.bf16.mxu0 %v19336_v52 }
 0x924   : > { %17983 = vmatpush3.bf16.msra.mxu1 %v19221_v23  ;;  %17990 = vmatprep.mubr.msk.bf16.mxu1 %vm19337_vm2, %v19336_v52 }
 0x925   : > { %17984 = vmatprep.subr.bf16.mxu1 %v19336_v52 }
 0x926   : > { %17997 = vmatpush3.bf16.msra.mxu0 %v19222_v49 }
 0x927   : > { %17998 = vmatprep.subr.bf16.mxu0 %v19336_v52 }
 0x928   : > { %17985 = vmatpush3.bf16.msra.mxu1 %v19223_v17 }
 0x929   : > { %17986 = vmatprep.subr.bf16.mxu1 %v19336_v52 }
 0x92a   : > { %17999 = vmatpush3.bf16.msra.mxu0 %v19224_v58 }
 0x92b   : > { %18000 = vmatprep.subr.bf16.mxu0 %v19336_v52 }
 0x92c   : > { %17987 = vmatpush3.bf16.msra.mxu1 %v19225_v28 }
 0x92d   : > { %17988 = vmatprep.subr.bf16.mxu1 %v19336_v52 }
 0x92e   : > { %18001 = vmatpush3.bf16.msra.mxu0 %v19226_v24 }
 0x930   : > { %17989 = vmatpush3.bf16.msra.mxu1 %v19227_v37 }
 0x931   : > { %18003 = vmatmul.mubr.msk.bf16.vlgmr.msra.gmra.mxu0 %vm14690_vm15, %v15200_v32  ;;  %18006 = vmatprep.subr.mxu1 %v19336_v52 }
 0x933   : > { %17991 = vmatmul.mubr.msk.bf16.vlgmr.msra.gmra.mxu1 %vm14690_vm15, %v15122_v25 }
 0x934   : > { %18014 = vmatprep.mubr.msk.f32.mxu1 %vm19337_vm2, %v19336_v52  ;;  %18007 = vmatpush3.msra.mxu1 %v15273_v40 }
 0x935   : > { %18008 = vmatprep.subr.mxu1 %v19336_v52 }
 0x936   : > { %18009 = vmatpush3.msra.mxu1 %v15272_v9 }
 0x937   : > { %18010 = vmatprep.subr.mxu1 %v19336_v52 }
 0x938   : > { %18011 = vmatpush3.msra.mxu1 %v15271_v10 }
 0x939   : > { %18012 = vmatprep.subr.mxu1 %v19336_v52 }
 0x93a   : > { %18013 = vmatpush3.msra.mxu1 %v15270_v55 }
 0x9c1   : > { %v14794_v54 = vpop.f32.mrf.mxu0 }
 0x9c3   : > { %v14728_v8 = vpop.f32.mrf.mxu1  ;;  %v17932_v31 = vpop.f32.mrf.mxu0 }
 0x9c4   : > { %v14795_v62 = vadd.f32 %v14794_v54, %v14728_v8 }
 0x9c5   : > { %v17920_v0 = vpop.f32.mrf.mxu1  ;;  %v14797_v47 = vpop.f32.mrf.mxu0 }
 0x9c7   : > { %v14731_v19 = vpop.f32.mrf.mxu1  ;;  %v17933_v60 = vpop.f32.mrf.mxu0 }
 0x9c9   : > { %v17921_v13 = vpop.f32.mrf.mxu1 }
 0x9d1   : > { %v14950_v63 = vpop.f32.mrf.mxu0 }
 0x9d3   : > { %v14872_v29 = vpop.f32.mrf.mxu1  ;;  %v17956_v4 = vpop.f32.mrf.mxu0 }
 0x9d4   : > { %v14878_v3 = vadd.f32 %v14872_v29, %v14795_v62 }
 0x9d5   : > { %v17944_v2 = vpop.f32.mrf.mxu1  ;;  %v14953_v35 = vpop.f32.mrf.mxu0 }
 0x9d6   : > { %v14956_v11 = vadd.f32 %v14950_v63, %v14878_v3 }
 0x9d7   : > { %v14875_v39 = vpop.f32.mrf.mxu1  ;;  %v17957_v52 = vpop.f32.mrf.mxu0 }
 0x9d9   : > { %v17945_v21 = vpop.f32.mrf.mxu1 }
 0x9e1   : > { %v15106_v46 = vpop.f32.mrf.mxu0 }
 0x9e3   : > { %v15028_v50 = vpop.f32.mrf.mxu1  ;;  %v17980_v1 = vpop.f32.mrf.mxu0 }
 0x9e4   : > { %v15034_v5 = vadd.f32 %v15028_v50, %v14956_v11 }
 0x9e5   : > { %v17968_v42 = vpop.f32.mrf.mxu1  ;;  %v15109_v18 = vpop.f32.mrf.mxu0 }
 0x9e6   : > { %v15112_v20 = vadd.f32 %v15106_v46, %v15034_v5 }
 0x9e7   : > { %v15031_v59 = vpop.f32.mrf.mxu1  ;;  %v17981_v38 = vpop.f32.mrf.mxu0 }
 0x9e9   : > { %v17969_v14 = vpop.f32.mrf.mxu1 }
 0x9f1   : > { %v15262_v12 = vpop.f32.mrf.mxu0 }
 0x9f3   : > { %v15184_v34 = vpop.f32.mrf.mxu1  ;;  %v18004_v27 = vpop.f32.mrf.mxu0 }
 0x9f4   : > { %v15190_v6 = vadd.f32 %v15184_v34, %v15112_v20 }
 0x9f5   : > { %v17992_v43 = vpop.f32.mrf.mxu1  ;;  %v15265_v51 = vpop.f32.mrf.mxu0 }
 0x9f6   : > { %v15268_v45 = vadd.f32 %v15262_v12, %v15190_v6 }
 0x9f7   : > { %v15187_v22 = vpop.f32.mrf.mxu1  ;;  %v18005_v61 = vpop.f32.mrf.mxu0 }
 0x9f8   : > { %v15269_v56 = vmax.f32 %v15268_v45, 0.0 }
 0x9f9   : > { %v17993_v15 = vpop.f32.mrf.mxu1 }
 0x9fa   : > { %18015 = vmatmul.mubr.msk.f32.vlgmr.msra.gmra.mxu1 %vm15274_vm3, %v15269_v56 }
 0xaba   : > { %v15344_v48 = vpop.f32.mrf.mxu1 }
 0xabb   : > { %15349 = vst.msk [vmem:[%s270_s9] sm:$0x1] %vm15348_vm14, %v15344_v48 }
 0xabc   : > { %v18016_v26 = vpop.f32.mrf.mxu1 }
 0xabd   : > { %19244 = shalt.err (!%p19241_p3)
}
 0xabe   : > { %s19245_s21 = scalar_lea.hbm %s24127_s18, 16  ;;  %s19249_s22 = scalar_lea.hbm %s24175_s7, 32 }
 0xabf   : > { %p19246_p4 = scmp.ne.s32.totalorder %s24127_s18, %s19245_s21  ;;  %p19250_p9 = scmp.lt.s32.totalorder %s24127_s18, %s24175_s7 }
 0xac0   : > { %p19251_p10 = scmp.lt.s32.totalorder %s19249_s22, %s19245_s21 }
 0xac1   : > { %p19247_p7 = pnand %p19246_p4, %p19417_p5 }
 0xac2   : > { %p19252_p11 = por %p19251_p10, %p19250_p9 }
 0xac3   : > { %p19248_p8 = pneg %p19247_p7 }
 0xac5   : > { %p19253_p12 = pnand %p19252_p11, %p19248_p8 }
 0xac7   : > { %19256 = shalt.err (!%p19253_p12)
}
 0xac8   : > { %18026 = dma.vmem_to_hbm [thread:$0]  (%p19417_p5), %s24129_s15, 16, %s24127_s18, %s15351_s23  }
 0xac9 PF: > { %p18032_p13 = scmp.ge.s32.totalorder %s19291_s27, 2  ;;  %s15375_s16 = sand.u32 1, %s19279_s24  }
 0xaca   : > { %s15376_s17 = scalar_lea.sflag [#allocation3], %s15375_s16 }
 0xacb   : > { %p18029_p0 = pnand %p18032_p13, %p19421_p6 }
 0xacd   : > { %p18030_p1 = pneg %p18029_p0 }
 0xacf   : > { %19274 = dma.done.wait (%p18030_p1), %s15376_s17, 16  }
 0xad0   : > { %19276 = vsyncadd (%p18030_p1), %s15376_s17, 4294967280  ;;  %p17_p2 = scmp.ge.s32.totalorder %s19404_s30, 4   ;;  %s24190_s24 = smov %s19283_s25 }
 0xad1   : > { %s24191_s25 = smov %s19287_s26  ;;  %s24192_s26 = smov %s19415_s10 }
 0xad2   : > { %s24193_s27 = smov %s19404_s30  ;;  %19 = sbr.rel (!%p17_p2) target bundleno = 3 (0x3), region = 144 }
 0xad7   :  { %15380 = vsyncpa [#allocation3], 1 }
 0xad8   :  { %15382 = vsyncpa [#allocation3 + $0x1], 1 }

</bundles_post_ra>
